<compile_context>
chip_gen: v7x
topology: tpu7x:2x2x1
jax: 0.10.0
libtpu: 0.0.40
codegen_flags: <defaults>
</compile_context>

<pallas_src>
import functools

import jax
import jax.numpy as jnp
from jax import lax
from jax.experimental import pallas as pl
from jax.experimental.pallas import tpu as pltpu


def qrange(nbits):
    return float(-(2 ** (nbits - 1))), float(2 ** (nbits - 1) - 1)


def _pick_tile(dim, target, align):
    """Largest `align`-multiple divisor of `dim` <= target, or the full dim."""
    if dim <= target:
        return dim
    start = (target // align) * align
    for t in range(start, 0, -align):
        if dim % t == 0:
            return t
    # TODO(synk): odd large dims would need pad+mask; never hit for ViT shapes.
    return dim


# ----------------------------------------------------------------------------
# Fused quantized linear:
#   [optional LayerNorm over K] -> [optional LSQ act-quant to integer codes]
#   -> bf16 code matmul on the MXU (f32 accumulation)
#   -> per-column scale+bias epilogue [-> GELU] [-> +residual] [-> output quant]
# ----------------------------------------------------------------------------

def _fused_linear_kernel(x_ref, w_ref, cs_ref, cb_ref, *rest,
                         multi_k, ln, ln_eps, quant, inv_a, zp, qn, qp,
                         gelu, out_q, inv_oa, ozp, oqn, oqp, add_residual):
    pos = 0
    if ln:
        g_ref, b_ref = rest[0], rest[1]
        pos = 2
    if add_residual:
        res_ref = rest[pos]
        pos += 1
    o_ref = rest[pos]
    acc_ref = rest[pos + 1] if multi_k else None

    if ln or quant:
        x = x_ref[...].astype(jnp.float32)
        if ln:
            mu = jnp.mean(x, axis=-1, keepdims=True)
            var = jnp.mean(jnp.square(x - mu), axis=-1, keepdims=True)
            x = (x - mu) * lax.rsqrt(var + ln_eps) * g_ref[...] + b_ref[...]
        if quant:
            x = jnp.round(jnp.clip(x * inv_a + zp, qn, qp))   # integer codes
        x = x.astype(w_ref.dtype)
    else:
        x = x_ref[...].astype(w_ref.dtype)                    # pre-quantized codes

    part = jnp.dot(x, w_ref[...], preferred_element_type=jnp.float32)

    def _epilogue(acc):
        y = acc * cs_ref[...] + cb_ref[...]
        if gelu:
            # TODO(synk): reference nn.GELU uses exact erf; tanh approx used here.
            y = jax.nn.gelu(y, approximate=True)
        if add_residual:
            y = y + res_ref[...].astype(jnp.float32)
        if out_q:
            y = jnp.round(jnp.clip(y * inv_oa + ozp, oqn, oqp))
        o_ref[...] = y.astype(o_ref.dtype)

    if multi_k:
        k = pl.program_id(2)

        @pl.when(k == 0)
        def _init():
            acc_ref[...] = jnp.zeros_like(acc_ref)

        acc_ref[...] += part

        @pl.when(k == pl.num_programs(2) - 1)
        def _fin():
            _epilogue(acc_ref[...])
    else:
        _epilogue(part)


def fused_linear(x, w, col_scale, col_bias, *, act=None, ln=None, gelu=False,
                 out_quant=None, residual=None, out_dtype=jnp.float32):
    """(M,K) x -> (M,N).  act/ln/out_quant params are Python floats (static)."""
    M, K = x.shape
    Kw, N = w.shape
    assert K == Kw
    ln_on = ln is not None
    quant = act is not None

    # Row tiling: full rows for small M, otherwise 256-row tiles with zero padding.
    if M <= 256:
        tm, m_pad = M, M
    else:
        tm = 256
        m_pad = ((M + tm - 1) // tm) * tm
        x = jnp.pad(x, ((0, m_pad - M), (0, 0)))
        if residual is not None:
            residual = jnp.pad(residual, ((0, m_pad - M), (0, 0)))
    tn = _pick_tile(N, 512, 128)
    tk = K if ln_on else _pick_tile(K, 512, 128)
    grid = (m_pad // tm, N // tn, K // tk)
    multi_k = grid[2] > 1

    in_specs = [
        pl.BlockSpec((tm, tk), lambda i, j, k: (i, k)),
        pl.BlockSpec((tk, tn), lambda i, j, k: (k, j)),
        pl.BlockSpec((1, tn), lambda i, j, k: (0, j)),
        pl.BlockSpec((1, tn), lambda i, j, k: (0, j)),
    ]
    args = [x, w,
            jnp.reshape(col_scale, (1, N)).astype(jnp.float32),
            jnp.reshape(col_bias, (1, N)).astype(jnp.float32)]
    if ln_on:
        in_specs += [pl.BlockSpec((1, K), lambda i, j, k: (0, 0)),
                     pl.BlockSpec((1, K), lambda i, j, k: (0, 0))]
        args += [jnp.reshape(ln["g"], (1, K)).astype(jnp.float32),
                 jnp.reshape(ln["b"], (1, K)).astype(jnp.float32)]
    if residual is not None:
        in_specs.append(pl.BlockSpec((tm, tn), lambda i, j, k: (i, j)))
        args.append(residual)

    kernel = functools.partial(
        _fused_linear_kernel,
        multi_k=multi_k,
        ln=ln_on, ln_eps=float(ln["eps"]) if ln_on else 0.0,
        quant=quant,
        inv_a=(1.0 / act["alpha"]) if quant else 1.0,
        zp=act["zp"] if quant else 0.0,
        qn=act["qn"] if quant else 0.0,
        qp=act["qp"] if quant else 0.0,
        gelu=gelu,
        out_q=out_quant is not None,
        inv_oa=(1.0 / out_quant["alpha"]) if out_quant is not None else 1.0,
        ozp=out_quant["zp"] if out_quant is not None else 0.0,
        oqn=out_quant["qn"] if out_quant is not None else 0.0,
        oqp=out_quant["qp"] if out_quant is not None else 0.0,
        add_residual=residual is not None)

    out = pl.pallas_call(
        kernel,
        out_shape=jax.ShapeDtypeStruct((m_pad, N), out_dtype),
        grid=grid,
        in_specs=in_specs,
        out_specs=pl.BlockSpec((tm, tn), lambda i, j, k: (i, j)),
        scratch_shapes=([pltpu.VMEM((tm, tn), jnp.float32)] if multi_k else []),
        compiler_params=pltpu.CompilerParams(
            dimension_semantics=("parallel", "parallel", "arbitrary")),
    )(*args)
    return out[:M] if m_pad != M else out


# ----------------------------------------------------------------------------
# Fused quantized attention core, gridded over (batch, head-group).
# Per group: per-head q/k LayerNorm, q/k/v LSQ quant, QK^T, softmax, attention
# re-quantization, attn@V, proj activation quant -> one lane-dense bf16 code slab.
# ----------------------------------------------------------------------------

def _attention_kernel(q_ref, k_ref, v_ref, gq_ref, bq_ref, gk_ref, bk_ref, o_ref,
                      *, hg, hd, scale, a_qkv, a_q, zp_q, a_k, zp_k, a_v, zp_v,
                      a_at, zp_at, a_pr, zp_pr, qn, qp, ln_eps):
    gq, bq = gq_ref[...], bq_ref[...]          # (1, hd) f32
    gk, bk = gk_ref[...], bk_ref[...]

    inv_a_q, inv_a_k = 1.0 / a_q, 1.0 / a_k
    inv_a_v, inv_a_at, inv_a_pr = 1.0 / a_v, 1.0 / a_at, 1.0 / a_pr
    score_scale = scale * a_q * a_k
    out_scale = a_at * a_v                      # x1_32b * attn_act.alpha * v_act.alpha

    def _ln(t, g, b):
        mu = jnp.mean(t, axis=-1, keepdims=True)
        var = jnp.mean(jnp.square(t - mu), axis=-1, keepdims=True)
        return (t - mu) * lax.rsqrt(var + ln_eps) * g + b

    outs = []
    for h in range(hg):                         # bounded unroll: <= 4 heads / step
        s0, s1 = h * hd, (h + 1) * hd
        q0 = q_ref[0, :, s0:s1].astype(jnp.float32)     # (N, hd)
        k0 = k_ref[0, :, s0:s1].astype(jnp.float32)
        v0 = v_ref[0, :, s0:s1].astype(jnp.float32)

        q2 = jnp.round(jnp.clip(_ln(q0, gq, bq) * inv_a_q + zp_q, qn, qp))
        k2 = jnp.round(jnp.clip(_ln(k0, gk, bk) * inv_a_k + zp_k, qn, qp))
        v2 = jnp.round(jnp.clip(v0 * a_qkv * inv_a_v + zp_v, qn, qp))

        s = lax.dot_general(q2.astype(jnp.bfloat16), k2.astype(jnp.bfloat16),
                            (((1,), (1,)), ((), ())),
                            preferred_element_type=jnp.float32) * score_scale
        m = jnp.max(s, axis=-1, keepdims=True)
        e = jnp.exp(s - m)
        p = e * pl.reciprocal(jnp.sum(e, axis=-1, keepdims=True), approx=True)

        code = jnp.round(jnp.clip(p * inv_a_at + zp_at, qn, qp))     # ActQ codes
        attn_i = jnp.round(code - zp_at)                             # integer attention
        o = jnp.dot(attn_i.astype(jnp.bfloat16), v2.astype(jnp.bfloat16),
                    preferred_element_type=jnp.float32) * out_scale
        # proj activation quant fused here -> next linear consumes codes directly
        outs.append(jnp.round(jnp.clip(o * inv_a_pr + zp_pr, qn, qp)))

    o_blk = outs[0] if hg == 1 else jnp.concatenate(outs, axis=-1)   # (N, hg*hd)
    o_ref[0] = o_blk.astype(o_ref.dtype)                             # lane-dense store


def pl_attention(q_all, k_all, v_all, p_attn, cfg, qn, qp):
    B, N, C = q_all.shape
    H = cfg["num_heads"]
    hd = C // H

    # heads per grid step: aim for a >=128-lane group (or all heads).
    hg = min(H, max(1, 128 // hd))
    while H % hg != 0:
        hg -= 1
    if hg < H and (hg * hd) % 128 != 0:
        hg = H                                   # keep block shapes (8,128)-legal
    G = H // hg
    blk = hg * hd

    kernel = functools.partial(
        _attention_kernel, hg=hg, hd=hd, scale=float(hd) ** -0.5,
        qn=qn, qp=qp, ln_eps=1e-5, **p_attn["scalars"])

    return pl.pallas_call(
        kernel,
        out_shape=jax.ShapeDtypeStruct((B, N, C), jnp.bfloat16),
        grid=(B, G),
        in_specs=[
            pl.BlockSpec((1, N, blk), lambda b, g: (b, 0, g)),
            pl.BlockSpec((1, N, blk), lambda b, g: (b, 0, g)),
            pl.BlockSpec((1, N, blk), lambda b, g: (b, 0, g)),
            pl.BlockSpec((1, hd), lambda b, g: (0, 0)),
            pl.BlockSpec((1, hd), lambda b, g: (0, 0)),
            pl.BlockSpec((1, hd), lambda b, g: (0, 0)),
            pl.BlockSpec((1, hd), lambda b, g: (0, 0)),
        ],
        out_specs=pl.BlockSpec((1, N, blk), lambda b, g: (b, 0, g)),
        compiler_params=pltpu.CompilerParams(
            dimension_semantics=("parallel", "parallel")),
    )(q_all, k_all, v_all,
      p_attn["norm_q_g"], p_attn["norm_q_b"],
      p_attn["norm_k_g"], p_attn["norm_k_b"])


# ----------------------------------------------------------------------------
# Parameter preprocessing (weight fake-quant hoisted, scalars -> Python floats)
# ----------------------------------------------------------------------------

def _weight_codes(w, alpha_w, nbits):
    qn, qp = qrange(nbits)
    return jnp.round(jnp.clip(w / alpha_w[:, None], qn, qp))


def _act_scalars(alpha, zp):
    return float(jnp.mean(alpha)), float(jnp.mean(jnp.round(zp)))


def _prep_linear_q(p, nbits):
    """LinearQ: y = F.linear((code - zp)*a, w_int*alpha_w, b)  (zp folded into bias)."""
    a, zp = _act_scalars(p["act_alpha"], p["act_zp"])
    w_int = _weight_codes(p["w"], p["alpha_w"], nbits)
    rowsum = jnp.sum(w_int, axis=1)
    return dict(wT=w_int.T.astype(jnp.bfloat16),
                col_scale=(a * p["alpha_w"]).astype(jnp.float32),
                col_bias=(p["b"] - a * p["alpha_w"] * zp * rowsum).astype(jnp.float32),
                alpha=a, zp=zp)


def _prep_qkv(p, nbits):
    """LinearQ_v2 qkv with Q_Attention.forward's folded-bias trick (output is /alpha)."""
    a = float(jnp.mean(p["act_alpha"]))
    zp_r = float(jnp.mean(jnp.round(p["act_zp"])))   # used by the quantizer
    zp_raw = float(jnp.mean(p["act_zp"]))            # used by the bias trick
    w_int = _weight_codes(p["w"], p["alpha_w"], nbits)
    rowsum = jnp.sum(w_int, axis=1)
    return dict(wT=w_int.T.astype(jnp.bfloat16),
                col_scale=p["alpha_w"].astype(jnp.float32),
                col_bias=((p["b"] - zp_raw * a * p["alpha_w"] * rowsum) / a
                          ).astype(jnp.float32),
                alpha=a, zp=zp_r)


def _prep_proj(p, nbits):
    """LinearQ_v2 proj: y = proj(codes) * a_pr + bias  (codes keep their zp)."""
    a, zp = _act_scalars(p["act_alpha"], p["act_zp"])
    w_int = _weight_codes(p["w"], p["alpha_w"], nbits)
    return dict(wT=w_int.T.astype(jnp.bfloat16),
                col_scale=(a * p["alpha_w"]).astype(jnp.float32),
                col_bias=p["b"].astype(jnp.float32),
                alpha=a, zp=zp)


def prepare_params(params, cfg):
    nbits = cfg["nbits"]
    E = cfg["embed_dim"]
    H = cfg["num_heads"]
    hd = E // H

    def attn_prep(a):
        a_q, zp_q = _act_scalars(a["q_act_alpha"], a["q_act_zp"])
        a_k, zp_k = _act_scalars(a["k_act_alpha"], a["k_act_zp"])
        a_v, zp_v = _act_scalars(a["v_act_alpha"], a["v_act_zp"])
        a_at, zp_at = _act_scalars(a["attn_act_alpha"], a["attn_act_zp"])
        qkv = _prep_qkv(a["qkv"], nbits)
        proj = _prep_proj(a["proj"], nbits)
        return dict(
            qkv=qkv, proj=proj,
            scalars=dict(a_qkv=qkv["alpha"], a_q=a_q, zp_q=zp_q, a_k=a_k, zp_k=zp_k,
                         a_v=a_v, zp_v=zp_v, a_at=a_at, zp_at=zp_at,
                         a_pr=proj["alpha"], zp_pr=proj["zp"]),
            norm_q_g=jnp.reshape(a["norm_q_g"], (1, hd)).astype(jnp.float32),
            norm_q_b=jnp.reshape(a["norm_q_b"], (1, hd)).astype(jnp.float32),
            norm_k_g=jnp.reshape(a["norm_k_g"], (1, hd)).astype(jnp.float32),
            norm_k_b=jnp.reshape(a["norm_k_b"], (1, hd)).astype(jnp.float32))

    prep = dict(
        # TODO(synk): Q_PatchEmbed definition not provided; unquantized bf16 matmul.
        pe=dict(wT=params["pe_w"].T.astype(jnp.bfloat16),
                col_scale=jnp.ones((E,), jnp.float32),
                col_bias=params["pe_b"].astype(jnp.float32)),
        cls_token=params["cls_token"], dist_token=params["dist_token"],
        pos_embed=params["pos_embed"],
        norm_g=params["norm_g"], norm_b=params["norm_b"],
        head=_prep_linear_q(params["head"], 8),
        head_dist=_prep_linear_q(params["head_dist"], 8),
        blocks=[])
    for blk in params["blocks"]:
        prep["blocks"].append(dict(
            norm1_g=blk["norm1_g"], norm1_b=blk["norm1_b"],
            norm2_g=blk["norm2_g"], norm2_b=blk["norm2_b"],
            attn=attn_prep(blk["attn"]),
            mlp=dict(fc1=_prep_linear_q(blk["mlp"]["fc1"], nbits),
                     fc2=_prep_linear_q(blk["mlp"]["fc2"], nbits))))
    return prep


# ----------------------------------------------------------------------------
# Model blocks
# ----------------------------------------------------------------------------

def q_block(x, p, cfg):
    B, N, C = x.shape
    qn, qp = qrange(cfg["nbits"])
    x2d = x.reshape(B * N, C)

    # attention branch: [norm1 + act-quant + qkv] -> fused attention -> [proj + residual]
    qk = p["attn"]["qkv"]
    qkv = fused_linear(x2d, qk["wT"], qk["col_scale"], qk["col_bias"],
                       ln=dict(g=p["norm1_g"], b=p["norm1_b"], eps=1e-6),
                       act=dict(alpha=qk["alpha"], zp=qk["zp"], qn=qn, qp=qp),
                       out_dtype=jnp.bfloat16)
    q_all = qkv[:, :C].reshape(B, N, C)
    k_all = qkv[:, C:2 * C].reshape(B, N, C)
    v_all = qkv[:, 2 * C:].reshape(B, N, C)
    attn_codes = pl_attention(q_all, k_all, v_all, p["attn"], cfg, qn, qp)

    pr = p["attn"]["proj"]
    x2d = fused_linear(attn_codes.reshape(B * N, C), pr["wT"],
                       pr["col_scale"], pr["col_bias"], residual=x2d)

    # MLP branch: [norm2 + quant + fc1 + GELU + fc2-code quant] -> [fc2 + residual]
    # TODO(synk): Q_Mlp definition not provided; timm-style MLP with LinearQ layers.
    fc1, fc2 = p["mlp"]["fc1"], p["mlp"]["fc2"]
    h1 = fused_linear(x2d, fc1["wT"], fc1["col_scale"], fc1["col_bias"],
                      ln=dict(g=p["norm2_g"], b=p["norm2_b"], eps=1e-6),
                      act=dict(alpha=fc1["alpha"], zp=fc1["zp"], qn=qn, qp=qp),
                      gelu=True,
                      out_quant=dict(alpha=fc2["alpha"], zp=fc2["zp"], qn=qn, qp=qp),
                      out_dtype=jnp.bfloat16)
    x2d = fused_linear(h1, fc2["wT"], fc2["col_scale"], fc2["col_bias"],
                       residual=x2d)
    return x2d.reshape(B, N, C)


def vit_forward(x_nchw, prep, cfg):
    B, Cin, Himg, Wimg = x_nchw.shape
    P = cfg["patch_size"]
    E = cfg["embed_dim"]
    gh, gw = Himg // P, Wimg // P

    # Patch embedding: stride-P conv == matmul over flattened (C, p, p) patches.
    patches = x_nchw.reshape(B, Cin, gh, P, gw, P).transpose(0, 2, 4, 1, 3, 5)
    patches = patches.reshape(B * gh * gw, Cin * P * P).astype(jnp.bfloat16)
    pe = prep["pe"]
    x1 = fused_linear(patches, pe["wT"], pe["col_scale"], pe["col_bias"])
    x1 = x1.reshape(B, gh * gw, E)

    cls = jnp.broadcast_to(prep["cls_token"], (B, 1, E))
    dist = jnp.broadcast_to(prep["dist_token"], (B, 1, E))
    x = jnp.concatenate([cls, dist, x1], axis=1) + prep["pos_embed"]  # pos_drop = id

    for blk in prep["blocks"]:
        x = q_block(x, blk, cfg)

    # final LayerNorm fused into the 8-bit heads; only cls/dist rows are needed.
    qn8, qp8 = qrange(8)
    final_ln = dict(g=prep["norm_g"], b=prep["norm_b"], eps=1e-6)
    hp, hdp = prep["head"], prep["head_dist"]
    out = fused_linear(x[:, 0, :], hp["wT"], hp["col_scale"], hp["col_bias"],
                       ln=final_ln,
                       act=dict(alpha=hp["alpha"], zp=hp["zp"], qn=qn8, qp=qp8))
    out_d = fused_linear(x[:, 1, :], hdp["wT"], hdp["col_scale"], hdp["col_bias"],
                         ln=final_ln,
                         act=dict(alpha=hdp["alpha"], zp=hdp["zp"], qn=qn8, qp=qp8))
    return (out + out_d) / 2.0


# ----------------------------------------------------------------------------
# Deterministic synthetic parameter initialization
# ----------------------------------------------------------------------------

def init_params(key, cfg):
    E = cfg["embed_dim"]
    H = cfg["num_heads"]
    hd = E // H
    P = cfg["patch_size"]
    Cin = cfg["in_chans"]
    ncls = cfg["num_classes"]
    depth = cfg["depth"]
    hidden = int(E * cfg["mlp_ratio"])
    n_patches = (cfg["img_size"] // P) ** 2

    keys = iter(jax.random.split(key, 2048))

    def nrm(shape, std=0.02):
        return std * jax.random.normal(next(keys), shape, jnp.float32)

    def alpha_init(shape):
        return 0.1 + 0.02 * jax.random.uniform(next(keys), shape, jnp.float32)

    def zp_init(shape):
        return 0.05 * jax.random.normal(next(keys), shape, jnp.float32)

    def linear_q_params(in_f, out_f):
        return dict(w=nrm((out_f, in_f)), b=nrm((out_f,), 0.01),
                    alpha_w=alpha_init((out_f,)),
                    act_alpha=alpha_init((in_f,)), act_zp=zp_init((in_f,)))

    params = dict(
        pe_w=nrm((E, Cin * P * P)),
        pe_b=nrm((E,), 0.01),
        cls_token=nrm((1, 1, E)),
        dist_token=nrm((1, 1, E)),
        pos_embed=nrm((1, n_patches + 2, E)),
        norm_g=jnp.ones((E,), jnp.float32),
        norm_b=jnp.zeros((E,), jnp.float32),
        head=linear_q_params(E, ncls),
        head_dist=linear_q_params(E, ncls),
        blocks=[])
    for _ in range(depth):
        params["blocks"].append(dict(
            norm1_g=jnp.ones((E,), jnp.float32), norm1_b=jnp.zeros((E,), jnp.float32),
            norm2_g=jnp.ones((E,), jnp.float32), norm2_b=jnp.zeros((E,), jnp.float32),
            attn=dict(
                qkv=linear_q_params(E, 3 * E),
                proj=linear_q_params(E, E),
                q_act_alpha=alpha_init((H,)), q_act_zp=zp_init((H,)),
                k_act_alpha=alpha_init((H,)), k_act_zp=zp_init((H,)),
                v_act_alpha=alpha_init((H,)), v_act_zp=zp_init((H,)),
                attn_act_alpha=alpha_init((H,)), attn_act_zp=zp_init((H,)),
                norm_q_g=jnp.ones((hd,), jnp.float32),
                norm_q_b=jnp.zeros((hd,), jnp.float32),
                norm_k_g=jnp.ones((hd,), jnp.float32),
                norm_k_b=jnp.zeros((hd,), jnp.float32)),
            mlp=dict(fc1=linear_q_params(E, hidden),
                     fc2=linear_q_params(hidden, E))))
    return params


# ----------------------------------------------------------------------------

if __name__ == "__main__":
    cfg = dict(
        nbits=4,
        img_size=32,
        patch_size=8,
        in_chans=3,
        num_classes=10,
        embed_dim=64,
        depth=2,
        num_heads=4,
        mlp_ratio=4.0,
    )

    key = jax.random.PRNGKey(0)
    pkey, xkey = jax.random.split(key)
    params = init_params(pkey, cfg)
    prep = prepare_params(params, cfg)     # weight fake-quant + scalar folding hoisted
    x = jax.random.normal(xkey, (2, cfg["in_chans"], cfg["img_size"], cfg["img_size"]),
                          jnp.float32)

    fwd = jax.jit(lambda xx: vit_forward(xx, prep, cfg))
    out = jax.block_until_ready(fwd(x))

    assert out.shape == (2, cfg["num_classes"]), out.shape
    assert not bool(jnp.any(jnp.isnan(out)))
    print("KERNEL_OK")
</pallas_src>

<mosaic_0001>
module attributes {stable_mosaic.version = 11 : i64} {
  func.func @_fused_linear_kernel(%arg0: i32, %arg1: i32, %arg2: i32, %arg3: memref<32x192xbf16, #tpu.memory_space<vmem>>, %arg4: memref<192x64xbf16, #tpu.memory_space<vmem>>, %arg5: memref<1x64xf32, #tpu.memory_space<vmem>>, %arg6: memref<1x64xf32, #tpu.memory_space<vmem>>, %arg7: memref<32x64xf32, #tpu.memory_space<vmem>>) attributes {dimension_semantics = [#tpu.dimension_semantics<parallel>, #tpu.dimension_semantics<parallel>, #tpu.dimension_semantics<arbitrary>], iteration_bounds = array<i64: 1, 1, 1>, scalar_prefetch = 0 : i64, scratch_operands = 0 : i64, tpu.core_type = #tpu.core_type<tc>, window_params = [{transform_indices = @transform_0, window_bounds = array<i64: 32, 192>}, {transform_indices = @transform_1, window_bounds = array<i64: 192, 64>}, {transform_indices = @transform_2, window_bounds = array<i64: 1, 64>}, {transform_indices = @transform_3, window_bounds = array<i64: 1, 64>}, {transform_indices = @transform_4, window_bounds = array<i64: 32, 64>}]} {
    %c0 = arith.constant 0 : index
    %c0_0 = arith.constant 0 : index
    %0 = vector.load %arg3[%c0, %c0_0] : memref<32x192xbf16, #tpu.memory_space<vmem>>, vector<32x192xbf16>
    %c0_1 = arith.constant 0 : index
    %c0_2 = arith.constant 0 : index
    %1 = vector.load %arg4[%c0_1, %c0_2] : memref<192x64xbf16, #tpu.memory_space<vmem>>, vector<192x64xbf16>
    %cst = arith.constant dense<0.000000e+00> : vector<32x64xf32>
    %2 = tpu.matmul %0, %1, %cst {dimension_numbers = #tpu.dot_dimension_numbers<[1], [0], [0], [1], [0, 0, 1, 1], [], []>} : vector<32x192xbf16>, vector<192x64xbf16>, vector<32x64xf32> -> vector<32x64xf32>
    %c0_3 = arith.constant 0 : index
    %c0_4 = arith.constant 0 : index
    %3 = vector.load %arg5[%c0_3, %c0_4] : memref<1x64xf32, #tpu.memory_space<vmem>>, vector<1x64xf32>
    %4 = vector.broadcast %3 : vector<1x64xf32> to vector<32x64xf32>
    %5 = arith.mulf %2, %4 : vector<32x64xf32>
    %c0_5 = arith.constant 0 : index
    %c0_6 = arith.constant 0 : index
    %6 = vector.load %arg6[%c0_5, %c0_6] : memref<1x64xf32, #tpu.memory_space<vmem>>, vector<1x64xf32>
    %7 = vector.broadcast %6 : vector<1x64xf32> to vector<32x64xf32>
    %8 = arith.addf %5, %7 : vector<32x64xf32>
    %c0_7 = arith.constant 0 : index
    %c0_8 = arith.constant 0 : index
    %9 = vector.load %arg7[%c0_7, %c0_8] : memref<32x64xf32, #tpu.memory_space<vmem>>, vector<32x64xf32>
    tpu.vector_store %arg7[%c0_7, %c0_8], %8 {strides = array<i32>} : memref<32x64xf32, #tpu.memory_space<vmem>>, vector<32x64xf32>,
    return
  }
  func.func @transform_0(%arg0: i32, %arg1: i32, %arg2: i32) -> (i32, i32) {
    %c0_i32 = arith.constant 0 : i32
    return %arg0, %arg2 : i32, i32
  }
  func.func @transform_1(%arg0: i32, %arg1: i32, %arg2: i32) -> (i32, i32) {
    %c0_i32 = arith.constant 0 : i32
    return %arg2, %arg1 : i32, i32
  }
  func.func @transform_2(%arg0: i32, %arg1: i32, %arg2: i32) -> (i32, i32) {
    %c0_i32 = arith.constant 0 : i32
    %c0_i32_0 = arith.constant 0 : i32
    return %c0_i32, %arg1 : i32, i32
  }
  func.func @transform_3(%arg0: i32, %arg1: i32, %arg2: i32) -> (i32, i32) {
    %c0_i32 = arith.constant 0 : i32
    %c0_i32_0 = arith.constant 0 : i32
    return %c0_i32, %arg1 : i32, i32
  }
  func.func @transform_4(%arg0: i32, %arg1: i32, %arg2: i32) -> (i32, i32) {
    %c0_i32 = arith.constant 0 : i32
    return %arg0, %arg1 : i32, i32
  }
}

module attributes {stable_mosaic.version = 11 : i64} {
  func.func @_fused_linear_kernel(%arg0: i32, %arg1: i32, %arg2: i32, %arg3: memref<36x64xf32, #tpu.memory_space<vmem>>, %arg4: memref<64x192xbf16, #tpu.memory_space<vmem>>, %arg5: memref<1x192xf32, #tpu.memory_space<vmem>>, %arg6: memref<1x192xf32, #tpu.memory_space<vmem>>, %arg7: memref<1x64xf32, #tpu.memory_space<vmem>>, %arg8: memref<1x64xf32, #tpu.memory_space<vmem>>, %arg9: memref<36x192xbf16, #tpu.memory_space<vmem>>) attributes {dimension_semantics = [#tpu.dimension_semantics<parallel>, #tpu.dimension_semantics<parallel>, #tpu.dimension_semantics<arbitrary>], iteration_bounds = array<i64: 1, 1, 1>, scalar_prefetch = 0 : i64, scratch_operands = 0 : i64, tpu.core_type = #tpu.core_type<tc>, window_params = [{transform_indices = @transform_0, window_bounds = array<i64: 36, 64>}, {transform_indices = @transform_1, window_bounds = array<i64: 64, 192>}, {transform_indices = @transform_2, window_bounds = array<i64: 1, 192>}, {transform_indices = @transform_3, window_bounds = array<i64: 1, 192>}, {pipeline_mode = #tpu.pipeline_mode<synchronous>, transform_indices = @transform_4, window_bounds = array<i64: 1, 64>}, {pipeline_mode = #tpu.pipeline_mode<synchronous>, transform_indices = @transform_5, window_bounds = array<i64: 1, 64>}, {transform_indices = @transform_6, window_bounds = array<i64: 36, 192>}]} {
    %c0 = arith.constant 0 : index
    %c0_0 = arith.constant 0 : index
    %0 = vector.load %arg3[%c0, %c0_0] : memref<36x64xf32, #tpu.memory_space<vmem>>, vector<36x64xf32>
    %cst = arith.constant dense<0.000000e+00> : vector<36xf32>
    %1 = vector.multi_reduction <add>, %0, %cst [1] : vector<36x64xf32> to vector<36xf32>
    %2 = vector.shape_cast %1 : vector<36xf32> to vector<36x1xf32>
    %cst_1 = arith.constant 6.400000e+01 : f32
    %3 = vector.broadcast %cst_1 : f32 to vector<36x1xf32>
    %4 = arith.divf %2, %3 : vector<36x1xf32>
    %5 = vector.broadcast %4 : vector<36x1xf32> to vector<36x64xf32>
    %6 = arith.subf %0, %5 : vector<36x64xf32>
    %7 = arith.mulf %6, %6 : vector<36x64xf32>
    %cst_2 = arith.constant dense<0.000000e+00> : vector<36xf32>
    %8 = vector.multi_reduction <add>, %7, %cst_2 [1] : vector<36x64xf32> to vector<36xf32>
    %9 = vector.shape_cast %8 : vector<36xf32> to vector<36x1xf32>
    %cst_3 = arith.constant 6.400000e+01 : f32
    %10 = vector.broadcast %cst_3 : f32 to vector<36x1xf32>
    %11 = arith.divf %9, %10 : vector<36x1xf32>
    %12 = vector.broadcast %4 : vector<36x1xf32> to vector<36x64xf32>
    %13 = arith.subf %0, %12 : vector<36x64xf32>
    %cst_4 = arith.constant 9.99999997E-7 : f32
    %14 = vector.broadcast %cst_4 : f32 to vector<36x1xf32>
    %15 = arith.addf %11, %14 : vector<36x1xf32>
    %16 = math.rsqrt %15 : vector<36x1xf32>
    %17 = vector.broadcast %16 : vector<36x1xf32> to vector<36x64xf32>
    %18 = arith.mulf %13, %17 : vector<36x64xf32>
    %c0_5 = arith.constant 0 : index
    %c0_6 = arith.constant 0 : index
    %19 = vector.load %arg7[%c0_5, %c0_6] : memref<1x64xf32, #tpu.memory_space<vmem>>, vector<1x64xf32>
    %20 = vector.broadcast %19 : vector<1x64xf32> to vector<36x64xf32>
    %21 = arith.mulf %18, %20 : vector<36x64xf32>
    %c0_7 = arith.constant 0 : index
    %c0_8 = arith.constant 0 : index
    %22 = vector.load %arg8[%c0_7, %c0_8] : memref<1x64xf32, #tpu.memory_space<vmem>>, vector<1x64xf32>
    %23 = vector.broadcast %22 : vector<1x64xf32> to vector<36x64xf32>
    %24 = arith.addf %21, %23 : vector<36x64xf32>
    %cst_9 = arith.constant 9.0774908 : f32
    %25 = vector.broadcast %cst_9 : f32 to vector<36x64xf32>
    %26 = arith.mulf %24, %25 : vector<36x64xf32>
    %cst_10 = arith.constant 0.000000e+00 : f32
    %27 = vector.broadcast %cst_10 : f32 to vector<36x64xf32>
    %28 = arith.addf %26, %27 : vector<36x64xf32>
    %cst_11 = arith.constant -8.000000e+00 : f32
    %cst_12 = arith.constant 7.000000e+00 : f32
    %29 = vector.broadcast %cst_11 : f32 to vector<36x64xf32>
    %30 = arith.maximumf %29, %28 : vector<36x64xf32>
    %31 = vector.broadcast %cst_12 : f32 to vector<36x64xf32>
    %32 = arith.minimumf %31, %30 : vector<36x64xf32>
    %33 = math.roundeven %32 : vector<36x64xf32>
    %34 = arith.truncf %33 : vector<36x64xf32> to vector<36x64xbf16>
    %c0_13 = arith.constant 0 : index
    %c0_14 = arith.constant 0 : index
    %35 = vector.load %arg4[%c0_13, %c0_14] : memref<64x192xbf16, #tpu.memory_space<vmem>>, vector<64x192xbf16>
    %cst_15 = arith.constant dense<0.000000e+00> : vector<36x192xf32>
    %36 = tpu.matmul %34, %35, %cst_15 {dimension_numbers = #tpu.dot_dimension_numbers<[1], [0], [0], [1], [0, 0, 1, 1], [], []>} : vector<36x64xbf16>, vector<64x192xbf16>, vector<36x192xf32> -> vector<36x192xf32>
    %c0_16 = arith.constant 0 : index
    %c0_17 = arith.constant 0 : index
    %37 = vector.load %arg5[%c0_16, %c0_17] : memref<1x192xf32, #tpu.memory_space<vmem>>, vector<1x192xf32>
    %38 = vector.broadcast %37 : vector<1x192xf32> to vector<36x192xf32>
    %39 = arith.mulf %36, %38 : vector<36x192xf32>
    %c0_18 = arith.constant 0 : index
    %c0_19 = arith.constant 0 : index
    %40 = vector.load %arg6[%c0_18, %c0_19] : memref<1x192xf32, #tpu.memory_space<vmem>>, vector<1x192xf32>
    %41 = vector.broadcast %40 : vector<1x192xf32> to vector<36x192xf32>
    %42 = arith.addf %39, %41 : vector<36x192xf32>
    %43 = arith.truncf %42 : vector<36x192xf32> to vector<36x192xbf16>
    %c0_20 = arith.constant 0 : index
    %c0_21 = arith.constant 0 : index
    %44 = vector.load %arg9[%c0_20, %c0_21] : memref<36x192xbf16, #tpu.memory_space<vmem>>, vector<36x192xbf16>
    tpu.vector_store %arg9[%c0_20, %c0_21], %43 {strides = array<i32>} : memref<36x192xbf16, #tpu.memory_space<vmem>>, vector<36x192xbf16>,
    return
  }
  func.func @transform_0(%arg0: i32, %arg1: i32, %arg2: i32) -> (i32, i32) {
    %c0_i32 = arith.constant 0 : i32
    return %arg0, %arg2 : i32, i32
  }
  func.func @transform_1(%arg0: i32, %arg1: i32, %arg2: i32) -> (i32, i32) {
    %c0_i32 = arith.constant 0 : i32
    return %arg2, %arg1 : i32, i32
  }
  func.func @transform_2(%arg0: i32, %arg1: i32, %arg2: i32) -> (i32, i32) {
    %c0_i32 = arith.constant 0 : i32
    %c0_i32_0 = arith.constant 0 : i32
    return %c0_i32, %arg1 : i32, i32
  }
  func.func @transform_3(%arg0: i32, %arg1: i32, %arg2: i32) -> (i32, i32) {
    %c0_i32 = arith.constant 0 : i32
    %c0_i32_0 = arith.constant 0 : i32
    return %c0_i32, %arg1 : i32, i32
  }
  func.func @transform_4(%arg0: i32, %arg1: i32, %arg2: i32) -> (i32, i32) {
    %c0_i32 = arith.constant 0 : i32
    %c0_i32_0 = arith.constant 0 : i32
    %c0_i32_1 = arith.constant 0 : i32
    return %c0_i32, %c0_i32_0 : i32, i32
  }
  func.func @transform_5(%arg0: i32, %arg1: i32, %arg2: i32) -> (i32, i32) {
    %c0_i32 = arith.constant 0 : i32
    %c0_i32_0 = arith.constant 0 : i32
    %c0_i32_1 = arith.constant 0 : i32
    return %c0_i32, %c0_i32_0 : i32, i32
  }
  func.func @transform_6(%arg0: i32, %arg1: i32, %arg2: i32) -> (i32, i32) {
    %c0_i32 = arith.constant 0 : i32
    return %arg0, %arg1 : i32, i32
  }
}

module attributes {stable_mosaic.version = 11 : i64} {
  func.func @_attention_kernel(%arg0: i32, %arg1: i32, %arg2: memref<1x18x64xbf16, #tpu.memory_space<vmem>>, %arg3: memref<1x18x64xbf16, #tpu.memory_space<vmem>>, %arg4: memref<1x18x64xbf16, #tpu.memory_space<vmem>>, %arg5: memref<1x16xf32, #tpu.memory_space<vmem>>, %arg6: memref<1x16xf32, #tpu.memory_space<vmem>>, %arg7: memref<1x16xf32, #tpu.memory_space<vmem>>, %arg8: memref<1x16xf32, #tpu.memory_space<vmem>>, %arg9: memref<1x18x64xbf16, #tpu.memory_space<vmem>>) attributes {dimension_semantics = [#tpu.dimension_semantics<parallel>, #tpu.dimension_semantics<parallel>], iteration_bounds = array<i64: 2, 1>, scalar_prefetch = 0 : i64, scratch_operands = 0 : i64, tpu.core_type = #tpu.core_type<tc>, window_params = [{transform_indices = @transform_0, window_bounds = array<i64: 1, 18, 64>}, {transform_indices = @transform_1, window_bounds = array<i64: 1, 18, 64>}, {transform_indices = @transform_2, window_bounds = array<i64: 1, 18, 64>}, {pipeline_mode = #tpu.pipeline_mode<synchronous>, transform_indices = @transform_3, window_bounds = array<i64: 1, 16>}, {pipeline_mode = #tpu.pipeline_mode<synchronous>, transform_indices = @transform_4, window_bounds = array<i64: 1, 16>}, {pipeline_mode = #tpu.pipeline_mode<synchronous>, transform_indices = @transform_5, window_bounds = array<i64: 1, 16>}, {pipeline_mode = #tpu.pipeline_mode<synchronous>, transform_indices = @transform_6, window_bounds = array<i64: 1, 16>}, {transform_indices = @transform_7, window_bounds = array<i64: 1, 18, 64>}]} {
    %c0 = arith.constant 0 : index
    %c0_0 = arith.constant 0 : index
    %0 = vector.load %arg5[%c0, %c0_0] : memref<1x16xf32, #tpu.memory_space<vmem>>, vector<1x16xf32>
    %c0_1 = arith.constant 0 : index
    %c0_2 = arith.constant 0 : index
    %1 = vector.load %arg6[%c0_1, %c0_2] : memref<1x16xf32, #tpu.memory_space<vmem>>, vector<1x16xf32>
    %c0_3 = arith.constant 0 : index
    %c0_4 = arith.constant 0 : index
    %2 = vector.load %arg7[%c0_3, %c0_4] : memref<1x16xf32, #tpu.memory_space<vmem>>, vector<1x16xf32>
    %c0_5 = arith.constant 0 : index
    %c0_6 = arith.constant 0 : index
    %3 = vector.load %arg8[%c0_5, %c0_6] : memref<1x16xf32, #tpu.memory_space<vmem>>, vector<1x16xf32>
    %c0_7 = arith.constant 0 : index
    %c0_8 = arith.constant 0 : index
    %c0_9 = arith.constant 0 : index
    %4 = vector.load %arg2[%c0_7, %c0_8, %c0_9] : memref<1x18x64xbf16, #tpu.memory_space<vmem>>, vector<1x18x16xbf16>
    %5 = vector.shape_cast %4 : vector<1x18x16xbf16> to vector<18x16xbf16>
    %6 = arith.extf %5 : vector<18x16xbf16> to vector<18x16xf32>
    %c0_10 = arith.constant 0 : index
    %c0_11 = arith.constant 0 : index
    %c0_12 = arith.constant 0 : index
    %7 = vector.load %arg3[%c0_10, %c0_11, %c0_12] : memref<1x18x64xbf16, #tpu.memory_space<vmem>>, vector<1x18x16xbf16>
    %8 = vector.shape_cast %7 : vector<1x18x16xbf16> to vector<18x16xbf16>
    %9 = arith.extf %8 : vector<18x16xbf16> to vector<18x16xf32>
    %c0_13 = arith.constant 0 : index
    %c0_14 = arith.constant 0 : index
    %c0_15 = arith.constant 0 : index
    %10 = vector.load %arg4[%c0_13, %c0_14, %c0_15] : memref<1x18x64xbf16, #tpu.memory_space<vmem>>, vector<1x18x16xbf16>
    %11 = vector.shape_cast %10 : vector<1x18x16xbf16> to vector<18x16xbf16>
    %12 = arith.extf %11 : vector<18x16xbf16> to vector<18x16xf32>
    %cst = arith.constant dense<0.000000e+00> : vector<18xf32>
    %13 = vector.multi_reduction <add>, %6, %cst [1] : vector<18x16xf32> to vector<18xf32>
    %14 = vector.shape_cast %13 : vector<18xf32> to vector<18x1xf32>
    %cst_16 = arith.constant 1.600000e+01 : f32
    %15 = vector.broadcast %cst_16 : f32 to vector<18x1xf32>
    %16 = arith.divf %14, %15 : vector<18x1xf32>
    %17 = vector.broadcast %16 : vector<18x1xf32> to vector<18x16xf32>
    %18 = arith.subf %6, %17 : vector<18x16xf32>
    %19 = arith.mulf %18, %18 : vector<18x16xf32>
    %cst_17 = arith.constant dense<0.000000e+00> : vector<18xf32>
    %20 = vector.multi_reduction <add>, %19, %cst_17 [1] : vector<18x16xf32> to vector<18xf32>
    %21 = vector.shape_cast %20 : vector<18xf32> to vector<18x1xf32>
    %cst_18 = arith.constant 1.600000e+01 : f32
    %22 = vector.broadcast %cst_18 : f32 to vector<18x1xf32>
    %23 = arith.divf %21, %22 : vector<18x1xf32>
    %24 = vector.broadcast %16 : vector<18x1xf32> to vector<18x16xf32>
    %25 = arith.subf %6, %24 : vector<18x16xf32>
    %cst_19 = arith.constant 9.99999974E-6 : f32
    %26 = vector.broadcast %cst_19 : f32 to vector<18x1xf32>
    %27 = arith.addf %23, %26 : vector<18x1xf32>
    %28 = math.rsqrt %27 : vector<18x1xf32>
    %29 = vector.broadcast %28 : vector<18x1xf32> to vector<18x16xf32>
    %30 = arith.mulf %25, %29 : vector<18x16xf32>
    %31 = vector.broadcast %0 : vector<1x16xf32> to vector<18x16xf32>
    %32 = arith.mulf %30, %31 : vector<18x16xf32>
    %33 = vector.broadcast %1 : vector<1x16xf32> to vector<18x16xf32>
    %34 = arith.addf %32, %33 : vector<18x16xf32>
    %cst_20 = arith.constant 9.15412425 : f32
    %35 = vector.broadcast %cst_20 : f32 to vector<18x16xf32>
    %36 = arith.mulf %34, %35 : vector<18x16xf32>
    %cst_21 = arith.constant 0.000000e+00 : f32
    %37 = vector.broadcast %cst_21 : f32 to vector<18x16xf32>
    %38 = arith.addf %36, %37 : vector<18x16xf32>
    %cst_22 = arith.constant -8.000000e+00 : f32
    %cst_23 = arith.constant 7.000000e+00 : f32
    %39 = vector.broadcast %cst_22 : f32 to vector<18x16xf32>
    %40 = arith.maximumf %39, %38 : vector<18x16xf32>
    %41 = vector.broadcast %cst_23 : f32 to vector<18x16xf32>
    %42 = arith.minimumf %41, %40 : vector<18x16xf32>
    %43 = math.roundeven %42 : vector<18x16xf32>
    %cst_24 = arith.constant dense<0.000000e+00> : vector<18xf32>
    %44 = vector.multi_reduction <add>, %9, %cst_24 [1] : vector<18x16xf32> to vector<18xf32>
    %45 = vector.shape_cast %44 : vector<18xf32> to vector<18x1xf32>
    %cst_25 = arith.constant 1.600000e+01 : f32
    %46 = vector.broadcast %cst_25 : f32 to vector<18x1xf32>
    %47 = arith.divf %45, %46 : vector<18x1xf32>
    %48 = vector.broadcast %47 : vector<18x1xf32> to vector<18x16xf32>
    %49 = arith.subf %9, %48 : vector<18x16xf32>
    %50 = arith.mulf %49, %49 : vector<18x16xf32>
    %cst_26 = arith.constant dense<0.000000e+00> : vector<18xf32>
    %51 = vector.multi_reduction <add>, %50, %cst_26 [1] : vector<18x16xf32> to vector<18xf32>
    %52 = vector.shape_cast %51 : vector<18xf32> to vector<18x1xf32>
    %cst_27 = arith.constant 1.600000e+01 : f32
    %53 = vector.broadcast %cst_27 : f32 to vector<18x1xf32>
    %54 = arith.divf %52, %53 : vector<18x1xf32>
    %55 = vector.broadcast %47 : vector<18x1xf32> to vector<18x16xf32>
    %56 = arith.subf %9, %55 : vector<18x16xf32>
    %cst_28 = arith.constant 9.99999974E-6 : f32
    %57 = vector.broadcast %cst_28 : f32 to vector<18x1xf32>
    %58 = arith.addf %54, %57 : vector<18x1xf32>
    %59 = math.rsqrt %58 : vector<18x1xf32>
    %60 = vector.broadcast %59 : vector<18x1xf32> to vector<18x16xf32>
    %61 = arith.mulf %56, %60 : vector<18x16xf32>
    %62 = vector.broadcast %2 : vector<1x16xf32> to vector<18x16xf32>
    %63 = arith.mulf %61, %62 : vector<18x16xf32>
    %64 = vector.broadcast %3 : vector<1x16xf32> to vector<18x16xf32>
    %65 = arith.addf %63, %64 : vector<18x16xf32>
    %cst_29 = arith.constant 8.98018836 : f32
    %66 = vector.broadcast %cst_29 : f32 to vector<18x16xf32>
    %67 = arith.mulf %65, %66 : vector<18x16xf32>
    %cst_30 = arith.constant 0.000000e+00 : f32
    %68 = vector.broadcast %cst_30 : f32 to vector<18x16xf32>
    %69 = arith.addf %67, %68 : vector<18x16xf32>
    %cst_31 = arith.constant -8.000000e+00 : f32
    %cst_32 = arith.constant 7.000000e+00 : f32
    %70 = vector.broadcast %cst_31 : f32 to vector<18x16xf32>
    %71 = arith.maximumf %70, %69 : vector<18x16xf32>
    %72 = vector.broadcast %cst_32 : f32 to vector<18x16xf32>
    %73 = arith.minimumf %72, %71 : vector<18x16xf32>
    %74 = math.roundeven %73 : vector<18x16xf32>
    %cst_33 = arith.constant 0.110162601 : f32
    %75 = vector.broadcast %cst_33 : f32 to vector<18x16xf32>
    %76 = arith.mulf %12, %75 : vector<18x16xf32>
    %cst_34 = arith.constant 8.95572281 : f32
    %77 = vector.broadcast %cst_34 : f32 to vector<18x16xf32>
    %78 = arith.mulf %76, %77 : vector<18x16xf32>
    %cst_35 = arith.constant 0.000000e+00 : f32
    %79 = vector.broadcast %cst_35 : f32 to vector<18x16xf32>
    %80 = arith.addf %78, %79 : vector<18x16xf32>
    %cst_36 = arith.constant -8.000000e+00 : f32
    %cst_37 = arith.constant 7.000000e+00 : f32
    %81 = vector.broadcast %cst_36 : f32 to vector<18x16xf32>
    %82 = arith.maximumf %81, %80 : vector<18x16xf32>
    %83 = vector.broadcast %cst_37 : f32 to vector<18x16xf32>
    %84 = arith.minimumf %83, %82 : vector<18x16xf32>
    %85 = math.roundeven %84 : vector<18x16xf32>
    %86 = arith.truncf %43 : vector<18x16xf32> to vector<18x16xbf16>
    %87 = arith.truncf %74 : vector<18x16xf32> to vector<18x16xbf16>
    %cst_38 = arith.constant dense<0.000000e+00> : vector<18x18xf32>
    %88 = tpu.matmul %86, %87, %cst_38 {dimension_numbers = #tpu.dot_dimension_numbers<[1], [1], [0], [0], [0, 0, 1, 0], [], []>} : vector<18x16xbf16>, vector<18x16xbf16>, vector<18x18xf32> -> vector<18x18xf32>
    %cst_39 = arith.constant 0.00304114958 : f32
    %89 = vector.broadcast %cst_39 : f32 to vector<18x18xf32>
    %90 = arith.mulf %88, %89 : vector<18x18xf32>
    %cst_40 = arith.constant dense<0xFF800000> : vector<18xf32>
    %91 = vector.multi_reduction <maximumf>, %90, %cst_40 [1] : vector<18x18xf32> to vector<18xf32>
    %92 = vector.shape_cast %91 : vector<18xf32> to vector<18x1xf32>
    %93 = vector.broadcast %92 : vector<18x1xf32> to vector<18x18xf32>
    %94 = arith.subf %90, %93 : vector<18x18xf32>
    %95 = math.exp %94 : vector<18x18xf32>
    %cst_41 = arith.constant dense<0.000000e+00> : vector<18xf32>
    %96 = vector.multi_reduction <add>, %95, %cst_41 [1] : vector<18x18xf32> to vector<18xf32>
    %97 = vector.shape_cast %96 : vector<18xf32> to vector<18x1xf32>
    %98 = tpu.reciprocal %97 {approx = true} : vector<18x1xf32> -> vector<18x1xf32>
    %99 = vector.broadcast %98 : vector<18x1xf32> to vector<18x18xf32>
    %100 = arith.mulf %95, %99 : vector<18x18xf32>
    %cst_42 = arith.constant 9.1711378 : f32
    %101 = vector.broadcast %cst_42 : f32 to vector<18x18xf32>
    %102 = arith.mulf %100, %101 : vector<18x18xf32>
    %cst_43 = arith.constant 0.000000e+00 : f32
    %103 = vector.broadcast %cst_43 : f32 to vector<18x18xf32>
    %104 = arith.addf %102, %103 : vector<18x18xf32>
    %cst_44 = arith.constant -8.000000e+00 : f32
    %cst_45 = arith.constant 7.000000e+00 : f32
    %105 = vector.broadcast %cst_44 : f32 to vector<18x18xf32>
    %106 = arith.maximumf %105, %104 : vector<18x18xf32>
    %107 = vector.broadcast %cst_45 : f32 to vector<18x18xf32>
    %108 = arith.minimumf %107, %106 : vector<18x18xf32>
    %109 = math.roundeven %108 : vector<18x18xf32>
    %cst_46 = arith.constant 0.000000e+00 : f32
    %110 = vector.broadcast %cst_46 : f32 to vector<18x18xf32>
    %111 = arith.subf %109, %110 : vector<18x18xf32>
    %112 = math.roundeven %111 : vector<18x18xf32>
    %113 = arith.truncf %112 : vector<18x18xf32> to vector<18x18xbf16>
    %114 = arith.truncf %85 : vector<18x16xf32> to vector<18x16xbf16>
    %cst_47 = arith.constant dense<0.000000e+00> : vector<18x16xf32>
    %115 = tpu.matmul %113, %114, %cst_47 {dimension_numbers = #tpu.dot_dimension_numbers<[1], [0], [0], [1], [0, 0, 1, 1], [], []>} : vector<18x18xbf16>, vector<18x16xbf16>, vector<18x16xf32> -> vector<18x16xf32>
    %cst_48 = arith.constant 0.0121752005 : f32
    %116 = vector.broadcast %cst_48 : f32 to vector<18x16xf32>
    %117 = arith.mulf %115, %116 : vector<18x16xf32>
    %cst_49 = arith.constant 9.07021808 : f32
    %118 = vector.broadcast %cst_49 : f32 to vector<18x16xf32>
    %119 = arith.mulf %117, %118 : vector<18x16xf32>
    %cst_50 = arith.constant 0.000000e+00 : f32
    %120 = vector.broadcast %cst_50 : f32 to vector<18x16xf32>
    %121 = arith.addf %119, %120 : vector<18x16xf32>
    %cst_51 = arith.constant -8.000000e+00 : f32
    %cst_52 = arith.constant 7.000000e+00 : f32
    %122 = vector.broadcast %cst_51 : f32 to vector<18x16xf32>
    %123 = arith.maximumf %122, %121 : vector<18x16xf32>
    %124 = vector.broadcast %cst_52 : f32 to vector<18x16xf32>
    %125 = arith.minimumf %124, %123 : vector<18x16xf32>
    %126 = math.roundeven %125 : vector<18x16xf32>
    %c0_53 = arith.constant 0 : index
    %c0_54 = arith.constant 0 : index
    %c16 = arith.constant 16 : index
    %127 = vector.load %arg2[%c0_53, %c0_54, %c16] : memref<1x18x64xbf16, #tpu.memory_space<vmem>>, vector<1x18x16xbf16>
    %128 = vector.shape_cast %127 : vector<1x18x16xbf16> to vector<18x16xbf16>
    %129 = arith.extf %128 : vector<18x16xbf16> to vector<18x16xf32>
    %c0_55 = arith.constant 0 : index
    %c0_56 = arith.constant 0 : index
    %c16_57 = arith.constant 16 : index
    %130 = vector.load %arg3[%c0_55, %c0_56, %c16_57] : memref<1x18x64xbf16, #tpu.memory_space<vmem>>, vector<1x18x16xbf16>
    %131 = vector.shape_cast %130 : vector<1x18x16xbf16> to vector<18x16xbf16>
    %132 = arith.extf %131 : vector<18x16xbf16> to vector<18x16xf32>
    %c0_58 = arith.constant 0 : index
    %c0_59 = arith.constant 0 : index
    %c16_60 = arith.constant 16 : index
    %133 = vector.load %arg4[%c0_58, %c0_59, %c16_60] : memref<1x18x64xbf16, #tpu.memory_space<vmem>>, vector<1x18x16xbf16>
    %134 = vector.shape_cast %133 : vector<1x18x16xbf16> to vector<18x16xbf16>
    %135 = arith.extf %134 : vector<18x16xbf16> to vector<18x16xf32>
    %cst_61 = arith.constant dense<0.000000e+00> : vector<18xf32>
    %136 = vector.multi_reduction <add>, %129, %cst_61 [1] : vector<18x16xf32> to vector<18xf32>
    %137 = vector.shape_cast %136 : vector<18xf32> to vector<18x1xf32>
    %cst_62 = arith.constant 1.600000e+01 : f32
    %138 = vector.broadcast %cst_62 : f32 to vector<18x1xf32>
    %139 = arith.divf %137, %138 : vector<18x1xf32>
    %140 = vector.broadcast %139 : vector<18x1xf32> to vector<18x16xf32>
    %141 = arith.subf %129, %140 : vector<18x16xf32>
    %142 = arith.mulf %141, %141 : vector<18x16xf32>
    %cst_63 = arith.constant dense<0.000000e+00> : vector<18xf32>
    %143 = vector.multi_reduction <add>, %142, %cst_63 [1] : vector<18x16xf32> to vector<18xf32>
    %144 = vector.shape_cast %143 : vector<18xf32> to vector<18x1xf32>
    %cst_64 = arith.constant 1.600000e+01 : f32
    %145 = vector.broadcast %cst_64 : f32 to vector<18x1xf32>
    %146 = arith.divf %144, %145 : vector<18x1xf32>
    %147 = vector.broadcast %139 : vector<18x1xf32> to vector<18x16xf32>
    %148 = arith.subf %129, %147 : vector<18x16xf32>
    %cst_65 = arith.constant 9.99999974E-6 : f32
    %149 = vector.broadcast %cst_65 : f32 to vector<18x1xf32>
    %150 = arith.addf %146, %149 : vector<18x1xf32>
    %151 = math.rsqrt %150 : vector<18x1xf32>
    %152 = vector.broadcast %151 : vector<18x1xf32> to vector<18x16xf32>
    %153 = arith.mulf %148, %152 : vector<18x16xf32>
    %154 = vector.broadcast %0 : vector<1x16xf32> to vector<18x16xf32>
    %155 = arith.mulf %153, %154 : vector<18x16xf32>
    %156 = vector.broadcast %1 : vector<1x16xf32> to vector<18x16xf32>
    %157 = arith.addf %155, %156 : vector<18x16xf32>
    %cst_66 = arith.constant 9.15412425 : f32
    %158 = vector.broadcast %cst_66 : f32 to vector<18x16xf32>
    %159 = arith.mulf %157, %158 : vector<18x16xf32>
    %cst_67 = arith.constant 0.000000e+00 : f32
    %160 = vector.broadcast %cst_67 : f32 to vector<18x16xf32>
    %161 = arith.addf %159, %160 : vector<18x16xf32>
    %cst_68 = arith.constant -8.000000e+00 : f32
    %cst_69 = arith.constant 7.000000e+00 : f32
    %162 = vector.broadcast %cst_68 : f32 to vector<18x16xf32>
    %163 = arith.maximumf %162, %161 : vector<18x16xf32>
    %164 = vector.broadcast %cst_69 : f32 to vector<18x16xf32>
    %165 = arith.minimumf %164, %163 : vector<18x16xf32>
    %166 = math.roundeven %165 : vector<18x16xf32>
    %cst_70 = arith.constant dense<0.000000e+00> : vector<18xf32>
    %167 = vector.multi_reduction <add>, %132, %cst_70 [1] : vector<18x16xf32> to vector<18xf32>
    %168 = vector.shape_cast %167 : vector<18xf32> to vector<18x1xf32>
    %cst_71 = arith.constant 1.600000e+01 : f32
    %169 = vector.broadcast %cst_71 : f32 to vector<18x1xf32>
    %170 = arith.divf %168, %169 : vector<18x1xf32>
    %171 = vector.broadcast %170 : vector<18x1xf32> to vector<18x16xf32>
    %172 = arith.subf %132, %171 : vector<18x16xf32>
    %173 = arith.mulf %172, %172 : vector<18x16xf32>
    %cst_72 = arith.constant dense<0.000000e+00> : vector<18xf32>
    %174 = vector.multi_reduction <add>, %173, %cst_72 [1] : vector<18x16xf32> to vector<18xf32>
    %175 = vector.shape_cast %174 : vector<18xf32> to vector<18x1xf32>
    %cst_73 = arith.constant 1.600000e+01 : f32
    %176 = vector.broadcast %cst_73 : f32 to vector<18x1xf32>
    %177 = arith.divf %175, %176 : vector<18x1xf32>
    %178 = vector.broadcast %170 : vector<18x1xf32> to vector<18x16xf32>
    %179 = arith.subf %132, %178 : vector<18x16xf32>
    %cst_74 = arith.constant 9.99999974E-6 : f32
    %180 = vector.broadcast %cst_74 : f32 to vector<18x1xf32>
    %181 = arith.addf %177, %180 : vector<18x1xf32>
    %182 = math.rsqrt %181 : vector<18x1xf32>
    %183 = vector.broadcast %182 : vector<18x1xf32> to vector<18x16xf32>
    %184 = arith.mulf %179, %183 : vector<18x16xf32>
    %185 = vector.broadcast %2 : vector<1x16xf32> to vector<18x16xf32>
    %186 = arith.mulf %184, %185 : vector<18x16xf32>
    %187 = vector.broadcast %3 : vector<1x16xf32> to vector<18x16xf32>
    %188 = arith.addf %186, %187 : vector<18x16xf32>
    %cst_75 = arith.constant 8.98018836 : f32
    %189 = vector.broadcast %cst_75 : f32 to vector<18x16xf32>
    %190 = arith.mulf %188, %189 : vector<18x16xf32>
    %cst_76 = arith.constant 0.000000e+00 : f32
    %191 = vector.broadcast %cst_76 : f32 to vector<18x16xf32>
    %192 = arith.addf %190, %191 : vector<18x16xf32>
    %cst_77 = arith.constant -8.000000e+00 : f32
    %cst_78 = arith.constant 7.000000e+00 : f32
    %193 = vector.broadcast %cst_77 : f32 to vector<18x16xf32>
    %194 = arith.maximumf %193, %192 : vector<18x16xf32>
    %195 = vector.broadcast %cst_78 : f32 to vector<18x16xf32>
    %196 = arith.minimumf %195, %194 : vector<18x16xf32>
    %197 = math.roundeven %196 : vector<18x16xf32>
    %cst_79 = arith.constant 0.110162601 : f32
    %198 = vector.broadcast %cst_79 : f32 to vector<18x16xf32>
    %199 = arith.mulf %135, %198 : vector<18x16xf32>
    %cst_80 = arith.constant 8.95572281 : f32
    %200 = vector.broadcast %cst_80 : f32 to vector<18x16xf32>
    %201 = arith.mulf %199, %200 : vector<18x16xf32>
    %cst_81 = arith.constant 0.000000e+00 : f32
    %202 = vector.broadcast %cst_81 : f32 to vector<18x16xf32>
    %203 = arith.addf %201, %202 : vector<18x16xf32>
    %cst_82 = arith.constant -8.000000e+00 : f32
    %cst_83 = arith.constant 7.000000e+00 : f32
    %204 = vector.broadcast %cst_82 : f32 to vector<18x16xf32>
    %205 = arith.maximumf %204, %203 : vector<18x16xf32>
    %206 = vector.broadcast %cst_83 : f32 to vector<18x16xf32>
    %207 = arith.minimumf %206, %205 : vector<18x16xf32>
    %208 = math.roundeven %207 : vector<18x16xf32>
    %209 = arith.truncf %166 : vector<18x16xf32> to vector<18x16xbf16>
    %210 = arith.truncf %197 : vector<18x16xf32> to vector<18x16xbf16>
    %cst_84 = arith.constant dense<0.000000e+00> : vector<18x18xf32>
    %211 = tpu.matmul %209, %210, %cst_84 {dimension_numbers = #tpu.dot_dimension_numbers<[1], [1], [0], [0], [0, 0, 1, 0], [], []>} : vector<18x16xbf16>, vector<18x16xbf16>, vector<18x18xf32> -> vector<18x18xf32>
    %cst_85 = arith.constant 0.00304114958 : f32
    %212 = vector.broadcast %cst_85 : f32 to vector<18x18xf32>
    %213 = arith.mulf %211, %212 : vector<18x18xf32>
    %cst_86 = arith.constant dense<0xFF800000> : vector<18xf32>
    %214 = vector.multi_reduction <maximumf>, %213, %cst_86 [1] : vector<18x18xf32> to vector<18xf32>
    %215 = vector.shape_cast %214 : vector<18xf32> to vector<18x1xf32>
    %216 = vector.broadcast %215 : vector<18x1xf32> to vector<18x18xf32>
    %217 = arith.subf %213, %216 : vector<18x18xf32>
    %218 = math.exp %217 : vector<18x18xf32>
    %cst_87 = arith.constant dense<0.000000e+00> : vector<18xf32>
    %219 = vector.multi_reduction <add>, %218, %cst_87 [1] : vector<18x18xf32> to vector<18xf32>
    %220 = vector.shape_cast %219 : vector<18xf32> to vector<18x1xf32>
    %221 = tpu.reciprocal %220 {approx = true} : vector<18x1xf32> -> vector<18x1xf32>
    %222 = vector.broadcast %221 : vector<18x1xf32> to vector<18x18xf32>
    %223 = arith.mulf %218, %222 : vector<18x18xf32>
    %cst_88 = arith.constant 9.1711378 : f32
    %224 = vector.broadcast %cst_88 : f32 to vector<18x18xf32>
    %225 = arith.mulf %223, %224 : vector<18x18xf32>
    %cst_89 = arith.constant 0.000000e+00 : f32
    %226 = vector.broadcast %cst_89 : f32 to vector<18x18xf32>
    %227 = arith.addf %225, %226 : vector<18x18xf32>
    %cst_90 = arith.constant -8.000000e+00 : f32
    %cst_91 = arith.constant 7.000000e+00 : f32
    %228 = vector.broadcast %cst_90 : f32 to vector<18x18xf32>
    %229 = arith.maximumf %228, %227 : vector<18x18xf32>
    %230 = vector.broadcast %cst_91 : f32 to vector<18x18xf32>
    %231 = arith.minimumf %230, %229 : vector<18x18xf32>
    %232 = math.roundeven %231 : vector<18x18xf32>
    %cst_92 = arith.constant 0.000000e+00 : f32
    %233 = vector.broadcast %cst_92 : f32 to vector<18x18xf32>
    %234 = arith.subf %232, %233 : vector<18x18xf32>
    %235 = math.roundeven %234 : vector<18x18xf32>
    %236 = arith.truncf %235 : vector<18x18xf32> to vector<18x18xbf16>
    %237 = arith.truncf %208 : vector<18x16xf32> to vector<18x16xbf16>
    %cst_93 = arith.constant dense<0.000000e+00> : vector<18x16xf32>
    %238 = tpu.matmul %236, %237, %cst_93 {dimension_numbers = #tpu.dot_dimension_numbers<[1], [0], [0], [1], [0, 0, 1, 1], [], []>} : vector<18x18xbf16>, vector<18x16xbf16>, vector<18x16xf32> -> vector<18x16xf32>
    %cst_94 = arith.constant 0.0121752005 : f32
    %239 = vector.broadcast %cst_94 : f32 to vector<18x16xf32>
    %240 = arith.mulf %238, %239 : vector<18x16xf32>
    %cst_95 = arith.constant 9.07021808 : f32
    %241 = vector.broadcast %cst_95 : f32 to vector<18x16xf32>
    %242 = arith.mulf %240, %241 : vector<18x16xf32>
    %cst_96 = arith.constant 0.000000e+00 : f32
    %243 = vector.broadcast %cst_96 : f32 to vector<18x16xf32>
    %244 = arith.addf %242, %243 : vector<18x16xf32>
    %cst_97 = arith.constant -8.000000e+00 : f32
    %cst_98 = arith.constant 7.000000e+00 : f32
    %245 = vector.broadcast %cst_97 : f32 to vector<18x16xf32>
    %246 = arith.maximumf %245, %244 : vector<18x16xf32>
    %247 = vector.broadcast %cst_98 : f32 to vector<18x16xf32>
    %248 = arith.minimumf %247, %246 : vector<18x16xf32>
    %249 = math.roundeven %248 : vector<18x16xf32>
    %c0_99 = arith.constant 0 : index
    %c0_100 = arith.constant 0 : index
    %c32 = arith.constant 32 : index
    %250 = vector.load %arg2[%c0_99, %c0_100, %c32] : memref<1x18x64xbf16, #tpu.memory_space<vmem>>, vector<1x18x16xbf16>
    %251 = vector.shape_cast %250 : vector<1x18x16xbf16> to vector<18x16xbf16>
    %252 = arith.extf %251 : vector<18x16xbf16> to vector<18x16xf32>
    %c0_101 = arith.constant 0 : index
    %c0_102 = arith.constant 0 : index
    %c32_103 = arith.constant 32 : index
    %253 = vector.load %arg3[%c0_101, %c0_102, %c32_103] : memref<1x18x64xbf16, #tpu.memory_space<vmem>>, vector<1x18x16xbf16>
    %254 = vector.shape_cast %253 : vector<1x18x16xbf16> to vector<18x16xbf16>
    %255 = arith.extf %254 : vector<18x16xbf16> to vector<18x16xf32>
    %c0_104 = arith.constant 0 : index
    %c0_105 = arith.constant 0 : index
    %c32_106 = arith.constant 32 : index
    %256 = vector.load %arg4[%c0_104, %c0_105, %c32_106] : memref<1x18x64xbf16, #tpu.memory_space<vmem>>, vector<1x18x16xbf16>
    %257 = vector.shape_cast %256 : vector<1x18x16xbf16> to vector<18x16xbf16>
    %258 = arith.extf %257 : vector<18x16xbf16> to vector<18x16xf32>
    %cst_107 = arith.constant dense<0.000000e+00> : vector<18xf32>
    %259 = vector.multi_reduction <add>, %252, %cst_107 [1] : vector<18x16xf32> to vector<18xf32>
    %260 = vector.shape_cast %259 : vector<18xf32> to vector<18x1xf32>
    %cst_108 = arith.constant 1.600000e+01 : f32
    %261 = vector.broadcast %cst_108 : f32 to vector<18x1xf32>
    %262 = arith.divf %260, %261 : vector<18x1xf32>
    %263 = vector.broadcast %262 : vector<18x1xf32> to vector<18x16xf32>
    %264 = arith.subf %252, %263 : vector<18x16xf32>
    %265 = arith.mulf %264, %264 : vector<18x16xf32>
    %cst_109 = arith.constant dense<0.000000e+00> : vector<18xf32>
    %266 = vector.multi_reduction <add>, %265, %cst_109 [1] : vector<18x16xf32> to vector<18xf32>
    %267 = vector.shape_cast %266 : vector<18xf32> to vector<18x1xf32>
    %cst_110 = arith.constant 1.600000e+01 : f32
    %268 = vector.broadcast %cst_110 : f32 to vector<18x1xf32>
    %269 = arith.divf %267, %268 : vector<18x1xf32>
    %270 = vector.broadcast %262 : vector<18x1xf32> to vector<18x16xf32>
    %271 = arith.subf %252, %270 : vector<18x16xf32>
    %cst_111 = arith.constant 9.99999974E-6 : f32
    %272 = vector.broadcast %cst_111 : f32 to vector<18x1xf32>
    %273 = arith.addf %269, %272 : vector<18x1xf32>
    %274 = math.rsqrt %273 : vector<18x1xf32>
    %275 = vector.broadcast %274 : vector<18x1xf32> to vector<18x16xf32>
    %276 = arith.mulf %271, %275 : vector<18x16xf32>
    %277 = vector.broadcast %0 : vector<1x16xf32> to vector<18x16xf32>
    %278 = arith.mulf %276, %277 : vector<18x16xf32>
    %279 = vector.broadcast %1 : vector<1x16xf32> to vector<18x16xf32>
    %280 = arith.addf %278, %279 : vector<18x16xf32>
    %cst_112 = arith.constant 9.15412425 : f32
    %281 = vector.broadcast %cst_112 : f32 to vector<18x16xf32>
    %282 = arith.mulf %280, %281 : vector<18x16xf32>
    %cst_113 = arith.constant 0.000000e+00 : f32
    %283 = vector.broadcast %cst_113 : f32 to vector<18x16xf32>
    %284 = arith.addf %282, %283 : vector<18x16xf32>
    %cst_114 = arith.constant -8.000000e+00 : f32
    %cst_115 = arith.constant 7.000000e+00 : f32
    %285 = vector.broadcast %cst_114 : f32 to vector<18x16xf32>
    %286 = arith.maximumf %285, %284 : vector<18x16xf32>
    %287 = vector.broadcast %cst_115 : f32 to vector<18x16xf32>
    %288 = arith.minimumf %287, %286 : vector<18x16xf32>
    %289 = math.roundeven %288 : vector<18x16xf32>
    %cst_116 = arith.constant dense<0.000000e+00> : vector<18xf32>
    %290 = vector.multi_reduction <add>, %255, %cst_116 [1] : vector<18x16xf32> to vector<18xf32>
    %291 = vector.shape_cast %290 : vector<18xf32> to vector<18x1xf32>
    %cst_117 = arith.constant 1.600000e+01 : f32
    %292 = vector.broadcast %cst_117 : f32 to vector<18x1xf32>
    %293 = arith.divf %291, %292 : vector<18x1xf32>
    %294 = vector.broadcast %293 : vector<18x1xf32> to vector<18x16xf32>
    %295 = arith.subf %255, %294 : vector<18x16xf32>
    %296 = arith.mulf %295, %295 : vector<18x16xf32>
    %cst_118 = arith.constant dense<0.000000e+00> : vector<18xf32>
    %297 = vector.multi_reduction <add>, %296, %cst_118 [1] : vector<18x16xf32> to vector<18xf32>
    %298 = vector.shape_cast %297 : vector<18xf32> to vector<18x1xf32>
    %cst_119 = arith.constant 1.600000e+01 : f32
    %299 = vector.broadcast %cst_119 : f32 to vector<18x1xf32>
    %300 = arith.divf %298, %299 : vector<18x1xf32>
    %301 = vector.broadcast %293 : vector<18x1xf32> to vector<18x16xf32>
    %302 = arith.subf %255, %301 : vector<18x16xf32>
    %cst_120 = arith.constant 9.99999974E-6 : f32
    %303 = vector.broadcast %cst_120 : f32 to vector<18x1xf32>
    %304 = arith.addf %300, %303 : vector<18x1xf32>
    %305 = math.rsqrt %304 : vector<18x1xf32>
    %306 = vector.broadcast %305 : vector<18x1xf32> to vector<18x16xf32>
    %307 = arith.mulf %302, %306 : vector<18x16xf32>
    %308 = vector.broadcast %2 : vector<1x16xf32> to vector<18x16xf32>
    %309 = arith.mulf %307, %308 : vector<18x16xf32>
    %310 = vector.broadcast %3 : vector<1x16xf32> to vector<18x16xf32>
    %311 = arith.addf %309, %310 : vector<18x16xf32>
    %cst_121 = arith.constant 8.98018836 : f32
    %312 = vector.broadcast %cst_121 : f32 to vector<18x16xf32>
    %313 = arith.mulf %311, %312 : vector<18x16xf32>
    %cst_122 = arith.constant 0.000000e+00 : f32
    %314 = vector.broadcast %cst_122 : f32 to vector<18x16xf32>
    %315 = arith.addf %313, %314 : vector<18x16xf32>
    %cst_123 = arith.constant -8.000000e+00 : f32
    %cst_124 = arith.constant 7.000000e+00 : f32
    %316 = vector.broadcast %cst_123 : f32 to vector<18x16xf32>
    %317 = arith.maximumf %316, %315 : vector<18x16xf32>
    %318 = vector.broadcast %cst_124 : f32 to vector<18x16xf32>
    %319 = arith.minimumf %318, %317 : vector<18x16xf32>
    %320 = math.roundeven %319 : vector<18x16xf32>
    %cst_125 = arith.constant 0.110162601 : f32
    %321 = vector.broadcast %cst_125 : f32 to vector<18x16xf32>
    %322 = arith.mulf %258, %321 : vector<18x16xf32>
    %cst_126 = arith.constant 8.95572281 : f32
    %323 = vector.broadcast %cst_126 : f32 to vector<18x16xf32>
    %324 = arith.mulf %322, %323 : vector<18x16xf32>
    %cst_127 = arith.constant 0.000000e+00 : f32
    %325 = vector.broadcast %cst_127 : f32 to vector<18x16xf32>
    %326 = arith.addf %324, %325 : vector<18x16xf32>
    %cst_128 = arith.constant -8.000000e+00 : f32
    %cst_129 = arith.constant 7.000000e+00 : f32
    %327 = vector.broadcast %cst_128 : f32 to vector<18x16xf32>
    %328 = arith.maximumf %327, %326 : vector<18x16xf32>
    %329 = vector.broadcast %cst_129 : f32 to vector<18x16xf32>
    %330 = arith.minimumf %329, %328 : vector<18x16xf32>
    %331 = math.roundeven %330 : vector<18x16xf32>
    %332 = arith.truncf %289 : vector<18x16xf32> to vector<18x16xbf16>
    %333 = arith.truncf %320 : vector<18x16xf32> to vector<18x16xbf16>
    %cst_130 = arith.constant dense<0.000000e+00> : vector<18x18xf32>
    %334 = tpu.matmul %332, %333, %cst_130 {dimension_numbers = #tpu.dot_dimension_numbers<[1], [1], [0], [0], [0, 0, 1, 0], [], []>} : vector<18x16xbf16>, vector<18x16xbf16>, vector<18x18xf32> -> vector<18x18xf32>
    %cst_131 = arith.constant 0.00304114958 : f32
    %335 = vector.broadcast %cst_131 : f32 to vector<18x18xf32>
    %336 = arith.mulf %334, %335 : vector<18x18xf32>
    %cst_132 = arith.constant dense<0xFF800000> : vector<18xf32>
    %337 = vector.multi_reduction <maximumf>, %336, %cst_132 [1] : vector<18x18xf32> to vector<18xf32>
    %338 = vector.shape_cast %337 : vector<18xf32> to vector<18x1xf32>
    %339 = vector.broadcast %338 : vector<18x1xf32> to vector<18x18xf32>
    %340 = arith.subf %336, %339 : vector<18x18xf32>
    %341 = math.exp %340 : vector<18x18xf32>
    %cst_133 = arith.constant dense<0.000000e+00> : vector<18xf32>
    %342 = vector.multi_reduction <add>, %341, %cst_133 [1] : vector<18x18xf32> to vector<18xf32>
    %343 = vector.shape_cast %342 : vector<18xf32> to vector<18x1xf32>
    %344 = tpu.reciprocal %343 {approx = true} : vector<18x1xf32> -> vector<18x1xf32>
    %345 = vector.broadcast %344 : vector<18x1xf32> to vector<18x18xf32>
    %346 = arith.mulf %341, %345 : vector<18x18xf32>
    %cst_134 = arith.constant 9.1711378 : f32
    %347 = vector.broadcast %cst_134 : f32 to vector<18x18xf32>
    %348 = arith.mulf %346, %347 : vector<18x18xf32>
    %cst_135 = arith.constant 0.000000e+00 : f32
    %349 = vector.broadcast %cst_135 : f32 to vector<18x18xf32>
    %350 = arith.addf %348, %349 : vector<18x18xf32>
    %cst_136 = arith.constant -8.000000e+00 : f32
    %cst_137 = arith.constant 7.000000e+00 : f32
    %351 = vector.broadcast %cst_136 : f32 to vector<18x18xf32>
    %352 = arith.maximumf %351, %350 : vector<18x18xf32>
    %353 = vector.broadcast %cst_137 : f32 to vector<18x18xf32>
    %354 = arith.minimumf %353, %352 : vector<18x18xf32>
    %355 = math.roundeven %354 : vector<18x18xf32>
    %cst_138 = arith.constant 0.000000e+00 : f32
    %356 = vector.broadcast %cst_138 : f32 to vector<18x18xf32>
    %357 = arith.subf %355, %356 : vector<18x18xf32>
    %358 = math.roundeven %357 : vector<18x18xf32>
    %359 = arith.truncf %358 : vector<18x18xf32> to vector<18x18xbf16>
    %360 = arith.truncf %331 : vector<18x16xf32> to vector<18x16xbf16>
    %cst_139 = arith.constant dense<0.000000e+00> : vector<18x16xf32>
    %361 = tpu.matmul %359, %360, %cst_139 {dimension_numbers = #tpu.dot_dimension_numbers<[1], [0], [0], [1], [0, 0, 1, 1], [], []>} : vector<18x18xbf16>, vector<18x16xbf16>, vector<18x16xf32> -> vector<18x16xf32>
    %cst_140 = arith.constant 0.0121752005 : f32
    %362 = vector.broadcast %cst_140 : f32 to vector<18x16xf32>
    %363 = arith.mulf %361, %362 : vector<18x16xf32>
    %cst_141 = arith.constant 9.07021808 : f32
    %364 = vector.broadcast %cst_141 : f32 to vector<18x16xf32>
    %365 = arith.mulf %363, %364 : vector<18x16xf32>
    %cst_142 = arith.constant 0.000000e+00 : f32
    %366 = vector.broadcast %cst_142 : f32 to vector<18x16xf32>
    %367 = arith.addf %365, %366 : vector<18x16xf32>
    %cst_143 = arith.constant -8.000000e+00 : f32
    %cst_144 = arith.constant 7.000000e+00 : f32
    %368 = vector.broadcast %cst_143 : f32 to vector<18x16xf32>
    %369 = arith.maximumf %368, %367 : vector<18x16xf32>
    %370 = vector.broadcast %cst_144 : f32 to vector<18x16xf32>
    %371 = arith.minimumf %370, %369 : vector<18x16xf32>
    %372 = math.roundeven %371 : vector<18x16xf32>
    %c0_145 = arith.constant 0 : index
    %c0_146 = arith.constant 0 : index
    %c48 = arith.constant 48 : index
    %373 = vector.load %arg2[%c0_145, %c0_146, %c48] : memref<1x18x64xbf16, #tpu.memory_space<vmem>>, vector<1x18x16xbf16>
    %374 = vector.shape_cast %373 : vector<1x18x16xbf16> to vector<18x16xbf16>
    %375 = arith.extf %374 : vector<18x16xbf16> to vector<18x16xf32>
    %c0_147 = arith.constant 0 : index
    %c0_148 = arith.constant 0 : index
    %c48_149 = arith.constant 48 : index
    %376 = vector.load %arg3[%c0_147, %c0_148, %c48_149] : memref<1x18x64xbf16, #tpu.memory_space<vmem>>, vector<1x18x16xbf16>
    %377 = vector.shape_cast %376 : vector<1x18x16xbf16> to vector<18x16xbf16>
    %378 = arith.extf %377 : vector<18x16xbf16> to vector<18x16xf32>
    %c0_150 = arith.constant 0 : index
    %c0_151 = arith.constant 0 : index
    %c48_152 = arith.constant 48 : index
    %379 = vector.load %arg4[%c0_150, %c0_151, %c48_152] : memref<1x18x64xbf16, #tpu.memory_space<vmem>>, vector<1x18x16xbf16>
    %380 = vector.shape_cast %379 : vector<1x18x16xbf16> to vector<18x16xbf16>
    %381 = arith.extf %380 : vector<18x16xbf16> to vector<18x16xf32>
    %cst_153 = arith.constant dense<0.000000e+00> : vector<18xf32>
    %382 = vector.multi_reduction <add>, %375, %cst_153 [1] : vector<18x16xf32> to vector<18xf32>
    %383 = vector.shape_cast %382 : vector<18xf32> to vector<18x1xf32>
    %cst_154 = arith.constant 1.600000e+01 : f32
    %384 = vector.broadcast %cst_154 : f32 to vector<18x1xf32>
    %385 = arith.divf %383, %384 : vector<18x1xf32>
    %386 = vector.broadcast %385 : vector<18x1xf32> to vector<18x16xf32>
    %387 = arith.subf %375, %386 : vector<18x16xf32>
    %388 = arith.mulf %387, %387 : vector<18x16xf32>
    %cst_155 = arith.constant dense<0.000000e+00> : vector<18xf32>
    %389 = vector.multi_reduction <add>, %388, %cst_155 [1] : vector<18x16xf32> to vector<18xf32>
    %390 = vector.shape_cast %389 : vector<18xf32> to vector<18x1xf32>
    %cst_156 = arith.constant 1.600000e+01 : f32
    %391 = vector.broadcast %cst_156 : f32 to vector<18x1xf32>
    %392 = arith.divf %390, %391 : vector<18x1xf32>
    %393 = vector.broadcast %385 : vector<18x1xf32> to vector<18x16xf32>
    %394 = arith.subf %375, %393 : vector<18x16xf32>
    %cst_157 = arith.constant 9.99999974E-6 : f32
    %395 = vector.broadcast %cst_157 : f32 to vector<18x1xf32>
    %396 = arith.addf %392, %395 : vector<18x1xf32>
    %397 = math.rsqrt %396 : vector<18x1xf32>
    %398 = vector.broadcast %397 : vector<18x1xf32> to vector<18x16xf32>
    %399 = arith.mulf %394, %398 : vector<18x16xf32>
    %400 = vector.broadcast %0 : vector<1x16xf32> to vector<18x16xf32>
    %401 = arith.mulf %399, %400 : vector<18x16xf32>
    %402 = vector.broadcast %1 : vector<1x16xf32> to vector<18x16xf32>
    %403 = arith.addf %401, %402 : vector<18x16xf32>
    %cst_158 = arith.constant 9.15412425 : f32
    %404 = vector.broadcast %cst_158 : f32 to vector<18x16xf32>
    %405 = arith.mulf %403, %404 : vector<18x16xf32>
    %cst_159 = arith.constant 0.000000e+00 : f32
    %406 = vector.broadcast %cst_159 : f32 to vector<18x16xf32>
    %407 = arith.addf %405, %406 : vector<18x16xf32>
    %cst_160 = arith.constant -8.000000e+00 : f32
    %cst_161 = arith.constant 7.000000e+00 : f32
    %408 = vector.broadcast %cst_160 : f32 to vector<18x16xf32>
    %409 = arith.maximumf %408, %407 : vector<18x16xf32>
    %410 = vector.broadcast %cst_161 : f32 to vector<18x16xf32>
    %411 = arith.minimumf %410, %409 : vector<18x16xf32>
    %412 = math.roundeven %411 : vector<18x16xf32>
    %cst_162 = arith.constant dense<0.000000e+00> : vector<18xf32>
    %413 = vector.multi_reduction <add>, %378, %cst_162 [1] : vector<18x16xf32> to vector<18xf32>
    %414 = vector.shape_cast %413 : vector<18xf32> to vector<18x1xf32>
    %cst_163 = arith.constant 1.600000e+01 : f32
    %415 = vector.broadcast %cst_163 : f32 to vector<18x1xf32>
    %416 = arith.divf %414, %415 : vector<18x1xf32>
    %417 = vector.broadcast %416 : vector<18x1xf32> to vector<18x16xf32>
    %418 = arith.subf %378, %417 : vector<18x16xf32>
    %419 = arith.mulf %418, %418 : vector<18x16xf32>
    %cst_164 = arith.constant dense<0.000000e+00> : vector<18xf32>
    %420 = vector.multi_reduction <add>, %419, %cst_164 [1] : vector<18x16xf32> to vector<18xf32>
    %421 = vector.shape_cast %420 : vector<18xf32> to vector<18x1xf32>
    %cst_165 = arith.constant 1.600000e+01 : f32
    %422 = vector.broadcast %cst_165 : f32 to vector<18x1xf32>
    %423 = arith.divf %421, %422 : vector<18x1xf32>
    %424 = vector.broadcast %416 : vector<18x1xf32> to vector<18x16xf32>
    %425 = arith.subf %378, %424 : vector<18x16xf32>
    %cst_166 = arith.constant 9.99999974E-6 : f32
    %426 = vector.broadcast %cst_166 : f32 to vector<18x1xf32>
    %427 = arith.addf %423, %426 : vector<18x1xf32>
    %428 = math.rsqrt %427 : vector<18x1xf32>
    %429 = vector.broadcast %428 : vector<18x1xf32> to vector<18x16xf32>
    %430 = arith.mulf %425, %429 : vector<18x16xf32>
    %431 = vector.broadcast %2 : vector<1x16xf32> to vector<18x16xf32>
    %432 = arith.mulf %430, %431 : vector<18x16xf32>
    %433 = vector.broadcast %3 : vector<1x16xf32> to vector<18x16xf32>
    %434 = arith.addf %432, %433 : vector<18x16xf32>
    %cst_167 = arith.constant 8.98018836 : f32
    %435 = vector.broadcast %cst_167 : f32 to vector<18x16xf32>
    %436 = arith.mulf %434, %435 : vector<18x16xf32>
    %cst_168 = arith.constant 0.000000e+00 : f32
    %437 = vector.broadcast %cst_168 : f32 to vector<18x16xf32>
    %438 = arith.addf %436, %437 : vector<18x16xf32>
    %cst_169 = arith.constant -8.000000e+00 : f32
    %cst_170 = arith.constant 7.000000e+00 : f32
    %439 = vector.broadcast %cst_169 : f32 to vector<18x16xf32>
    %440 = arith.maximumf %439, %438 : vector<18x16xf32>
    %441 = vector.broadcast %cst_170 : f32 to vector<18x16xf32>
    %442 = arith.minimumf %441, %440 : vector<18x16xf32>
    %443 = math.roundeven %442 : vector<18x16xf32>
    %cst_171 = arith.constant 0.110162601 : f32
    %444 = vector.broadcast %cst_171 : f32 to vector<18x16xf32>
    %445 = arith.mulf %381, %444 : vector<18x16xf32>
    %cst_172 = arith.constant 8.95572281 : f32
    %446 = vector.broadcast %cst_172 : f32 to vector<18x16xf32>
    %447 = arith.mulf %445, %446 : vector<18x16xf32>
    %cst_173 = arith.constant 0.000000e+00 : f32
    %448 = vector.broadcast %cst_173 : f32 to vector<18x16xf32>
    %449 = arith.addf %447, %448 : vector<18x16xf32>
    %cst_174 = arith.constant -8.000000e+00 : f32
    %cst_175 = arith.constant 7.000000e+00 : f32
    %450 = vector.broadcast %cst_174 : f32 to vector<18x16xf32>
    %451 = arith.maximumf %450, %449 : vector<18x16xf32>
    %452 = vector.broadcast %cst_175 : f32 to vector<18x16xf32>
    %453 = arith.minimumf %452, %451 : vector<18x16xf32>
    %454 = math.roundeven %453 : vector<18x16xf32>
    %455 = arith.truncf %412 : vector<18x16xf32> to vector<18x16xbf16>
    %456 = arith.truncf %443 : vector<18x16xf32> to vector<18x16xbf16>
    %cst_176 = arith.constant dense<0.000000e+00> : vector<18x18xf32>
    %457 = tpu.matmul %455, %456, %cst_176 {dimension_numbers = #tpu.dot_dimension_numbers<[1], [1], [0], [0], [0, 0, 1, 0], [], []>} : vector<18x16xbf16>, vector<18x16xbf16>, vector<18x18xf32> -> vector<18x18xf32>
    %cst_177 = arith.constant 0.00304114958 : f32
    %458 = vector.broadcast %cst_177 : f32 to vector<18x18xf32>
    %459 = arith.mulf %457, %458 : vector<18x18xf32>
    %cst_178 = arith.constant dense<0xFF800000> : vector<18xf32>
    %460 = vector.multi_reduction <maximumf>, %459, %cst_178 [1] : vector<18x18xf32> to vector<18xf32>
    %461 = vector.shape_cast %460 : vector<18xf32> to vector<18x1xf32>
    %462 = vector.broadcast %461 : vector<18x1xf32> to vector<18x18xf32>
    %463 = arith.subf %459, %462 : vector<18x18xf32>
    %464 = math.exp %463 : vector<18x18xf32>
    %cst_179 = arith.constant dense<0.000000e+00> : vector<18xf32>
    %465 = vector.multi_reduction <add>, %464, %cst_179 [1] : vector<18x18xf32> to vector<18xf32>
    %466 = vector.shape_cast %465 : vector<18xf32> to vector<18x1xf32>
    %467 = tpu.reciprocal %466 {approx = true} : vector<18x1xf32> -> vector<18x1xf32>
    %468 = vector.broadcast %467 : vector<18x1xf32> to vector<18x18xf32>
    %469 = arith.mulf %464, %468 : vector<18x18xf32>
    %cst_180 = arith.constant 9.1711378 : f32
    %470 = vector.broadcast %cst_180 : f32 to vector<18x18xf32>
    %471 = arith.mulf %469, %470 : vector<18x18xf32>
    %cst_181 = arith.constant 0.000000e+00 : f32
    %472 = vector.broadcast %cst_181 : f32 to vector<18x18xf32>
    %473 = arith.addf %471, %472 : vector<18x18xf32>
    %cst_182 = arith.constant -8.000000e+00 : f32
    %cst_183 = arith.constant 7.000000e+00 : f32
    %474 = vector.broadcast %cst_182 : f32 to vector<18x18xf32>
    %475 = arith.maximumf %474, %473 : vector<18x18xf32>
    %476 = vector.broadcast %cst_183 : f32 to vector<18x18xf32>
    %477 = arith.minimumf %476, %475 : vector<18x18xf32>
    %478 = math.roundeven %477 : vector<18x18xf32>
    %cst_184 = arith.constant 0.000000e+00 : f32
    %479 = vector.broadcast %cst_184 : f32 to vector<18x18xf32>
    %480 = arith.subf %478, %479 : vector<18x18xf32>
    %481 = math.roundeven %480 : vector<18x18xf32>
    %482 = arith.truncf %481 : vector<18x18xf32> to vector<18x18xbf16>
    %483 = arith.truncf %454 : vector<18x16xf32> to vector<18x16xbf16>
    %cst_185 = arith.constant dense<0.000000e+00> : vector<18x16xf32>
    %484 = tpu.matmul %482, %483, %cst_185 {dimension_numbers = #tpu.dot_dimension_numbers<[1], [0], [0], [1], [0, 0, 1, 1], [], []>} : vector<18x18xbf16>, vector<18x16xbf16>, vector<18x16xf32> -> vector<18x16xf32>
    %cst_186 = arith.constant 0.0121752005 : f32
    %485 = vector.broadcast %cst_186 : f32 to vector<18x16xf32>
    %486 = arith.mulf %484, %485 : vector<18x16xf32>
    %cst_187 = arith.constant 9.07021808 : f32
    %487 = vector.broadcast %cst_187 : f32 to vector<18x16xf32>
    %488 = arith.mulf %486, %487 : vector<18x16xf32>
    %cst_188 = arith.constant 0.000000e+00 : f32
    %489 = vector.broadcast %cst_188 : f32 to vector<18x16xf32>
    %490 = arith.addf %488, %489 : vector<18x16xf32>
    %cst_189 = arith.constant -8.000000e+00 : f32
    %cst_190 = arith.constant 7.000000e+00 : f32
    %491 = vector.broadcast %cst_189 : f32 to vector<18x16xf32>
    %492 = arith.maximumf %491, %490 : vector<18x16xf32>
    %493 = vector.broadcast %cst_190 : f32 to vector<18x16xf32>
    %494 = arith.minimumf %493, %492 : vector<18x16xf32>
    %495 = math.roundeven %494 : vector<18x16xf32>
    %496 = tpu.concatenate %126, %249, %372, %495 in 1 : vector<18x16xf32>, vector<18x16xf32>, vector<18x16xf32>, vector<18x16xf32> -> vector<18x64xf32>
    %497 = arith.truncf %496 : vector<18x64xf32> to vector<18x64xbf16>
    %c0_191 = arith.constant 0 : index
    %c0_192 = arith.constant 0 : index
    %c0_193 = arith.constant 0 : index
    %498 = vector.load %arg9[%c0_191, %c0_192, %c0_193] : memref<1x18x64xbf16, #tpu.memory_space<vmem>>, vector<1x18x64xbf16>
    %499 = vector.shape_cast %498 : vector<1x18x64xbf16> to vector<18x64xbf16>
    %500 = vector.shape_cast %497 : vector<18x64xbf16> to vector<1x18x64xbf16>
    tpu.vector_store %arg9[%c0_191, %c0_192, %c0_193], %500 {strides = array<i32>} : memref<1x18x64xbf16, #tpu.memory_space<vmem>>, vector<1x18x64xbf16>,
    return
  }
  func.func @transform_0(%arg0: i32, %arg1: i32) -> (i32, i32, i32) {
    %c0_i32 = arith.constant 0 : i32
    %c0_i32_0 = arith.constant 0 : i32
    return %arg0, %c0_i32, %arg1 : i32, i32, i32
  }
  func.func @transform_1(%arg0: i32, %arg1: i32) -> (i32, i32, i32) {
    %c0_i32 = arith.constant 0 : i32
    %c0_i32_0 = arith.constant 0 : i32
    return %arg0, %c0_i32, %arg1 : i32, i32, i32
  }
  func.func @transform_2(%arg0: i32, %arg1: i32) -> (i32, i32, i32) {
    %c0_i32 = arith.constant 0 : i32
    %c0_i32_0 = arith.constant 0 : i32
    return %arg0, %c0_i32, %arg1 : i32, i32, i32
  }
  func.func @transform_3(%arg0: i32, %arg1: i32) -> (i32, i32) {
    %c0_i32 = arith.constant 0 : i32
    %c0_i32_0 = arith.constant 0 : i32
    %c0_i32_1 = arith.constant 0 : i32
    return %c0_i32, %c0_i32_0 : i32, i32
  }
  func.func @transform_4(%arg0: i32, %arg1: i32) -> (i32, i32) {
    %c0_i32 = arith.constant 0 : i32
    %c0_i32_0 = arith.constant 0 : i32
    %c0_i32_1 = arith.constant 0 : i32
    return %c0_i32, %c0_i32_0 : i32, i32
  }
  func.func @transform_5(%arg0: i32, %arg1: i32) -> (i32, i32) {
    %c0_i32 = arith.constant 0 : i32
    %c0_i32_0 = arith.constant 0 : i32
    %c0_i32_1 = arith.constant 0 : i32
    return %c0_i32, %c0_i32_0 : i32, i32
  }
  func.func @transform_6(%arg0: i32, %arg1: i32) -> (i32, i32) {
    %c0_i32 = arith.constant 0 : i32
    %c0_i32_0 = arith.constant 0 : i32
    %c0_i32_1 = arith.constant 0 : i32
    return %c0_i32, %c0_i32_0 : i32, i32
  }
  func.func @transform_7(%arg0: i32, %arg1: i32) -> (i32, i32, i32) {
    %c0_i32 = arith.constant 0 : i32
    %c0_i32_0 = arith.constant 0 : i32
    return %arg0, %c0_i32, %arg1 : i32, i32, i32
  }
}

module attributes {stable_mosaic.version = 11 : i64} {
  func.func @_fused_linear_kernel(%arg0: i32, %arg1: i32, %arg2: i32, %arg3: memref<36x64xbf16, #tpu.memory_space<vmem>>, %arg4: memref<64x64xbf16, #tpu.memory_space<vmem>>, %arg5: memref<1x64xf32, #tpu.memory_space<vmem>>, %arg6: memref<1x64xf32, #tpu.memory_space<vmem>>, %arg7: memref<36x64xf32, #tpu.memory_space<vmem>>, %arg8: memref<36x64xf32, #tpu.memory_space<vmem>>) attributes {dimension_semantics = [#tpu.dimension_semantics<parallel>, #tpu.dimension_semantics<parallel>, #tpu.dimension_semantics<arbitrary>], iteration_bounds = array<i64: 1, 1, 1>, scalar_prefetch = 0 : i64, scratch_operands = 0 : i64, tpu.core_type = #tpu.core_type<tc>, window_params = [{transform_indices = @transform_0, window_bounds = array<i64: 36, 64>}, {transform_indices = @transform_1, window_bounds = array<i64: 64, 64>}, {transform_indices = @transform_2, window_bounds = array<i64: 1, 64>}, {transform_indices = @transform_3, window_bounds = array<i64: 1, 64>}, {transform_indices = @transform_4, window_bounds = array<i64: 36, 64>}, {transform_indices = @transform_5, window_bounds = array<i64: 36, 64>}]} {
    %c0 = arith.constant 0 : index
    %c0_0 = arith.constant 0 : index
    %0 = vector.load %arg3[%c0, %c0_0] : memref<36x64xbf16, #tpu.memory_space<vmem>>, vector<36x64xbf16>
    %c0_1 = arith.constant 0 : index
    %c0_2 = arith.constant 0 : index
    %1 = vector.load %arg4[%c0_1, %c0_2] : memref<64x64xbf16, #tpu.memory_space<vmem>>, vector<64x64xbf16>
    %cst = arith.constant dense<0.000000e+00> : vector<36x64xf32>
    %2 = tpu.matmul %0, %1, %cst {dimension_numbers = #tpu.dot_dimension_numbers<[1], [0], [0], [1], [0, 0, 1, 1], [], []>} : vector<36x64xbf16>, vector<64x64xbf16>, vector<36x64xf32> -> vector<36x64xf32>
    %c0_3 = arith.constant 0 : index
    %c0_4 = arith.constant 0 : index
    %3 = vector.load %arg5[%c0_3, %c0_4] : memref<1x64xf32, #tpu.memory_space<vmem>>, vector<1x64xf32>
    %4 = vector.broadcast %3 : vector<1x64xf32> to vector<36x64xf32>
    %5 = arith.mulf %2, %4 : vector<36x64xf32>
    %c0_5 = arith.constant 0 : index
    %c0_6 = arith.constant 0 : index
    %6 = vector.load %arg6[%c0_5, %c0_6] : memref<1x64xf32, #tpu.memory_space<vmem>>, vector<1x64xf32>
    %7 = vector.broadcast %6 : vector<1x64xf32> to vector<36x64xf32>
    %8 = arith.addf %5, %7 : vector<36x64xf32>
    %c0_7 = arith.constant 0 : index
    %c0_8 = arith.constant 0 : index
    %9 = vector.load %arg7[%c0_7, %c0_8] : memref<36x64xf32, #tpu.memory_space<vmem>>, vector<36x64xf32>
    %10 = arith.addf %8, %9 : vector<36x64xf32>
    %c0_9 = arith.constant 0 : index
    %c0_10 = arith.constant 0 : index
    %11 = vector.load %arg8[%c0_9, %c0_10] : memref<36x64xf32, #tpu.memory_space<vmem>>, vector<36x64xf32>
    tpu.vector_store %arg8[%c0_9, %c0_10], %10 {strides = array<i32>} : memref<36x64xf32, #tpu.memory_space<vmem>>, vector<36x64xf32>,
    return
  }
  func.func @transform_0(%arg0: i32, %arg1: i32, %arg2: i32) -> (i32, i32) {
    %c0_i32 = arith.constant 0 : i32
    return %arg0, %arg2 : i32, i32
  }
  func.func @transform_1(%arg0: i32, %arg1: i32, %arg2: i32) -> (i32, i32) {
    %c0_i32 = arith.constant 0 : i32
    return %arg2, %arg1 : i32, i32
  }
  func.func @transform_2(%arg0: i32, %arg1: i32, %arg2: i32) -> (i32, i32) {
    %c0_i32 = arith.constant 0 : i32
    %c0_i32_0 = arith.constant 0 : i32
    return %c0_i32, %arg1 : i32, i32
  }
  func.func @transform_3(%arg0: i32, %arg1: i32, %arg2: i32) -> (i32, i32) {
    %c0_i32 = arith.constant 0 : i32
    %c0_i32_0 = arith.constant 0 : i32
    return %c0_i32, %arg1 : i32, i32
  }
  func.func @transform_4(%arg0: i32, %arg1: i32, %arg2: i32) -> (i32, i32) {
    %c0_i32 = arith.constant 0 : i32
    return %arg0, %arg1 : i32, i32
  }
  func.func @transform_5(%arg0: i32, %arg1: i32, %arg2: i32) -> (i32, i32) {
    %c0_i32 = arith.constant 0 : i32
    return %arg0, %arg1 : i32, i32
  }
}

module attributes {stable_mosaic.version = 11 : i64} {
  func.func @_fused_linear_kernel(%arg0: i32, %arg1: i32, %arg2: i32, %arg3: memref<36x64xf32, #tpu.memory_space<vmem>>, %arg4: memref<64x256xbf16, #tpu.memory_space<vmem>>, %arg5: memref<1x256xf32, #tpu.memory_space<vmem>>, %arg6: memref<1x256xf32, #tpu.memory_space<vmem>>, %arg7: memref<1x64xf32, #tpu.memory_space<vmem>>, %arg8: memref<1x64xf32, #tpu.memory_space<vmem>>, %arg9: memref<36x256xbf16, #tpu.memory_space<vmem>>) attributes {dimension_semantics = [#tpu.dimension_semantics<parallel>, #tpu.dimension_semantics<parallel>, #tpu.dimension_semantics<arbitrary>], iteration_bounds = array<i64: 1, 1, 1>, scalar_prefetch = 0 : i64, scratch_operands = 0 : i64, tpu.core_type = #tpu.core_type<tc>, window_params = [{transform_indices = @transform_0, window_bounds = array<i64: 36, 64>}, {transform_indices = @transform_1, window_bounds = array<i64: 64, 256>}, {transform_indices = @transform_2, window_bounds = array<i64: 1, 256>}, {transform_indices = @transform_3, window_bounds = array<i64: 1, 256>}, {pipeline_mode = #tpu.pipeline_mode<synchronous>, transform_indices = @transform_4, window_bounds = array<i64: 1, 64>}, {pipeline_mode = #tpu.pipeline_mode<synchronous>, transform_indices = @transform_5, window_bounds = array<i64: 1, 64>}, {transform_indices = @transform_6, window_bounds = array<i64: 36, 256>}]} {
    %c0 = arith.constant 0 : index
    %c0_0 = arith.constant 0 : index
    %0 = vector.load %arg3[%c0, %c0_0] : memref<36x64xf32, #tpu.memory_space<vmem>>, vector<36x64xf32>
    %cst = arith.constant dense<0.000000e+00> : vector<36xf32>
    %1 = vector.multi_reduction <add>, %0, %cst [1] : vector<36x64xf32> to vector<36xf32>
    %2 = vector.shape_cast %1 : vector<36xf32> to vector<36x1xf32>
    %cst_1 = arith.constant 6.400000e+01 : f32
    %3 = vector.broadcast %cst_1 : f32 to vector<36x1xf32>
    %4 = arith.divf %2, %3 : vector<36x1xf32>
    %5 = vector.broadcast %4 : vector<36x1xf32> to vector<36x64xf32>
    %6 = arith.subf %0, %5 : vector<36x64xf32>
    %7 = arith.mulf %6, %6 : vector<36x64xf32>
    %cst_2 = arith.constant dense<0.000000e+00> : vector<36xf32>
    %8 = vector.multi_reduction <add>, %7, %cst_2 [1] : vector<36x64xf32> to vector<36xf32>
    %9 = vector.shape_cast %8 : vector<36xf32> to vector<36x1xf32>
    %cst_3 = arith.constant 6.400000e+01 : f32
    %10 = vector.broadcast %cst_3 : f32 to vector<36x1xf32>
    %11 = arith.divf %9, %10 : vector<36x1xf32>
    %12 = vector.broadcast %4 : vector<36x1xf32> to vector<36x64xf32>
    %13 = arith.subf %0, %12 : vector<36x64xf32>
    %cst_4 = arith.constant 9.99999997E-7 : f32
    %14 = vector.broadcast %cst_4 : f32 to vector<36x1xf32>
    %15 = arith.addf %11, %14 : vector<36x1xf32>
    %16 = math.rsqrt %15 : vector<36x1xf32>
    %17 = vector.broadcast %16 : vector<36x1xf32> to vector<36x64xf32>
    %18 = arith.mulf %13, %17 : vector<36x64xf32>
    %c0_5 = arith.constant 0 : index
    %c0_6 = arith.constant 0 : index
    %19 = vector.load %arg7[%c0_5, %c0_6] : memref<1x64xf32, #tpu.memory_space<vmem>>, vector<1x64xf32>
    %20 = vector.broadcast %19 : vector<1x64xf32> to vector<36x64xf32>
    %21 = arith.mulf %18, %20 : vector<36x64xf32>
    %c0_7 = arith.constant 0 : index
    %c0_8 = arith.constant 0 : index
    %22 = vector.load %arg8[%c0_7, %c0_8] : memref<1x64xf32, #tpu.memory_space<vmem>>, vector<1x64xf32>
    %23 = vector.broadcast %22 : vector<1x64xf32> to vector<36x64xf32>
    %24 = arith.addf %21, %23 : vector<36x64xf32>
    %cst_9 = arith.constant 9.07050514 : f32
    %25 = vector.broadcast %cst_9 : f32 to vector<36x64xf32>
    %26 = arith.mulf %24, %25 : vector<36x64xf32>
    %cst_10 = arith.constant 0.000000e+00 : f32
    %27 = vector.broadcast %cst_10 : f32 to vector<36x64xf32>
    %28 = arith.addf %26, %27 : vector<36x64xf32>
    %cst_11 = arith.constant -8.000000e+00 : f32
    %cst_12 = arith.constant 7.000000e+00 : f32
    %29 = vector.broadcast %cst_11 : f32 to vector<36x64xf32>
    %30 = arith.maximumf %29, %28 : vector<36x64xf32>
    %31 = vector.broadcast %cst_12 : f32 to vector<36x64xf32>
    %32 = arith.minimumf %31, %30 : vector<36x64xf32>
    %33 = math.roundeven %32 : vector<36x64xf32>
    %34 = arith.truncf %33 : vector<36x64xf32> to vector<36x64xbf16>
    %c0_13 = arith.constant 0 : index
    %c0_14 = arith.constant 0 : index
    %35 = vector.load %arg4[%c0_13, %c0_14] : memref<64x256xbf16, #tpu.memory_space<vmem>>, vector<64x256xbf16>
    %cst_15 = arith.constant dense<0.000000e+00> : vector<36x256xf32>
    %36 = tpu.matmul %34, %35, %cst_15 {dimension_numbers = #tpu.dot_dimension_numbers<[1], [0], [0], [1], [0, 0, 1, 1], [], []>} : vector<36x64xbf16>, vector<64x256xbf16>, vector<36x256xf32> -> vector<36x256xf32>
    %c0_16 = arith.constant 0 : index
    %c0_17 = arith.constant 0 : index
    %37 = vector.load %arg5[%c0_16, %c0_17] : memref<1x256xf32, #tpu.memory_space<vmem>>, vector<1x256xf32>
    %38 = vector.broadcast %37 : vector<1x256xf32> to vector<36x256xf32>
    %39 = arith.mulf %36, %38 : vector<36x256xf32>
    %c0_18 = arith.constant 0 : index
    %c0_19 = arith.constant 0 : index
    %40 = vector.load %arg6[%c0_18, %c0_19] : memref<1x256xf32, #tpu.memory_space<vmem>>, vector<1x256xf32>
    %41 = vector.broadcast %40 : vector<1x256xf32> to vector<36x256xf32>
    %42 = arith.addf %39, %41 : vector<36x256xf32>
    %43 = arith.mulf %42, %42 : vector<36x256xf32>
    %44 = arith.mulf %42, %43 : vector<36x256xf32>
    %cst_20 = arith.constant 4.471500e-02 : f32
    %45 = vector.broadcast %cst_20 : f32 to vector<36x256xf32>
    %46 = arith.mulf %45, %44 : vector<36x256xf32>
    %47 = arith.addf %42, %46 : vector<36x256xf32>
    %cst_21 = arith.constant 0.797884583 : f32
    %48 = vector.broadcast %cst_21 : f32 to vector<36x256xf32>
    %49 = arith.mulf %48, %47 : vector<36x256xf32>
    %50 = math.tanh %49 : vector<36x256xf32>
    %cst_22 = arith.constant 1.000000e+00 : f32
    %51 = vector.broadcast %cst_22 : f32 to vector<36x256xf32>
    %52 = arith.addf %51, %50 : vector<36x256xf32>
    %cst_23 = arith.constant 5.000000e-01 : f32
    %53 = vector.broadcast %cst_23 : f32 to vector<36x256xf32>
    %54 = arith.mulf %53, %52 : vector<36x256xf32>
    %55 = arith.mulf %42, %54 : vector<36x256xf32>
    %cst_24 = arith.constant 9.18070697 : f32
    %56 = vector.broadcast %cst_24 : f32 to vector<36x256xf32>
    %57 = arith.mulf %55, %56 : vector<36x256xf32>
    %cst_25 = arith.constant 0.000000e+00 : f32
    %58 = vector.broadcast %cst_25 : f32 to vector<36x256xf32>
    %59 = arith.addf %57, %58 : vector<36x256xf32>
    %cst_26 = arith.constant -8.000000e+00 : f32
    %cst_27 = arith.constant 7.000000e+00 : f32
    %60 = vector.broadcast %cst_26 : f32 to vector<36x256xf32>
    %61 = arith.maximumf %60, %59 : vector<36x256xf32>
    %62 = vector.broadcast %cst_27 : f32 to vector<36x256xf32>
    %63 = arith.minimumf %62, %61 : vector<36x256xf32>
    %64 = math.roundeven %63 : vector<36x256xf32>
    %65 = arith.truncf %64 : vector<36x256xf32> to vector<36x256xbf16>
    %c0_28 = arith.constant 0 : index
    %c0_29 = arith.constant 0 : index
    %66 = vector.load %arg9[%c0_28, %c0_29] : memref<36x256xbf16, #tpu.memory_space<vmem>>, vector<36x256xbf16>
    tpu.vector_store %arg9[%c0_28, %c0_29], %65 {strides = array<i32>} : memref<36x256xbf16, #tpu.memory_space<vmem>>, vector<36x256xbf16>,
    return
  }
  func.func @transform_0(%arg0: i32, %arg1: i32, %arg2: i32) -> (i32, i32) {
    %c0_i32 = arith.constant 0 : i32
    return %arg0, %arg2 : i32, i32
  }
  func.func @transform_1(%arg0: i32, %arg1: i32, %arg2: i32) -> (i32, i32) {
    %c0_i32 = arith.constant 0 : i32
    return %arg2, %arg1 : i32, i32
  }
  func.func @transform_2(%arg0: i32, %arg1: i32, %arg2: i32) -> (i32, i32) {
    %c0_i32 = arith.constant 0 : i32
    %c0_i32_0 = arith.constant 0 : i32
    return %c0_i32, %arg1 : i32, i32
  }
  func.func @transform_3(%arg0: i32, %arg1: i32, %arg2: i32) -> (i32, i32) {
    %c0_i32 = arith.constant 0 : i32
    %c0_i32_0 = arith.constant 0 : i32
    return %c0_i32, %arg1 : i32, i32
  }
  func.func @transform_4(%arg0: i32, %arg1: i32, %arg2: i32) -> (i32, i32) {
    %c0_i32 = arith.constant 0 : i32
    %c0_i32_0 = arith.constant 0 : i32
    %c0_i32_1 = arith.constant 0 : i32
    return %c0_i32, %c0_i32_0 : i32, i32
  }
  func.func @transform_5(%arg0: i32, %arg1: i32, %arg2: i32) -> (i32, i32) {
    %c0_i32 = arith.constant 0 : i32
    %c0_i32_0 = arith.constant 0 : i32
    %c0_i32_1 = arith.constant 0 : i32
    return %c0_i32, %c0_i32_0 : i32, i32
  }
  func.func @transform_6(%arg0: i32, %arg1: i32, %arg2: i32) -> (i32, i32) {
    %c0_i32 = arith.constant 0 : i32
    return %arg0, %arg1 : i32, i32
  }
}

module attributes {stable_mosaic.version = 11 : i64} {
  func.func @_fused_linear_kernel(%arg0: i32, %arg1: i32, %arg2: i32, %arg3: memref<36x256xbf16, #tpu.memory_space<vmem>>, %arg4: memref<256x64xbf16, #tpu.memory_space<vmem>>, %arg5: memref<1x64xf32, #tpu.memory_space<vmem>>, %arg6: memref<1x64xf32, #tpu.memory_space<vmem>>, %arg7: memref<36x64xf32, #tpu.memory_space<vmem>>, %arg8: memref<36x64xf32, #tpu.memory_space<vmem>>) attributes {dimension_semantics = [#tpu.dimension_semantics<parallel>, #tpu.dimension_semantics<parallel>, #tpu.dimension_semantics<arbitrary>], iteration_bounds = array<i64: 1, 1, 1>, scalar_prefetch = 0 : i64, scratch_operands = 0 : i64, tpu.core_type = #tpu.core_type<tc>, window_params = [{transform_indices = @transform_0, window_bounds = array<i64: 36, 256>}, {transform_indices = @transform_1, window_bounds = array<i64: 256, 64>}, {transform_indices = @transform_2, window_bounds = array<i64: 1, 64>}, {transform_indices = @transform_3, window_bounds = array<i64: 1, 64>}, {transform_indices = @transform_4, window_bounds = array<i64: 36, 64>}, {transform_indices = @transform_5, window_bounds = array<i64: 36, 64>}]} {
    %c0 = arith.constant 0 : index
    %c0_0 = arith.constant 0 : index
    %0 = vector.load %arg3[%c0, %c0_0] : memref<36x256xbf16, #tpu.memory_space<vmem>>, vector<36x256xbf16>
    %c0_1 = arith.constant 0 : index
    %c0_2 = arith.constant 0 : index
    %1 = vector.load %arg4[%c0_1, %c0_2] : memref<256x64xbf16, #tpu.memory_space<vmem>>, vector<256x64xbf16>
    %cst = arith.constant dense<0.000000e+00> : vector<36x64xf32>
    %2 = tpu.matmul %0, %1, %cst {dimension_numbers = #tpu.dot_dimension_numbers<[1], [0], [0], [1], [0, 0, 1, 1], [], []>} : vector<36x256xbf16>, vector<256x64xbf16>, vector<36x64xf32> -> vector<36x64xf32>
    %c0_3 = arith.constant 0 : index
    %c0_4 = arith.constant 0 : index
    %3 = vector.load %arg5[%c0_3, %c0_4] : memref<1x64xf32, #tpu.memory_space<vmem>>, vector<1x64xf32>
    %4 = vector.broadcast %3 : vector<1x64xf32> to vector<36x64xf32>
    %5 = arith.mulf %2, %4 : vector<36x64xf32>
    %c0_5 = arith.constant 0 : index
    %c0_6 = arith.constant 0 : index
    %6 = vector.load %arg6[%c0_5, %c0_6] : memref<1x64xf32, #tpu.memory_space<vmem>>, vector<1x64xf32>
    %7 = vector.broadcast %6 : vector<1x64xf32> to vector<36x64xf32>
    %8 = arith.addf %5, %7 : vector<36x64xf32>
    %c0_7 = arith.constant 0 : index
    %c0_8 = arith.constant 0 : index
    %9 = vector.load %arg7[%c0_7, %c0_8] : memref<36x64xf32, #tpu.memory_space<vmem>>, vector<36x64xf32>
    %10 = arith.addf %8, %9 : vector<36x64xf32>
    %c0_9 = arith.constant 0 : index
    %c0_10 = arith.constant 0 : index
    %11 = vector.load %arg8[%c0_9, %c0_10] : memref<36x64xf32, #tpu.memory_space<vmem>>, vector<36x64xf32>
    tpu.vector_store %arg8[%c0_9, %c0_10], %10 {strides = array<i32>} : memref<36x64xf32, #tpu.memory_space<vmem>>, vector<36x64xf32>,
    return
  }
  func.func @transform_0(%arg0: i32, %arg1: i32, %arg2: i32) -> (i32, i32) {
    %c0_i32 = arith.constant 0 : i32
    return %arg0, %arg2 : i32, i32
  }
  func.func @transform_1(%arg0: i32, %arg1: i32, %arg2: i32) -> (i32, i32) {
    %c0_i32 = arith.constant 0 : i32
    return %arg2, %arg1 : i32, i32
  }
  func.func @transform_2(%arg0: i32, %arg1: i32, %arg2: i32) -> (i32, i32) {
    %c0_i32 = arith.constant 0 : i32
    %c0_i32_0 = arith.constant 0 : i32
    return %c0_i32, %arg1 : i32, i32
  }
  func.func @transform_3(%arg0: i32, %arg1: i32, %arg2: i32) -> (i32, i32) {
    %c0_i32 = arith.constant 0 : i32
    %c0_i32_0 = arith.constant 0 : i32
    return %c0_i32, %arg1 : i32, i32
  }
  func.func @transform_4(%arg0: i32, %arg1: i32, %arg2: i32) -> (i32, i32) {
    %c0_i32 = arith.constant 0 : i32
    return %arg0, %arg1 : i32, i32
  }
  func.func @transform_5(%arg0: i32, %arg1: i32, %arg2: i32) -> (i32, i32) {
    %c0_i32 = arith.constant 0 : i32
    return %arg0, %arg1 : i32, i32
  }
}

module attributes {stable_mosaic.version = 11 : i64} {
  func.func @_fused_linear_kernel(%arg0: i32, %arg1: i32, %arg2: i32, %arg3: memref<36x64xf32, #tpu.memory_space<vmem>>, %arg4: memref<64x192xbf16, #tpu.memory_space<vmem>>, %arg5: memref<1x192xf32, #tpu.memory_space<vmem>>, %arg6: memref<1x192xf32, #tpu.memory_space<vmem>>, %arg7: memref<1x64xf32, #tpu.memory_space<vmem>>, %arg8: memref<1x64xf32, #tpu.memory_space<vmem>>, %arg9: memref<36x192xbf16, #tpu.memory_space<vmem>>) attributes {dimension_semantics = [#tpu.dimension_semantics<parallel>, #tpu.dimension_semantics<parallel>, #tpu.dimension_semantics<arbitrary>], iteration_bounds = array<i64: 1, 1, 1>, scalar_prefetch = 0 : i64, scratch_operands = 0 : i64, tpu.core_type = #tpu.core_type<tc>, window_params = [{transform_indices = @transform_0, window_bounds = array<i64: 36, 64>}, {transform_indices = @transform_1, window_bounds = array<i64: 64, 192>}, {transform_indices = @transform_2, window_bounds = array<i64: 1, 192>}, {transform_indices = @transform_3, window_bounds = array<i64: 1, 192>}, {pipeline_mode = #tpu.pipeline_mode<synchronous>, transform_indices = @transform_4, window_bounds = array<i64: 1, 64>}, {pipeline_mode = #tpu.pipeline_mode<synchronous>, transform_indices = @transform_5, window_bounds = array<i64: 1, 64>}, {transform_indices = @transform_6, window_bounds = array<i64: 36, 192>}]} {
    %c0 = arith.constant 0 : index
    %c0_0 = arith.constant 0 : index
    %0 = vector.load %arg3[%c0, %c0_0] : memref<36x64xf32, #tpu.memory_space<vmem>>, vector<36x64xf32>
    %cst = arith.constant dense<0.000000e+00> : vector<36xf32>
    %1 = vector.multi_reduction <add>, %0, %cst [1] : vector<36x64xf32> to vector<36xf32>
    %2 = vector.shape_cast %1 : vector<36xf32> to vector<36x1xf32>
    %cst_1 = arith.constant 6.400000e+01 : f32
    %3 = vector.broadcast %cst_1 : f32 to vector<36x1xf32>
    %4 = arith.divf %2, %3 : vector<36x1xf32>
    %5 = vector.broadcast %4 : vector<36x1xf32> to vector<36x64xf32>
    %6 = arith.subf %0, %5 : vector<36x64xf32>
    %7 = arith.mulf %6, %6 : vector<36x64xf32>
    %cst_2 = arith.constant dense<0.000000e+00> : vector<36xf32>
    %8 = vector.multi_reduction <add>, %7, %cst_2 [1] : vector<36x64xf32> to vector<36xf32>
    %9 = vector.shape_cast %8 : vector<36xf32> to vector<36x1xf32>
    %cst_3 = arith.constant 6.400000e+01 : f32
    %10 = vector.broadcast %cst_3 : f32 to vector<36x1xf32>
    %11 = arith.divf %9, %10 : vector<36x1xf32>
    %12 = vector.broadcast %4 : vector<36x1xf32> to vector<36x64xf32>
    %13 = arith.subf %0, %12 : vector<36x64xf32>
    %cst_4 = arith.constant 9.99999997E-7 : f32
    %14 = vector.broadcast %cst_4 : f32 to vector<36x1xf32>
    %15 = arith.addf %11, %14 : vector<36x1xf32>
    %16 = math.rsqrt %15 : vector<36x1xf32>
    %17 = vector.broadcast %16 : vector<36x1xf32> to vector<36x64xf32>
    %18 = arith.mulf %13, %17 : vector<36x64xf32>
    %c0_5 = arith.constant 0 : index
    %c0_6 = arith.constant 0 : index
    %19 = vector.load %arg7[%c0_5, %c0_6] : memref<1x64xf32, #tpu.memory_space<vmem>>, vector<1x64xf32>
    %20 = vector.broadcast %19 : vector<1x64xf32> to vector<36x64xf32>
    %21 = arith.mulf %18, %20 : vector<36x64xf32>
    %c0_7 = arith.constant 0 : index
    %c0_8 = arith.constant 0 : index
    %22 = vector.load %arg8[%c0_7, %c0_8] : memref<1x64xf32, #tpu.memory_space<vmem>>, vector<1x64xf32>
    %23 = vector.broadcast %22 : vector<1x64xf32> to vector<36x64xf32>
    %24 = arith.addf %21, %23 : vector<36x64xf32>
    %cst_9 = arith.constant 9.00236415 : f32
    %25 = vector.broadcast %cst_9 : f32 to vector<36x64xf32>
    %26 = arith.mulf %24, %25 : vector<36x64xf32>
    %cst_10 = arith.constant 0.000000e+00 : f32
    %27 = vector.broadcast %cst_10 : f32 to vector<36x64xf32>
    %28 = arith.addf %26, %27 : vector<36x64xf32>
    %cst_11 = arith.constant -8.000000e+00 : f32
    %cst_12 = arith.constant 7.000000e+00 : f32
    %29 = vector.broadcast %cst_11 : f32 to vector<36x64xf32>
    %30 = arith.maximumf %29, %28 : vector<36x64xf32>
    %31 = vector.broadcast %cst_12 : f32 to vector<36x64xf32>
    %32 = arith.minimumf %31, %30 : vector<36x64xf32>
    %33 = math.roundeven %32 : vector<36x64xf32>
    %34 = arith.truncf %33 : vector<36x64xf32> to vector<36x64xbf16>
    %c0_13 = arith.constant 0 : index
    %c0_14 = arith.constant 0 : index
    %35 = vector.load %arg4[%c0_13, %c0_14] : memref<64x192xbf16, #tpu.memory_space<vmem>>, vector<64x192xbf16>
    %cst_15 = arith.constant dense<0.000000e+00> : vector<36x192xf32>
    %36 = tpu.matmul %34, %35, %cst_15 {dimension_numbers = #tpu.dot_dimension_numbers<[1], [0], [0], [1], [0, 0, 1, 1], [], []>} : vector<36x64xbf16>, vector<64x192xbf16>, vector<36x192xf32> -> vector<36x192xf32>
    %c0_16 = arith.constant 0 : index
    %c0_17 = arith.constant 0 : index
    %37 = vector.load %arg5[%c0_16, %c0_17] : memref<1x192xf32, #tpu.memory_space<vmem>>, vector<1x192xf32>
    %38 = vector.broadcast %37 : vector<1x192xf32> to vector<36x192xf32>
    %39 = arith.mulf %36, %38 : vector<36x192xf32>
    %c0_18 = arith.constant 0 : index
    %c0_19 = arith.constant 0 : index
    %40 = vector.load %arg6[%c0_18, %c0_19] : memref<1x192xf32, #tpu.memory_space<vmem>>, vector<1x192xf32>
    %41 = vector.broadcast %40 : vector<1x192xf32> to vector<36x192xf32>
    %42 = arith.addf %39, %41 : vector<36x192xf32>
    %43 = arith.truncf %42 : vector<36x192xf32> to vector<36x192xbf16>
    %c0_20 = arith.constant 0 : index
    %c0_21 = arith.constant 0 : index
    %44 = vector.load %arg9[%c0_20, %c0_21] : memref<36x192xbf16, #tpu.memory_space<vmem>>, vector<36x192xbf16>
    tpu.vector_store %arg9[%c0_20, %c0_21], %43 {strides = array<i32>} : memref<36x192xbf16, #tpu.memory_space<vmem>>, vector<36x192xbf16>,
    return
  }
  func.func @transform_0(%arg0: i32, %arg1: i32, %arg2: i32) -> (i32, i32) {
    %c0_i32 = arith.constant 0 : i32
    return %arg0, %arg2 : i32, i32
  }
  func.func @transform_1(%arg0: i32, %arg1: i32, %arg2: i32) -> (i32, i32) {
    %c0_i32 = arith.constant 0 : i32
    return %arg2, %arg1 : i32, i32
  }
  func.func @transform_2(%arg0: i32, %arg1: i32, %arg2: i32) -> (i32, i32) {
    %c0_i32 = arith.constant 0 : i32
    %c0_i32_0 = arith.constant 0 : i32
    return %c0_i32, %arg1 : i32, i32
  }
  func.func @transform_3(%arg0: i32, %arg1: i32, %arg2: i32) -> (i32, i32) {
    %c0_i32 = arith.constant 0 : i32
    %c0_i32_0 = arith.constant 0 : i32
    return %c0_i32, %arg1 : i32, i32
  }
  func.func @transform_4(%arg0: i32, %arg1: i32, %arg2: i32) -> (i32, i32) {
    %c0_i32 = arith.constant 0 : i32
    %c0_i32_0 = arith.constant 0 : i32
    %c0_i32_1 = arith.constant 0 : i32
    return %c0_i32, %c0_i32_0 : i32, i32
  }
  func.func @transform_5(%arg0: i32, %arg1: i32, %arg2: i32) -> (i32, i32) {
    %c0_i32 = arith.constant 0 : i32
    %c0_i32_0 = arith.constant 0 : i32
    %c0_i32_1 = arith.constant 0 : i32
    return %c0_i32, %c0_i32_0 : i32, i32
  }
  func.func @transform_6(%arg0: i32, %arg1: i32, %arg2: i32) -> (i32, i32) {
    %c0_i32 = arith.constant 0 : i32
    return %arg0, %arg1 : i32, i32
  }
}

module attributes {stable_mosaic.version = 11 : i64} {
  func.func @_attention_kernel(%arg0: i32, %arg1: i32, %arg2: memref<1x18x64xbf16, #tpu.memory_space<vmem>>, %arg3: memref<1x18x64xbf16, #tpu.memory_space<vmem>>, %arg4: memref<1x18x64xbf16, #tpu.memory_space<vmem>>, %arg5: memref<1x16xf32, #tpu.memory_space<vmem>>, %arg6: memref<1x16xf32, #tpu.memory_space<vmem>>, %arg7: memref<1x16xf32, #tpu.memory_space<vmem>>, %arg8: memref<1x16xf32, #tpu.memory_space<vmem>>, %arg9: memref<1x18x64xbf16, #tpu.memory_space<vmem>>) attributes {dimension_semantics = [#tpu.dimension_semantics<parallel>, #tpu.dimension_semantics<parallel>], iteration_bounds = array<i64: 2, 1>, scalar_prefetch = 0 : i64, scratch_operands = 0 : i64, tpu.core_type = #tpu.core_type<tc>, window_params = [{transform_indices = @transform_0, window_bounds = array<i64: 1, 18, 64>}, {transform_indices = @transform_1, window_bounds = array<i64: 1, 18, 64>}, {transform_indices = @transform_2, window_bounds = array<i64: 1, 18, 64>}, {pipeline_mode = #tpu.pipeline_mode<synchronous>, transform_indices = @transform_3, window_bounds = array<i64: 1, 16>}, {pipeline_mode = #tpu.pipeline_mode<synchronous>, transform_indices = @transform_4, window_bounds = array<i64: 1, 16>}, {pipeline_mode = #tpu.pipeline_mode<synchronous>, transform_indices = @transform_5, window_bounds = array<i64: 1, 16>}, {pipeline_mode = #tpu.pipeline_mode<synchronous>, transform_indices = @transform_6, window_bounds = array<i64: 1, 16>}, {transform_indices = @transform_7, window_bounds = array<i64: 1, 18, 64>}]} {
    %c0 = arith.constant 0 : index
    %c0_0 = arith.constant 0 : index
    %0 = vector.load %arg5[%c0, %c0_0] : memref<1x16xf32, #tpu.memory_space<vmem>>, vector<1x16xf32>
    %c0_1 = arith.constant 0 : index
    %c0_2 = arith.constant 0 : index
    %1 = vector.load %arg6[%c0_1, %c0_2] : memref<1x16xf32, #tpu.memory_space<vmem>>, vector<1x16xf32>
    %c0_3 = arith.constant 0 : index
    %c0_4 = arith.constant 0 : index
    %2 = vector.load %arg7[%c0_3, %c0_4] : memref<1x16xf32, #tpu.memory_space<vmem>>, vector<1x16xf32>
    %c0_5 = arith.constant 0 : index
    %c0_6 = arith.constant 0 : index
    %3 = vector.load %arg8[%c0_5, %c0_6] : memref<1x16xf32, #tpu.memory_space<vmem>>, vector<1x16xf32>
    %c0_7 = arith.constant 0 : index
    %c0_8 = arith.constant 0 : index
    %c0_9 = arith.constant 0 : index
    %4 = vector.load %arg2[%c0_7, %c0_8, %c0_9] : memref<1x18x64xbf16, #tpu.memory_space<vmem>>, vector<1x18x16xbf16>
    %5 = vector.shape_cast %4 : vector<1x18x16xbf16> to vector<18x16xbf16>
    %6 = arith.extf %5 : vector<18x16xbf16> to vector<18x16xf32>
    %c0_10 = arith.constant 0 : index
    %c0_11 = arith.constant 0 : index
    %c0_12 = arith.constant 0 : index
    %7 = vector.load %arg3[%c0_10, %c0_11, %c0_12] : memref<1x18x64xbf16, #tpu.memory_space<vmem>>, vector<1x18x16xbf16>
    %8 = vector.shape_cast %7 : vector<1x18x16xbf16> to vector<18x16xbf16>
    %9 = arith.extf %8 : vector<18x16xbf16> to vector<18x16xf32>
    %c0_13 = arith.constant 0 : index
    %c0_14 = arith.constant 0 : index
    %c0_15 = arith.constant 0 : index
    %10 = vector.load %arg4[%c0_13, %c0_14, %c0_15] : memref<1x18x64xbf16, #tpu.memory_space<vmem>>, vector<1x18x16xbf16>
    %11 = vector.shape_cast %10 : vector<1x18x16xbf16> to vector<18x16xbf16>
    %12 = arith.extf %11 : vector<18x16xbf16> to vector<18x16xf32>
    %cst = arith.constant dense<0.000000e+00> : vector<18xf32>
    %13 = vector.multi_reduction <add>, %6, %cst [1] : vector<18x16xf32> to vector<18xf32>
    %14 = vector.shape_cast %13 : vector<18xf32> to vector<18x1xf32>
    %cst_16 = arith.constant 1.600000e+01 : f32
    %15 = vector.broadcast %cst_16 : f32 to vector<18x1xf32>
    %16 = arith.divf %14, %15 : vector<18x1xf32>
    %17 = vector.broadcast %16 : vector<18x1xf32> to vector<18x16xf32>
    %18 = arith.subf %6, %17 : vector<18x16xf32>
    %19 = arith.mulf %18, %18 : vector<18x16xf32>
    %cst_17 = arith.constant dense<0.000000e+00> : vector<18xf32>
    %20 = vector.multi_reduction <add>, %19, %cst_17 [1] : vector<18x16xf32> to vector<18xf32>
    %21 = vector.shape_cast %20 : vector<18xf32> to vector<18x1xf32>
    %cst_18 = arith.constant 1.600000e+01 : f32
    %22 = vector.broadcast %cst_18 : f32 to vector<18x1xf32>
    %23 = arith.divf %21, %22 : vector<18x1xf32>
    %24 = vector.broadcast %16 : vector<18x1xf32> to vector<18x16xf32>
    %25 = arith.subf %6, %24 : vector<18x16xf32>
    %cst_19 = arith.constant 9.99999974E-6 : f32
    %26 = vector.broadcast %cst_19 : f32 to vector<18x1xf32>
    %27 = arith.addf %23, %26 : vector<18x1xf32>
    %28 = math.rsqrt %27 : vector<18x1xf32>
    %29 = vector.broadcast %28 : vector<18x1xf32> to vector<18x16xf32>
    %30 = arith.mulf %25, %29 : vector<18x16xf32>
    %31 = vector.broadcast %0 : vector<1x16xf32> to vector<18x16xf32>
    %32 = arith.mulf %30, %31 : vector<18x16xf32>
    %33 = vector.broadcast %1 : vector<1x16xf32> to vector<18x16xf32>
    %34 = arith.addf %32, %33 : vector<18x16xf32>
    %cst_20 = arith.constant 8.66657639 : f32
    %35 = vector.broadcast %cst_20 : f32 to vector<18x16xf32>
    %36 = arith.mulf %34, %35 : vector<18x16xf32>
    %cst_21 = arith.constant 0.000000e+00 : f32
    %37 = vector.broadcast %cst_21 : f32 to vector<18x16xf32>
    %38 = arith.addf %36, %37 : vector<18x16xf32>
    %cst_22 = arith.constant -8.000000e+00 : f32
    %cst_23 = arith.constant 7.000000e+00 : f32
    %39 = vector.broadcast %cst_22 : f32 to vector<18x16xf32>
    %40 = arith.maximumf %39, %38 : vector<18x16xf32>
    %41 = vector.broadcast %cst_23 : f32 to vector<18x16xf32>
    %42 = arith.minimumf %41, %40 : vector<18x16xf32>
    %43 = math.roundeven %42 : vector<18x16xf32>
    %cst_24 = arith.constant dense<0.000000e+00> : vector<18xf32>
    %44 = vector.multi_reduction <add>, %9, %cst_24 [1] : vector<18x16xf32> to vector<18xf32>
    %45 = vector.shape_cast %44 : vector<18xf32> to vector<18x1xf32>
    %cst_25 = arith.constant 1.600000e+01 : f32
    %46 = vector.broadcast %cst_25 : f32 to vector<18x1xf32>
    %47 = arith.divf %45, %46 : vector<18x1xf32>
    %48 = vector.broadcast %47 : vector<18x1xf32> to vector<18x16xf32>
    %49 = arith.subf %9, %48 : vector<18x16xf32>
    %50 = arith.mulf %49, %49 : vector<18x16xf32>
    %cst_26 = arith.constant dense<0.000000e+00> : vector<18xf32>
    %51 = vector.multi_reduction <add>, %50, %cst_26 [1] : vector<18x16xf32> to vector<18xf32>
    %52 = vector.shape_cast %51 : vector<18xf32> to vector<18x1xf32>
    %cst_27 = arith.constant 1.600000e+01 : f32
    %53 = vector.broadcast %cst_27 : f32 to vector<18x1xf32>
    %54 = arith.divf %52, %53 : vector<18x1xf32>
    %55 = vector.broadcast %47 : vector<18x1xf32> to vector<18x16xf32>
    %56 = arith.subf %9, %55 : vector<18x16xf32>
    %cst_28 = arith.constant 9.99999974E-6 : f32
    %57 = vector.broadcast %cst_28 : f32 to vector<18x1xf32>
    %58 = arith.addf %54, %57 : vector<18x1xf32>
    %59 = math.rsqrt %58 : vector<18x1xf32>
    %60 = vector.broadcast %59 : vector<18x1xf32> to vector<18x16xf32>
    %61 = arith.mulf %56, %60 : vector<18x16xf32>
    %62 = vector.broadcast %2 : vector<1x16xf32> to vector<18x16xf32>
    %63 = arith.mulf %61, %62 : vector<18x16xf32>
    %64 = vector.broadcast %3 : vector<1x16xf32> to vector<18x16xf32>
    %65 = arith.addf %63, %64 : vector<18x16xf32>
    %cst_29 = arith.constant 9.11900711 : f32
    %66 = vector.broadcast %cst_29 : f32 to vector<18x16xf32>
    %67 = arith.mulf %65, %66 : vector<18x16xf32>
    %cst_30 = arith.constant 0.000000e+00 : f32
    %68 = vector.broadcast %cst_30 : f32 to vector<18x16xf32>
    %69 = arith.addf %67, %68 : vector<18x16xf32>
    %cst_31 = arith.constant -8.000000e+00 : f32
    %cst_32 = arith.constant 7.000000e+00 : f32
    %70 = vector.broadcast %cst_31 : f32 to vector<18x16xf32>
    %71 = arith.maximumf %70, %69 : vector<18x16xf32>
    %72 = vector.broadcast %cst_32 : f32 to vector<18x16xf32>
    %73 = arith.minimumf %72, %71 : vector<18x16xf32>
    %74 = math.roundeven %73 : vector<18x16xf32>
    %cst_33 = arith.constant 0.111081928 : f32
    %75 = vector.broadcast %cst_33 : f32 to vector<18x16xf32>
    %76 = arith.mulf %12, %75 : vector<18x16xf32>
    %cst_34 = arith.constant 9.34450817 : f32
    %77 = vector.broadcast %cst_34 : f32 to vector<18x16xf32>
    %78 = arith.mulf %76, %77 : vector<18x16xf32>
    %cst_35 = arith.constant 0.000000e+00 : f32
    %79 = vector.broadcast %cst_35 : f32 to vector<18x16xf32>
    %80 = arith.addf %78, %79 : vector<18x16xf32>
    %cst_36 = arith.constant -8.000000e+00 : f32
    %cst_37 = arith.constant 7.000000e+00 : f32
    %81 = vector.broadcast %cst_36 : f32 to vector<18x16xf32>
    %82 = arith.maximumf %81, %80 : vector<18x16xf32>
    %83 = vector.broadcast %cst_37 : f32 to vector<18x16xf32>
    %84 = arith.minimumf %83, %82 : vector<18x16xf32>
    %85 = math.roundeven %84 : vector<18x16xf32>
    %86 = arith.truncf %43 : vector<18x16xf32> to vector<18x16xbf16>
    %87 = arith.truncf %74 : vector<18x16xf32> to vector<18x16xbf16>
    %cst_38 = arith.constant dense<0.000000e+00> : vector<18x18xf32>
    %88 = tpu.matmul %86, %87, %cst_38 {dimension_numbers = #tpu.dot_dimension_numbers<[1], [1], [0], [0], [0, 0, 1, 0], [], []>} : vector<18x16xbf16>, vector<18x16xbf16>, vector<18x18xf32> -> vector<18x18xf32>
    %cst_39 = arith.constant 0.00316333259 : f32
    %89 = vector.broadcast %cst_39 : f32 to vector<18x18xf32>
    %90 = arith.mulf %88, %89 : vector<18x18xf32>
    %cst_40 = arith.constant dense<0xFF800000> : vector<18xf32>
    %91 = vector.multi_reduction <maximumf>, %90, %cst_40 [1] : vector<18x18xf32> to vector<18xf32>
    %92 = vector.shape_cast %91 : vector<18xf32> to vector<18x1xf32>
    %93 = vector.broadcast %92 : vector<18x1xf32> to vector<18x18xf32>
    %94 = arith.subf %90, %93 : vector<18x18xf32>
    %95 = math.exp %94 : vector<18x18xf32>
    %cst_41 = arith.constant dense<0.000000e+00> : vector<18xf32>
    %96 = vector.multi_reduction <add>, %95, %cst_41 [1] : vector<18x18xf32> to vector<18xf32>
    %97 = vector.shape_cast %96 : vector<18xf32> to vector<18x1xf32>
    %98 = tpu.reciprocal %97 {approx = true} : vector<18x1xf32> -> vector<18x1xf32>
    %99 = vector.broadcast %98 : vector<18x1xf32> to vector<18x18xf32>
    %100 = arith.mulf %95, %99 : vector<18x18xf32>
    %cst_42 = arith.constant 9.51989746 : f32
    %101 = vector.broadcast %cst_42 : f32 to vector<18x18xf32>
    %102 = arith.mulf %100, %101 : vector<18x18xf32>
    %cst_43 = arith.constant 0.000000e+00 : f32
    %103 = vector.broadcast %cst_43 : f32 to vector<18x18xf32>
    %104 = arith.addf %102, %103 : vector<18x18xf32>
    %cst_44 = arith.constant -8.000000e+00 : f32
    %cst_45 = arith.constant 7.000000e+00 : f32
    %105 = vector.broadcast %cst_44 : f32 to vector<18x18xf32>
    %106 = arith.maximumf %105, %104 : vector<18x18xf32>
    %107 = vector.broadcast %cst_45 : f32 to vector<18x18xf32>
    %108 = arith.minimumf %107, %106 : vector<18x18xf32>
    %109 = math.roundeven %108 : vector<18x18xf32>
    %cst_46 = arith.constant 0.000000e+00 : f32
    %110 = vector.broadcast %cst_46 : f32 to vector<18x18xf32>
    %111 = arith.subf %109, %110 : vector<18x18xf32>
    %112 = math.roundeven %111 : vector<18x18xf32>
    %113 = arith.truncf %112 : vector<18x18xf32> to vector<18x18xbf16>
    %114 = arith.truncf %85 : vector<18x16xf32> to vector<18x16xbf16>
    %cst_47 = arith.constant dense<0.000000e+00> : vector<18x16xf32>
    %115 = tpu.matmul %113, %114, %cst_47 {dimension_numbers = #tpu.dot_dimension_numbers<[1], [0], [0], [1], [0, 0, 1, 1], [], []>} : vector<18x18xbf16>, vector<18x16xbf16>, vector<18x16xf32> -> vector<18x16xf32>
    %cst_48 = arith.constant 0.0112411631 : f32
    %116 = vector.broadcast %cst_48 : f32 to vector<18x16xf32>
    %117 = arith.mulf %115, %116 : vector<18x16xf32>
    %cst_49 = arith.constant 9.0680828 : f32
    %118 = vector.broadcast %cst_49 : f32 to vector<18x16xf32>
    %119 = arith.mulf %117, %118 : vector<18x16xf32>
    %cst_50 = arith.constant 0.000000e+00 : f32
    %120 = vector.broadcast %cst_50 : f32 to vector<18x16xf32>
    %121 = arith.addf %119, %120 : vector<18x16xf32>
    %cst_51 = arith.constant -8.000000e+00 : f32
    %cst_52 = arith.constant 7.000000e+00 : f32
    %122 = vector.broadcast %cst_51 : f32 to vector<18x16xf32>
    %123 = arith.maximumf %122, %121 : vector<18x16xf32>
    %124 = vector.broadcast %cst_52 : f32 to vector<18x16xf32>
    %125 = arith.minimumf %124, %123 : vector<18x16xf32>
    %126 = math.roundeven %125 : vector<18x16xf32>
    %c0_53 = arith.constant 0 : index
    %c0_54 = arith.constant 0 : index
    %c16 = arith.constant 16 : index
    %127 = vector.load %arg2[%c0_53, %c0_54, %c16] : memref<1x18x64xbf16, #tpu.memory_space<vmem>>, vector<1x18x16xbf16>
    %128 = vector.shape_cast %127 : vector<1x18x16xbf16> to vector<18x16xbf16>
    %129 = arith.extf %128 : vector<18x16xbf16> to vector<18x16xf32>
    %c0_55 = arith.constant 0 : index
    %c0_56 = arith.constant 0 : index
    %c16_57 = arith.constant 16 : index
    %130 = vector.load %arg3[%c0_55, %c0_56, %c16_57] : memref<1x18x64xbf16, #tpu.memory_space<vmem>>, vector<1x18x16xbf16>
    %131 = vector.shape_cast %130 : vector<1x18x16xbf16> to vector<18x16xbf16>
    %132 = arith.extf %131 : vector<18x16xbf16> to vector<18x16xf32>
    %c0_58 = arith.constant 0 : index
    %c0_59 = arith.constant 0 : index
    %c16_60 = arith.constant 16 : index
    %133 = vector.load %arg4[%c0_58, %c0_59, %c16_60] : memref<1x18x64xbf16, #tpu.memory_space<vmem>>, vector<1x18x16xbf16>
    %134 = vector.shape_cast %133 : vector<1x18x16xbf16> to vector<18x16xbf16>
    %135 = arith.extf %134 : vector<18x16xbf16> to vector<18x16xf32>
    %cst_61 = arith.constant dense<0.000000e+00> : vector<18xf32>
    %136 = vector.multi_reduction <add>, %129, %cst_61 [1] : vector<18x16xf32> to vector<18xf32>
    %137 = vector.shape_cast %136 : vector<18xf32> to vector<18x1xf32>
    %cst_62 = arith.constant 1.600000e+01 : f32
    %138 = vector.broadcast %cst_62 : f32 to vector<18x1xf32>
    %139 = arith.divf %137, %138 : vector<18x1xf32>
    %140 = vector.broadcast %139 : vector<18x1xf32> to vector<18x16xf32>
    %141 = arith.subf %129, %140 : vector<18x16xf32>
    %142 = arith.mulf %141, %141 : vector<18x16xf32>
    %cst_63 = arith.constant dense<0.000000e+00> : vector<18xf32>
    %143 = vector.multi_reduction <add>, %142, %cst_63 [1] : vector<18x16xf32> to vector<18xf32>
    %144 = vector.shape_cast %143 : vector<18xf32> to vector<18x1xf32>
    %cst_64 = arith.constant 1.600000e+01 : f32
    %145 = vector.broadcast %cst_64 : f32 to vector<18x1xf32>
    %146 = arith.divf %144, %145 : vector<18x1xf32>
    %147 = vector.broadcast %139 : vector<18x1xf32> to vector<18x16xf32>
    %148 = arith.subf %129, %147 : vector<18x16xf32>
    %cst_65 = arith.constant 9.99999974E-6 : f32
    %149 = vector.broadcast %cst_65 : f32 to vector<18x1xf32>
    %150 = arith.addf %146, %149 : vector<18x1xf32>
    %151 = math.rsqrt %150 : vector<18x1xf32>
    %152 = vector.broadcast %151 : vector<18x1xf32> to vector<18x16xf32>
    %153 = arith.mulf %148, %152 : vector<18x16xf32>
    %154 = vector.broadcast %0 : vector<1x16xf32> to vector<18x16xf32>
    %155 = arith.mulf %153, %154 : vector<18x16xf32>
    %156 = vector.broadcast %1 : vector<1x16xf32> to vector<18x16xf32>
    %157 = arith.addf %155, %156 : vector<18x16xf32>
    %cst_66 = arith.constant 8.66657639 : f32
    %158 = vector.broadcast %cst_66 : f32 to vector<18x16xf32>
    %159 = arith.mulf %157, %158 : vector<18x16xf32>
    %cst_67 = arith.constant 0.000000e+00 : f32
    %160 = vector.broadcast %cst_67 : f32 to vector<18x16xf32>
    %161 = arith.addf %159, %160 : vector<18x16xf32>
    %cst_68 = arith.constant -8.000000e+00 : f32
    %cst_69 = arith.constant 7.000000e+00 : f32
    %162 = vector.broadcast %cst_68 : f32 to vector<18x16xf32>
    %163 = arith.maximumf %162, %161 : vector<18x16xf32>
    %164 = vector.broadcast %cst_69 : f32 to vector<18x16xf32>
    %165 = arith.minimumf %164, %163 : vector<18x16xf32>
    %166 = math.roundeven %165 : vector<18x16xf32>
    %cst_70 = arith.constant dense<0.000000e+00> : vector<18xf32>
    %167 = vector.multi_reduction <add>, %132, %cst_70 [1] : vector<18x16xf32> to vector<18xf32>
    %168 = vector.shape_cast %167 : vector<18xf32> to vector<18x1xf32>
    %cst_71 = arith.constant 1.600000e+01 : f32
    %169 = vector.broadcast %cst_71 : f32 to vector<18x1xf32>
    %170 = arith.divf %168, %169 : vector<18x1xf32>
    %171 = vector.broadcast %170 : vector<18x1xf32> to vector<18x16xf32>
    %172 = arith.subf %132, %171 : vector<18x16xf32>
    %173 = arith.mulf %172, %172 : vector<18x16xf32>
    %cst_72 = arith.constant dense<0.000000e+00> : vector<18xf32>
    %174 = vector.multi_reduction <add>, %173, %cst_72 [1] : vector<18x16xf32> to vector<18xf32>
    %175 = vector.shape_cast %174 : vector<18xf32> to vector<18x1xf32>
    %cst_73 = arith.constant 1.600000e+01 : f32
    %176 = vector.broadcast %cst_73 : f32 to vector<18x1xf32>
    %177 = arith.divf %175, %176 : vector<18x1xf32>
    %178 = vector.broadcast %170 : vector<18x1xf32> to vector<18x16xf32>
    %179 = arith.subf %132, %178 : vector<18x16xf32>
    %cst_74 = arith.constant 9.99999974E-6 : f32
    %180 = vector.broadcast %cst_74 : f32 to vector<18x1xf32>
    %181 = arith.addf %177, %180 : vector<18x1xf32>
    %182 = math.rsqrt %181 : vector<18x1xf32>
    %183 = vector.broadcast %182 : vector<18x1xf32> to vector<18x16xf32>
    %184 = arith.mulf %179, %183 : vector<18x16xf32>
    %185 = vector.broadcast %2 : vector<1x16xf32> to vector<18x16xf32>
    %186 = arith.mulf %184, %185 : vector<18x16xf32>
    %187 = vector.broadcast %3 : vector<1x16xf32> to vector<18x16xf32>
    %188 = arith.addf %186, %187 : vector<18x16xf32>
    %cst_75 = arith.constant 9.11900711 : f32
    %189 = vector.broadcast %cst_75 : f32 to vector<18x16xf32>
    %190 = arith.mulf %188, %189 : vector<18x16xf32>
    %cst_76 = arith.constant 0.000000e+00 : f32
    %191 = vector.broadcast %cst_76 : f32 to vector<18x16xf32>
    %192 = arith.addf %190, %191 : vector<18x16xf32>
    %cst_77 = arith.constant -8.000000e+00 : f32
    %cst_78 = arith.constant 7.000000e+00 : f32
    %193 = vector.broadcast %cst_77 : f32 to vector<18x16xf32>
    %194 = arith.maximumf %193, %192 : vector<18x16xf32>
    %195 = vector.broadcast %cst_78 : f32 to vector<18x16xf32>
    %196 = arith.minimumf %195, %194 : vector<18x16xf32>
    %197 = math.roundeven %196 : vector<18x16xf32>
    %cst_79 = arith.constant 0.111081928 : f32
    %198 = vector.broadcast %cst_79 : f32 to vector<18x16xf32>
    %199 = arith.mulf %135, %198 : vector<18x16xf32>
    %cst_80 = arith.constant 9.34450817 : f32
    %200 = vector.broadcast %cst_80 : f32 to vector<18x16xf32>
    %201 = arith.mulf %199, %200 : vector<18x16xf32>
    %cst_81 = arith.constant 0.000000e+00 : f32
    %202 = vector.broadcast %cst_81 : f32 to vector<18x16xf32>
    %203 = arith.addf %201, %202 : vector<18x16xf32>
    %cst_82 = arith.constant -8.000000e+00 : f32
    %cst_83 = arith.constant 7.000000e+00 : f32
    %204 = vector.broadcast %cst_82 : f32 to vector<18x16xf32>
    %205 = arith.maximumf %204, %203 : vector<18x16xf32>
    %206 = vector.broadcast %cst_83 : f32 to vector<18x16xf32>
    %207 = arith.minimumf %206, %205 : vector<18x16xf32>
    %208 = math.roundeven %207 : vector<18x16xf32>
    %209 = arith.truncf %166 : vector<18x16xf32> to vector<18x16xbf16>
    %210 = arith.truncf %197 : vector<18x16xf32> to vector<18x16xbf16>
    %cst_84 = arith.constant dense<0.000000e+00> : vector<18x18xf32>
    %211 = tpu.matmul %209, %210, %cst_84 {dimension_numbers = #tpu.dot_dimension_numbers<[1], [1], [0], [0], [0, 0, 1, 0], [], []>} : vector<18x16xbf16>, vector<18x16xbf16>, vector<18x18xf32> -> vector<18x18xf32>
    %cst_85 = arith.constant 0.00316333259 : f32
    %212 = vector.broadcast %cst_85 : f32 to vector<18x18xf32>
    %213 = arith.mulf %211, %212 : vector<18x18xf32>
    %cst_86 = arith.constant dense<0xFF800000> : vector<18xf32>
    %214 = vector.multi_reduction <maximumf>, %213, %cst_86 [1] : vector<18x18xf32> to vector<18xf32>
    %215 = vector.shape_cast %214 : vector<18xf32> to vector<18x1xf32>
    %216 = vector.broadcast %215 : vector<18x1xf32> to vector<18x18xf32>
    %217 = arith.subf %213, %216 : vector<18x18xf32>
    %218 = math.exp %217 : vector<18x18xf32>
    %cst_87 = arith.constant dense<0.000000e+00> : vector<18xf32>
    %219 = vector.multi_reduction <add>, %218, %cst_87 [1] : vector<18x18xf32> to vector<18xf32>
    %220 = vector.shape_cast %219 : vector<18xf32> to vector<18x1xf32>
    %221 = tpu.reciprocal %220 {approx = true} : vector<18x1xf32> -> vector<18x1xf32>
    %222 = vector.broadcast %221 : vector<18x1xf32> to vector<18x18xf32>
    %223 = arith.mulf %218, %222 : vector<18x18xf32>
    %cst_88 = arith.constant 9.51989746 : f32
    %224 = vector.broadcast %cst_88 : f32 to vector<18x18xf32>
    %225 = arith.mulf %223, %224 : vector<18x18xf32>
    %cst_89 = arith.constant 0.000000e+00 : f32
    %226 = vector.broadcast %cst_89 : f32 to vector<18x18xf32>
    %227 = arith.addf %225, %226 : vector<18x18xf32>
    %cst_90 = arith.constant -8.000000e+00 : f32
    %cst_91 = arith.constant 7.000000e+00 : f32
    %228 = vector.broadcast %cst_90 : f32 to vector<18x18xf32>
    %229 = arith.maximumf %228, %227 : vector<18x18xf32>
    %230 = vector.broadcast %cst_91 : f32 to vector<18x18xf32>
    %231 = arith.minimumf %230, %229 : vector<18x18xf32>
    %232 = math.roundeven %231 : vector<18x18xf32>
    %cst_92 = arith.constant 0.000000e+00 : f32
    %233 = vector.broadcast %cst_92 : f32 to vector<18x18xf32>
    %234 = arith.subf %232, %233 : vector<18x18xf32>
    %235 = math.roundeven %234 : vector<18x18xf32>
    %236 = arith.truncf %235 : vector<18x18xf32> to vector<18x18xbf16>
    %237 = arith.truncf %208 : vector<18x16xf32> to vector<18x16xbf16>
    %cst_93 = arith.constant dense<0.000000e+00> : vector<18x16xf32>
    %238 = tpu.matmul %236, %237, %cst_93 {dimension_numbers = #tpu.dot_dimension_numbers<[1], [0], [0], [1], [0, 0, 1, 1], [], []>} : vector<18x18xbf16>, vector<18x16xbf16>, vector<18x16xf32> -> vector<18x16xf32>
    %cst_94 = arith.constant 0.0112411631 : f32
    %239 = vector.broadcast %cst_94 : f32 to vector<18x16xf32>
    %240 = arith.mulf %238, %239 : vector<18x16xf32>
    %cst_95 = arith.constant 9.0680828 : f32
    %241 = vector.broadcast %cst_95 : f32 to vector<18x16xf32>
    %242 = arith.mulf %240, %241 : vector<18x16xf32>
    %cst_96 = arith.constant 0.000000e+00 : f32
    %243 = vector.broadcast %cst_96 : f32 to vector<18x16xf32>
    %244 = arith.addf %242, %243 : vector<18x16xf32>
    %cst_97 = arith.constant -8.000000e+00 : f32
    %cst_98 = arith.constant 7.000000e+00 : f32
    %245 = vector.broadcast %cst_97 : f32 to vector<18x16xf32>
    %246 = arith.maximumf %245, %244 : vector<18x16xf32>
    %247 = vector.broadcast %cst_98 : f32 to vector<18x16xf32>
    %248 = arith.minimumf %247, %246 : vector<18x16xf32>
    %249 = math.roundeven %248 : vector<18x16xf32>
    %c0_99 = arith.constant 0 : index
    %c0_100 = arith.constant 0 : index
    %c32 = arith.constant 32 : index
    %250 = vector.load %arg2[%c0_99, %c0_100, %c32] : memref<1x18x64xbf16, #tpu.memory_space<vmem>>, vector<1x18x16xbf16>
    %251 = vector.shape_cast %250 : vector<1x18x16xbf16> to vector<18x16xbf16>
    %252 = arith.extf %251 : vector<18x16xbf16> to vector<18x16xf32>
    %c0_101 = arith.constant 0 : index
    %c0_102 = arith.constant 0 : index
    %c32_103 = arith.constant 32 : index
    %253 = vector.load %arg3[%c0_101, %c0_102, %c32_103] : memref<1x18x64xbf16, #tpu.memory_space<vmem>>, vector<1x18x16xbf16>
    %254 = vector.shape_cast %253 : vector<1x18x16xbf16> to vector<18x16xbf16>
    %255 = arith.extf %254 : vector<18x16xbf16> to vector<18x16xf32>
    %c0_104 = arith.constant 0 : index
    %c0_105 = arith.constant 0 : index
    %c32_106 = arith.constant 32 : index
    %256 = vector.load %arg4[%c0_104, %c0_105, %c32_106] : memref<1x18x64xbf16, #tpu.memory_space<vmem>>, vector<1x18x16xbf16>
    %257 = vector.shape_cast %256 : vector<1x18x16xbf16> to vector<18x16xbf16>
    %258 = arith.extf %257 : vector<18x16xbf16> to vector<18x16xf32>
    %cst_107 = arith.constant dense<0.000000e+00> : vector<18xf32>
    %259 = vector.multi_reduction <add>, %252, %cst_107 [1] : vector<18x16xf32> to vector<18xf32>
    %260 = vector.shape_cast %259 : vector<18xf32> to vector<18x1xf32>
    %cst_108 = arith.constant 1.600000e+01 : f32
    %261 = vector.broadcast %cst_108 : f32 to vector<18x1xf32>
    %262 = arith.divf %260, %261 : vector<18x1xf32>
    %263 = vector.broadcast %262 : vector<18x1xf32> to vector<18x16xf32>
    %264 = arith.subf %252, %263 : vector<18x16xf32>
    %265 = arith.mulf %264, %264 : vector<18x16xf32>
    %cst_109 = arith.constant dense<0.000000e+00> : vector<18xf32>
    %266 = vector.multi_reduction <add>, %265, %cst_109 [1] : vector<18x16xf32> to vector<18xf32>
    %267 = vector.shape_cast %266 : vector<18xf32> to vector<18x1xf32>
    %cst_110 = arith.constant 1.600000e+01 : f32
    %268 = vector.broadcast %cst_110 : f32 to vector<18x1xf32>
    %269 = arith.divf %267, %268 : vector<18x1xf32>
    %270 = vector.broadcast %262 : vector<18x1xf32> to vector<18x16xf32>
    %271 = arith.subf %252, %270 : vector<18x16xf32>
    %cst_111 = arith.constant 9.99999974E-6 : f32
    %272 = vector.broadcast %cst_111 : f32 to vector<18x1xf32>
    %273 = arith.addf %269, %272 : vector<18x1xf32>
    %274 = math.rsqrt %273 : vector<18x1xf32>
    %275 = vector.broadcast %274 : vector<18x1xf32> to vector<18x16xf32>
    %276 = arith.mulf %271, %275 : vector<18x16xf32>
    %277 = vector.broadcast %0 : vector<1x16xf32> to vector<18x16xf32>
    %278 = arith.mulf %276, %277 : vector<18x16xf32>
    %279 = vector.broadcast %1 : vector<1x16xf32> to vector<18x16xf32>
    %280 = arith.addf %278, %279 : vector<18x16xf32>
    %cst_112 = arith.constant 8.66657639 : f32
    %281 = vector.broadcast %cst_112 : f32 to vector<18x16xf32>
    %282 = arith.mulf %280, %281 : vector<18x16xf32>
    %cst_113 = arith.constant 0.000000e+00 : f32
    %283 = vector.broadcast %cst_113 : f32 to vector<18x16xf32>
    %284 = arith.addf %282, %283 : vector<18x16xf32>
    %cst_114 = arith.constant -8.000000e+00 : f32
    %cst_115 = arith.constant 7.000000e+00 : f32
    %285 = vector.broadcast %cst_114 : f32 to vector<18x16xf32>
    %286 = arith.maximumf %285, %284 : vector<18x16xf32>
    %287 = vector.broadcast %cst_115 : f32 to vector<18x16xf32>
    %288 = arith.minimumf %287, %286 : vector<18x16xf32>
    %289 = math.roundeven %288 : vector<18x16xf32>
    %cst_116 = arith.constant dense<0.000000e+00> : vector<18xf32>
    %290 = vector.multi_reduction <add>, %255, %cst_116 [1] : vector<18x16xf32> to vector<18xf32>
    %291 = vector.shape_cast %290 : vector<18xf32> to vector<18x1xf32>
    %cst_117 = arith.constant 1.600000e+01 : f32
    %292 = vector.broadcast %cst_117 : f32 to vector<18x1xf32>
    %293 = arith.divf %291, %292 : vector<18x1xf32>
    %294 = vector.broadcast %293 : vector<18x1xf32> to vector<18x16xf32>
    %295 = arith.subf %255, %294 : vector<18x16xf32>
    %296 = arith.mulf %295, %295 : vector<18x16xf32>
    %cst_118 = arith.constant dense<0.000000e+00> : vector<18xf32>
    %297 = vector.multi_reduction <add>, %296, %cst_118 [1] : vector<18x16xf32> to vector<18xf32>
    %298 = vector.shape_cast %297 : vector<18xf32> to vector<18x1xf32>
    %cst_119 = arith.constant 1.600000e+01 : f32
    %299 = vector.broadcast %cst_119 : f32 to vector<18x1xf32>
    %300 = arith.divf %298, %299 : vector<18x1xf32>
    %301 = vector.broadcast %293 : vector<18x1xf32> to vector<18x16xf32>
    %302 = arith.subf %255, %301 : vector<18x16xf32>
    %cst_120 = arith.constant 9.99999974E-6 : f32
    %303 = vector.broadcast %cst_120 : f32 to vector<18x1xf32>
    %304 = arith.addf %300, %303 : vector<18x1xf32>
    %305 = math.rsqrt %304 : vector<18x1xf32>
    %306 = vector.broadcast %305 : vector<18x1xf32> to vector<18x16xf32>
    %307 = arith.mulf %302, %306 : vector<18x16xf32>
    %308 = vector.broadcast %2 : vector<1x16xf32> to vector<18x16xf32>
    %309 = arith.mulf %307, %308 : vector<18x16xf32>
    %310 = vector.broadcast %3 : vector<1x16xf32> to vector<18x16xf32>
    %311 = arith.addf %309, %310 : vector<18x16xf32>
    %cst_121 = arith.constant 9.11900711 : f32
    %312 = vector.broadcast %cst_121 : f32 to vector<18x16xf32>
    %313 = arith.mulf %311, %312 : vector<18x16xf32>
    %cst_122 = arith.constant 0.000000e+00 : f32
    %314 = vector.broadcast %cst_122 : f32 to vector<18x16xf32>
    %315 = arith.addf %313, %314 : vector<18x16xf32>
    %cst_123 = arith.constant -8.000000e+00 : f32
    %cst_124 = arith.constant 7.000000e+00 : f32
    %316 = vector.broadcast %cst_123 : f32 to vector<18x16xf32>
    %317 = arith.maximumf %316, %315 : vector<18x16xf32>
    %318 = vector.broadcast %cst_124 : f32 to vector<18x16xf32>
    %319 = arith.minimumf %318, %317 : vector<18x16xf32>
    %320 = math.roundeven %319 : vector<18x16xf32>
    %cst_125 = arith.constant 0.111081928 : f32
    %321 = vector.broadcast %cst_125 : f32 to vector<18x16xf32>
    %322 = arith.mulf %258, %321 : vector<18x16xf32>
    %cst_126 = arith.constant 9.34450817 : f32
    %323 = vector.broadcast %cst_126 : f32 to vector<18x16xf32>
    %324 = arith.mulf %322, %323 : vector<18x16xf32>
    %cst_127 = arith.constant 0.000000e+00 : f32
    %325 = vector.broadcast %cst_127 : f32 to vector<18x16xf32>
    %326 = arith.addf %324, %325 : vector<18x16xf32>
    %cst_128 = arith.constant -8.000000e+00 : f32
    %cst_129 = arith.constant 7.000000e+00 : f32
    %327 = vector.broadcast %cst_128 : f32 to vector<18x16xf32>
    %328 = arith.maximumf %327, %326 : vector<18x16xf32>
    %329 = vector.broadcast %cst_129 : f32 to vector<18x16xf32>
    %330 = arith.minimumf %329, %328 : vector<18x16xf32>
    %331 = math.roundeven %330 : vector<18x16xf32>
    %332 = arith.truncf %289 : vector<18x16xf32> to vector<18x16xbf16>
    %333 = arith.truncf %320 : vector<18x16xf32> to vector<18x16xbf16>
    %cst_130 = arith.constant dense<0.000000e+00> : vector<18x18xf32>
    %334 = tpu.matmul %332, %333, %cst_130 {dimension_numbers = #tpu.dot_dimension_numbers<[1], [1], [0], [0], [0, 0, 1, 0], [], []>} : vector<18x16xbf16>, vector<18x16xbf16>, vector<18x18xf32> -> vector<18x18xf32>
    %cst_131 = arith.constant 0.00316333259 : f32
    %335 = vector.broadcast %cst_131 : f32 to vector<18x18xf32>
    %336 = arith.mulf %334, %335 : vector<18x18xf32>
    %cst_132 = arith.constant dense<0xFF800000> : vector<18xf32>
    %337 = vector.multi_reduction <maximumf>, %336, %cst_132 [1] : vector<18x18xf32> to vector<18xf32>
    %338 = vector.shape_cast %337 : vector<18xf32> to vector<18x1xf32>
    %339 = vector.broadcast %338 : vector<18x1xf32> to vector<18x18xf32>
    %340 = arith.subf %336, %339 : vector<18x18xf32>
    %341 = math.exp %340 : vector<18x18xf32>
    %cst_133 = arith.constant dense<0.000000e+00> : vector<18xf32>
    %342 = vector.multi_reduction <add>, %341, %cst_133 [1] : vector<18x18xf32> to vector<18xf32>
    %343 = vector.shape_cast %342 : vector<18xf32> to vector<18x1xf32>
    %344 = tpu.reciprocal %343 {approx = true} : vector<18x1xf32> -> vector<18x1xf32>
    %345 = vector.broadcast %344 : vector<18x1xf32> to vector<18x18xf32>
    %346 = arith.mulf %341, %345 : vector<18x18xf32>
    %cst_134 = arith.constant 9.51989746 : f32
    %347 = vector.broadcast %cst_134 : f32 to vector<18x18xf32>
    %348 = arith.mulf %346, %347 : vector<18x18xf32>
    %cst_135 = arith.constant 0.000000e+00 : f32
    %349 = vector.broadcast %cst_135 : f32 to vector<18x18xf32>
    %350 = arith.addf %348, %349 : vector<18x18xf32>
    %cst_136 = arith.constant -8.000000e+00 : f32
    %cst_137 = arith.constant 7.000000e+00 : f32
    %351 = vector.broadcast %cst_136 : f32 to vector<18x18xf32>
    %352 = arith.maximumf %351, %350 : vector<18x18xf32>
    %353 = vector.broadcast %cst_137 : f32 to vector<18x18xf32>
    %354 = arith.minimumf %353, %352 : vector<18x18xf32>
    %355 = math.roundeven %354 : vector<18x18xf32>
    %cst_138 = arith.constant 0.000000e+00 : f32
    %356 = vector.broadcast %cst_138 : f32 to vector<18x18xf32>
    %357 = arith.subf %355, %356 : vector<18x18xf32>
    %358 = math.roundeven %357 : vector<18x18xf32>
    %359 = arith.truncf %358 : vector<18x18xf32> to vector<18x18xbf16>
    %360 = arith.truncf %331 : vector<18x16xf32> to vector<18x16xbf16>
    %cst_139 = arith.constant dense<0.000000e+00> : vector<18x16xf32>
    %361 = tpu.matmul %359, %360, %cst_139 {dimension_numbers = #tpu.dot_dimension_numbers<[1], [0], [0], [1], [0, 0, 1, 1], [], []>} : vector<18x18xbf16>, vector<18x16xbf16>, vector<18x16xf32> -> vector<18x16xf32>
    %cst_140 = arith.constant 0.0112411631 : f32
    %362 = vector.broadcast %cst_140 : f32 to vector<18x16xf32>
    %363 = arith.mulf %361, %362 : vector<18x16xf32>
    %cst_141 = arith.constant 9.0680828 : f32
    %364 = vector.broadcast %cst_141 : f32 to vector<18x16xf32>
    %365 = arith.mulf %363, %364 : vector<18x16xf32>
    %cst_142 = arith.constant 0.000000e+00 : f32
    %366 = vector.broadcast %cst_142 : f32 to vector<18x16xf32>
    %367 = arith.addf %365, %366 : vector<18x16xf32>
    %cst_143 = arith.constant -8.000000e+00 : f32
    %cst_144 = arith.constant 7.000000e+00 : f32
    %368 = vector.broadcast %cst_143 : f32 to vector<18x16xf32>
    %369 = arith.maximumf %368, %367 : vector<18x16xf32>
    %370 = vector.broadcast %cst_144 : f32 to vector<18x16xf32>
    %371 = arith.minimumf %370, %369 : vector<18x16xf32>
    %372 = math.roundeven %371 : vector<18x16xf32>
    %c0_145 = arith.constant 0 : index
    %c0_146 = arith.constant 0 : index
    %c48 = arith.constant 48 : index
    %373 = vector.load %arg2[%c0_145, %c0_146, %c48] : memref<1x18x64xbf16, #tpu.memory_space<vmem>>, vector<1x18x16xbf16>
    %374 = vector.shape_cast %373 : vector<1x18x16xbf16> to vector<18x16xbf16>
    %375 = arith.extf %374 : vector<18x16xbf16> to vector<18x16xf32>
    %c0_147 = arith.constant 0 : index
    %c0_148 = arith.constant 0 : index
    %c48_149 = arith.constant 48 : index
    %376 = vector.load %arg3[%c0_147, %c0_148, %c48_149] : memref<1x18x64xbf16, #tpu.memory_space<vmem>>, vector<1x18x16xbf16>
    %377 = vector.shape_cast %376 : vector<1x18x16xbf16> to vector<18x16xbf16>
    %378 = arith.extf %377 : vector<18x16xbf16> to vector<18x16xf32>
    %c0_150 = arith.constant 0 : index
    %c0_151 = arith.constant 0 : index
    %c48_152 = arith.constant 48 : index
    %379 = vector.load %arg4[%c0_150, %c0_151, %c48_152] : memref<1x18x64xbf16, #tpu.memory_space<vmem>>, vector<1x18x16xbf16>
    %380 = vector.shape_cast %379 : vector<1x18x16xbf16> to vector<18x16xbf16>
    %381 = arith.extf %380 : vector<18x16xbf16> to vector<18x16xf32>
    %cst_153 = arith.constant dense<0.000000e+00> : vector<18xf32>
    %382 = vector.multi_reduction <add>, %375, %cst_153 [1] : vector<18x16xf32> to vector<18xf32>
    %383 = vector.shape_cast %382 : vector<18xf32> to vector<18x1xf32>
    %cst_154 = arith.constant 1.600000e+01 : f32
    %384 = vector.broadcast %cst_154 : f32 to vector<18x1xf32>
    %385 = arith.divf %383, %384 : vector<18x1xf32>
    %386 = vector.broadcast %385 : vector<18x1xf32> to vector<18x16xf32>
    %387 = arith.subf %375, %386 : vector<18x16xf32>
    %388 = arith.mulf %387, %387 : vector<18x16xf32>
    %cst_155 = arith.constant dense<0.000000e+00> : vector<18xf32>
    %389 = vector.multi_reduction <add>, %388, %cst_155 [1] : vector<18x16xf32> to vector<18xf32>
    %390 = vector.shape_cast %389 : vector<18xf32> to vector<18x1xf32>
    %cst_156 = arith.constant 1.600000e+01 : f32
    %391 = vector.broadcast %cst_156 : f32 to vector<18x1xf32>
    %392 = arith.divf %390, %391 : vector<18x1xf32>
    %393 = vector.broadcast %385 : vector<18x1xf32> to vector<18x16xf32>
    %394 = arith.subf %375, %393 : vector<18x16xf32>
    %cst_157 = arith.constant 9.99999974E-6 : f32
    %395 = vector.broadcast %cst_157 : f32 to vector<18x1xf32>
    %396 = arith.addf %392, %395 : vector<18x1xf32>
    %397 = math.rsqrt %396 : vector<18x1xf32>
    %398 = vector.broadcast %397 : vector<18x1xf32> to vector<18x16xf32>
    %399 = arith.mulf %394, %398 : vector<18x16xf32>
    %400 = vector.broadcast %0 : vector<1x16xf32> to vector<18x16xf32>
    %401 = arith.mulf %399, %400 : vector<18x16xf32>
    %402 = vector.broadcast %1 : vector<1x16xf32> to vector<18x16xf32>
    %403 = arith.addf %401, %402 : vector<18x16xf32>
    %cst_158 = arith.constant 8.66657639 : f32
    %404 = vector.broadcast %cst_158 : f32 to vector<18x16xf32>
    %405 = arith.mulf %403, %404 : vector<18x16xf32>
    %cst_159 = arith.constant 0.000000e+00 : f32
    %406 = vector.broadcast %cst_159 : f32 to vector<18x16xf32>
    %407 = arith.addf %405, %406 : vector<18x16xf32>
    %cst_160 = arith.constant -8.000000e+00 : f32
    %cst_161 = arith.constant 7.000000e+00 : f32
    %408 = vector.broadcast %cst_160 : f32 to vector<18x16xf32>
    %409 = arith.maximumf %408, %407 : vector<18x16xf32>
    %410 = vector.broadcast %cst_161 : f32 to vector<18x16xf32>
    %411 = arith.minimumf %410, %409 : vector<18x16xf32>
    %412 = math.roundeven %411 : vector<18x16xf32>
    %cst_162 = arith.constant dense<0.000000e+00> : vector<18xf32>
    %413 = vector.multi_reduction <add>, %378, %cst_162 [1] : vector<18x16xf32> to vector<18xf32>
    %414 = vector.shape_cast %413 : vector<18xf32> to vector<18x1xf32>
    %cst_163 = arith.constant 1.600000e+01 : f32
    %415 = vector.broadcast %cst_163 : f32 to vector<18x1xf32>
    %416 = arith.divf %414, %415 : vector<18x1xf32>
    %417 = vector.broadcast %416 : vector<18x1xf32> to vector<18x16xf32>
    %418 = arith.subf %378, %417 : vector<18x16xf32>
    %419 = arith.mulf %418, %418 : vector<18x16xf32>
    %cst_164 = arith.constant dense<0.000000e+00> : vector<18xf32>
    %420 = vector.multi_reduction <add>, %419, %cst_164 [1] : vector<18x16xf32> to vector<18xf32>
    %421 = vector.shape_cast %420 : vector<18xf32> to vector<18x1xf32>
    %cst_165 = arith.constant 1.600000e+01 : f32
    %422 = vector.broadcast %cst_165 : f32 to vector<18x1xf32>
    %423 = arith.divf %421, %422 : vector<18x1xf32>
    %424 = vector.broadcast %416 : vector<18x1xf32> to vector<18x16xf32>
    %425 = arith.subf %378, %424 : vector<18x16xf32>
    %cst_166 = arith.constant 9.99999974E-6 : f32
    %426 = vector.broadcast %cst_166 : f32 to vector<18x1xf32>
    %427 = arith.addf %423, %426 : vector<18x1xf32>
    %428 = math.rsqrt %427 : vector<18x1xf32>
    %429 = vector.broadcast %428 : vector<18x1xf32> to vector<18x16xf32>
    %430 = arith.mulf %425, %429 : vector<18x16xf32>
    %431 = vector.broadcast %2 : vector<1x16xf32> to vector<18x16xf32>
    %432 = arith.mulf %430, %431 : vector<18x16xf32>
    %433 = vector.broadcast %3 : vector<1x16xf32> to vector<18x16xf32>
    %434 = arith.addf %432, %433 : vector<18x16xf32>
    %cst_167 = arith.constant 9.11900711 : f32
    %435 = vector.broadcast %cst_167 : f32 to vector<18x16xf32>
    %436 = arith.mulf %434, %435 : vector<18x16xf32>
    %cst_168 = arith.constant 0.000000e+00 : f32
    %437 = vector.broadcast %cst_168 : f32 to vector<18x16xf32>
    %438 = arith.addf %436, %437 : vector<18x16xf32>
    %cst_169 = arith.constant -8.000000e+00 : f32
    %cst_170 = arith.constant 7.000000e+00 : f32
    %439 = vector.broadcast %cst_169 : f32 to vector<18x16xf32>
    %440 = arith.maximumf %439, %438 : vector<18x16xf32>
    %441 = vector.broadcast %cst_170 : f32 to vector<18x16xf32>
    %442 = arith.minimumf %441, %440 : vector<18x16xf32>
    %443 = math.roundeven %442 : vector<18x16xf32>
    %cst_171 = arith.constant 0.111081928 : f32
    %444 = vector.broadcast %cst_171 : f32 to vector<18x16xf32>
    %445 = arith.mulf %381, %444 : vector<18x16xf32>
    %cst_172 = arith.constant 9.34450817 : f32
    %446 = vector.broadcast %cst_172 : f32 to vector<18x16xf32>
    %447 = arith.mulf %445, %446 : vector<18x16xf32>
    %cst_173 = arith.constant 0.000000e+00 : f32
    %448 = vector.broadcast %cst_173 : f32 to vector<18x16xf32>
    %449 = arith.addf %447, %448 : vector<18x16xf32>
    %cst_174 = arith.constant -8.000000e+00 : f32
    %cst_175 = arith.constant 7.000000e+00 : f32
    %450 = vector.broadcast %cst_174 : f32 to vector<18x16xf32>
    %451 = arith.maximumf %450, %449 : vector<18x16xf32>
    %452 = vector.broadcast %cst_175 : f32 to vector<18x16xf32>
    %453 = arith.minimumf %452, %451 : vector<18x16xf32>
    %454 = math.roundeven %453 : vector<18x16xf32>
    %455 = arith.truncf %412 : vector<18x16xf32> to vector<18x16xbf16>
    %456 = arith.truncf %443 : vector<18x16xf32> to vector<18x16xbf16>
    %cst_176 = arith.constant dense<0.000000e+00> : vector<18x18xf32>
    %457 = tpu.matmul %455, %456, %cst_176 {dimension_numbers = #tpu.dot_dimension_numbers<[1], [1], [0], [0], [0, 0, 1, 0], [], []>} : vector<18x16xbf16>, vector<18x16xbf16>, vector<18x18xf32> -> vector<18x18xf32>
    %cst_177 = arith.constant 0.00316333259 : f32
    %458 = vector.broadcast %cst_177 : f32 to vector<18x18xf32>
    %459 = arith.mulf %457, %458 : vector<18x18xf32>
    %cst_178 = arith.constant dense<0xFF800000> : vector<18xf32>
    %460 = vector.multi_reduction <maximumf>, %459, %cst_178 [1] : vector<18x18xf32> to vector<18xf32>
    %461 = vector.shape_cast %460 : vector<18xf32> to vector<18x1xf32>
    %462 = vector.broadcast %461 : vector<18x1xf32> to vector<18x18xf32>
    %463 = arith.subf %459, %462 : vector<18x18xf32>
    %464 = math.exp %463 : vector<18x18xf32>
    %cst_179 = arith.constant dense<0.000000e+00> : vector<18xf32>
    %465 = vector.multi_reduction <add>, %464, %cst_179 [1] : vector<18x18xf32> to vector<18xf32>
    %466 = vector.shape_cast %465 : vector<18xf32> to vector<18x1xf32>
    %467 = tpu.reciprocal %466 {approx = true} : vector<18x1xf32> -> vector<18x1xf32>
    %468 = vector.broadcast %467 : vector<18x1xf32> to vector<18x18xf32>
    %469 = arith.mulf %464, %468 : vector<18x18xf32>
    %cst_180 = arith.constant 9.51989746 : f32
    %470 = vector.broadcast %cst_180 : f32 to vector<18x18xf32>
    %471 = arith.mulf %469, %470 : vector<18x18xf32>
    %cst_181 = arith.constant 0.000000e+00 : f32
    %472 = vector.broadcast %cst_181 : f32 to vector<18x18xf32>
    %473 = arith.addf %471, %472 : vector<18x18xf32>
    %cst_182 = arith.constant -8.000000e+00 : f32
    %cst_183 = arith.constant 7.000000e+00 : f32
    %474 = vector.broadcast %cst_182 : f32 to vector<18x18xf32>
    %475 = arith.maximumf %474, %473 : vector<18x18xf32>
    %476 = vector.broadcast %cst_183 : f32 to vector<18x18xf32>
    %477 = arith.minimumf %476, %475 : vector<18x18xf32>
    %478 = math.roundeven %477 : vector<18x18xf32>
    %cst_184 = arith.constant 0.000000e+00 : f32
    %479 = vector.broadcast %cst_184 : f32 to vector<18x18xf32>
    %480 = arith.subf %478, %479 : vector<18x18xf32>
    %481 = math.roundeven %480 : vector<18x18xf32>
    %482 = arith.truncf %481 : vector<18x18xf32> to vector<18x18xbf16>
    %483 = arith.truncf %454 : vector<18x16xf32> to vector<18x16xbf16>
    %cst_185 = arith.constant dense<0.000000e+00> : vector<18x16xf32>
    %484 = tpu.matmul %482, %483, %cst_185 {dimension_numbers = #tpu.dot_dimension_numbers<[1], [0], [0], [1], [0, 0, 1, 1], [], []>} : vector<18x18xbf16>, vector<18x16xbf16>, vector<18x16xf32> -> vector<18x16xf32>
    %cst_186 = arith.constant 0.0112411631 : f32
    %485 = vector.broadcast %cst_186 : f32 to vector<18x16xf32>
    %486 = arith.mulf %484, %485 : vector<18x16xf32>
    %cst_187 = arith.constant 9.0680828 : f32
    %487 = vector.broadcast %cst_187 : f32 to vector<18x16xf32>
    %488 = arith.mulf %486, %487 : vector<18x16xf32>
    %cst_188 = arith.constant 0.000000e+00 : f32
    %489 = vector.broadcast %cst_188 : f32 to vector<18x16xf32>
    %490 = arith.addf %488, %489 : vector<18x16xf32>
    %cst_189 = arith.constant -8.000000e+00 : f32
    %cst_190 = arith.constant 7.000000e+00 : f32
    %491 = vector.broadcast %cst_189 : f32 to vector<18x16xf32>
    %492 = arith.maximumf %491, %490 : vector<18x16xf32>
    %493 = vector.broadcast %cst_190 : f32 to vector<18x16xf32>
    %494 = arith.minimumf %493, %492 : vector<18x16xf32>
    %495 = math.roundeven %494 : vector<18x16xf32>
    %496 = tpu.concatenate %126, %249, %372, %495 in 1 : vector<18x16xf32>, vector<18x16xf32>, vector<18x16xf32>, vector<18x16xf32> -> vector<18x64xf32>
    %497 = arith.truncf %496 : vector<18x64xf32> to vector<18x64xbf16>
    %c0_191 = arith.constant 0 : index
    %c0_192 = arith.constant 0 : index
    %c0_193 = arith.constant 0 : index
    %498 = vector.load %arg9[%c0_191, %c0_192, %c0_193] : memref<1x18x64xbf16, #tpu.memory_space<vmem>>, vector<1x18x64xbf16>
    %499 = vector.shape_cast %498 : vector<1x18x64xbf16> to vector<18x64xbf16>
    %500 = vector.shape_cast %497 : vector<18x64xbf16> to vector<1x18x64xbf16>
    tpu.vector_store %arg9[%c0_191, %c0_192, %c0_193], %500 {strides = array<i32>} : memref<1x18x64xbf16, #tpu.memory_space<vmem>>, vector<1x18x64xbf16>,
    return
  }
  func.func @transform_0(%arg0: i32, %arg1: i32) -> (i32, i32, i32) {
    %c0_i32 = arith.constant 0 : i32
    %c0_i32_0 = arith.constant 0 : i32
    return %arg0, %c0_i32, %arg1 : i32, i32, i32
  }
  func.func @transform_1(%arg0: i32, %arg1: i32) -> (i32, i32, i32) {
    %c0_i32 = arith.constant 0 : i32
    %c0_i32_0 = arith.constant 0 : i32
    return %arg0, %c0_i32, %arg1 : i32, i32, i32
  }
  func.func @transform_2(%arg0: i32, %arg1: i32) -> (i32, i32, i32) {
    %c0_i32 = arith.constant 0 : i32
    %c0_i32_0 = arith.constant 0 : i32
    return %arg0, %c0_i32, %arg1 : i32, i32, i32
  }
  func.func @transform_3(%arg0: i32, %arg1: i32) -> (i32, i32) {
    %c0_i32 = arith.constant 0 : i32
    %c0_i32_0 = arith.constant 0 : i32
    %c0_i32_1 = arith.constant 0 : i32
    return %c0_i32, %c0_i32_0 : i32, i32
  }
  func.func @transform_4(%arg0: i32, %arg1: i32) -> (i32, i32) {
    %c0_i32 = arith.constant 0 : i32
    %c0_i32_0 = arith.constant 0 : i32
    %c0_i32_1 = arith.constant 0 : i32
    return %c0_i32, %c0_i32_0 : i32, i32
  }
  func.func @transform_5(%arg0: i32, %arg1: i32) -> (i32, i32) {
    %c0_i32 = arith.constant 0 : i32
    %c0_i32_0 = arith.constant 0 : i32
    %c0_i32_1 = arith.constant 0 : i32
    return %c0_i32, %c0_i32_0 : i32, i32
  }
  func.func @transform_6(%arg0: i32, %arg1: i32) -> (i32, i32) {
    %c0_i32 = arith.constant 0 : i32
    %c0_i32_0 = arith.constant 0 : i32
    %c0_i32_1 = arith.constant 0 : i32
    return %c0_i32, %c0_i32_0 : i32, i32
  }
  func.func @transform_7(%arg0: i32, %arg1: i32) -> (i32, i32, i32) {
    %c0_i32 = arith.constant 0 : i32
    %c0_i32_0 = arith.constant 0 : i32
    return %arg0, %c0_i32, %arg1 : i32, i32, i32
  }
}

module attributes {stable_mosaic.version = 11 : i64} {
  func.func @_fused_linear_kernel(%arg0: i32, %arg1: i32, %arg2: i32, %arg3: memref<36x64xf32, #tpu.memory_space<vmem>>, %arg4: memref<64x256xbf16, #tpu.memory_space<vmem>>, %arg5: memref<1x256xf32, #tpu.memory_space<vmem>>, %arg6: memref<1x256xf32, #tpu.memory_space<vmem>>, %arg7: memref<1x64xf32, #tpu.memory_space<vmem>>, %arg8: memref<1x64xf32, #tpu.memory_space<vmem>>, %arg9: memref<36x256xbf16, #tpu.memory_space<vmem>>) attributes {dimension_semantics = [#tpu.dimension_semantics<parallel>, #tpu.dimension_semantics<parallel>, #tpu.dimension_semantics<arbitrary>], iteration_bounds = array<i64: 1, 1, 1>, scalar_prefetch = 0 : i64, scratch_operands = 0 : i64, tpu.core_type = #tpu.core_type<tc>, window_params = [{transform_indices = @transform_0, window_bounds = array<i64: 36, 64>}, {transform_indices = @transform_1, window_bounds = array<i64: 64, 256>}, {transform_indices = @transform_2, window_bounds = array<i64: 1, 256>}, {transform_indices = @transform_3, window_bounds = array<i64: 1, 256>}, {pipeline_mode = #tpu.pipeline_mode<synchronous>, transform_indices = @transform_4, window_bounds = array<i64: 1, 64>}, {pipeline_mode = #tpu.pipeline_mode<synchronous>, transform_indices = @transform_5, window_bounds = array<i64: 1, 64>}, {transform_indices = @transform_6, window_bounds = array<i64: 36, 256>}]} {
    %c0 = arith.constant 0 : index
    %c0_0 = arith.constant 0 : index
    %0 = vector.load %arg3[%c0, %c0_0] : memref<36x64xf32, #tpu.memory_space<vmem>>, vector<36x64xf32>
    %cst = arith.constant dense<0.000000e+00> : vector<36xf32>
    %1 = vector.multi_reduction <add>, %0, %cst [1] : vector<36x64xf32> to vector<36xf32>
    %2 = vector.shape_cast %1 : vector<36xf32> to vector<36x1xf32>
    %cst_1 = arith.constant 6.400000e+01 : f32
    %3 = vector.broadcast %cst_1 : f32 to vector<36x1xf32>
    %4 = arith.divf %2, %3 : vector<36x1xf32>
    %5 = vector.broadcast %4 : vector<36x1xf32> to vector<36x64xf32>
    %6 = arith.subf %0, %5 : vector<36x64xf32>
    %7 = arith.mulf %6, %6 : vector<36x64xf32>
    %cst_2 = arith.constant dense<0.000000e+00> : vector<36xf32>
    %8 = vector.multi_reduction <add>, %7, %cst_2 [1] : vector<36x64xf32> to vector<36xf32>
    %9 = vector.shape_cast %8 : vector<36xf32> to vector<36x1xf32>
    %cst_3 = arith.constant 6.400000e+01 : f32
    %10 = vector.broadcast %cst_3 : f32 to vector<36x1xf32>
    %11 = arith.divf %9, %10 : vector<36x1xf32>
    %12 = vector.broadcast %4 : vector<36x1xf32> to vector<36x64xf32>
    %13 = arith.subf %0, %12 : vector<36x64xf32>
    %cst_4 = arith.constant 9.99999997E-7 : f32
    %14 = vector.broadcast %cst_4 : f32 to vector<36x1xf32>
    %15 = arith.addf %11, %14 : vector<36x1xf32>
    %16 = math.rsqrt %15 : vector<36x1xf32>
    %17 = vector.broadcast %16 : vector<36x1xf32> to vector<36x64xf32>
    %18 = arith.mulf %13, %17 : vector<36x64xf32>
    %c0_5 = arith.constant 0 : index
    %c0_6 = arith.constant 0 : index
    %19 = vector.load %arg7[%c0_5, %c0_6] : memref<1x64xf32, #tpu.memory_space<vmem>>, vector<1x64xf32>
    %20 = vector.broadcast %19 : vector<1x64xf32> to vector<36x64xf32>
    %21 = arith.mulf %18, %20 : vector<36x64xf32>
    %c0_7 = arith.constant 0 : index
    %c0_8 = arith.constant 0 : index
    %22 = vector.load %arg8[%c0_7, %c0_8] : memref<1x64xf32, #tpu.memory_space<vmem>>, vector<1x64xf32>
    %23 = vector.broadcast %22 : vector<1x64xf32> to vector<36x64xf32>
    %24 = arith.addf %21, %23 : vector<36x64xf32>
    %cst_9 = arith.constant 9.0990982 : f32
    %25 = vector.broadcast %cst_9 : f32 to vector<36x64xf32>
    %26 = arith.mulf %24, %25 : vector<36x64xf32>
    %cst_10 = arith.constant 0.000000e+00 : f32
    %27 = vector.broadcast %cst_10 : f32 to vector<36x64xf32>
    %28 = arith.addf %26, %27 : vector<36x64xf32>
    %cst_11 = arith.constant -8.000000e+00 : f32
    %cst_12 = arith.constant 7.000000e+00 : f32
    %29 = vector.broadcast %cst_11 : f32 to vector<36x64xf32>
    %30 = arith.maximumf %29, %28 : vector<36x64xf32>
    %31 = vector.broadcast %cst_12 : f32 to vector<36x64xf32>
    %32 = arith.minimumf %31, %30 : vector<36x64xf32>
    %33 = math.roundeven %32 : vector<36x64xf32>
    %34 = arith.truncf %33 : vector<36x64xf32> to vector<36x64xbf16>
    %c0_13 = arith.constant 0 : index
    %c0_14 = arith.constant 0 : index
    %35 = vector.load %arg4[%c0_13, %c0_14] : memref<64x256xbf16, #tpu.memory_space<vmem>>, vector<64x256xbf16>
    %cst_15 = arith.constant dense<0.000000e+00> : vector<36x256xf32>
    %36 = tpu.matmul %34, %35, %cst_15 {dimension_numbers = #tpu.dot_dimension_numbers<[1], [0], [0], [1], [0, 0, 1, 1], [], []>} : vector<36x64xbf16>, vector<64x256xbf16>, vector<36x256xf32> -> vector<36x256xf32>
    %c0_16 = arith.constant 0 : index
    %c0_17 = arith.constant 0 : index
    %37 = vector.load %arg5[%c0_16, %c0_17] : memref<1x256xf32, #tpu.memory_space<vmem>>, vector<1x256xf32>
    %38 = vector.broadcast %37 : vector<1x256xf32> to vector<36x256xf32>
    %39 = arith.mulf %36, %38 : vector<36x256xf32>
    %c0_18 = arith.constant 0 : index
    %c0_19 = arith.constant 0 : index
    %40 = vector.load %arg6[%c0_18, %c0_19] : memref<1x256xf32, #tpu.memory_space<vmem>>, vector<1x256xf32>
    %41 = vector.broadcast %40 : vector<1x256xf32> to vector<36x256xf32>
    %42 = arith.addf %39, %41 : vector<36x256xf32>
    %43 = arith.mulf %42, %42 : vector<36x256xf32>
    %44 = arith.mulf %42, %43 : vector<36x256xf32>
    %cst_20 = arith.constant 4.471500e-02 : f32
    %45 = vector.broadcast %cst_20 : f32 to vector<36x256xf32>
    %46 = arith.mulf %45, %44 : vector<36x256xf32>
    %47 = arith.addf %42, %46 : vector<36x256xf32>
    %cst_21 = arith.constant 0.797884583 : f32
    %48 = vector.broadcast %cst_21 : f32 to vector<36x256xf32>
    %49 = arith.mulf %48, %47 : vector<36x256xf32>
    %50 = math.tanh %49 : vector<36x256xf32>
    %cst_22 = arith.constant 1.000000e+00 : f32
    %51 = vector.broadcast %cst_22 : f32 to vector<36x256xf32>
    %52 = arith.addf %51, %50 : vector<36x256xf32>
    %cst_23 = arith.constant 5.000000e-01 : f32
    %53 = vector.broadcast %cst_23 : f32 to vector<36x256xf32>
    %54 = arith.mulf %53, %52 : vector<36x256xf32>
    %55 = arith.mulf %42, %54 : vector<36x256xf32>
    %cst_24 = arith.constant 9.09659099 : f32
    %56 = vector.broadcast %cst_24 : f32 to vector<36x256xf32>
    %57 = arith.mulf %55, %56 : vector<36x256xf32>
    %cst_25 = arith.constant 0.000000e+00 : f32
    %58 = vector.broadcast %cst_25 : f32 to vector<36x256xf32>
    %59 = arith.addf %57, %58 : vector<36x256xf32>
    %cst_26 = arith.constant -8.000000e+00 : f32
    %cst_27 = arith.constant 7.000000e+00 : f32
    %60 = vector.broadcast %cst_26 : f32 to vector<36x256xf32>
    %61 = arith.maximumf %60, %59 : vector<36x256xf32>
    %62 = vector.broadcast %cst_27 : f32 to vector<36x256xf32>
    %63 = arith.minimumf %62, %61 : vector<36x256xf32>
    %64 = math.roundeven %63 : vector<36x256xf32>
    %65 = arith.truncf %64 : vector<36x256xf32> to vector<36x256xbf16>
    %c0_28 = arith.constant 0 : index
    %c0_29 = arith.constant 0 : index
    %66 = vector.load %arg9[%c0_28, %c0_29] : memref<36x256xbf16, #tpu.memory_space<vmem>>, vector<36x256xbf16>
    tpu.vector_store %arg9[%c0_28, %c0_29], %65 {strides = array<i32>} : memref<36x256xbf16, #tpu.memory_space<vmem>>, vector<36x256xbf16>,
    return
  }
  func.func @transform_0(%arg0: i32, %arg1: i32, %arg2: i32) -> (i32, i32) {
    %c0_i32 = arith.constant 0 : i32
    return %arg0, %arg2 : i32, i32
  }
  func.func @transform_1(%arg0: i32, %arg1: i32, %arg2: i32) -> (i32, i32) {
    %c0_i32 = arith.constant 0 : i32
    return %arg2, %arg1 : i32, i32
  }
  func.func @transform_2(%arg0: i32, %arg1: i32, %arg2: i32) -> (i32, i32) {
    %c0_i32 = arith.constant 0 : i32
    %c0_i32_0 = arith.constant 0 : i32
    return %c0_i32, %arg1 : i32, i32
  }
  func.func @transform_3(%arg0: i32, %arg1: i32, %arg2: i32) -> (i32, i32) {
    %c0_i32 = arith.constant 0 : i32
    %c0_i32_0 = arith.constant 0 : i32
    return %c0_i32, %arg1 : i32, i32
  }
  func.func @transform_4(%arg0: i32, %arg1: i32, %arg2: i32) -> (i32, i32) {
    %c0_i32 = arith.constant 0 : i32
    %c0_i32_0 = arith.constant 0 : i32
    %c0_i32_1 = arith.constant 0 : i32
    return %c0_i32, %c0_i32_0 : i32, i32
  }
  func.func @transform_5(%arg0: i32, %arg1: i32, %arg2: i32) -> (i32, i32) {
    %c0_i32 = arith.constant 0 : i32
    %c0_i32_0 = arith.constant 0 : i32
    %c0_i32_1 = arith.constant 0 : i32
    return %c0_i32, %c0_i32_0 : i32, i32
  }
  func.func @transform_6(%arg0: i32, %arg1: i32, %arg2: i32) -> (i32, i32) {
    %c0_i32 = arith.constant 0 : i32
    return %arg0, %arg1 : i32, i32
  }
}

module attributes {stable_mosaic.version = 11 : i64} {
  func.func @_fused_linear_kernel(%arg0: i32, %arg1: i32, %arg2: i32, %arg3: memref<2x64xf32, #tpu.memory_space<vmem>>, %arg4: memref<64x10xbf16, #tpu.memory_space<vmem>>, %arg5: memref<1x10xf32, #tpu.memory_space<vmem>>, %arg6: memref<1x10xf32, #tpu.memory_space<vmem>>, %arg7: memref<1x64xf32, #tpu.memory_space<vmem>>, %arg8: memref<1x64xf32, #tpu.memory_space<vmem>>, %arg9: memref<2x10xf32, #tpu.memory_space<vmem>>) attributes {dimension_semantics = [#tpu.dimension_semantics<parallel>, #tpu.dimension_semantics<parallel>, #tpu.dimension_semantics<arbitrary>], iteration_bounds = array<i64: 1, 1, 1>, scalar_prefetch = 0 : i64, scratch_operands = 0 : i64, tpu.core_type = #tpu.core_type<tc>, window_params = [{transform_indices = @transform_0, window_bounds = array<i64: 2, 64>}, {transform_indices = @transform_1, window_bounds = array<i64: 64, 10>}, {transform_indices = @transform_2, window_bounds = array<i64: 1, 10>}, {transform_indices = @transform_3, window_bounds = array<i64: 1, 10>}, {pipeline_mode = #tpu.pipeline_mode<synchronous>, transform_indices = @transform_4, window_bounds = array<i64: 1, 64>}, {pipeline_mode = #tpu.pipeline_mode<synchronous>, transform_indices = @transform_5, window_bounds = array<i64: 1, 64>}, {transform_indices = @transform_6, window_bounds = array<i64: 2, 10>}]} {
    %c0 = arith.constant 0 : index
    %c0_0 = arith.constant 0 : index
    %0 = vector.load %arg3[%c0, %c0_0] : memref<2x64xf32, #tpu.memory_space<vmem>>, vector<2x64xf32>
    %cst = arith.constant dense<0.000000e+00> : vector<2xf32>
    %1 = vector.multi_reduction <add>, %0, %cst [1] : vector<2x64xf32> to vector<2xf32>
    %2 = vector.shape_cast %1 : vector<2xf32> to vector<2x1xf32>
    %cst_1 = arith.constant 6.400000e+01 : f32
    %3 = vector.broadcast %cst_1 : f32 to vector<2x1xf32>
    %4 = arith.divf %2, %3 : vector<2x1xf32>
    %5 = vector.broadcast %4 : vector<2x1xf32> to vector<2x64xf32>
    %6 = arith.subf %0, %5 : vector<2x64xf32>
    %7 = arith.mulf %6, %6 : vector<2x64xf32>
    %cst_2 = arith.constant dense<0.000000e+00> : vector<2xf32>
    %8 = vector.multi_reduction <add>, %7, %cst_2 [1] : vector<2x64xf32> to vector<2xf32>
    %9 = vector.shape_cast %8 : vector<2xf32> to vector<2x1xf32>
    %cst_3 = arith.constant 6.400000e+01 : f32
    %10 = vector.broadcast %cst_3 : f32 to vector<2x1xf32>
    %11 = arith.divf %9, %10 : vector<2x1xf32>
    %12 = vector.broadcast %4 : vector<2x1xf32> to vector<2x64xf32>
    %13 = arith.subf %0, %12 : vector<2x64xf32>
    %cst_4 = arith.constant 9.99999997E-7 : f32
    %14 = vector.broadcast %cst_4 : f32 to vector<2x1xf32>
    %15 = arith.addf %11, %14 : vector<2x1xf32>
    %16 = math.rsqrt %15 : vector<2x1xf32>
    %17 = vector.broadcast %16 : vector<2x1xf32> to vector<2x64xf32>
    %18 = arith.mulf %13, %17 : vector<2x64xf32>
    %c0_5 = arith.constant 0 : index
    %c0_6 = arith.constant 0 : index
    %19 = vector.load %arg7[%c0_5, %c0_6] : memref<1x64xf32, #tpu.memory_space<vmem>>, vector<1x64xf32>
    %20 = vector.broadcast %19 : vector<1x64xf32> to vector<2x64xf32>
    %21 = arith.mulf %18, %20 : vector<2x64xf32>
    %c0_7 = arith.constant 0 : index
    %c0_8 = arith.constant 0 : index
    %22 = vector.load %arg8[%c0_7, %c0_8] : memref<1x64xf32, #tpu.memory_space<vmem>>, vector<1x64xf32>
    %23 = vector.broadcast %22 : vector<1x64xf32> to vector<2x64xf32>
    %24 = arith.addf %21, %23 : vector<2x64xf32>
    %cst_9 = arith.constant 9.08212662 : f32
    %25 = vector.broadcast %cst_9 : f32 to vector<2x64xf32>
    %26 = arith.mulf %24, %25 : vector<2x64xf32>
    %cst_10 = arith.constant 0.000000e+00 : f32
    %27 = vector.broadcast %cst_10 : f32 to vector<2x64xf32>
    %28 = arith.addf %26, %27 : vector<2x64xf32>
    %cst_11 = arith.constant -1.280000e+02 : f32
    %cst_12 = arith.constant 1.270000e+02 : f32
    %29 = vector.broadcast %cst_11 : f32 to vector<2x64xf32>
    %30 = arith.maximumf %29, %28 : vector<2x64xf32>
    %31 = vector.broadcast %cst_12 : f32 to vector<2x64xf32>
    %32 = arith.minimumf %31, %30 : vector<2x64xf32>
    %33 = math.roundeven %32 : vector<2x64xf32>
    %34 = arith.truncf %33 : vector<2x64xf32> to vector<2x64xbf16>
    %c0_13 = arith.constant 0 : index
    %c0_14 = arith.constant 0 : index
    %35 = vector.load %arg4[%c0_13, %c0_14] : memref<64x10xbf16, #tpu.memory_space<vmem>>, vector<64x10xbf16>
    %cst_15 = arith.constant dense<0.000000e+00> : vector<2x10xf32>
    %36 = tpu.matmul %34, %35, %cst_15 {dimension_numbers = #tpu.dot_dimension_numbers<[1], [0], [0], [1], [0, 0, 1, 1], [], []>} : vector<2x64xbf16>, vector<64x10xbf16>, vector<2x10xf32> -> vector<2x10xf32>
    %c0_16 = arith.constant 0 : index
    %c0_17 = arith.constant 0 : index
    %37 = vector.load %arg5[%c0_16, %c0_17] : memref<1x10xf32, #tpu.memory_space<vmem>>, vector<1x10xf32>
    %38 = vector.broadcast %37 : vector<1x10xf32> to vector<2x10xf32>
    %39 = arith.mulf %36, %38 : vector<2x10xf32>
    %c0_18 = arith.constant 0 : index
    %c0_19 = arith.constant 0 : index
    %40 = vector.load %arg6[%c0_18, %c0_19] : memref<1x10xf32, #tpu.memory_space<vmem>>, vector<1x10xf32>
    %41 = vector.broadcast %40 : vector<1x10xf32> to vector<2x10xf32>
    %42 = arith.addf %39, %41 : vector<2x10xf32>
    %c0_20 = arith.constant 0 : index
    %c0_21 = arith.constant 0 : index
    %43 = vector.load %arg9[%c0_20, %c0_21] : memref<2x10xf32, #tpu.memory_space<vmem>>, vector<2x10xf32>
    tpu.vector_store %arg9[%c0_20, %c0_21], %42 {strides = array<i32>} : memref<2x10xf32, #tpu.memory_space<vmem>>, vector<2x10xf32>,
    return
  }
  func.func @transform_0(%arg0: i32, %arg1: i32, %arg2: i32) -> (i32, i32) {
    %c0_i32 = arith.constant 0 : i32
    return %arg0, %arg2 : i32, i32
  }
  func.func @transform_1(%arg0: i32, %arg1: i32, %arg2: i32) -> (i32, i32) {
    %c0_i32 = arith.constant 0 : i32
    return %arg2, %arg1 : i32, i32
  }
  func.func @transform_2(%arg0: i32, %arg1: i32, %arg2: i32) -> (i32, i32) {
    %c0_i32 = arith.constant 0 : i32
    %c0_i32_0 = arith.constant 0 : i32
    return %c0_i32, %arg1 : i32, i32
  }
  func.func @transform_3(%arg0: i32, %arg1: i32, %arg2: i32) -> (i32, i32) {
    %c0_i32 = arith.constant 0 : i32
    %c0_i32_0 = arith.constant 0 : i32
    return %c0_i32, %arg1 : i32, i32
  }
  func.func @transform_4(%arg0: i32, %arg1: i32, %arg2: i32) -> (i32, i32) {
    %c0_i32 = arith.constant 0 : i32
    %c0_i32_0 = arith.constant 0 : i32
    %c0_i32_1 = arith.constant 0 : i32
    return %c0_i32, %c0_i32_0 : i32, i32
  }
  func.func @transform_5(%arg0: i32, %arg1: i32, %arg2: i32) -> (i32, i32) {
    %c0_i32 = arith.constant 0 : i32
    %c0_i32_0 = arith.constant 0 : i32
    %c0_i32_1 = arith.constant 0 : i32
    return %c0_i32, %c0_i32_0 : i32, i32
  }
  func.func @transform_6(%arg0: i32, %arg1: i32, %arg2: i32) -> (i32, i32) {
    %c0_i32 = arith.constant 0 : i32
    return %arg0, %arg1 : i32, i32
  }
}

module attributes {stable_mosaic.version = 11 : i64} {
  func.func @_fused_linear_kernel(%arg0: i32, %arg1: i32, %arg2: i32, %arg3: memref<2x64xf32, #tpu.memory_space<vmem>>, %arg4: memref<64x10xbf16, #tpu.memory_space<vmem>>, %arg5: memref<1x10xf32, #tpu.memory_space<vmem>>, %arg6: memref<1x10xf32, #tpu.memory_space<vmem>>, %arg7: memref<1x64xf32, #tpu.memory_space<vmem>>, %arg8: memref<1x64xf32, #tpu.memory_space<vmem>>, %arg9: memref<2x10xf32, #tpu.memory_space<vmem>>) attributes {dimension_semantics = [#tpu.dimension_semantics<parallel>, #tpu.dimension_semantics<parallel>, #tpu.dimension_semantics<arbitrary>], iteration_bounds = array<i64: 1, 1, 1>, scalar_prefetch = 0 : i64, scratch_operands = 0 : i64, tpu.core_type = #tpu.core_type<tc>, window_params = [{transform_indices = @transform_0, window_bounds = array<i64: 2, 64>}, {transform_indices = @transform_1, window_bounds = array<i64: 64, 10>}, {transform_indices = @transform_2, window_bounds = array<i64: 1, 10>}, {transform_indices = @transform_3, window_bounds = array<i64: 1, 10>}, {pipeline_mode = #tpu.pipeline_mode<synchronous>, transform_indices = @transform_4, window_bounds = array<i64: 1, 64>}, {pipeline_mode = #tpu.pipeline_mode<synchronous>, transform_indices = @transform_5, window_bounds = array<i64: 1, 64>}, {transform_indices = @transform_6, window_bounds = array<i64: 2, 10>}]} {
    %c0 = arith.constant 0 : index
    %c0_0 = arith.constant 0 : index
    %0 = vector.load %arg3[%c0, %c0_0] : memref<2x64xf32, #tpu.memory_space<vmem>>, vector<2x64xf32>
    %cst = arith.constant dense<0.000000e+00> : vector<2xf32>
    %1 = vector.multi_reduction <add>, %0, %cst [1] : vector<2x64xf32> to vector<2xf32>
    %2 = vector.shape_cast %1 : vector<2xf32> to vector<2x1xf32>
    %cst_1 = arith.constant 6.400000e+01 : f32
    %3 = vector.broadcast %cst_1 : f32 to vector<2x1xf32>
    %4 = arith.divf %2, %3 : vector<2x1xf32>
    %5 = vector.broadcast %4 : vector<2x1xf32> to vector<2x64xf32>
    %6 = arith.subf %0, %5 : vector<2x64xf32>
    %7 = arith.mulf %6, %6 : vector<2x64xf32>
    %cst_2 = arith.constant dense<0.000000e+00> : vector<2xf32>
    %8 = vector.multi_reduction <add>, %7, %cst_2 [1] : vector<2x64xf32> to vector<2xf32>
    %9 = vector.shape_cast %8 : vector<2xf32> to vector<2x1xf32>
    %cst_3 = arith.constant 6.400000e+01 : f32
    %10 = vector.broadcast %cst_3 : f32 to vector<2x1xf32>
    %11 = arith.divf %9, %10 : vector<2x1xf32>
    %12 = vector.broadcast %4 : vector<2x1xf32> to vector<2x64xf32>
    %13 = arith.subf %0, %12 : vector<2x64xf32>
    %cst_4 = arith.constant 9.99999997E-7 : f32
    %14 = vector.broadcast %cst_4 : f32 to vector<2x1xf32>
    %15 = arith.addf %11, %14 : vector<2x1xf32>
    %16 = math.rsqrt %15 : vector<2x1xf32>
    %17 = vector.broadcast %16 : vector<2x1xf32> to vector<2x64xf32>
    %18 = arith.mulf %13, %17 : vector<2x64xf32>
    %c0_5 = arith.constant 0 : index
    %c0_6 = arith.constant 0 : index
    %19 = vector.load %arg7[%c0_5, %c0_6] : memref<1x64xf32, #tpu.memory_space<vmem>>, vector<1x64xf32>
    %20 = vector.broadcast %19 : vector<1x64xf32> to vector<2x64xf32>
    %21 = arith.mulf %18, %20 : vector<2x64xf32>
    %c0_7 = arith.constant 0 : index
    %c0_8 = arith.constant 0 : index
    %22 = vector.load %arg8[%c0_7, %c0_8] : memref<1x64xf32, #tpu.memory_space<vmem>>, vector<1x64xf32>
    %23 = vector.broadcast %22 : vector<1x64xf32> to vector<2x64xf32>
    %24 = arith.addf %21, %23 : vector<2x64xf32>
    %cst_9 = arith.constant 9.117580e+00 : f32
    %25 = vector.broadcast %cst_9 : f32 to vector<2x64xf32>
    %26 = arith.mulf %24, %25 : vector<2x64xf32>
    %cst_10 = arith.constant 0.000000e+00 : f32
    %27 = vector.broadcast %cst_10 : f32 to vector<2x64xf32>
    %28 = arith.addf %26, %27 : vector<2x64xf32>
    %cst_11 = arith.constant -1.280000e+02 : f32
    %cst_12 = arith.constant 1.270000e+02 : f32
    %29 = vector.broadcast %cst_11 : f32 to vector<2x64xf32>
    %30 = arith.maximumf %29, %28 : vector<2x64xf32>
    %31 = vector.broadcast %cst_12 : f32 to vector<2x64xf32>
    %32 = arith.minimumf %31, %30 : vector<2x64xf32>
    %33 = math.roundeven %32 : vector<2x64xf32>
    %34 = arith.truncf %33 : vector<2x64xf32> to vector<2x64xbf16>
    %c0_13 = arith.constant 0 : index
    %c0_14 = arith.constant 0 : index
    %35 = vector.load %arg4[%c0_13, %c0_14] : memref<64x10xbf16, #tpu.memory_space<vmem>>, vector<64x10xbf16>
    %cst_15 = arith.constant dense<0.000000e+00> : vector<2x10xf32>
    %36 = tpu.matmul %34, %35, %cst_15 {dimension_numbers = #tpu.dot_dimension_numbers<[1], [0], [0], [1], [0, 0, 1, 1], [], []>} : vector<2x64xbf16>, vector<64x10xbf16>, vector<2x10xf32> -> vector<2x10xf32>
    %c0_16 = arith.constant 0 : index
    %c0_17 = arith.constant 0 : index
    %37 = vector.load %arg5[%c0_16, %c0_17] : memref<1x10xf32, #tpu.memory_space<vmem>>, vector<1x10xf32>
    %38 = vector.broadcast %37 : vector<1x10xf32> to vector<2x10xf32>
    %39 = arith.mulf %36, %38 : vector<2x10xf32>
    %c0_18 = arith.constant 0 : index
    %c0_19 = arith.constant 0 : index
    %40 = vector.load %arg6[%c0_18, %c0_19] : memref<1x10xf32, #tpu.memory_space<vmem>>, vector<1x10xf32>
    %41 = vector.broadcast %40 : vector<1x10xf32> to vector<2x10xf32>
    %42 = arith.addf %39, %41 : vector<2x10xf32>
    %c0_20 = arith.constant 0 : index
    %c0_21 = arith.constant 0 : index
    %43 = vector.load %arg9[%c0_20, %c0_21] : memref<2x10xf32, #tpu.memory_space<vmem>>, vector<2x10xf32>
    tpu.vector_store %arg9[%c0_20, %c0_21], %42 {strides = array<i32>} : memref<2x10xf32, #tpu.memory_space<vmem>>, vector<2x10xf32>,
    return
  }
  func.func @transform_0(%arg0: i32, %arg1: i32, %arg2: i32) -> (i32, i32) {
    %c0_i32 = arith.constant 0 : i32
    return %arg0, %arg2 : i32, i32
  }
  func.func @transform_1(%arg0: i32, %arg1: i32, %arg2: i32) -> (i32, i32) {
    %c0_i32 = arith.constant 0 : i32
    return %arg2, %arg1 : i32, i32
  }
  func.func @transform_2(%arg0: i32, %arg1: i32, %arg2: i32) -> (i32, i32) {
    %c0_i32 = arith.constant 0 : i32
    %c0_i32_0 = arith.constant 0 : i32
    return %c0_i32, %arg1 : i32, i32
  }
  func.func @transform_3(%arg0: i32, %arg1: i32, %arg2: i32) -> (i32, i32) {
    %c0_i32 = arith.constant 0 : i32
    %c0_i32_0 = arith.constant 0 : i32
    return %c0_i32, %arg1 : i32, i32
  }
  func.func @transform_4(%arg0: i32, %arg1: i32, %arg2: i32) -> (i32, i32) {
    %c0_i32 = arith.constant 0 : i32
    %c0_i32_0 = arith.constant 0 : i32
    %c0_i32_1 = arith.constant 0 : i32
    return %c0_i32, %c0_i32_0 : i32, i32
  }
  func.func @transform_5(%arg0: i32, %arg1: i32, %arg2: i32) -> (i32, i32) {
    %c0_i32 = arith.constant 0 : i32
    %c0_i32_0 = arith.constant 0 : i32
    %c0_i32_1 = arith.constant 0 : i32
    return %c0_i32, %c0_i32_0 : i32, i32
  }
  func.func @transform_6(%arg0: i32, %arg1: i32, %arg2: i32) -> (i32, i32) {
    %c0_i32 = arith.constant 0 : i32
    return %arg0, %arg1 : i32, i32
  }
}

</mosaic_0001>

<bundles_post_ra>
// kernel: _lambda_.13
= control target key start
LH: loop header
LB: loop body
LE: loop exit
PB: predicated region body
PF: predicated region fallthrough
CT: control target
= control target key end

     0   :  { %v285_v0 = vmov 0   ;;  %vm136_vm0 = vcmask 523264   ;;  %s407_s1 = inlined_call_operand.vmem [shape: bf16[192,64], index: 1, kind: input, shape index: {}]   ;;  %s408_s0 = inlined_call_operand.vmem [shape: bf16[32,192], index: 0, kind: input, shape index: {}]   ;;  %s409_s2 = inlined_call_operand.vmem [shape: f32[1,64], index: 2, kind: input, shape index: {}]   ;;  %s410_s3 = inlined_call_operand.vmem [shape: f32[1,64], index: 3, kind: input, shape index: {}]   ;;  %s411_s4 = inlined_call_operand.vmem [shape: f32[32,64], index: 4, kind: output, shape index: {}]  }
   0x1   :  { %143 = vmatprep.subr.bf16.mxu0 %v285_v0  ;;  %242 = vmatprep.subr.bf16.mxu1 %v285_v0  ;;  %v267_v1 = vld [vmem:[%s407_s1] sm:$0xff]   ;;  %v268_v2 = vld [vmem:[%s407_s1 + $0x8] sm:$0xff]   ;;  %v269_v3 = vld [vmem:[%s407_s1 + $0x10] sm:$0xff]  }
   0x2   :  { %144 = vmatpush1.bf16.msra.mxu0 %v267_v1  ;;  %254 = vmatpush1.bf16.msra.mxu1 %v267_v1  ;;  %v270_v4 = vld [vmem:[%s407_s1 + $0x18] sm:$0xff]   ;;  %v281_v5 = vld [vmem:[%s408_s0 + $0x4] ss:$8 sps:$4 sm:$0xff]   ;;  %v273_v9 = vld [vmem:[%s407_s1 + $0x30] sm:$0xff]  }
   0x3   :  { %145 = vmatprep.subr.bf16.mxu0 %v285_v0  ;;  %243 = vmatprep.subr.bf16.mxu1 %v285_v0  ;;  %v271_v6 = vld [vmem:[%s407_s1 + $0x20] sm:$0xff]   ;;  %v284_v7 = vld [vmem:[%s408_s0 + $0x14] ss:$8 sps:$4 sm:$0xff]   ;;  %v272_v8 = vld [vmem:[%s407_s1 + $0x28] sm:$0xff]  }
   0x4   :  { %238 = vmatprep.mubr.msk.bf16.mxu0 %vm136_vm0, %v281_v5  ;;  %239 = vmatprep.mubr.msk.bf16.mxu1 %vm136_vm0, %v284_v7  ;;  %v274_v10 = vld [vmem:[%s407_s1 + $0x38] sm:$0xff]   ;;  %v275_v11 = vld [vmem:[%s407_s1 + $0x40] sm:$0xff]   ;;  %v276_v12 = vld [vmem:[%s407_s1 + $0x48] sm:$0xff]  }
   0x5   :  { %v277_v13 = vld [vmem:[%s407_s1 + $0x50] sm:$0xff]   ;;  %v278_v14 = vld [vmem:[%s407_s1 + $0x58] sm:$0xff]   ;;  %v279_v15 = vld [vmem:[%s408_s0] ss:$8 sps:$4 sm:$0xff]  }
   0x6   :  { %146 = vmatpush1.bf16.msra.mxu0 %v268_v2  ;;  %255 = vmatpush1.bf16.msra.mxu1 %v268_v2  ;;  %v282_v16 = vld [vmem:[%s408_s0 + $0x10] ss:$8 sps:$4 sm:$0xff]   ;;  %v240_v17 = vld [vmem:[%s409_s2] ss:$0 sm:$0xff] }
   0x7   :  { %147 = vmatprep.subr.bf16.mxu0 %v285_v0  ;;  %244 = vmatprep.subr.bf16.mxu1 %v285_v0  ;;  %v241_v19 = vld [vmem:[%s410_s3] ss:$0 sm:$0xff] }
   0xa   :  { %148 = vmatpush1.bf16.msra.mxu0 %v269_v3  ;;  %256 = vmatpush1.bf16.msra.mxu1 %v269_v3 }
   0xb   :  { %149 = vmatprep.subr.bf16.mxu0 %v285_v0  ;;  %245 = vmatprep.subr.bf16.mxu1 %v285_v0 }
   0xe   :  { %150 = vmatpush1.bf16.msra.mxu0 %v270_v4  ;;  %257 = vmatpush1.bf16.msra.mxu1 %v270_v4 }
   0xf   :  { %151 = vmatprep.subr.bf16.mxu0 %v285_v0  ;;  %246 = vmatprep.subr.bf16.mxu1 %v285_v0 }
  0x12   :  { %152 = vmatpush1.bf16.msra.mxu0 %v271_v6  ;;  %258 = vmatpush1.bf16.msra.mxu1 %v271_v6 }
  0x13   :  { %153 = vmatprep.subr.bf16.mxu0 %v285_v0  ;;  %247 = vmatprep.subr.bf16.mxu1 %v285_v0 }
  0x16   :  { %154 = vmatpush1.bf16.msra.mxu0 %v272_v8  ;;  %259 = vmatpush1.bf16.msra.mxu1 %v272_v8 }
  0x17   :  { %155 = vmatprep.subr.bf16.mxu0 %v285_v0  ;;  %248 = vmatprep.subr.bf16.mxu1 %v285_v0 }
  0x1a   :  { %156 = vmatpush1.bf16.msra.mxu0 %v273_v9  ;;  %260 = vmatpush1.bf16.msra.mxu1 %v273_v9 }
  0x1b   :  { %157 = vmatprep.subr.bf16.mxu0 %v285_v0  ;;  %249 = vmatprep.subr.bf16.mxu1 %v285_v0 }
  0x1e   :  { %158 = vmatpush1.bf16.msra.mxu0 %v274_v10  ;;  %261 = vmatpush1.bf16.msra.mxu1 %v274_v10 }
  0x1f   :  { %159 = vmatprep.subr.bf16.mxu0 %v285_v0  ;;  %250 = vmatprep.subr.bf16.mxu1 %v285_v0 }
  0x22   :  { %160 = vmatpush1.bf16.msra.mxu0 %v275_v11  ;;  %262 = vmatpush1.bf16.msra.mxu1 %v275_v11 }
  0x23   :  { %161 = vmatprep.subr.bf16.mxu0 %v285_v0  ;;  %251 = vmatprep.subr.bf16.mxu1 %v285_v0 }
  0x26   :  { %162 = vmatpush1.bf16.msra.mxu0 %v276_v12  ;;  %263 = vmatpush1.bf16.msra.mxu1 %v276_v12 }
  0x27   :  { %163 = vmatprep.subr.bf16.mxu0 %v285_v0  ;;  %252 = vmatprep.subr.bf16.mxu1 %v285_v0 }
  0x2a   :  { %164 = vmatpush1.bf16.msra.mxu0 %v277_v13  ;;  %264 = vmatpush1.bf16.msra.mxu1 %v277_v13 }
  0x2b   :  { %165 = vmatprep.subr.bf16.mxu0 %v285_v0  ;;  %253 = vmatprep.subr.bf16.mxu1 %v285_v0 }
  0x2e   :  { %166 = vmatpush1.bf16.msra.mxu0 %v278_v14  ;;  %265 = vmatpush1.bf16.msra.mxu1 %v278_v14 }
  0x31   :  { %176 = vmatmul.mubr.bf16.vlgmr.msra.gmra.mrb[0].mxu0 %v279_v15  ;;  %184 = vmatmul.mubr.bf16.vlgmr.msra.gmra.mrb[0].mxu1 %v282_v16 }
 0x104   :  { %v177_v18 = vpop.f32.mrb[0].mxu0  ;;  %v185_v20 = vpop.f32.mrb[0].mxu1 }
 0x105   :  { %v199_v21 = vmul.f32 %v240_v17, %v177_v18  ;;  %v201_v22 = vmul.f32 %v240_v17, %v185_v20  ;;  %v179_v23 = vpop.f32.mrb[1].mxu0  ;;  %v187_v24 = vpop.f32.mrb[1].mxu1 }
 0x106   :  { %v180_v25 = vpop.f32.mrb[2].mxu0  ;;  %v188_v26 = vpop.f32.mrb[2].mxu1 }
 0x107   :  { %v210_v27 = vadd.f32 %v241_v19, %v199_v21  ;;  %v212_v28 = vadd.f32 %v241_v19, %v201_v22  ;;  %v200_v29 = vmul.f32 %v240_v17, %v180_v25  ;;  %v202_v30 = vmul.f32 %v240_v17, %v188_v26  ;;  %v182_v31 = vpop.f32.mrb[3].mxu0  ;;  %v190_v32 = vpop.f32.mrb[3].mxu1 }
 0x109   :  { %214 = vst.msk [vmem:[%s411_s4] sm:$0xff] %vm136_vm0, %v210_v27  ;;  %216 = vst.msk [vmem:[%s411_s4 + $0x10] sm:$0xff] %vm136_vm0, %v212_v28  ;;  %v211_v33 = vadd.f32 %v241_v19, %v200_v29  ;;  %v213_v34 = vadd.f32 %v241_v19, %v202_v30 }
 0x10b   :  { %215 = vst.msk [vmem:[%s411_s4 + $0x8] sm:$0xff] %vm136_vm0, %v211_v33  ;;  %217 = vst.msk [vmem:[%s411_s4 + $0x18] sm:$0xff] %vm136_vm0, %v213_v34 }

// kernel: _lambda_.16
= control target key start
LH: loop header
LB: loop body
LE: loop exit
PB: predicated region body
PF: predicated region fallthrough
CT: control target
= control target key end

     0   :  { %v237_v0 = vmov 0.0   ;;  %vm238_vm0 = vmmov 0   ;;  %vm71_vm1 = vcmask 523264   ;;  %vm175_vm2 = vcmask 519168   ;;  %s336_s1 = inlined_call_operand.vmem [shape: bf16[64,64], index: 1, kind: input, shape index: {}]   ;;  %s337_s0 = inlined_call_operand.vmem [shape: bf16[36,64], index: 0, kind: input, shape index: {}]   ;;  %s338_s2 = inlined_call_operand.vmem [shape: f32[1,64], index: 2, kind: input, shape index: {}]   ;;  %s339_s3 = inlined_call_operand.vmem [shape: f32[1,64], index: 3, kind: input, shape index: {}]   ;;  %s340_s4 = inlined_call_operand.vmem [shape: f32[36,64], index: 4, kind: input, shape index: {}]   ;;  %s341_s5 = inlined_call_operand.vmem [shape: f32[36,64], index: 5, kind: output, shape index: {}]  }
   0x1   :  { %220 = vmatprep.subr.bf16.mxu1 %v237_v0  ;;  %v230_v1 = vld [vmem:[%s336_s1] sm:$0xff]   ;;  %200 = vmatprep.subr.bf16.mxu0 %v237_v0  ;;  %v231_v2 = vld [vmem:[%s336_s1 + $0x8] sm:$0xff]   ;;  %v232_v3 = vld [vmem:[%s336_s1 + $0x10] sm:$0xff]  }
   0x2   :  { %212 = vmatprep.mubr.msk.bf16.mxu1 %vm238_vm0, %v237_v0  ;;  %208 = vmatprep.mubr.msk.bf16.mxu0 %vm238_vm0, %v237_v0  ;;  %v233_v4 = vld [vmem:[%s336_s1 + $0x18] sm:$0xff]   ;;  %v234_v5 = vld [vmem:[%s337_s0 + $0x8] sm:$0xff]   ;;  %v235_v6 = vld [vmem:[%s337_s0] sm:$0xff]  }
   0x3   :  { %224 = vmatpush3.bf16.msra.mxu1 %v230_v1  ;;  %201 = vmatpush3.bf16.msra.mxu0 %v230_v1  ;;  %v236_v7 = vld [vmem:[%s337_s0 + $0x10] ss:$0 sps:$4 sm:$0x33]   ;;  %v191_v8 = vld [vmem:[%s338_s2] ss:$0 sm:$0xff]  ;;  %v164_v26 = vld [vmem:[%s340_s4 + $0x18] sm:$0xff] }
   0x4   :  { %221 = vmatprep.subr.bf16.mxu1 %v237_v0  ;;  %202 = vmatprep.subr.bf16.mxu0 %v237_v0  ;;  %v192_v10 = vld [vmem:[%s339_s3] ss:$0 sm:$0xff]  ;;  %v163_v16 = vld [vmem:[%s340_s4 + $0x10] sm:$0xff]  ;;  %v162_v27 = vld [vmem:[%s340_s4 + $0x8] sm:$0xff] }
   0x5   :  { %v161_v18 = vld [vmem:[%s340_s4] sm:$0xff] }
   0x6   :  { %v165_v37 = vld [vmem:[%s340_s4 + $0x20] sm:$0xf] }
   0x7   :  { %225 = vmatpush3.bf16.msra.mxu1 %v231_v2  ;;  %203 = vmatpush3.bf16.msra.mxu0 %v231_v2 }
   0x8   :  { %222 = vmatprep.subr.bf16.mxu1 %v237_v0  ;;  %204 = vmatprep.subr.bf16.mxu0 %v237_v0 }
   0xb   :  { %226 = vmatpush3.bf16.msra.mxu1 %v232_v3  ;;  %205 = vmatpush3.bf16.msra.mxu0 %v232_v3 }
   0xc   :  { %223 = vmatprep.subr.bf16.mxu1 %v237_v0  ;;  %206 = vmatprep.subr.bf16.mxu0 %v237_v0 }
   0xf   :  { %227 = vmatpush3.bf16.msra.mxu1 %v233_v4  ;;  %207 = vmatpush3.bf16.msra.mxu0 %v233_v4 }
  0x12   :  { %213 = vmatmul.mubr.msk.bf16.vlgmr.msra.gmra.mrb[0].mxu1 %vm71_vm1, %v234_v5  ;;  %209 = vmatmul.mubr.msk.bf16.vlgmr.msra.gmra.mrb[0].mxu0 %vm71_vm1, %v235_v6 }
  0x13   :  { %216 = vmatprep.mubr.msk.bf16.mxu1 %vm238_vm0, %v237_v0 }
  0x1a   :  { %217 = vmatmul.mubr.msk.bf16.gmra.mrb[4].mxu1 %vm71_vm1, %v236_v7 }
  0xe5   :  { %v123_v9 = vpop.f32.mrb[0].mxu1  ;;  %v115_v11 = vpop.f32.mrb[0].mxu0 }
  0xe6   :  { %v146_v12 = vmul.f32 %v191_v8, %v123_v9  ;;  %v214_v13 = vpop.f32.mrb[1].mxu1  ;;  %v144_v14 = vmul.f32 %v191_v8, %v115_v11  ;;  %v210_v15 = vpop.f32.mrb[1].mxu0 }
  0xe7   :  { %v126_v17 = vpop.f32.mrb[2].mxu1  ;;  %v118_v19 = vpop.f32.mrb[2].mxu0 }
  0xe8   :  { %v158_v20 = vadd.f32 %v192_v10, %v146_v12  ;;  %v147_v21 = vmul.f32 %v191_v8, %v126_v17  ;;  %v156_v22 = vadd.f32 %v192_v10, %v144_v14  ;;  %v215_v23 = vpop.f32.mrb[3].mxu1  ;;  %v145_v24 = vmul.f32 %v191_v8, %v118_v19  ;;  %v211_v25 = vpop.f32.mrb[3].mxu0 }
  0xea   :  { %v168_v28 = vadd.f32 %v163_v16, %v158_v20  ;;  %v159_v29 = vadd.f32 %v192_v10, %v147_v21  ;;  %v166_v30 = vadd.f32 %v161_v18, %v156_v22  ;;  %v157_v31 = vadd.f32 %v192_v10, %v145_v24 }
  0xec   :  { %173 = vst.msk [vmem:[%s341_s5 + $0x10] sm:$0xff] %vm71_vm1, %v168_v28  ;;  %v169_v32 = vadd.f32 %v164_v26, %v159_v29  ;;  %171 = vst.msk [vmem:[%s341_s5] sm:$0xff] %vm71_vm1, %v166_v30  ;;  %v167_v33 = vadd.f32 %v162_v27, %v157_v31 }
  0xed   :  { %v131_v34 = vpop.f32.mrb[4].mxu1 }
  0xee   :  { %174 = vst.msk [vmem:[%s341_s5 + $0x18] sm:$0xff] %vm71_vm1, %v169_v32  ;;  %172 = vst.msk [vmem:[%s341_s5 + $0x8] sm:$0xff] %vm71_vm1, %v167_v33  ;;  %v148_v35 = vmul.f32 %v191_v8, %v131_v34  ;;  %v218_v36 = vpop.f32.mrb[5].mxu1 }
  0xef   :  { %v134_v38 = vpop.f32.mrb[6].mxu1 }
  0xf0   :  { %v160_v39 = vadd.f32 %v192_v10, %v148_v35  ;;  %v219_v40 = vpop.f32.mrb[7].mxu1 }
  0xf2   :  { %v170_v41 = vadd.f32 %v165_v37, %v160_v39 }
  0xf4   :  { %176 = vst.msk [vmem:[%s341_s5 + $0x20] sm:$0xf] %vm175_vm2, %v170_v41 }

// kernel: _lambda_.14
= control target key start
LH: loop header
LB: loop body
LE: loop exit
PB: predicated region body
PF: predicated region fallthrough
CT: control target
= control target key end

     0   :  { %vm29_vm0 = vcmask 523264   ;;  %vm42_vm1 = vcmask 519168   ;;  %v417_v42 = vmov 0   ;;  %vm343_vm2 = vcmask 1043456   ;;  %s572_s0 = inlined_call_operand.vmem [shape: f32[36,64], index: 0, kind: input, shape index: {}]   ;;  %s573_s1 = inlined_call_operand.vmem [shape: bf16[64,192], index: 1, kind: input, shape index: {}]   ;;  %s574_s4 = inlined_call_operand.vmem [shape: f32[1,64], index: 4, kind: input, shape index: {}]   ;;  %s575_s5 = inlined_call_operand.vmem [shape: f32[1,64], index: 5, kind: input, shape index: {}]   ;;  %s576_s2 = inlined_call_operand.vmem [shape: f32[1,192], index: 2, kind: input, shape index: {}]   ;;  %s577_s3 = inlined_call_operand.vmem [shape: f32[1,192], index: 3, kind: input, shape index: {}]   ;;  %s578_s6 = inlined_call_operand.vmem [shape: bf16[36,192], index: 6, kind: output, shape index: {}]  }
   0x1   :  { %v26_v0 = vld [vmem:[%s572_s0 + $0x10] sm:$0xff]  ;;  %v27_v1 = vld [vmem:[%s572_s0 + $0x18] sm:$0xff]  ;;  %v24_v2 = vld [vmem:[%s572_s0] sm:$0xff]  ;;  %248 = vmatprep.mubr.bf16.mxu1 %v417_v42  ;;  %238 = vmatprep.mubr.bf16.mxu0 %v417_v42  ;;  %vm344_vm3 = vcmask 523268   ;;  %vm350_vm5 = vcmask 1041408   ;;  %vm351_vm6 = vcmask 521220  }
   0x2   :  { %v36_v3 = vsel %vm29_vm0, %v26_v0, 0.0  ;;  %v30_v4 = vsel %vm29_vm0, %v24_v2, 0.0  ;;  %v25_v5 = vld [vmem:[%s572_s0 + $0x8] sm:$0xff]  ;;  %v39_v6 = vsel %vm29_vm0, %v27_v1, 0.0  ;;  %v28_v8 = vld [vmem:[%s572_s0 + $0x20] sm:$0xf]  ;;  %vm545_vm4 = vmor %vm344_vm3, %vm343_vm2 }
   0x3   :  { %37 = vadd.xlane.f32.xlu0 %v36_v3  ;;  %31 = vadd.xlane.f32.xlu1 %v30_v4  ;;  %v33_v7 = vsel %vm29_vm0, %v25_v5, 0.0  ;;  %v43_v9 = vsel %vm42_vm1, %v28_v8, 0.0  ;;  %v395_v35 = vld [vmem:[%s573_s1 + $0x4] ss:$8 sps:$4 sm:$0xff]   ;;  %v397_v36 = vld [vmem:[%s573_s1] ss:$8 sps:$4 sm:$0xff]   ;;  %vm352_vm7 = vmor %vm351_vm6, %vm350_vm5 }
   0x4   :  { %381 = vmatprep.subr.bf16.mxu1 %v395_v35  ;;  %206 = vmatprep.subr.bf16.mxu0 %v395_v35  ;;  %v398_v37 = vld [vmem:[%s573_s1 + $0x14] ss:$8 sps:$4 sm:$0xff]   ;;  %v400_v38 = vld [vmem:[%s573_s1 + $0x10] ss:$8 sps:$4 sm:$0xff]   ;;  %v401_v39 = vld [vmem:[%s573_s1 + $0x24] ss:$8 sps:$4 sm:$0xff]  }
   0x5   :  { %385 = vmatpush1.bf16.msra.mxu1 %v397_v36  ;;  %207 = vmatpush1.bf16.msra.mxu0 %v397_v36  ;;  %v403_v40 = vld [vmem:[%s573_s1 + $0x20] ss:$8 sps:$4 sm:$0xff]   ;;  %v404_v41 = vld [vmem:[%s573_s1 + $0x34] ss:$8 sps:$4 sm:$0xff]   ;;  %v406_v43 = vld [vmem:[%s573_s1 + $0x30] ss:$8 sps:$4 sm:$0xff]  }
   0x6   :  { %382 = vmatprep.subr.bf16.mxu1 %v398_v37  ;;  %208 = vmatprep.subr.bf16.mxu0 %v398_v37  ;;  %v358_v60 = vld [vmem:[%s574_s4] ss:$0 sm:$0xff] }
   0x7   :  { %40 = vadd.xlane.f32.xlu0 %v39_v6  ;;  %34 = vadd.xlane.f32.xlu1 %v33_v7  ;;  %v359_v62 = vld [vmem:[%s575_s5] ss:$0 sm:$0xff] }
   0x9   :  { %386 = vmatpush1.bf16.msra.mxu1 %v400_v38  ;;  %209 = vmatpush1.bf16.msra.mxu0 %v400_v38 }
   0xa   :  { %383 = vmatprep.subr.bf16.mxu1 %v401_v39  ;;  %210 = vmatprep.subr.bf16.mxu0 %v401_v39 }
   0xb   :  { %44 = vadd.xlane.f32.xlu0 %v43_v9 }
   0xd   :  { %387 = vmatpush1.bf16.msra.mxu1 %v403_v40  ;;  %211 = vmatpush1.bf16.msra.mxu0 %v403_v40  ;;  %v269_v40 = vlaneseq }
   0xe   :  { %384 = vmatprep.subr.bf16.mxu1 %v404_v41  ;;  %212 = vmatprep.subr.bf16.mxu0 %v404_v41 }
   0xf   :  { %v270_v41 = vshrl.u32 %v269_v40, 7 }
  0x11   :  { %388 = vmatpush1.bf16.msra.mxu1 %v406_v43  ;;  %213 = vmatpush1.bf16.msra.mxu0 %v406_v43  ;;  %v271_v43 = vsub.s32 0, %v270_v41 }
  0x90   :  { %v38_v10 = vpop.xlane.xlu0 %37  ;;  %v32_v11 = vpop.xlane.xlu1 %31 }
  0x91   :  { %v49_v12 = vmul.f32 0.015625, %v38_v10  ;;  %v47_v13 = vmul.f32 0.015625, %v32_v11 }
  0x93   :  { %v473_v14 = vsub.f32 %v26_v0, %v49_v12  ;;  %v475_v15 = vsub.f32 %v24_v2, %v47_v13 }
  0x94   :  { %v41_v16 = vpop.xlane.xlu0 %40  ;;  %v35_v17 = vpop.xlane.xlu1 %34 }
  0x95   :  { %v50_v18 = vmul.f32 0.015625, %v41_v16  ;;  %v59_v19 = vmul.f32 %v473_v14, %v473_v14  ;;  %v48_v20 = vmul.f32 0.015625, %v35_v17  ;;  %v57_v21 = vmul.f32 %v475_v15, %v475_v15 }
  0x97   :  { %v481_v22 = vsub.f32 %v27_v1, %v50_v18  ;;  %v68_v23 = vsel %vm29_vm0, %v59_v19, 0.0  ;;  %v484_v24 = vsub.f32 %v25_v5, %v48_v20  ;;  %v62_v28 = vsel %vm29_vm0, %v57_v21, 0.0 }
  0x98   :  { %v45_v25 = vpop.xlane.xlu0 %44  ;;  %69 = vadd.xlane.f32.xlu1 %v68_v23 }
  0x99   :  { %v51_v26 = vmul.f32 0.015625, %v45_v25  ;;  %v60_v27 = vmul.f32 %v481_v22, %v481_v22  ;;  %v58_v29 = vmul.f32 %v484_v24, %v484_v24 }
  0x9b   :  { %v491_v30 = vsub.f32 %v28_v8, %v51_v26  ;;  %v71_v31 = vsel %vm29_vm0, %v60_v27, 0.0  ;;  %v65_v33 = vsel %vm29_vm0, %v58_v29, 0.0 }
  0x9c   :  { %72 = vadd.xlane.f32.xlu0 %v71_v31  ;;  %63 = vadd.xlane.f32.xlu1 %v62_v28 }
  0x9d   :  { %v61_v32 = vmul.f32 %v491_v30, %v491_v30 }
  0x9f   :  { %v74_v34 = vsel %vm42_vm1, %v61_v32, 0.0 }
  0xa0   :  { %75 = vadd.xlane.f32.xlu1 %v74_v34  ;;  %66 = vadd.xlane.f32.xlu0 %v65_v33 }
 0x125   :  { %v70_v44 = vpop.xlane.xlu1 %69 }
 0x126   :  { %v79_v45 = vmul.f32 0.015625, %v70_v44  ;;  %v267_v44 = vld [vmem:[%s576_s2] sm:$0x3] }
 0x128   :  { %v84_v46 = vadd.f32 1e-06, %v79_v45  ;;  %v275_v45 = vsub.s32 1, %v270_v41 }
 0x129   :  { %v73_v47 = vpop.xlane.xlu0 %72  ;;  %v64_v48 = vpop.xlane.xlu1 %63 }
 0x12a   :  { %407 = vrsqrt.f32 %v84_v46  ;;  %v80_v49 = vmul.f32 0.015625, %v73_v47  ;;  %v77_v50 = vmul.f32 0.015625, %v64_v48  ;;  %v289_v46 = vld [vmem:[%s577_s3] sm:$0x3]  ;;  %v276_v47 = vrot.slane %v267_v44, %v275_v45 }
 0x12b   :  { %v294_v48 = vrot.slane %v289_v46, %v271_v43 }
 0x12c   :  { %v85_v51 = vadd.f32 1e-06, %v80_v49  ;;  %v82_v52 = vadd.f32 1e-06, %v77_v50  ;;  %v298_v50 = vrot.slane %v289_v46, %v275_v45 }
 0x12d   :  { %v67_v53 = vpop.xlane.xlu0 %66  ;;  %v76_v54 = vpop.xlane.xlu1 %75 }
 0x12e   :  { %409 = vrsqrt.f32 %v85_v51  ;;  %v78_v55 = vmul.f32 0.015625, %v67_v53  ;;  %v81_v56 = vmul.f32 0.015625, %v76_v54 }
 0x12f   :  { %411 = vrsqrt.f32 %v82_v52 }
 0x130   :  { %v83_v57 = vadd.f32 1e-06, %v78_v55  ;;  %v86_v58 = vadd.f32 1e-06, %v81_v56 }
 0x132   :  { %413 = vrsqrt.f32 %v83_v57 }
 0x133   :  { %415 = vrsqrt.f32 %v86_v58 }
 0x134   :  { %v408_v59 = vpop.eup %407 }
 0x135   :  { %v94_v61 = vmul.f32 %v408_v59, %v473_v14 }
 0x137   :  { %v106_v63 = vmul.f32 %v358_v60, %v94_v61 }
 0x138   :  { %v410_v0 = vpop.eup %409 }
 0x139   :  { %v412_v1 = vpop.eup %411  ;;  %v95_v2 = vmul.f32 %v410_v0, %v481_v22  ;;  %v118_v3 = vadd.f32 %v359_v62, %v106_v63 }
 0x13a   :  { %v92_v4 = vmul.f32 %v412_v1, %v475_v15 }
 0x13b   :  { %v107_v5 = vmul.f32 %v358_v60, %v95_v2  ;;  %v123_v6 = vmul.f32 9.077491, %v118_v3 }
 0x13c   :  { %v414_v7 = vpop.eup %413  ;;  %v104_v8 = vmul.f32 %v358_v60, %v92_v4 }
 0x13d   :  { %v416_v9 = vpop.eup %415  ;;  %v93_v10 = vmul.f32 %v414_v7, %v484_v24  ;;  %v119_v11 = vadd.f32 %v359_v62, %v107_v5  ;;  %v133_v12 = vmax.f32 %v123_v6, -8.0 }
 0x13e   :  { %v96_v13 = vmul.f32 %v416_v9, %v491_v30  ;;  %v116_v14 = vadd.f32 %v359_v62, %v104_v8 }
 0x13f   :  { %v124_v16 = vmul.f32 9.077491, %v119_v11  ;;  %v105_v17 = vmul.f32 %v358_v60, %v93_v10  ;;  %v138_v21 = vmin.f32 %v133_v12, 7.0 }
 0x140   :  { %v121_v18 = vmul.f32 9.077491, %v116_v14  ;;  %v108_v19 = vmul.f32 %v358_v60, %v96_v13 }
 0x141   :  { %v134_v20 = vmax.f32 %v124_v16, -8.0  ;;  %v117_v22 = vadd.f32 %v359_v62, %v105_v17  ;;  %v391_v28 = vround.rtne.f32 %v138_v21 }
 0x142   :  { %v131_v15 = vmax.f32 %v121_v18, -8.0  ;;  %v120_v23 = vadd.f32 %v359_v62, %v108_v19 }
 0x143   :  { %v139_v25 = vmin.f32 %v134_v20, 7.0  ;;  %v122_v26 = vmul.f32 9.077491, %v117_v22 }
 0x144   :  { %v125_v27 = vmul.f32 9.077491, %v120_v23  ;;  %v136_v31 = vmin.f32 %v131_v15, 7.0 }
 0x145   :  { %v392_v29 = vround.rtne.f32 %v139_v25  ;;  %v132_v24 = vmax.f32 %v122_v26, -8.0 }
 0x146   :  { %v135_v32 = vmax.f32 %v125_v27, -8.0  ;;  %v389_v35 = vround.rtne.f32 %v136_v31 }
 0x147   :  { %v147_v33 = vpack.c.bf16 %v392_v29, %v391_v28  ;;  %v137_v30 = vmin.f32 %v132_v24, 7.0 }
 0x148   :  { %v140_v34 = vmin.f32 %v135_v32, 7.0 }
 0x149   :  { %369 = vmatmul.mubr.msk.bf16.vlgmr.msra.gmra.mrb[0].mxu1 %vm29_vm0, %v147_v33  ;;  %v390_v36 = vround.rtne.f32 %v137_v30 }
 0x14a   :  { %258 = vmatprep.mubr.bf16.mxu1 %v417_v42  ;;  %v393_v38 = vround.rtne.f32 %v140_v34  ;;  %v272_v42 = vrot.slane %v267_v44, %v271_v43 }
 0x14b   :  { %v146_v37 = vpack.c.bf16 %v390_v36, %v389_v35 }
 0x14c   :  { %v148_v39 = vpack.c.bf16 %v393_v38, %v393_v38 }
 0x14d   :  { %368 = vmatmul.mubr.msk.bf16.vlgmr.msra.gmra.mrb[0].mxu0 %vm29_vm0, %v146_v37 }
 0x151   :  { %370 = vmatmul.mubr.msk.bf16.gmra.mrb[4].mxu1 %vm29_vm0, %v148_v39 }
 0x21c   :  { %v250_v49 = vpop.f32.mrb[0].mxu1 }
 0x21d   :  { %v283_v51 = vmul.f32 %v272_v42, %v250_v49  ;;  %v252_v52 = vpop.f32.mrb[1].mxu1 }
 0x21e   :  { %v284_v53 = vmul.f32 %v276_v47, %v252_v52  ;;  %v254_v54 = vpop.f32.mrb[2].mxu1 }
 0x21f   :  { %v305_v55 = vadd.f32 %v294_v48, %v283_v51  ;;  %v285_v56 = vmul.f32 %v272_v42, %v254_v54  ;;  %v256_v57 = vpop.f32.mrb[3].mxu1 }
 0x220   :  { %v306_v58 = vadd.f32 %v298_v50, %v284_v53  ;;  %v286_v59 = vmul.f32 %v276_v47, %v256_v57  ;;  %v240_v60 = vpop.f32.mrb[0].mxu0 }
 0x221   :  { %v307_v62 = vadd.f32 %v294_v48, %v285_v56  ;;  %v279_v63 = vmul.f32 %v272_v42, %v240_v60  ;;  %v242_v0 = vpop.f32.mrb[1].mxu0 }
 0x222   :  { %v378_v1 = vpack.c.bf16 %v306_v58, %v305_v55  ;;  %v308_v2 = vadd.f32 %v298_v50, %v286_v59  ;;  %v280_v3 = vmul.f32 %v276_v47, %v242_v0  ;;  %v244_v4 = vpop.f32.mrb[2].mxu0 }
 0x223   :  { %v301_v5 = vadd.f32 %v294_v48, %v279_v63  ;;  %v281_v6 = vmul.f32 %v272_v42, %v244_v4  ;;  %v246_v7 = vpop.f32.mrb[3].mxu0 }
 0x224   :  { %348 = vst.msk [vmem:[%s578_s6 + $0x10] sm:$0xff] %vm545_vm4, %v378_v1  ;;  %v379_v8 = vpack.c.bf16 %v308_v2, %v307_v62  ;;  %v302_v9 = vadd.f32 %v298_v50, %v280_v3  ;;  %v282_v10 = vmul.f32 %v276_v47, %v246_v7  ;;  %v260_v11 = vpop.f32.mrb[4].mxu1 }
 0x225   :  { %v303_v12 = vadd.f32 %v294_v48, %v281_v6  ;;  %v287_v13 = vmul.f32 %v272_v42, %v260_v11  ;;  %v262_v14 = vpop.f32.mrb[5].mxu1 }
 0x226   :  { %349 = vst.msk [vmem:[%s578_s6 + $0x18] sm:$0xff] %vm545_vm4, %v379_v8  ;;  %v376_v16 = vpack.c.bf16 %v302_v9, %v301_v5  ;;  %v304_v17 = vadd.f32 %v298_v50, %v282_v10  ;;  %v288_v18 = vmul.f32 %v276_v47, %v262_v14  ;;  %v264_v19 = vpop.f32.mrb[6].mxu1 }
 0x227   :  { %v309_v20 = vadd.f32 %v294_v48, %v287_v13  ;;  %v265_v21 = vpop.f32.mrb[7].mxu1 }
 0x228   :  { %346 = vst.msk [vmem:[%s578_s6] sm:$0xff] %vm545_vm4, %v376_v16  ;;  %v377_v22 = vpack.c.bf16 %v304_v17, %v303_v12  ;;  %v310_v15 = vadd.f32 %v298_v50, %v288_v18 }
 0x22a   :  { %347 = vst.msk [vmem:[%s578_s6 + $0x8] sm:$0xff] %vm545_vm4, %v377_v22  ;;  %v380_v23 = vpack.c.bf16 %v310_v15, %v309_v20 }
 0x22c   :  { %353 = vst.msk [vmem:[%s578_s6 + $0x20] sm:$0x33] %vm352_vm7, %v380_v23 }

// kernel: _lambda_.17
= control target key start
LH: loop header
LB: loop body
LE: loop exit
PB: predicated region body
PF: predicated region fallthrough
CT: control target
= control target key end

     0   :  { %vm29_vm0 = vcmask 523264   ;;  %vm42_vm1 = vcmask 519168   ;;  %v581_v42 = vmov 0   ;;  %s822_s0 = inlined_call_operand.vmem [shape: f32[36,64], index: 0, kind: input, shape index: {}]   ;;  %s823_s1 = inlined_call_operand.vmem [shape: bf16[64,256], index: 1, kind: input, shape index: {}]   ;;  %s824_s4 = inlined_call_operand.vmem [shape: f32[1,64], index: 4, kind: input, shape index: {}]   ;;  %s825_s5 = inlined_call_operand.vmem [shape: f32[1,64], index: 5, kind: input, shape index: {}]   ;;  %s826_s2 = inlined_call_operand.vmem [shape: f32[1,256], index: 2, kind: input, shape index: {}]   ;;  %s827_s3 = inlined_call_operand.vmem [shape: f32[1,256], index: 3, kind: input, shape index: {}]   ;;  %s828_s6 = inlined_call_operand.vmem [shape: bf16[36,256], index: 6, kind: output, shape index: {}]  }
   0x1   :  { %v26_v0 = vld [vmem:[%s822_s0 + $0x10] sm:$0xff]  ;;  %v27_v1 = vld [vmem:[%s822_s0 + $0x18] sm:$0xff]  ;;  %v24_v2 = vld [vmem:[%s822_s0] sm:$0xff]  ;;  %248 = vmatprep.mubr.bf16.mxu1 %v581_v42  ;;  %238 = vmatprep.mubr.bf16.mxu0 %v581_v42 }
   0x2   :  { %v36_v3 = vsel %vm29_vm0, %v26_v0, 0.0  ;;  %v30_v4 = vsel %vm29_vm0, %v24_v2, 0.0  ;;  %v25_v5 = vld [vmem:[%s822_s0 + $0x8] sm:$0xff]  ;;  %v39_v6 = vsel %vm29_vm0, %v27_v1, 0.0  ;;  %v28_v8 = vld [vmem:[%s822_s0 + $0x20] sm:$0xf] }
   0x3   :  { %37 = vadd.xlane.f32.xlu0 %v36_v3  ;;  %31 = vadd.xlane.f32.xlu1 %v30_v4  ;;  %v33_v7 = vsel %vm29_vm0, %v25_v5, 0.0  ;;  %v43_v9 = vsel %vm42_vm1, %v28_v8, 0.0  ;;  %v539_v35 = vld [vmem:[%s823_s1 + $0x4] ss:$8 sps:$4 sm:$0xff]   ;;  %v541_v36 = vld [vmem:[%s823_s1] ss:$8 sps:$4 sm:$0xff]  }
   0x4   :  { %515 = vmatprep.subr.bf16.mxu1 %v539_v35  ;;  %206 = vmatprep.subr.bf16.mxu0 %v539_v35  ;;  %v542_v37 = vld [vmem:[%s823_s1 + $0x14] ss:$8 sps:$4 sm:$0xff]   ;;  %v544_v38 = vld [vmem:[%s823_s1 + $0x10] ss:$8 sps:$4 sm:$0xff]   ;;  %v545_v39 = vld [vmem:[%s823_s1 + $0x24] ss:$8 sps:$4 sm:$0xff]  }
   0x5   :  { %519 = vmatpush1.bf16.msra.mxu1 %v541_v36  ;;  %207 = vmatpush1.bf16.msra.mxu0 %v541_v36  ;;  %v547_v40 = vld [vmem:[%s823_s1 + $0x20] ss:$8 sps:$4 sm:$0xff]   ;;  %v548_v41 = vld [vmem:[%s823_s1 + $0x34] ss:$8 sps:$4 sm:$0xff]   ;;  %v550_v43 = vld [vmem:[%s823_s1 + $0x30] ss:$8 sps:$4 sm:$0xff]  }
   0x6   :  { %516 = vmatprep.subr.bf16.mxu1 %v542_v37  ;;  %208 = vmatprep.subr.bf16.mxu0 %v542_v37  ;;  %v492_v60 = vld [vmem:[%s824_s4] ss:$0 sm:$0xff] }
   0x7   :  { %40 = vadd.xlane.f32.xlu0 %v39_v6  ;;  %34 = vadd.xlane.f32.xlu1 %v33_v7  ;;  %v493_v62 = vld [vmem:[%s825_s5] ss:$0 sm:$0xff] }
   0x9   :  { %520 = vmatpush1.bf16.msra.mxu1 %v544_v38  ;;  %209 = vmatpush1.bf16.msra.mxu0 %v544_v38 }
   0xa   :  { %517 = vmatprep.subr.bf16.mxu1 %v545_v39  ;;  %210 = vmatprep.subr.bf16.mxu0 %v545_v39 }
   0xb   :  { %44 = vadd.xlane.f32.xlu0 %v43_v9 }
   0xd   :  { %521 = vmatpush1.bf16.msra.mxu1 %v547_v40  ;;  %211 = vmatpush1.bf16.msra.mxu0 %v547_v40  ;;  %v269_v40 = vlaneseq }
   0xe   :  { %518 = vmatprep.subr.bf16.mxu1 %v548_v41  ;;  %212 = vmatprep.subr.bf16.mxu0 %v548_v41 }
   0xf   :  { %v270_v41 = vshrl.u32 %v269_v40, 7 }
  0x11   :  { %522 = vmatpush1.bf16.msra.mxu1 %v550_v43  ;;  %213 = vmatpush1.bf16.msra.mxu0 %v550_v43  ;;  %v271_v43 = vsub.s32 0, %v270_v41 }
  0x90   :  { %v38_v10 = vpop.xlane.xlu0 %37  ;;  %v32_v11 = vpop.xlane.xlu1 %31 }
  0x91   :  { %v49_v12 = vmul.f32 0.015625, %v38_v10  ;;  %v47_v13 = vmul.f32 0.015625, %v32_v11 }
  0x93   :  { %v637_v14 = vsub.f32 %v26_v0, %v49_v12  ;;  %v639_v15 = vsub.f32 %v24_v2, %v47_v13 }
  0x94   :  { %v41_v16 = vpop.xlane.xlu0 %40  ;;  %v35_v17 = vpop.xlane.xlu1 %34 }
  0x95   :  { %v50_v18 = vmul.f32 0.015625, %v41_v16  ;;  %v59_v19 = vmul.f32 %v637_v14, %v637_v14  ;;  %v48_v20 = vmul.f32 0.015625, %v35_v17  ;;  %v57_v21 = vmul.f32 %v639_v15, %v639_v15 }
  0x97   :  { %v645_v22 = vsub.f32 %v27_v1, %v50_v18  ;;  %v68_v23 = vsel %vm29_vm0, %v59_v19, 0.0  ;;  %v648_v24 = vsub.f32 %v25_v5, %v48_v20  ;;  %v62_v28 = vsel %vm29_vm0, %v57_v21, 0.0 }
  0x98   :  { %v45_v25 = vpop.xlane.xlu0 %44  ;;  %69 = vadd.xlane.f32.xlu1 %v68_v23 }
  0x99   :  { %v51_v26 = vmul.f32 0.015625, %v45_v25  ;;  %v60_v27 = vmul.f32 %v645_v22, %v645_v22  ;;  %v58_v29 = vmul.f32 %v648_v24, %v648_v24 }
  0x9b   :  { %v655_v30 = vsub.f32 %v28_v8, %v51_v26  ;;  %v71_v31 = vsel %vm29_vm0, %v60_v27, 0.0  ;;  %v65_v33 = vsel %vm29_vm0, %v58_v29, 0.0 }
  0x9c   :  { %72 = vadd.xlane.f32.xlu0 %v71_v31  ;;  %63 = vadd.xlane.f32.xlu1 %v62_v28 }
  0x9d   :  { %v61_v32 = vmul.f32 %v655_v30, %v655_v30 }
  0x9f   :  { %v74_v34 = vsel %vm42_vm1, %v61_v32, 0.0 }
  0xa0   :  { %75 = vadd.xlane.f32.xlu1 %v74_v34  ;;  %66 = vadd.xlane.f32.xlu0 %v65_v33 }
 0x125   :  { %v70_v44 = vpop.xlane.xlu1 %69 }
 0x126   :  { %v79_v45 = vmul.f32 0.015625, %v70_v44  ;;  %v267_v44 = vld [vmem:[%s826_s2] sm:$0x3] }
 0x128   :  { %v84_v46 = vadd.f32 1e-06, %v79_v45  ;;  %v275_v45 = vsub.s32 1, %v270_v41 }
 0x129   :  { %v73_v47 = vpop.xlane.xlu0 %72  ;;  %v64_v48 = vpop.xlane.xlu1 %63 }
 0x12a   :  { %551 = vrsqrt.f32 %v84_v46  ;;  %v80_v49 = vmul.f32 0.015625, %v73_v47  ;;  %v77_v50 = vmul.f32 0.015625, %v64_v48  ;;  %v289_v46 = vld [vmem:[%s827_s3] sm:$0x3]  ;;  %v711_v47 = vrot.slane %v267_v44, %v275_v45 }
 0x12b   :  { %v713_v48 = vrot.slane %v289_v46, %v271_v43 }
 0x12c   :  { %v85_v51 = vadd.f32 1e-06, %v80_v49  ;;  %v82_v52 = vadd.f32 1e-06, %v77_v50  ;;  %v715_v50 = vrot.slane %v289_v46, %v275_v45 }
 0x12d   :  { %v67_v53 = vpop.xlane.xlu0 %66  ;;  %v76_v54 = vpop.xlane.xlu1 %75 }
 0x12e   :  { %553 = vrsqrt.f32 %v85_v51  ;;  %v78_v55 = vmul.f32 0.015625, %v67_v53  ;;  %v81_v56 = vmul.f32 0.015625, %v76_v54 }
 0x12f   :  { %555 = vrsqrt.f32 %v82_v52 }
 0x130   :  { %v83_v57 = vadd.f32 1e-06, %v78_v55  ;;  %v86_v58 = vadd.f32 1e-06, %v81_v56 }
 0x132   :  { %557 = vrsqrt.f32 %v83_v57 }
 0x133   :  { %559 = vrsqrt.f32 %v86_v58 }
 0x134   :  { %v552_v59 = vpop.eup %551 }
 0x135   :  { %v94_v61 = vmul.f32 %v552_v59, %v637_v14 }
 0x137   :  { %v106_v63 = vmul.f32 %v492_v60, %v94_v61 }
 0x138   :  { %v554_v0 = vpop.eup %553 }
 0x139   :  { %v556_v1 = vpop.eup %555  ;;  %v95_v2 = vmul.f32 %v554_v0, %v645_v22  ;;  %v118_v3 = vadd.f32 %v493_v62, %v106_v63 }
 0x13a   :  { %v92_v4 = vmul.f32 %v556_v1, %v639_v15 }
 0x13b   :  { %v107_v5 = vmul.f32 %v492_v60, %v95_v2  ;;  %v123_v6 = vmul.f32 9.070505, %v118_v3 }
 0x13c   :  { %v558_v7 = vpop.eup %557  ;;  %v104_v8 = vmul.f32 %v492_v60, %v92_v4 }
 0x13d   :  { %v560_v9 = vpop.eup %559  ;;  %v93_v10 = vmul.f32 %v558_v7, %v648_v24  ;;  %v119_v11 = vadd.f32 %v493_v62, %v107_v5  ;;  %v133_v12 = vmax.f32 %v123_v6, -8.0 }
 0x13e   :  { %v96_v13 = vmul.f32 %v560_v9, %v655_v30  ;;  %v116_v14 = vadd.f32 %v493_v62, %v104_v8 }
 0x13f   :  { %v124_v16 = vmul.f32 9.070505, %v119_v11  ;;  %v105_v17 = vmul.f32 %v492_v60, %v93_v10  ;;  %v138_v21 = vmin.f32 %v133_v12, 7.0 }
 0x140   :  { %v121_v18 = vmul.f32 9.070505, %v116_v14  ;;  %v108_v19 = vmul.f32 %v492_v60, %v96_v13 }
 0x141   :  { %v134_v20 = vmax.f32 %v124_v16, -8.0  ;;  %v117_v22 = vadd.f32 %v493_v62, %v105_v17  ;;  %v525_v28 = vround.rtne.f32 %v138_v21 }
 0x142   :  { %v131_v15 = vmax.f32 %v121_v18, -8.0  ;;  %v120_v23 = vadd.f32 %v493_v62, %v108_v19 }
 0x143   :  { %v139_v25 = vmin.f32 %v134_v20, 7.0  ;;  %v122_v26 = vmul.f32 9.070505, %v117_v22 }
 0x144   :  { %v125_v27 = vmul.f32 9.070505, %v120_v23  ;;  %v136_v31 = vmin.f32 %v131_v15, 7.0 }
 0x145   :  { %v526_v29 = vround.rtne.f32 %v139_v25  ;;  %v132_v24 = vmax.f32 %v122_v26, -8.0 }
 0x146   :  { %v135_v32 = vmax.f32 %v125_v27, -8.0  ;;  %v523_v35 = vround.rtne.f32 %v136_v31 }
 0x147   :  { %v147_v33 = vpack.c.bf16 %v526_v29, %v525_v28  ;;  %v137_v30 = vmin.f32 %v132_v24, 7.0 }
 0x148   :  { %v140_v34 = vmin.f32 %v135_v32, 7.0 }
 0x149   :  { %503 = vmatmul.mubr.msk.bf16.vlgmr.msra.gmra.mrb[0].mxu1 %vm29_vm0, %v147_v33  ;;  %v524_v36 = vround.rtne.f32 %v137_v30 }
 0x14a   :  { %258 = vmatprep.mubr.bf16.mxu1 %v581_v42  ;;  %v527_v38 = vround.rtne.f32 %v140_v34  ;;  %v709_v42 = vrot.slane %v267_v44, %v271_v43 }
 0x14b   :  { %v146_v37 = vpack.c.bf16 %v524_v36, %v523_v35 }
 0x14c   :  { %v148_v39 = vpack.c.bf16 %v527_v38, %v527_v38 }
 0x14d   :  { %502 = vmatmul.mubr.msk.bf16.vlgmr.msra.gmra.mrb[0].mxu0 %vm29_vm0, %v146_v37 }
 0x151   :  { %504 = vmatmul.mubr.msk.bf16.gmra.mrb[4].mxu1 %vm29_vm0, %v148_v39 }
 0x21c   :  { %v250_v49 = vpop.f32.mrb[0].mxu1 }
 0x21d   :  { %v283_v51 = vmul.f32 %v709_v42, %v250_v49  ;;  %v252_v52 = vpop.f32.mrb[1].mxu1 }
 0x21e   :  { %v284_v53 = vmul.f32 %v711_v47, %v252_v52  ;;  %v254_v54 = vpop.f32.mrb[2].mxu1 }
 0x21f   :  { %v720_v55 = vadd.f32 %v713_v48, %v283_v51  ;;  %v285_v56 = vmul.f32 %v709_v42, %v254_v54  ;;  %v256_v57 = vpop.f32.mrb[3].mxu1 }
 0x220   :  { %v724_v58 = vadd.f32 %v715_v50, %v284_v53  ;;  %v286_v59 = vmul.f32 %v711_v47, %v256_v57  ;;  %v240_v60 = vpop.f32.mrb[0].mxu0 }
 0x221   :  { %v315_v61 = vmul.f32 %v720_v55, %v720_v55  ;;  %v730_v62 = vadd.f32 %v713_v48, %v285_v56  ;;  %v279_v63 = vmul.f32 %v709_v42, %v240_v60  ;;  %v242_v0 = vpop.f32.mrb[1].mxu0 }
 0x222   :  { %v316_v1 = vmul.f32 %v724_v58, %v724_v58  ;;  %v736_v2 = vadd.f32 %v715_v50, %v286_v59  ;;  %v280_v3 = vmul.f32 %v711_v47, %v242_v0  ;;  %v244_v4 = vpop.f32.mrb[2].mxu0 }
 0x223   :  { %v325_v5 = vmul.f32 %v315_v61, %v720_v55  ;;  %v317_v6 = vmul.f32 %v730_v62, %v730_v62  ;;  %v743_v7 = vadd.f32 %v713_v48, %v279_v63  ;;  %v281_v8 = vmul.f32 %v709_v42, %v244_v4  ;;  %v246_v9 = vpop.f32.mrb[3].mxu0 }
 0x224   :  { %v326_v10 = vmul.f32 %v316_v1, %v724_v58  ;;  %v318_v11 = vmul.f32 %v736_v2, %v736_v2  ;;  %v750_v12 = vadd.f32 %v715_v50, %v280_v3  ;;  %v282_v13 = vmul.f32 %v711_v47, %v246_v9  ;;  %v260_v14 = vpop.f32.mrb[4].mxu1 }
 0x225   :  { %v335_v16 = vmul.f32 0.044715, %v325_v5  ;;  %v327_v17 = vmul.f32 %v317_v6, %v730_v62  ;;  %v311_v18 = vmul.f32 %v743_v7, %v743_v7  ;;  %v757_v19 = vadd.f32 %v713_v48, %v281_v8  ;;  %v262_v20 = vpop.f32.mrb[5].mxu1 }
 0x226   :  { %v336_v21 = vmul.f32 0.044715, %v326_v10  ;;  %v328_v22 = vmul.f32 %v318_v11, %v736_v2  ;;  %v312_v15 = vmul.f32 %v750_v12, %v750_v12  ;;  %v763_v23 = vadd.f32 %v715_v50, %v282_v13  ;;  %v264_v25 = vpop.f32.mrb[6].mxu1 }
 0x227   :  { %v345_v26 = vadd.f32 %v335_v16, %v720_v55  ;;  %v337_v27 = vmul.f32 0.044715, %v327_v17  ;;  %v321_v28 = vmul.f32 %v311_v18, %v743_v7  ;;  %v313_v29 = vmul.f32 %v757_v19, %v757_v19  ;;  %v265_v24 = vpop.f32.mrb[7].mxu1 }
 0x228   :  { %v346_v31 = vadd.f32 %v336_v21, %v724_v58  ;;  %v338_v32 = vmul.f32 0.044715, %v328_v22  ;;  %v322_v33 = vmul.f32 %v312_v15, %v750_v12  ;;  %v314_v30 = vmul.f32 %v763_v23, %v763_v23 }
 0x229   :  { %v355_v34 = vmul.f32 0.7978846, %v345_v26  ;;  %v347_v35 = vadd.f32 %v337_v27, %v730_v62  ;;  %v331_v36 = vmul.f32 0.044715, %v321_v28  ;;  %v323_v37 = vmul.f32 %v313_v29, %v757_v19 }
 0x22a   :  { %v356_v38 = vmul.f32 0.7978846, %v346_v31  ;;  %v348_v39 = vadd.f32 %v338_v32, %v736_v2  ;;  %v332_v40 = vmul.f32 0.044715, %v322_v33  ;;  %v324_v41 = vmul.f32 %v314_v30, %v763_v23 }
 0x22b   :  { %561 = vtanh.f32 %v355_v34  ;;  %v357_v43 = vmul.f32 0.7978846, %v347_v35  ;;  %v341_v44 = vadd.f32 %v331_v36, %v743_v7  ;;  %v333_v45 = vmul.f32 0.044715, %v323_v37 }
 0x22c   :  { %563 = vtanh.f32 %v356_v38  ;;  %v358_v46 = vmul.f32 0.7978846, %v348_v39  ;;  %v342_v49 = vadd.f32 %v332_v40, %v750_v12  ;;  %v334_v51 = vmul.f32 0.044715, %v324_v41 }
 0x22d   :  { %565 = vtanh.f32 %v357_v43  ;;  %v351_v52 = vmul.f32 0.7978846, %v341_v44  ;;  %v343_v53 = vadd.f32 %v333_v45, %v757_v19  ;;  %v287_v54 = vmul.f32 %v709_v42, %v260_v14 }
 0x22e   :  { %567 = vtanh.f32 %v358_v46  ;;  %v352_v56 = vmul.f32 0.7978846, %v342_v49  ;;  %v344_v57 = vadd.f32 %v334_v51, %v763_v23  ;;  %v288_v59 = vmul.f32 %v711_v47, %v262_v20 }
 0x22f   :  { %569 = vtanh.f32 %v351_v52  ;;  %v353_v60 = vmul.f32 0.7978846, %v343_v53  ;;  %v784_v61 = vadd.f32 %v713_v48, %v287_v54 }
 0x230   :  { %571 = vtanh.f32 %v352_v56  ;;  %v354_v63 = vmul.f32 0.7978846, %v344_v57  ;;  %v787_v0 = vadd.f32 %v715_v50, %v288_v59 }
 0x231   :  { %573 = vtanh.f32 %v353_v60  ;;  %v319_v42 = vmul.f32 %v784_v61, %v784_v61 }
 0x232   :  { %575 = vtanh.f32 %v354_v63  ;;  %v320_v1 = vmul.f32 %v787_v0, %v787_v0 }
 0x233   :  { %v329_v47 = vmul.f32 %v319_v42, %v784_v61 }
 0x234   :  { %v330_v3 = vmul.f32 %v320_v1, %v787_v0 }
 0x235   :  { %v562_v4 = vpop.eup %561  ;;  %v339_v48 = vmul.f32 0.044715, %v329_v47 }
 0x236   :  { %v564_v5 = vpop.eup %563  ;;  %v375_v6 = vadd.f32 1.0, %v562_v4  ;;  %v340_v8 = vmul.f32 0.044715, %v330_v3 }
 0x237   :  { %v566_v9 = vpop.eup %565  ;;  %v376_v50 = vadd.f32 1.0, %v564_v5  ;;  %v349_v10 = vadd.f32 %v339_v48, %v784_v61 }
 0x238   :  { %v568_v11 = vpop.eup %567  ;;  %v385_v13 = vmul.f32 0.5, %v375_v6  ;;  %v377_v14 = vadd.f32 1.0, %v566_v9  ;;  %v350_v16 = vadd.f32 %v340_v8, %v787_v0 }
 0x239   :  { %v570_v17 = vpop.eup %569  ;;  %v386_v18 = vmul.f32 0.5, %v376_v50  ;;  %v378_v20 = vadd.f32 1.0, %v568_v11  ;;  %v359_v21 = vmul.f32 0.7978846, %v349_v10 }
 0x23a   :  { %v572_v22 = vpop.eup %571  ;;  %v395_v15 = vmul.f32 %v385_v13, %v720_v55  ;;  %v387_v25 = vmul.f32 0.5, %v377_v14  ;;  %v371_v26 = vadd.f32 1.0, %v570_v17  ;;  %v360_v27 = vmul.f32 0.7978846, %v350_v16 }
 0x23b   :  { %v574_v28 = vpop.eup %573  ;;  %v396_v29 = vmul.f32 %v386_v18, %v724_v58  ;;  %v388_v24 = vmul.f32 0.5, %v378_v20  ;;  %v372_v31 = vadd.f32 1.0, %v572_v22  ;;  %577 = vtanh.f32 %v359_v21 }
 0x23c   :  { %v576_v32 = vpop.eup %575  ;;  %v405_v33 = vmul.f32 9.180707, %v395_v15  ;;  %v397_v30 = vmul.f32 %v387_v25, %v730_v62  ;;  %v381_v34 = vmul.f32 0.5, %v371_v26  ;;  %v373_v35 = vadd.f32 1.0, %v574_v28 }
 0x23d   :  { %v406_v36 = vmul.f32 9.180707, %v396_v29  ;;  %v398_v37 = vmul.f32 %v388_v24, %v736_v2  ;;  %v382_v38 = vmul.f32 0.5, %v372_v31  ;;  %v374_v55 = vadd.f32 1.0, %v576_v32 }
 0x23e   :  { %v425_v39 = vmax.f32 %v405_v33, -8.0  ;;  %v407_v40 = vmul.f32 9.180707, %v397_v30  ;;  %v391_v41 = vmul.f32 %v381_v34, %v743_v7  ;;  %v383_v43 = vmul.f32 0.5, %v373_v35 }
 0x23f   :  { %v426_v58 = vmax.f32 %v406_v36, -8.0  ;;  %v408_v44 = vmul.f32 9.180707, %v398_v37  ;;  %v392_v45 = vmul.f32 %v382_v38, %v750_v12  ;;  %v384_v46 = vmul.f32 0.5, %v374_v55 }
 0x240   :  { %v435_v49 = vmin.f32 %v425_v39, 7.0  ;;  %v427_v51 = vmax.f32 %v407_v40, -8.0  ;;  %v401_v62 = vmul.f32 9.180707, %v391_v41  ;;  %v393_v52 = vmul.f32 %v383_v43, %v757_v19 }
 0x241   :  { %v436_v53 = vmin.f32 %v426_v58, 7.0  ;;  %v428_v54 = vmax.f32 %v408_v44, -8.0  ;;  %v402_v2 = vmul.f32 9.180707, %v392_v45  ;;  %v394_v56 = vmul.f32 %v384_v46, %v763_v23 }
 0x242   :  { %v532_v57 = vround.rtne.f32 %v435_v49  ;;  %v437_v59 = vmin.f32 %v427_v51, 7.0  ;;  %v421_v60 = vmax.f32 %v401_v62, -8.0  ;;  %v403_v7 = vmul.f32 9.180707, %v393_v52 }
 0x243   :  { %v533_v63 = vround.rtne.f32 %v436_v53  ;;  %v438_v42 = vmin.f32 %v428_v54, 7.0  ;;  %v422_v1 = vmax.f32 %v402_v2, -8.0  ;;  %v404_v47 = vmul.f32 9.180707, %v394_v56 }
 0x244   :  { %v534_v12 = vround.rtne.f32 %v437_v59  ;;  %v431_v3 = vmin.f32 %v421_v60, 7.0  ;;  %v423_v4 = vmax.f32 %v403_v7, -8.0  ;;  %579 = vtanh.f32 %v360_v27 }
 0x245   :  { %v578_v48 = vpop.eup %577  ;;  %v512_v5 = vpack.c.bf16 %v533_v63, %v532_v57  ;;  %v535_v19 = vround.rtne.f32 %v438_v42  ;;  %v432_v6 = vmin.f32 %v422_v1, 7.0  ;;  %v424_v8 = vmax.f32 %v404_v47, -8.0 }
 0x246   :  { %v528_v9 = vround.rtne.f32 %v431_v3  ;;  %v433_v50 = vmin.f32 %v423_v4, 7.0  ;;  %v379_v23 = vadd.f32 1.0, %v578_v48 }
 0x247   :  { %485 = vst [vmem:[%s828_s6 + $0x10] sm:$0xff] %v512_v5  ;;  %v513_v10 = vpack.c.bf16 %v535_v19, %v534_v12  ;;  %v529_v11 = vround.rtne.f32 %v432_v6  ;;  %v434_v13 = vmin.f32 %v424_v8, 7.0 }
 0x248   :  { %v530_v14 = vround.rtne.f32 %v433_v50  ;;  %v389_v16 = vmul.f32 0.5, %v379_v23 }
 0x249   :  { %486 = vst [vmem:[%s828_s6 + $0x18] sm:$0xff] %v513_v10  ;;  %v510_v17 = vpack.c.bf16 %v529_v11, %v528_v9  ;;  %v531_v18 = vround.rtne.f32 %v434_v13 }
 0x24a   :  { %v399_v20 = vmul.f32 %v389_v16, %v784_v61 }
 0x24b   :  { %483 = vst [vmem:[%s828_s6] sm:$0xff] %v510_v17  ;;  %v511_v21 = vpack.c.bf16 %v531_v18, %v530_v14 }
 0x24c   :  { %v409_v22 = vmul.f32 9.180707, %v399_v20 }
 0x24d   :  { %484 = vst [vmem:[%s828_s6 + $0x8] sm:$0xff] %v511_v21 }
 0x24e   :  { %v580_v15 = vpop.eup %579  ;;  %v429_v26 = vmax.f32 %v409_v22, -8.0 }
 0x24f   :  { %v380_v25 = vadd.f32 1.0, %v580_v15 }
 0x250   :  { %v439_v29 = vmin.f32 %v429_v26, 7.0 }
 0x251   :  { %v390_v27 = vmul.f32 0.5, %v380_v25 }
 0x252   :  { %v536_v61 = vround.rtne.f32 %v439_v29 }
 0x253   :  { %v400_v28 = vmul.f32 %v390_v27, %v787_v0 }
 0x255   :  { %v410_v24 = vmul.f32 9.180707, %v400_v28 }
 0x257   :  { %v430_v31 = vmax.f32 %v410_v24, -8.0 }
 0x259   :  { %v440_v32 = vmin.f32 %v430_v31, 7.0 }
 0x25b   :  { %v537_v33 = vround.rtne.f32 %v440_v32 }
 0x25d   :  { %v514_v30 = vpack.c.bf16 %v537_v33, %v536_v61 }
 0x25f   :  { %487 = vst [vmem:[%s828_s6 + $0x20] sm:$0x33] %v514_v30 }

// kernel: _lambda_.18
= control target key start
LH: loop header
LB: loop body
LE: loop exit
PB: predicated region body
PF: predicated region fallthrough
CT: control target
= control target key end

     0   :  { %vm271_vm0 = vcmask 523264   ;;  %vm276_vm1 = vcmask 519168   ;;  %s513_s1 = inlined_call_operand.vmem [shape: bf16[256,64], index: 1, kind: input, shape index: {}]   ;;  %s514_s0 = inlined_call_operand.vmem [shape: bf16[36,256], index: 0, kind: input, shape index: {}]   ;;  %s515_s2 = inlined_call_operand.vmem [shape: f32[1,64], index: 2, kind: input, shape index: {}]   ;;  %s516_s3 = inlined_call_operand.vmem [shape: f32[1,64], index: 3, kind: input, shape index: {}]   ;;  %s517_s4 = inlined_call_operand.vmem [shape: f32[36,64], index: 4, kind: input, shape index: {}]   ;;  %s518_s5 = inlined_call_operand.vmem [shape: f32[36,64], index: 5, kind: output, shape index: {}]  }
   0x1   :  { %v356_v0 = vld [vmem:[%s513_s1 + $0x40] sm:$0xff]   ;;  %v358_v2 = vld [vmem:[%s513_s1 + $0x48] sm:$0xff]   ;;  %v360_v4 = vld [vmem:[%s513_s1 + $0x50] sm:$0xff]  }
   0x2   :  { %v357_v1 = vld [vmem:[%s513_s1] sm:$0xff]   ;;  %340 = vmatprep.subr.bf16.mxu1 %v356_v0  ;;  %306 = vmatprep.subr.bf16.mxu0 %v356_v0  ;;  %v359_v3 = vld [vmem:[%s513_s1 + $0x8] sm:$0xff]   ;;  %v361_v5 = vld [vmem:[%s513_s1 + $0x10] sm:$0xff]  }
   0x3   :  { %348 = vmatpush3.bf16.msra.mxu1 %v357_v1  ;;  %307 = vmatpush3.bf16.msra.mxu0 %v357_v1  ;;  %v362_v6 = vld [vmem:[%s513_s1 + $0x58] sm:$0xff]   ;;  %v364_v8 = vld [vmem:[%s513_s1 + $0x60] sm:$0xff]   ;;  %v366_v10 = vld [vmem:[%s513_s1 + $0x68] sm:$0xff]  }
   0x4   :  { %341 = vmatprep.subr.bf16.mxu1 %v358_v2  ;;  %308 = vmatprep.subr.bf16.mxu0 %v358_v2  ;;  %v363_v7 = vld [vmem:[%s513_s1 + $0x18] sm:$0xff]   ;;  %v365_v9 = vld [vmem:[%s513_s1 + $0x20] sm:$0xff]   ;;  %v367_v13 = vld [vmem:[%s513_s1 + $0x28] sm:$0xff]  }
   0x5   :  { %v374_v11 = vld [vmem:[%s514_s0 + $0x14] ss:$8 sps:$4 sm:$0xff]   ;;  %v377_v12 = vld [vmem:[%s514_s0 + $0x4] ss:$8 sps:$4 sm:$0xff]   ;;  %v372_v19 = vld [vmem:[%s514_s0 + $0x10] ss:$8 sps:$4 sm:$0xff]  }
   0x6   :  { %v368_v14 = vld [vmem:[%s513_s1 + $0x70] sm:$0xff]   ;;  %221 = vmatprep.mubr.bf16.mxu1 %v374_v11  ;;  %213 = vmatprep.mubr.bf16.mxu0 %v377_v12  ;;  %v370_v16 = vld [vmem:[%s513_s1 + $0x78] sm:$0xff]   ;;  %v25_v18 = vld [vmem:[%s514_s0 + $0x20] sm:$0x33] }
   0x7   :  { %349 = vmatpush3.bf16.msra.mxu1 %v359_v3  ;;  %309 = vmatpush3.bf16.msra.mxu0 %v359_v3  ;;  %v369_v15 = vld [vmem:[%s513_s1 + $0x30] sm:$0xff]   ;;  %v371_v17 = vld [vmem:[%s513_s1 + $0x38] sm:$0xff]   ;;  %v375_v20 = vld [vmem:[%s514_s0] ss:$8 sps:$4 sm:$0xff]   ;;  %v287_v21 = vcombine.high %v25_v18, %v25_v18  ;;  %v286_v22 = vcombine.low %v25_v18, %v25_v18 }
   0x8   :  { %342 = vmatprep.subr.bf16.mxu1 %v360_v4  ;;  %310 = vmatprep.subr.bf16.mxu0 %v360_v4  ;;  %v304_v26 = vld [vmem:[%s515_s2] ss:$0 sm:$0xff]  ;;  %v263_v39 = vld [vmem:[%s517_s4 + $0x10] sm:$0xff]  ;;  %v264_v45 = vld [vmem:[%s517_s4 + $0x18] sm:$0xff] }
   0x9   :  { %v305_v32 = vld [vmem:[%s516_s3] ss:$0 sm:$0xff]  ;;  %v262_v46 = vld [vmem:[%s517_s4 + $0x8] sm:$0xff] }
   0xa   :  { %v261_v40 = vld [vmem:[%s517_s4] sm:$0xff] }
   0xb   :  { %350 = vmatpush3.bf16.msra.mxu1 %v361_v5  ;;  %311 = vmatpush3.bf16.msra.mxu0 %v361_v5  ;;  %v265_v59 = vld [vmem:[%s517_s4 + $0x20] sm:$0xf] }
   0xc   :  { %343 = vmatprep.subr.bf16.mxu1 %v362_v6  ;;  %312 = vmatprep.subr.bf16.mxu0 %v362_v6 }
   0xf   :  { %351 = vmatpush3.bf16.msra.mxu1 %v363_v7  ;;  %313 = vmatpush3.bf16.msra.mxu0 %v363_v7 }
  0x10   :  { %344 = vmatprep.subr.bf16.mxu1 %v364_v8  ;;  %314 = vmatprep.subr.bf16.mxu0 %v364_v8 }
  0x13   :  { %352 = vmatpush3.bf16.msra.mxu1 %v365_v9  ;;  %315 = vmatpush3.bf16.msra.mxu0 %v365_v9 }
  0x14   :  { %345 = vmatprep.subr.bf16.mxu1 %v366_v10  ;;  %316 = vmatprep.subr.bf16.mxu0 %v366_v10 }
  0x17   :  { %353 = vmatpush3.bf16.msra.mxu1 %v367_v13  ;;  %317 = vmatpush3.bf16.msra.mxu0 %v367_v13 }
  0x18   :  { %346 = vmatprep.subr.bf16.mxu1 %v368_v14  ;;  %318 = vmatprep.subr.bf16.mxu0 %v368_v14 }
  0x1b   :  { %354 = vmatpush3.bf16.msra.mxu1 %v369_v15  ;;  %319 = vmatpush3.bf16.msra.mxu0 %v369_v15 }
  0x1c   :  { %347 = vmatprep.subr.bf16.mxu1 %v370_v16  ;;  %320 = vmatprep.subr.bf16.mxu0 %v370_v16 }
  0x1f   :  { %355 = vmatpush3.bf16.msra.mxu1 %v371_v17  ;;  %321 = vmatpush3.bf16.msra.mxu0 %v371_v17 }
  0x22   :  { %222 = vmatmul.mubr.bf16.vlgmr.msra.gmra.mrb[0].mxu1 %v372_v19  ;;  %214 = vmatmul.mubr.bf16.vlgmr.msra.gmra.mrb[0].mxu0 %v375_v20 }
  0x23   :  { %229 = vmatprep.mubr.bf16.mxu1 %v287_v21 }
  0x2a   :  { %230 = vmatmul.mubr.bf16.gmra.mrb[4].mxu1 %v286_v22 }
  0xf5   :  { %v328_v23 = vpop.f32.mrb[0].mxu1  ;;  %v322_v24 = vpop.f32.mrb[0].mxu0 }
  0xf6   :  { %v329_v25 = vpop.f32.mrb[1].mxu1  ;;  %v323_v27 = vpop.f32.mrb[1].mxu0 }
  0xf7   :  { %v330_v28 = vadd.f32 %v329_v25, %v328_v23  ;;  %v331_v29 = vpop.f32.mrb[2].mxu1  ;;  %v324_v30 = vadd.f32 %v323_v27, %v322_v24  ;;  %v325_v31 = vpop.f32.mrb[2].mxu0 }
  0xf8   :  { %v332_v33 = vpop.f32.mrb[3].mxu1  ;;  %v326_v34 = vpop.f32.mrb[3].mxu0 }
  0xf9   :  { %v246_v35 = vmul.f32 %v330_v28, %v304_v26  ;;  %v333_v36 = vadd.f32 %v332_v33, %v331_v29  ;;  %v244_v37 = vmul.f32 %v324_v30, %v304_v26  ;;  %v327_v38 = vadd.f32 %v326_v34, %v325_v31 }
  0xfb   :  { %v258_v41 = vadd.f32 %v305_v32, %v246_v35  ;;  %v247_v42 = vmul.f32 %v333_v36, %v304_v26  ;;  %v256_v43 = vadd.f32 %v305_v32, %v244_v37  ;;  %v245_v44 = vmul.f32 %v327_v38, %v304_v26 }
  0xfd   :  { %v268_v47 = vadd.f32 %v263_v39, %v258_v41  ;;  %v259_v48 = vadd.f32 %v305_v32, %v247_v42  ;;  %v266_v49 = vadd.f32 %v261_v40, %v256_v43  ;;  %v257_v50 = vadd.f32 %v305_v32, %v245_v44  ;;  %v334_v51 = vpop.f32.mrb[4].mxu1 }
  0xfe   :  { %v335_v52 = vpop.f32.mrb[5].mxu1 }
  0xff   :  { %274 = vst.msk [vmem:[%s518_s5 + $0x10] sm:$0xff] %vm271_vm0, %v268_v47  ;;  %v269_v53 = vadd.f32 %v264_v45, %v259_v48  ;;  %272 = vst.msk [vmem:[%s518_s5] sm:$0xff] %vm271_vm0, %v266_v49  ;;  %v267_v54 = vadd.f32 %v262_v46, %v257_v50  ;;  %v336_v55 = vadd.f32 %v335_v52, %v334_v51  ;;  %v337_v56 = vpop.f32.mrb[6].mxu1 }
 0x100   :  { %v338_v57 = vpop.f32.mrb[7].mxu1 }
 0x101   :  { %275 = vst.msk [vmem:[%s518_s5 + $0x18] sm:$0xff] %vm271_vm0, %v269_v53  ;;  %273 = vst.msk [vmem:[%s518_s5 + $0x8] sm:$0xff] %vm271_vm0, %v267_v54  ;;  %v248_v58 = vmul.f32 %v336_v55, %v304_v26 }
 0x103   :  { %v260_v60 = vadd.f32 %v305_v32, %v248_v58 }
 0x105   :  { %v270_v61 = vadd.f32 %v265_v59, %v260_v60 }
 0x107   :  { %277 = vst.msk [vmem:[%s518_s5 + $0x20] sm:$0xf] %vm276_vm1, %v270_v61 }

// kernel: _lambda_.15
= control target key start
LH: loop header
LB: loop body
LE: loop exit
PB: predicated region body
PF: predicated region fallthrough
CT: control target
= control target key end

     0   :  { %s2576_s24 = smov 0   ;;  %s2578_s25 = smov 0   ;;  %s3107_s0 = inlined_call_operand.vmem [shape: bf16[2,18,64], index: 0, kind: input, shape index: {}]   ;;  %s3108_s1 = inlined_call_operand.vmem [shape: bf16[2,18,64], index: 1, kind: input, shape index: {}]   ;;  %s3109_s2 = inlined_call_operand.vmem [shape: bf16[2,18,64], index: 2, kind: input, shape index: {}]   ;;  %s3110_s3 = inlined_call_operand.vmem [shape: f32[1,16], index: 3, kind: input, shape index: {}, may-alias: {3,5}]   ;;  %s3111_s4 = inlined_call_operand.vmem [shape: f32[1,16], index: 4, kind: input, shape index: {}, may-alias: {4,6}]   ;;  %s3112_s5 = inlined_call_operand.vmem [shape: f32[1,16], index: 5, kind: input, shape index: {}, may-alias: {3,5}]   ;;  %s3113_s6 = inlined_call_operand.vmem [shape: f32[1,16], index: 6, kind: input, shape index: {}, may-alias: {4,6}]   ;;  %s3114_s7 = inlined_call_operand.vmem [shape: bf16[2,18,64], index: 7, kind: output, shape index: {}]  }
   0x1   :  { %s2580_s26 = smov 0  }
   0x2 LB: > { %s29_s27 = sadd.s32 1, %s2524_s25  ;;  %p2114_p0 = scmp.ge.s32.totalorder %s2528_s26, 1  ;;  %s2528_s26 = sphi %s2580_s26, %s17_s26   ;;  %s2524_s25 = sphi %s2578_s25, %s3116_s25   ;;  %s2520_s24 = sphi %s2576_s24, %s3115_s24  }
   0x3   : > { %p31_p1 = scmp.ge.s32.totalorder %s29_s27, 2  ;;  %p286_p2 = scmp.lt.s32.totalorder %s2528_s26, 3 }
   0x5   : > { %s3118_s27 = smov (%p31_p1, %s29_s27), 0  ;;  %p287_p3 = pnand %p2114_p0, %p286_p2 }
   0x6   : > { %p340_p4 = scmp.lt.s32.totalorder (!%p287_p3), %s2520_s24, 1  ;;  %vm395_vm0 = vcmask (!%p287_p3), 130048   ;;  %vm402_vm1 = vcmask (!%p287_p3), 123904   ;;  %s2530_s12 = smov (!%p287_p3), 112   ;;  %vm627_vm2 = vcmask (!%p287_p3), 146432   ;;  %vm634_vm3 = vcmask (!%p287_p3), 140288  }
   0x7   : > { %290 = sbr.rel (%p287_p3) target bundleno = 2954 (0xb8a), region = 48  ;;  %s2531_s21 = smov (!%p287_p3), 16   ;;  %vm690_vm4 = vcmask (!%p287_p3), 1040384   ;;  %vm1969_vm5 = vcmask (!%p287_p3), 392192   ;;  %vm1965_vm6 = vcmask (!%p287_p3), 261120   ;;  %vm1989_vm7 = vcmask (!%p287_p3), 516096  }
   0x8   : > { %s2532_s29 = smov (!%p287_p3), 96   ;;  %s2533_s30 = smov (!%p287_p3), 32   ;;  %vm1986_vm8 = vcmask (!%p287_p3), 519168  }
   0xe   : > { %s3120_s24 = smov (!%p340_p4, %s2520_s24), 1 }
   0xf   : > { %s2594_s28 = smul.u32 12, %s3120_s24 }
  0x11   : > { %s355_s8 = scalar_lea.vmem %s3108_s1, %s2594_s28  ;;  %s347_s11 = scalar_lea.vmem %s3107_s0, %s2594_s28 }
  0x12   : > { %v2152_v0 = vld [vmem:[%s355_s8] sm:$0xff]   ;;  %v385_v1 = vld [vmem:[%s355_s8 + $0x8] sm:$0x1]  ;;  %s363_s24 = scalar_lea.vmem %s3109_s2, %s2594_s28  ;;  %s2534_s8 = smov 80  }
  0x13   : > { %v2148_v2 = vld [vmem:[%s347_s11] sm:$0xff]   ;;  %v2604_v3 = vunpack.c.l.bf16 %v2152_v0  ;;  %v2606_v4 = vunpack.c.l.bf16 %v385_v1  ;;  %v2608_v5 = vunpack.c.h.bf16 %v2152_v0  ;;  %v379_v7 = vld [vmem:[%s347_s11 + $0x8] sm:$0x1]  ;;  %s2535_s11 = smov 48   ;;  %s371_s20 = scalar_lea.vmem %s3114_s7, %s2594_s28 }
  0x14   : > { %v2610_v6 = vunpack.c.l.bf16 %v2148_v2  ;;  %v2618_v11 = vunpack.c.h.bf16 %v2148_v2  ;;  %v2622_v13 = vunpack.c.l.bf16 %v379_v7 }
  0x15   : > { %v470_v8 = vsel %vm395_vm0, %v2604_v3, 0.0  ;;  %v476_v9 = vsel %vm402_vm1, %v2606_v4, 0.0  ;;  %v473_v10 = vsel %vm395_vm0, %v2608_v5, 0.0  ;;  %v2666_v46 = vpack.i.bf16 %v2608_v5, %v2604_v3 }
  0x16   : > { %471 = vadd.xlane.f32.xlu0 %v470_v8  ;;  %477 = vadd.xlane.f32.xlu1 %v476_v9  ;;  %v396_v12 = vsel %vm395_vm0, %v2610_v6, 0.0  ;;  %v399_v14 = vsel %vm395_vm0, %v2618_v11, 0.0  ;;  %v403_v15 = vsel %vm402_vm1, %v2622_v13, 0.0  ;;  %v2672_v47 = vpack.i.bf16 %v2618_v11, %v2610_v6 }
  0x1a   : > { %474 = vadd.xlane.f32.xlu0 %v473_v10  ;;  %397 = vadd.xlane.f32.xlu1 %v396_v12 }
  0x1e   : > { %400 = vadd.xlane.f32.xlu0 %v399_v14  ;;  %404 = vadd.xlane.f32.xlu1 %v403_v15  ;;  %v2685_v14 = vld [vmem:[%s3112_s5] ss:$0 sm:$0xff] }
  0xa3   : > { %v472_v16 = vpop.xlane.xlu0 %471  ;;  %v478_v17 = vpop.xlane.xlu1 %477 }
  0xa4   : > { %v479_v18 = vmul.f32 0.0625, %v472_v16  ;;  %v481_v19 = vmul.f32 0.0625, %v478_v17 }
  0xa6   : > { %v2629_v20 = vsub.f32 %v2604_v3, %v479_v18  ;;  %v2632_v21 = vsub.f32 %v2606_v4, %v481_v19  ;;  %v2692_v18 = vld [vmem:[%s3113_s6] ss:$0 sm:$0xff] }
  0xa7   : > { %v475_v22 = vpop.xlane.xlu0 %474  ;;  %v398_v23 = vpop.xlane.xlu1 %397 }
  0xa8   : > { %v480_v24 = vmul.f32 0.0625, %v475_v22  ;;  %v485_v25 = vmul.f32 %v2629_v20, %v2629_v20  ;;  %v407_v26 = vmul.f32 0.0625, %v398_v23  ;;  %v487_v27 = vmul.f32 %v2632_v21, %v2632_v21 }
  0xaa   : > { %v2639_v28 = vsub.f32 %v2608_v5, %v480_v24  ;;  %v488_v29 = vsel %vm395_vm0, %v485_v25, 0.0  ;;  %v2643_v30 = vsub.f32 %v2610_v6, %v407_v26  ;;  %v494_v32 = vsel %vm402_vm1, %v487_v27, 0.0 }
  0xab   : > { %489 = vadd.xlane.f32.xlu0 %v488_v29  ;;  %v401_v31 = vpop.xlane.xlu0 %400  ;;  %v405_v33 = vpop.xlane.xlu1 %404 }
  0xac   : > { %v408_v34 = vmul.f32 0.0625, %v401_v31  ;;  %v486_v35 = vmul.f32 %v2639_v28, %v2639_v28  ;;  %v409_v36 = vmul.f32 0.0625, %v405_v33  ;;  %v413_v37 = vmul.f32 %v2643_v30, %v2643_v30 }
  0xae   : > { %v2651_v38 = vsub.f32 %v2618_v11, %v408_v34  ;;  %v491_v39 = vsel %vm395_vm0, %v486_v35, 0.0  ;;  %v2655_v40 = vsub.f32 %v2622_v13, %v409_v36  ;;  %v416_v42 = vsel %vm395_vm0, %v413_v37, 0.0 }
  0xaf   : > { %495 = vadd.xlane.f32.xlu0 %v494_v32  ;;  %492 = vadd.xlane.f32.xlu1 %v491_v39 }
  0xb0   : > { %v414_v41 = vmul.f32 %v2651_v38, %v2651_v38  ;;  %v415_v43 = vmul.f32 %v2655_v40, %v2655_v40 }
  0xb2   : > { %v419_v44 = vsel %vm395_vm0, %v414_v41, 0.0  ;;  %v422_v45 = vsel %vm402_vm1, %v415_v43, 0.0 }
  0xb3   : > { %420 = vadd.xlane.f32.xlu0 %v419_v44  ;;  %417 = vadd.xlane.f32.xlu1 %v416_v42 }
  0xb7   : > { %423 = vadd.xlane.f32.xlu1 %v422_v45  ;;  %v2714_v45 = vld [vmem:[%s3111_s4] ss:$0 sm:$0xff] }
  0xc8   : > { %857 = vrot.lane.b32.xlu1 %v2606_v4, %s2530_s12 }
  0xc9   : > { %2362 = vrot.lane.b32.xlu0 %v2666_v46, %s2530_s12 }
  0xcc   : > { %2367 = vrot.lane.b32.xlu1 %v2672_v47, %s2530_s12 }
  0xd0   : > { %767 = vrot.lane.b32.xlu1 %v2622_v13, %s2530_s12 }
 0x138   : > { %v490_v48 = vpop.xlane.xlu0 %489 }
 0x139   : > { %v497_v49 = vmul.f32 0.0625, %v490_v48 }
 0x13b   : > { %v500_v50 = vadd.f32 1e-05, %v497_v49 }
 0x13c   : > { %v496_v51 = vpop.xlane.xlu0 %495  ;;  %v493_v52 = vpop.xlane.xlu1 %492 }
 0x13d   : > { %2406 = vrsqrt.f32 %v500_v50  ;;  %v499_v53 = vmul.f32 0.0625, %v496_v51  ;;  %v498_v54 = vmul.f32 0.0625, %v493_v52 }
 0x13f   : > { %v502_v55 = vadd.f32 1e-05, %v499_v53  ;;  %v501_v56 = vadd.f32 1e-05, %v498_v54 }
 0x140   : > { %v421_v57 = vpop.xlane.xlu0 %420  ;;  %v418_v58 = vpop.xlane.xlu1 %417 }
 0x141   : > { %2408 = vrsqrt.f32 %v502_v55  ;;  %v426_v59 = vmul.f32 0.0625, %v421_v57  ;;  %v425_v60 = vmul.f32 0.0625, %v418_v58 }
 0x142   : > { %2410 = vrsqrt.f32 %v501_v56 }
 0x143   : > { %v429_v61 = vadd.f32 1e-05, %v426_v59  ;;  %v428_v62 = vadd.f32 1e-05, %v425_v60 }
 0x144   : > { %v2363_v63 = vpop.permute.xlu0 %2362  ;;  %v424_v0 = vpop.xlane.xlu1 %423 }
 0x145   : > { %2412 = vrsqrt.f32 %v429_v61  ;;  %v427_v1 = vmul.f32 0.0625, %v424_v0  ;;  %v2364_v2 = vunpack.i.l.bf16 %v2363_v63  ;;  %v2365_v7 = vunpack.i.h.bf16 %v2363_v63 }
 0x146   : > { %2414 = vrsqrt.f32 %v428_v62 }
 0x147   : > { %v2407_v8 = vpop.eup %2406  ;;  %v430_v9 = vadd.f32 1e-05, %v427_v1  ;;  %v862_v10 = vsel %vm395_vm0, %v2364_v2, 0.0  ;;  %v865_v12 = vsel %vm395_vm0, %v2365_v7, 0.0 }
 0x148   : > { %863 = vadd.xlane.f32.xlu0 %v862_v10  ;;  %866 = vadd.xlane.f32.xlu1 %v865_v12  ;;  %v858_v15 = vpop.permute.xlu1 %857  ;;  %v506_v16 = vmul.f32 %v2407_v8, %v2629_v20 }
 0x149   : > { %2416 = vrsqrt.f32 %v430_v9  ;;  %v868_v17 = vsel %vm402_vm1, %v858_v15, 0.0 }
 0x14a   : > { %v515_v19 = vmul.f32 %v2685_v14, %v506_v16 }
 0x14b   : > { %v2409_v22 = vpop.eup %2408 }
 0x14c   : > { %v2411_v23 = vpop.eup %2410  ;;  %v508_v24 = vmul.f32 %v2409_v22, %v2632_v21  ;;  %869 = vadd.xlane.f32.xlu0 %v868_v17  ;;  %v2368_v25 = vpop.permute.xlu1 %2367  ;;  %v524_v26 = vadd.f32 %v2692_v18, %v515_v19  ;;  %v2704_v21 = vld [vmem:[%s3110_s3] ss:$0 sm:$0xff] }
 0x14d   : > { %v2369_v27 = vunpack.i.l.bf16 %v2368_v25  ;;  %v2370_v20 = vunpack.i.h.bf16 %v2368_v25  ;;  %v507_v29 = vmul.f32 %v2411_v23, %v2639_v28 }
 0x14e   : > { %v527_v31 = vmul.f32 8.980188, %v524_v26  ;;  %v517_v32 = vmul.f32 %v2685_v14, %v508_v24 }
 0x14f   : > { %v2413_v33 = vpop.eup %2412  ;;  %v772_v34 = vsel %vm395_vm0, %v2369_v27, 0.0  ;;  %v516_v35 = vmul.f32 %v2685_v14, %v507_v29  ;;  %v775_v39 = vsel %vm395_vm0, %v2370_v20, 0.0 }
 0x150   : > { %v2415_v36 = vpop.eup %2414  ;;  %773 = vadd.xlane.f32.xlu0 %v772_v34  ;;  %v768_v37 = vpop.permute.xlu1 %767  ;;  %v526_v28 = vadd.f32 %v2692_v18, %v517_v32  ;;  %v435_v41 = vmul.f32 %v2413_v33, %v2651_v38  ;;  %v533_v44 = vmax.f32 %v527_v31, -8.0 }
 0x151   : > { %v778_v42 = vsel %vm402_vm1, %v768_v37, 0.0  ;;  %v525_v43 = vadd.f32 %v2692_v18, %v516_v35  ;;  %v434_v48 = vmul.f32 %v2415_v36, %v2643_v30 }
 0x152   : > { %779 = vadd.xlane.f32.xlu1 %v778_v42  ;;  %v529_v49 = vmul.f32 8.980188, %v526_v28  ;;  %v444_v50 = vmul.f32 %v2704_v21, %v435_v41  ;;  %v536_v57 = vmin.f32 %v533_v44, 7.0 }
 0x153   : > { %v2417_v51 = vpop.eup %2416  ;;  %v528_v52 = vmul.f32 8.980188, %v525_v43  ;;  %v443_v38 = vmul.f32 %v2704_v21, %v434_v48 }
 0x154   : > { %v436_v53 = vmul.f32 %v2417_v51, %v2655_v40  ;;  %776 = vadd.xlane.f32.xlu0 %v775_v39  ;;  %v535_v54 = vmax.f32 %v529_v49, -8.0  ;;  %v453_v55 = vadd.f32 %v2714_v45, %v444_v50  ;;  %v2271_v1 = vround.rtne.f32 %v536_v57 }
 0x155   : > { %v534_v56 = vmax.f32 %v528_v52, -8.0  ;;  %v452_v58 = vadd.f32 %v2714_v45, %v443_v38 }
 0x156   : > { %v538_v59 = vmin.f32 %v535_v54, 7.0  ;;  %v456_v30 = vmul.f32 9.154124, %v453_v55  ;;  %v445_v60 = vmul.f32 %v2704_v21, %v436_v53 }
 0x157   : > { %v537_v61 = vmin.f32 %v534_v56, 7.0  ;;  %v455_v62 = vmul.f32 9.154124, %v452_v58 }
 0x158   : > { %v462_v63 = vmax.f32 %v456_v30, -8.0  ;;  %v454_v0 = vadd.f32 %v2714_v45, %v445_v60  ;;  %v2273_v40 = vround.rtne.f32 %v538_v59 }
 0x159   : > { %v2272_v2 = vround.rtne.f32 %v537_v61  ;;  %v461_v7 = vmax.f32 %v455_v62, -8.0 }
 0x15a   : > { %v465_v8 = vmin.f32 %v462_v63, 7.0  ;;  %v457_v12 = vmul.f32 9.154124, %v454_v0  ;;  %v563_v17 = vpack.c.bf16 %v2273_v40, %v2273_v40 }
 0x15b   : > { %v562_v9 = vpack.c.bf16 %v2272_v2, %v2271_v1  ;;  %v464_v10 = vmin.f32 %v461_v7, 7.0 }
 0x15c   : > { %v2269_v15 = vround.rtne.f32 %v465_v8  ;;  %v463_v23 = vmax.f32 %v457_v12, -8.0  ;;  %v574_v25 = vsel %vm395_vm0, %v563_v17, 0 }
 0x15d   : > { %2255 = vmatprep.subr.msk.bf16.mxu0 %vm395_vm0, %v562_v9  ;;  %v571_v16 = vsel %vm395_vm0, %v562_v9, 0  ;;  %v2268_v19 = vround.rtne.f32 %v464_v10 }
 0x15e   : > { %2192 = vmatpush3.bf16.xpose.msra.mxu0 %v571_v16  ;;  %v466_v24 = vmin.f32 %v463_v23, 7.0 }
 0x15f   : > { %2256 = vmatprep.subr.msk.bf16.mxu0 %vm395_vm0, %v563_v17  ;;  %v560_v22 = vpack.c.bf16 %v2269_v15, %v2268_v19 }
 0x160   : > { %v2270_v26 = vround.rtne.f32 %v466_v24 }
 0x161   : > { %2195 = vmatprep.mubr.msk.bf16.mxu0 %vm395_vm0, %v560_v22 }
 0x162   : > { %v561_v27 = vpack.c.bf16 %v2270_v26, %v2270_v26 }
 0x166   : > { %2194 = vmatpush3.bf16.xpose.msra.mxu0 %v574_v25 }
 0x16d   : > { %2196 = vmatmul.mubr.msk.bf16.vlgmr.msra.gmra.mrb[0].mxu0 %vm395_vm0, %v561_v27 }
 0x1d5   : > { %v864_v20 = vpop.xlane.xlu0 %863  ;;  %v867_v29 = vpop.xlane.xlu1 %866 }
 0x1d6   : > { %v871_v31 = vmul.f32 0.0625, %v864_v20  ;;  %v872_v32 = vmul.f32 0.0625, %v867_v29 }
 0x1d8   : > { %v2731_v33 = vsub.f32 %v2604_v3, %v871_v31  ;;  %v2734_v34 = vsub.f32 %v2608_v5, %v872_v32 }
 0x1d9   : > { %v870_v35 = vpop.xlane.xlu0 %869 }
 0x1da   : > { %v873_v36 = vmul.f32 0.0625, %v870_v35  ;;  %v878_v37 = vmul.f32 %v2734_v34, %v2734_v34  ;;  %v877_v39 = vmul.f32 %v2731_v33, %v2731_v33 }
 0x1dc   : > { %v2741_v28 = vsub.f32 %v2606_v4, %v873_v36  ;;  %885 = vrot.lane.b32.xlu1 %v878_v37, %s2530_s12  ;;  %883 = vrot.lane.b32.xlu0 %v877_v39, %s2530_s12 }
 0x1dd   : > { %v774_v41 = vpop.xlane.xlu0 %773 }
 0x1de   : > { %v781_v42 = vmul.f32 0.0625, %v774_v41  ;;  %v879_v43 = vmul.f32 %v2741_v28, %v2741_v28 }
 0x1df   : > { %v780_v44 = vpop.xlane.xlu1 %779 }
 0x1e0   : > { %v2748_v48 = vsub.f32 %v2610_v6, %v781_v42  ;;  %887 = vrot.lane.b32.xlu1 %v879_v43, %s2530_s12  ;;  %v783_v49 = vmul.f32 0.0625, %v780_v44 }
 0x1e1   : > { %v777_v50 = vpop.xlane.xlu0 %776 }
 0x1e2   : > { %v2752_v51 = vsub.f32 %v2622_v13, %v783_v49  ;;  %v782_v52 = vmul.f32 0.0625, %v777_v50  ;;  %v787_v38 = vmul.f32 %v2748_v48, %v2748_v48 }
 0x1e4   : > { %v2757_v53 = vsub.f32 %v2618_v11, %v782_v52  ;;  %793 = vrot.lane.b32.xlu1 %v787_v38, %s2530_s12  ;;  %v789_v54 = vmul.f32 %v2752_v51, %v2752_v51 }
 0x1e6   : > { %v788_v55 = vmul.f32 %v2757_v53, %v2757_v53 }
 0x1e8   : > { %797 = vrot.lane.b32.xlu1 %v789_v54, %s2530_s12  ;;  %795 = vrot.lane.b32.xlu0 %v788_v55, %s2530_s12 }
 0x240   : > { %v2197_v56 = vpop.f32.mrb[0].mxu0 }
 0x241   : > { %v610_v57 = vpop.f32.mrb[1].mxu0  ;;  %v626_v60 = vmul.f32 0.0030411496, %v2197_v56 }
 0x242   : > { %v624_v58 = vmul.f32 0.0030411496, %v610_v57  ;;  %v2198_v59 = vpop.f32.mrb[2].mxu0  ;;  %v2156_v57 = vld [vmem:[%s363_s24] sm:$0xff]  }
 0x243   : > { %v613_v30 = vpop.f32.mrb[3].mxu0  ;;  %v635_v0 = vsel %vm634_vm3, %v626_v60, -inf  ;;  %v2158_v59 = vunpack.c.h.bf16 %v2156_v57 }
 0x244   : > { %v625_v61 = vmul.f32 0.0030411496, %v613_v30  ;;  %v628_v62 = vsel %vm627_vm2, %v624_v58, -inf }
 0x245   : > { %629 = vmax.xlane.f32.xlu0 %v628_v62 }
 0x246   : > { %v631_v63 = vsel %vm627_vm2, %v625_v61, -inf }
 0x247   : > { %632 = vmax.xlane.f32.xlu1 %v631_v63 }
 0x249   : > { %636 = vmax.xlane.f32.xlu0 %v635_v0  ;;  %v543_v0 = vmul.f32 0.1101626, %v2158_v59 }
 0x24e   : > { %v886_v1 = vpop.permute.xlu1 %885  ;;  %v884_v2 = vpop.permute.xlu0 %883 }
 0x24f   : > { %v892_v40 = vsel %vm395_vm0, %v884_v2, 0.0  ;;  %v895_v7 = vsel %vm395_vm0, %v886_v1, 0.0 }
 0x250   : > { %893 = vadd.xlane.f32.xlu0 %v892_v40  ;;  %v391_v40 = vld [vmem:[%s363_s24 + $0x8] sm:$0x1] }
 0x252   : > { %v888_v8 = vpop.permute.xlu1 %887 }
 0x253   : > { %v898_v9 = vsel %vm402_vm1, %v888_v8, 0.0  ;;  %v546_v8 = vmul.f32 8.955723, %v543_v0 }
 0x254   : > { %899 = vadd.xlane.f32.xlu1 %v898_v9  ;;  %896 = vadd.xlane.f32.xlu0 %v895_v7  ;;  %v394_v9 = vunpack.c.l.bf16 %v391_v40 }
 0x256   : > { %v794_v10 = vpop.permute.xlu1 %793 }
 0x257   : > { %v802_v12 = vsel %vm395_vm0, %v794_v10, 0.0 }
 0x258   : > { %803 = vadd.xlane.f32.xlu0 %v802_v12 }
 0x25a   : > { %v798_v15 = vpop.permute.xlu1 %797  ;;  %v796_v16 = vpop.permute.xlu0 %795 }
 0x25b   : > { %v808_v17 = vsel %vm402_vm1, %v798_v15, 0.0  ;;  %v805_v19 = vsel %vm395_vm0, %v796_v16, 0.0 }
 0x25c   : > { %809 = vadd.xlane.f32.xlu0 %v808_v17  ;;  %806 = vadd.xlane.f32.xlu1 %v805_v19 }
 0x26d   : > { %913 = vrot.lane.b32.xlu1 %v2685_v14, %s2531_s21 }
 0x271   : > { %823 = vrot.lane.b32.xlu1 %v2704_v21, %s2531_s21 }
 0x272   : > { %919 = vrot.lane.b32.xlu0 %v2692_v18, %s2531_s21 }
 0x275   : > { %829 = vrot.lane.b32.xlu1 %v2714_v45, %s2531_s21 }
 0x2d2   : > { %v630_v22 = vpop.xlane.xlu0 %629 }
 0x2d3   : > { %v638_v23 = vsub.f32 %v624_v58, %v630_v22  ;;  %v2157_v58 = vunpack.c.l.bf16 %v2156_v57  ;;  %v552_v22 = vmax.f32 %v546_v8, -8.0 }
 0x2d4   : > { %v633_v24 = vpop.xlane.xlu1 %632 }
 0x2d5   : > { %v641_v25 = vmul.f32 1.442695, %v638_v23  ;;  %v639_v26 = vsub.f32 %v625_v61, %v633_v24  ;;  %v542_v63 = vmul.f32 0.1101626, %v2157_v58  ;;  %v544_v23 = vmul.f32 0.1101626, %v394_v9 }
 0x2d6   : > { %v637_v27 = vpop.xlane.xlu0 %636 }
 0x2d7   : > { %2418 = vpow2.f32 %v641_v25  ;;  %v643_v20 = vmul.f32 1.442695, %v639_v26  ;;  %v640_v29 = vsub.f32 %v626_v60, %v637_v27  ;;  %v545_v7 = vmul.f32 8.955723, %v542_v63 }
 0x2d8   : > { %v555_v27 = vmin.f32 %v552_v22, 7.0 }
 0x2d9   : > { %2420 = vpow2.f32 %v643_v20  ;;  %v645_v31 = vmul.f32 1.442695, %v640_v29  ;;  %v551_v19 = vmax.f32 %v545_v7, -8.0  ;;  %v547_v29 = vmul.f32 8.955723, %v544_v23 }
 0x2db   : > { %2422 = vpow2.f32 %v645_v31  ;;  %v554_v26 = vmin.f32 %v551_v19, 7.0 }
 0x2dd   : > { %v894_v32 = vpop.xlane.xlu0 %893 }
 0x2de   : > { %v901_v35 = vmul.f32 0.0625, %v894_v32 }
 0x2e0   : > { %v904_v36 = vadd.f32 1e-05, %v901_v35 }
 0x2e1   : > { %v2783_v37 = vpop.eup %2418  ;;  %v900_v39 = vpop.xlane.xlu1 %899 }
 0x2e2   : > { %v897_v41 = vpop.xlane.xlu0 %896  ;;  %2424 = vrsqrt.f32 %v904_v36  ;;  %v903_v42 = vmul.f32 0.0625, %v900_v39  ;;  %v647_v44 = vsel %vm627_vm2, %v2783_v37, 0.0  ;;  %v2274_v39 = vround.rtne.f32 %v554_v26 }
 0x2e3   : > { %v902_v43 = vmul.f32 0.0625, %v897_v41  ;;  %v2787_v49 = vpop.eup %2420  ;;  %648 = vadd.xlane.f32.xlu1 %v647_v44  ;;  %v2275_v41 = vround.rtne.f32 %v555_v27 }
 0x2e4   : > { %v906_v50 = vadd.f32 1e-05, %v903_v42  ;;  %v650_v38 = vsel %vm627_vm2, %v2787_v49, 0.0  ;;  %v553_v42 = vmax.f32 %v547_v29, -8.0 }
 0x2e5   : > { %v905_v52 = vadd.f32 1e-05, %v902_v43  ;;  %v2791_v54 = vpop.eup %2422  ;;  %651 = vadd.xlane.f32.xlu0 %v650_v38 }
 0x2e6   : > { %v804_v55 = vpop.xlane.xlu0 %803  ;;  %2426 = vrsqrt.f32 %v906_v50  ;;  %v653_v60 = vsel %vm634_vm3, %v2791_v54, 0.0  ;;  %v2802_v50 = vpack.c.bf16 %v2275_v41, %v2274_v39 }
 0x2e7   : > { %v811_v56 = vmul.f32 0.0625, %v804_v55  ;;  %2428 = vrsqrt.f32 %v905_v52  ;;  %v556_v55 = vmin.f32 %v553_v42, 7.0 }
 0x2e8   : > { %2199 = vmatprep.subr.bf16.mxu1 %v2802_v50 }
 0x2e9   : > { %v814_v30 = vadd.f32 1e-05, %v811_v56  ;;  %654 = vadd.xlane.f32.xlu0 %v653_v60  ;;  %v807_v61 = vpop.xlane.xlu1 %806  ;;  %2200 = vmatpush3.bf16.msra.mxu1 %v2802_v50 }
 0x2ea   : > { %v810_v62 = vpop.xlane.xlu0 %809  ;;  %v812_v1 = vmul.f32 0.0625, %v807_v61 }
 0x2eb   : > { %2430 = vrsqrt.f32 %v814_v30  ;;  %v813_v2 = vmul.f32 0.0625, %v810_v62  ;;  %v2276_v30 = vround.rtne.f32 %v556_v55 }
 0x2ec   : > { %v2425_v10 = vpop.eup %2424  ;;  %v815_v12 = vadd.f32 1e-05, %v812_v1 }
 0x2ed   : > { %v816_v15 = vadd.f32 1e-05, %v813_v2  ;;  %v914_v16 = vpop.permute.xlu1 %913  ;;  %v910_v17 = vmul.f32 %v2425_v10, %v2731_v33  ;;  %v2807_v63 = vpack.c.bf16 %v2276_v30, %v2276_v30 }
 0x2ee   : > { %2432 = vrsqrt.f32 %v815_v12  ;;  %v920_v24 = vpop.permute.xlu0 %919 }
 0x2ef   : > { %2434 = vrsqrt.f32 %v816_v15  ;;  %v916_v25 = vmul.f32 %v914_v16, %v910_v17  ;;  %2257 = vmatprep.subr.msk.bf16.mxu1 %vm690_vm4, %v2807_v63  ;;  %v692_v9 = vsel %vm690_vm4, %v2807_v63, 0 }
 0x2f0   : > { %v2427_v20 = vpop.eup %2426  ;;  %2202 = vmatpush3.bf16.msra.mxu1 %v692_v9 }
 0x2f1   : > { %v2429_v31 = vpop.eup %2428  ;;  %v912_v32 = vmul.f32 %v2427_v20, %v2741_v28  ;;  %v922_v35 = vadd.f32 %v920_v24, %v916_v25  ;;  %v824_v36 = vpop.permute.xlu1 %823 }
 0x2f2   : > { %v911_v33 = vmul.f32 %v2429_v31, %v2734_v34 }
 0x2f3   : > { %v918_v43 = vmul.f32 %v914_v16, %v912_v32  ;;  %v925_v44 = vmul.f32 8.980188, %v922_v35 }
 0x2f4   : > { %v917_v38 = vmul.f32 %v914_v16, %v911_v33 }
 0x2f5   : > { %v2431_v52 = vpop.eup %2430  ;;  %v924_v56 = vadd.f32 %v920_v24, %v918_v43  ;;  %v931_v58 = vmax.f32 %v925_v44, -8.0  ;;  %v830_v59 = vpop.permute.xlu1 %829 }
 0x2f6   : > { %v820_v57 = vmul.f32 %v2431_v52, %v2748_v48  ;;  %v923_v28 = vadd.f32 %v920_v24, %v917_v38 }
 0x2f7   : > { %v927_v34 = vmul.f32 8.980188, %v924_v56  ;;  %v934_v7 = vmin.f32 %v931_v58, 7.0 }
 0x2f8   : > { %v826_v60 = vmul.f32 %v824_v36, %v820_v57  ;;  %v2433_v61 = vpop.eup %2432  ;;  %v926_v62 = vmul.f32 8.980188, %v923_v28 }
 0x2f9   : > { %v2435_v0 = vpop.eup %2434  ;;  %v933_v1 = vmax.f32 %v927_v34, -8.0  ;;  %v821_v2 = vmul.f32 %v2433_v61, %v2757_v53  ;;  %v2289_v23 = vround.rtne.f32 %v934_v7 }
 0x2fa   : > { %v832_v48 = vadd.f32 %v830_v59, %v826_v60  ;;  %v932_v40 = vmax.f32 %v926_v62, -8.0  ;;  %v822_v8 = vmul.f32 %v2435_v0, %v2752_v51 }
 0x2fb   : > { %v827_v10 = vmul.f32 %v824_v36, %v821_v2  ;;  %v936_v15 = vmin.f32 %v933_v1, 7.0 }
 0x2fc   : > { %v835_v12 = vmul.f32 9.154124, %v832_v48  ;;  %v935_v16 = vmin.f32 %v932_v40, 7.0  ;;  %v828_v17 = vmul.f32 %v824_v36, %v822_v8 }
 0x2fd   : > { %v833_v19 = vadd.f32 %v830_v59, %v827_v10  ;;  %v2291_v53 = vround.rtne.f32 %v936_v15 }
 0x2fe   : > { %v841_v22 = vmax.f32 %v835_v12, -8.0  ;;  %v2290_v24 = vround.rtne.f32 %v935_v16  ;;  %v834_v25 = vadd.f32 %v830_v59, %v828_v17 }
 0x2ff   : > { %v836_v26 = vmul.f32 9.154124, %v833_v19  ;;  %v943_v51 = vpack.c.bf16 %v2291_v53, %v2291_v53 }
 0x300   : > { %v942_v27 = vpack.c.bf16 %v2290_v24, %v2289_v23  ;;  %v837_v20 = vmul.f32 9.154124, %v834_v25  ;;  %v844_v31 = vmin.f32 %v841_v22, 7.0 }
 0x301   : > { %v842_v29 = vmax.f32 %v836_v26, -8.0  ;;  %954 = vrot.lane.b32.xlu1 %v943_v51, %s2530_s12 }
 0x302   : > { %952 = vrot.lane.b32.xlu0 %v942_v27, %s2530_s12  ;;  %v843_v32 = vmax.f32 %v837_v20, -8.0  ;;  %v2286_v36 = vround.rtne.f32 %v844_v31 }
 0x303   : > { %v845_v35 = vmin.f32 %v842_v29, 7.0 }
 0x304   : > { %v846_v39 = vmin.f32 %v843_v32, 7.0 }
 0x305   : > { %v2287_v41 = vround.rtne.f32 %v845_v35 }
 0x306   : > { %2372 = vrot.lane.b32.xlu0 %v2666_v46, %s2532_s29  ;;  %v2288_v42 = vround.rtne.f32 %v846_v39 }
 0x307   : > { %v940_v33 = vpack.c.bf16 %v2287_v41, %v2286_v36 }
 0x308   : > { %v941_v43 = vpack.c.bf16 %v2288_v42, %v2288_v42 }
 0x309   : > { %946 = vrot.lane.b32.xlu1 %v940_v33, %s2530_s12 }
 0x30a   : > { %2377 = vrot.lane.b32.xlu0 %v2672_v47, %s2532_s29 }
 0x30d   : > { %948 = vrot.lane.b32.xlu1 %v941_v43, %s2530_s12 }
 0x311   : > { %1245 = vrot.lane.b32.xlu1 %v2606_v4, %s2532_s29 }
 0x315   : > { %1158 = vrot.lane.b32.xlu1 %v2622_v13, %s2532_s29 }
 0x370   : > { %v649_v44 = vpop.xlane.xlu1 %648 }
 0x371   : > { %2436 = vrcp.f32 %v649_v44 }
 0x372   : > { %v652_v52 = vpop.xlane.xlu0 %651 }
 0x373   : > { %2438 = vrcp.f32 %v652_v52 }
 0x374   : > { %v955_v55 = vpop.permute.xlu1 %954 }
 0x375   : > { %v966_v36 = vsel %vm395_vm0, %v955_v55, 0 }
 0x376   : > { %v655_v38 = vpop.xlane.xlu0 %654 }
 0x377   : > { %2440 = vrcp.f32 %v655_v38 }
 0x37a   : > { %v953_v56 = vpop.permute.xlu0 %952 }
 0x37b   : > { %v2437_v57 = vpop.eup %2436  ;;  %2258 = vmatprep.subr.msk.bf16.mxu1 %vm395_vm0, %v953_v56  ;;  %v947_v28 = vpop.permute.xlu1 %946  ;;  %v963_v39 = vsel %vm395_vm0, %v953_v56, 0 }
 0x37c   : > { %v659_v58 = vmul.f32 %v2437_v57, %v2783_v37 }
 0x37d   : > { %v2439_v59 = vpop.eup %2438 }
 0x37e   : > { %v2373_v30 = vpop.permute.xlu0 %2372  ;;  %v660_v34 = vmul.f32 %v2439_v59, %v2787_v49  ;;  %v662_v60 = vmul.f32 9.171138, %v659_v58 }
 0x37f   : > { %v2375_v61 = vunpack.i.h.bf16 %v2373_v30  ;;  %v2374_v62 = vunpack.i.l.bf16 %v2373_v30  ;;  %v949_v0 = vpop.permute.xlu1 %948 }
 0x380   : > { %v663_v1 = vmul.f32 9.171138, %v660_v34  ;;  %v668_v2 = vmax.f32 %v662_v60, -8.0 }
 0x381   : > { %v2441_v48 = vpop.eup %2440  ;;  %v1253_v40 = vsel %vm395_vm0, %v2375_v61, 0.0  ;;  %v1250_v7 = vsel %vm395_vm0, %v2374_v62, 0.0 }
 0x382   : > { %1254 = vadd.xlane.f32.xlu1 %v1253_v40  ;;  %1251 = vadd.xlane.f32.xlu0 %v1250_v7  ;;  %v2378_v8 = vpop.permute.xlu0 %2377  ;;  %v669_v9 = vmax.f32 %v663_v1, -8.0  ;;  %v671_v37 = vmin.f32 %v668_v2, 7.0  ;;  %v661_v10 = vmul.f32 %v2441_v48, %v2791_v54 }
 0x383   : > { %v1246_v12 = vpop.permute.xlu1 %1245  ;;  %v2379_v49 = vunpack.i.l.bf16 %v2378_v8  ;;  %v2380_v23 = vunpack.i.h.bf16 %v2378_v8 }
 0x384   : > { %v1256_v15 = vsel %vm402_vm1, %v1246_v12, 0.0  ;;  %v672_v16 = vmin.f32 %v669_v9, 7.0  ;;  %v2277_v17 = vround.rtne.f32 %v671_v37  ;;  %v664_v19 = vmul.f32 9.171138, %v661_v10 }
 0x385   : > { %v1163_v24 = vsel %vm395_vm0, %v2379_v49, 0.0  ;;  %v1166_v31 = vsel %vm395_vm0, %v2380_v23, 0.0 }
 0x386   : > { %1257 = vadd.xlane.f32.xlu0 %v1256_v15  ;;  %v2278_v22 = vround.rtne.f32 %v672_v16  ;;  %v670_v53 = vmax.f32 %v664_v19, -8.0  ;;  %v2280_v26 = vround.rtne.f32 %v2277_v17 }
 0x387   : > { %v1159_v25 = vpop.permute.xlu1 %1158 }
 0x388   : > { %v2281_v51 = vround.rtne.f32 %v2278_v22  ;;  %v1169_v27 = vsel %vm402_vm1, %v1159_v25, 0.0  ;;  %v673_v20 = vmin.f32 %v670_v53, 7.0 }
 0x389   : > { %1170 = vadd.xlane.f32.xlu1 %v1169_v27 }
 0x38a   : > { %1164 = vadd.xlane.f32.xlu0 %v1163_v24  ;;  %v680_v54 = vpack.c.bf16 %v2281_v51, %v2280_v26  ;;  %v2279_v29 = vround.rtne.f32 %v673_v20 }
 0x38c   : > { %2203 = vmatprep.mubr.msk.bf16.mxu1 %vm627_vm2, %v680_v54  ;;  %v2282_v32 = vround.rtne.f32 %v2279_v29 }
 0x38e   : > { %1167 = vadd.xlane.f32.xlu0 %v1166_v31  ;;  %v681_v35 = vpack.c.bf16 %v2282_v32, %v2282_v32 }
 0x390   : > { %2204 = vmatmul.mubr.msk.bf16.vlgmr.msra.gmra.mrb[0].mxu1 %vm627_vm2, %v681_v35 }
 0x391   : > { %2208 = vmatpush3.bf16.xpose.msra.mxu1 %v963_v39  ;;  %2211 = vmatprep.mubr.msk.bf16.mxu1 %vm395_vm0, %v947_v28 }
 0x392   : > { %2259 = vmatprep.subr.msk.bf16.mxu1 %vm395_vm0, %v955_v55 }
 0x399   : > { %2210 = vmatpush3.bf16.xpose.msra.mxu1 %v966_v36 }
 0x3a0   : > { %2212 = vmatmul.mubr.msk.bf16.vlgmr.msra.gmra.mrb[4].mxu1 %vm395_vm0, %v949_v0 }
 0x40f   : > { %v1255_v41 = vpop.xlane.xlu1 %1254  ;;  %v1252_v33 = vpop.xlane.xlu0 %1251 }
 0x410   : > { %v1260_v42 = vmul.f32 0.0625, %v1255_v41  ;;  %v1259_v43 = vmul.f32 0.0625, %v1252_v33 }
 0x412   : > { %v2845_v44 = vsub.f32 %v2608_v5, %v1260_v42  ;;  %v2848_v52 = vsub.f32 %v2604_v3, %v1259_v43 }
 0x413   : > { %v1258_v38 = vpop.xlane.xlu0 %1257 }
 0x414   : > { %v1261_v56 = vmul.f32 0.0625, %v1258_v38  ;;  %v1266_v57 = vmul.f32 %v2845_v44, %v2845_v44  ;;  %v1265_v55 = vmul.f32 %v2848_v52, %v2848_v52 }
 0x416   : > { %v2855_v28 = vsub.f32 %v2606_v4, %v1261_v56  ;;  %1273 = vrot.lane.b32.xlu1 %v1266_v57, %s2532_s29  ;;  %1271 = vrot.lane.b32.xlu0 %v1265_v55, %s2532_s29  ;;  %v1171_v58 = vpop.xlane.xlu1 %1170 }
 0x417   : > { %v1165_v59 = vpop.xlane.xlu0 %1164  ;;  %v1174_v30 = vmul.f32 0.0625, %v1171_v58 }
 0x418   : > { %v1172_v34 = vmul.f32 0.0625, %v1165_v59  ;;  %v1267_v60 = vmul.f32 %v2855_v28, %v2855_v28 }
 0x419   : > { %v2866_v62 = vsub.f32 %v2622_v13, %v1174_v30 }
 0x41a   : > { %v2862_v61 = vsub.f32 %v2610_v6, %v1172_v34  ;;  %1275 = vrot.lane.b32.xlu1 %v1267_v60, %s2532_s29 }
 0x41b   : > { %v1168_v0 = vpop.xlane.xlu0 %1167  ;;  %v1180_v40 = vmul.f32 %v2866_v62, %v2866_v62 }
 0x41c   : > { %v1173_v1 = vmul.f32 0.0625, %v1168_v0  ;;  %v1178_v2 = vmul.f32 %v2862_v61, %v2862_v61 }
 0x41e   : > { %v2871_v48 = vsub.f32 %v2618_v11, %v1173_v1  ;;  %1184 = vrot.lane.b32.xlu1 %v1178_v2, %s2532_s29 }
 0x420   : > { %v1179_v7 = vmul.f32 %v2871_v48, %v2871_v48 }
 0x422   : > { %1188 = vrot.lane.b32.xlu1 %v1180_v40, %s2532_s29  ;;  %1186 = vrot.lane.b32.xlu0 %v1179_v7, %s2532_s29 }
 0x463   : > { %v2880_v8 = vpop.f32.mrb[0].mxu1 }
 0x464   : > { %v2882_v9 = vpop.f32.mrb[1].mxu1 }
 0x465   : > { %v2206_v37 = vpop.f32.mrb[2].mxu1 }
 0x466   : > { %v2884_v10 = vpop.f32.mrb[3].mxu1 }
 0x473   : > { %v2213_v12 = vpop.f32.mrb[4].mxu1 }
 0x474   : > { %v1002_v49 = vpop.f32.mrb[5].mxu1  ;;  %v1018_v19 = vmul.f32 0.0030411496, %v2213_v12 }
 0x475   : > { %v1016_v15 = vmul.f32 0.0030411496, %v1002_v49  ;;  %v2214_v16 = vpop.f32.mrb[6].mxu1 }
 0x476   : > { %v1005_v17 = vpop.f32.mrb[7].mxu1  ;;  %v1025_v24 = vsel %vm634_vm3, %v1018_v19, -inf }
 0x477   : > { %v1017_v22 = vmul.f32 0.0030411496, %v1005_v17  ;;  %v1019_v53 = vsel %vm627_vm2, %v1016_v15, -inf }
 0x478   : > { %1020 = vmax.xlane.f32.xlu0 %v1019_v53 }
 0x479   : > { %v1022_v23 = vsel %vm627_vm2, %v1017_v22, -inf }
 0x47a   : > { %1023 = vmax.xlane.f32.xlu1 %v1022_v23 }
 0x47c   : > { %1026 = vmax.xlane.f32.xlu0 %v1025_v24 }
 0x488   : > { %v1274_v25 = vpop.permute.xlu1 %1273  ;;  %v1272_v26 = vpop.permute.xlu0 %1271 }
 0x489   : > { %v1280_v51 = vsel %vm395_vm0, %v1272_v26, 0.0  ;;  %v1283_v27 = vsel %vm395_vm0, %v1274_v25, 0.0 }
 0x48a   : > { %1281 = vadd.xlane.f32.xlu0 %v1280_v51 }
 0x48c   : > { %v1276_v20 = vpop.permute.xlu1 %1275 }
 0x48d   : > { %v1286_v54 = vsel %vm402_vm1, %v1276_v20, 0.0 }
 0x48e   : > { %1287 = vadd.xlane.f32.xlu1 %v1286_v54  ;;  %1284 = vadd.xlane.f32.xlu0 %v1283_v27 }
 0x490   : > { %v1185_v29 = vpop.permute.xlu1 %1184 }
 0x491   : > { %v1193_v31 = vsel %vm395_vm0, %v1185_v29, 0.0 }
 0x492   : > { %1194 = vadd.xlane.f32.xlu0 %v1193_v31 }
 0x494   : > { %v1189_v32 = vpop.permute.xlu1 %1188  ;;  %v1187_v35 = vpop.permute.xlu0 %1186 }
 0x495   : > { %v1199_v39 = vsel %vm402_vm1, %v1189_v32, 0.0  ;;  %v1196_v36 = vsel %vm395_vm0, %v1187_v35, 0.0 }
 0x496   : > { %1200 = vadd.xlane.f32.xlu0 %v1199_v39  ;;  %1197 = vadd.xlane.f32.xlu1 %v1196_v36 }
 0x4a7   : > { %1301 = vrot.lane.b32.xlu1 %v2685_v14, %s2533_s30 }
 0x4ab   : > { %1214 = vrot.lane.b32.xlu1 %v2704_v21, %s2533_s30 }
 0x4ac   : > { %1307 = vrot.lane.b32.xlu0 %v2692_v18, %s2533_s30 }
 0x4af   : > { %1220 = vrot.lane.b32.xlu1 %v2714_v45, %s2533_s30 }
 0x505   : > { %v1021_v41 = vpop.xlane.xlu0 %1020 }
 0x506   : > { %v1028_v33 = vsub.f32 %v1016_v15, %v1021_v41 }
 0x507   : > { %v1024_v42 = vpop.xlane.xlu1 %1023 }
 0x508   : > { %v1031_v43 = vmul.f32 1.442695, %v1028_v33  ;;  %v1029_v38 = vsub.f32 %v1017_v22, %v1024_v42 }
 0x509   : > { %v1027_v56 = vpop.xlane.xlu0 %1026 }
 0x50a   : > { %2442 = vpow2.f32 %v1031_v43  ;;  %v1030_v57 = vsub.f32 %v1018_v19, %v1027_v56  ;;  %v1033_v55 = vmul.f32 1.442695, %v1029_v38 }
 0x50c   : > { %v1035_v58 = vmul.f32 1.442695, %v1030_v57 }
 0x50e   : > { %2444 = vpow2.f32 %v1035_v58 }
 0x50f   : > { %2446 = vpow2.f32 %v1033_v55 }
 0x514   : > { %v2903_v14 = vpop.eup %2442 }
 0x515   : > { %v1037_v18 = vsel %vm627_vm2, %v2903_v14, 0.0 }
 0x516   : > { %1038 = vadd.xlane.f32.xlu1 %v1037_v18 }
 0x517   : > { %v1282_v21 = vpop.xlane.xlu0 %1281 }
 0x518   : > { %v2907_v45 = vpop.eup %2444  ;;  %v1289_v59 = vmul.f32 0.0625, %v1282_v21 }
 0x519   : > { %v1043_v30 = vsel %vm634_vm3, %v2907_v45, 0.0  ;;  %v2911_v34 = vpop.eup %2446 }
 0x51a   : > { %v1292_v60 = vadd.f32 1e-05, %v1289_v59  ;;  %1044 = vadd.xlane.f32.xlu0 %v1043_v30  ;;  %v1040_v7 = vsel %vm627_vm2, %v2911_v34, 0.0 }
 0x51b   : > { %v1288_v0 = vpop.xlane.xlu1 %1287  ;;  %v1285_v1 = vpop.xlane.xlu0 %1284 }
 0x51c   : > { %2448 = vrsqrt.f32 %v1292_v60  ;;  %v1291_v2 = vmul.f32 0.0625, %v1288_v0  ;;  %v1290_v40 = vmul.f32 0.0625, %v1285_v1 }
 0x51e   : > { %v1294_v37 = vadd.f32 1e-05, %v1291_v2  ;;  %v1293_v12 = vadd.f32 1e-05, %v1290_v40  ;;  %1041 = vadd.xlane.f32.xlu0 %v1040_v7 }
 0x51f   : > { %v1195_v49 = vpop.xlane.xlu0 %1194 }
 0x520   : > { %2450 = vrsqrt.f32 %v1294_v37  ;;  %v1202_v15 = vmul.f32 0.0625, %v1195_v49 }
 0x521   : > { %2452 = vrsqrt.f32 %v1293_v12 }
 0x522   : > { %v1205_v16 = vadd.f32 1e-05, %v1202_v15 }
 0x523   : > { %v1198_v17 = vpop.xlane.xlu1 %1197  ;;  %v1201_v19 = vpop.xlane.xlu0 %1200 }
 0x524   : > { %2454 = vrsqrt.f32 %v1205_v16  ;;  %v1203_v22 = vmul.f32 0.0625, %v1198_v17  ;;  %v1204_v53 = vmul.f32 0.0625, %v1201_v19 }
 0x526   : > { %v2449_v23 = vpop.eup %2448  ;;  %v1206_v24 = vadd.f32 1e-05, %v1203_v22  ;;  %v1207_v25 = vadd.f32 1e-05, %v1204_v53 }
 0x527   : > { %v1302_v26 = vpop.permute.xlu1 %1301  ;;  %v1298_v51 = vmul.f32 %v2449_v23, %v2848_v52  ;;  %1076 = vrot.lane.b32.xlu1 %v2807_v63, %s2530_s12  ;;  %v1308_v27 = vpop.permute.xlu0 %1307 }
 0x528   : > { %2456 = vrsqrt.f32 %v1206_v24 }
 0x529   : > { %2458 = vrsqrt.f32 %v1207_v25  ;;  %v1304_v20 = vmul.f32 %v1302_v26, %v1298_v51 }
 0x52a   : > { %v2451_v54 = vpop.eup %2450 }
 0x52b   : > { %v2453_v29 = vpop.eup %2452  ;;  %v1300_v31 = vmul.f32 %v2451_v54, %v2855_v28  ;;  %v1310_v32 = vadd.f32 %v1308_v27, %v1304_v20  ;;  %v1215_v35 = vpop.permute.xlu1 %1214 }
 0x52c   : > { %v1299_v39 = vmul.f32 %v2453_v29, %v2845_v44 }
 0x52d   : > { %v1306_v36 = vmul.f32 %v1302_v26, %v1300_v31  ;;  %v1313_v41 = vmul.f32 8.980188, %v1310_v32 }
 0x52e   : > { %v2455_v33 = vpop.eup %2454  ;;  %v1305_v42 = vmul.f32 %v1302_v26, %v1299_v39 }
 0x52f   : > { %v1312_v52 = vadd.f32 %v1308_v27, %v1306_v36  ;;  %v1211_v43 = vmul.f32 %v2455_v33, %v2862_v61  ;;  %v1319_v56 = vmax.f32 %v1313_v41, -8.0  ;;  %v1221_v57 = vpop.permute.xlu1 %1220 }
 0x530   : > { %v1311_v38 = vadd.f32 %v1308_v27, %v1305_v42 }
 0x531   : > { %v1315_v55 = vmul.f32 8.980188, %v1312_v52  ;;  %v1217_v58 = vmul.f32 %v1215_v35, %v1211_v43  ;;  %v1322_v0 = vmin.f32 %v1319_v56, 7.0 }
 0x532   : > { %v2457_v18 = vpop.eup %2456  ;;  %v1314_v21 = vmul.f32 8.980188, %v1311_v38 }
 0x533   : > { %v2459_v59 = vpop.eup %2458  ;;  %v1321_v28 = vmax.f32 %v1315_v55, -8.0  ;;  %v1212_v30 = vmul.f32 %v2457_v18, %v2871_v48  ;;  %v1223_v60 = vadd.f32 %v1221_v57, %v1217_v58  ;;  %v2304_v15 = vround.rtne.f32 %v1322_v0 }
 0x534   : > { %v1320_v44 = vmax.f32 %v1314_v21, -8.0  ;;  %v1213_v1 = vmul.f32 %v2459_v59, %v2866_v62  ;;  %1074 = vrot.lane.b32.xlu0 %v2802_v50, %s2530_s12 }
 0x535   : > { %v1218_v61 = vmul.f32 %v1215_v35, %v1212_v30  ;;  %v1226_v2 = vmul.f32 9.154124, %v1223_v60  ;;  %v1324_v37 = vmin.f32 %v1321_v28, 7.0 }
 0x536   : > { %v1323_v40 = vmin.f32 %v1320_v44, 7.0  ;;  %v1219_v7 = vmul.f32 %v1215_v35, %v1213_v1 }
 0x537   : > { %v1224_v12 = vadd.f32 %v1221_v57, %v1218_v61  ;;  %v1232_v49 = vmax.f32 %v1226_v2, -8.0  ;;  %v2306_v53 = vround.rtne.f32 %v1324_v37 }
 0x538   : > { %v2305_v16 = vround.rtne.f32 %v1323_v40  ;;  %v1225_v17 = vadd.f32 %v1221_v57, %v1219_v7 }
 0x539   : > { %v1227_v19 = vmul.f32 9.154124, %v1224_v12  ;;  %v1235_v24 = vmin.f32 %v1232_v49, 7.0  ;;  %v1331_v26 = vpack.c.bf16 %v2306_v53, %v2306_v53 }
 0x53a   : > { %v1228_v48 = vmul.f32 9.154124, %v1225_v17  ;;  %v1330_v22 = vpack.c.bf16 %v2305_v16, %v2304_v15 }
 0x53b   : > { %v1233_v23 = vmax.f32 %v1227_v19, -8.0  ;;  %v2301_v27 = vround.rtne.f32 %v1235_v24 }
 0x53c   : > { %v1234_v62 = vmax.f32 %v1228_v48, -8.0  ;;  %1340 = vrot.lane.b32.xlu1 %v1330_v22, %s2532_s29 }
 0x53d   : > { %v1236_v25 = vmin.f32 %v1233_v23, 7.0 }
 0x53e   : > { %v1237_v51 = vmin.f32 %v1234_v62, 7.0 }
 0x53f   : > { %v2302_v20 = vround.rtne.f32 %v1236_v25 }
 0x540   : > { %1342 = vrot.lane.b32.xlu1 %v1331_v26, %s2532_s29  ;;  %v2303_v54 = vround.rtne.f32 %v1237_v51 }
 0x541   : > { %v1328_v29 = vpack.c.bf16 %v2302_v20, %v2301_v27 }
 0x542   : > { %v1329_v31 = vpack.c.bf16 %v2303_v54, %v2303_v54 }
 0x543   : > { %1334 = vrot.lane.b32.xlu0 %v1328_v29, %s2532_s29 }
 0x544   : > { %1336 = vrot.lane.b32.xlu1 %v1329_v31, %s2532_s29 }
 0x547   : > { %2382 = vrot.lane.b32.xlu0 %v2666_v46, %s2534_s8 }
 0x548   : > { %1631 = vrot.lane.b32.xlu1 %v2606_v4, %s2534_s8 }
 0x54b   : > { %2387 = vrot.lane.b32.xlu0 %v2672_v47, %s2534_s8 }
 0x54c   : > { %1544 = vrot.lane.b32.xlu1 %v2622_v13, %s2534_s8 }
 0x5a3   : > { %v1039_v32 = vpop.xlane.xlu1 %1038 }
 0x5a4   : > { %2460 = vrcp.f32 %v1039_v32 }
 0x5a7   : > { %v1045_v35 = vpop.xlane.xlu0 %1044  ;;  %v1077_v39 = vpop.permute.xlu1 %1076 }
 0x5a8   : > { %2462 = vrcp.f32 %v1045_v35  ;;  %v1086_v47 = vsel %vm690_vm4, %v1077_v39, 0 }
 0x5ab   : > { %v1042_v36 = vpop.xlane.xlu0 %1041 }
 0x5ac   : > { %2464 = vrcp.f32 %v1042_v36 }
 0x5ae   : > { %v2461_v41 = vpop.eup %2460  ;;  %v1341_v33 = vpop.permute.xlu1 %1340 }
 0x5af   : > { %v1049_v46 = vmul.f32 %v2461_v41, %v2903_v14  ;;  %v1075_v42 = vpop.permute.xlu0 %1074  ;;  %v1351_v26 = vsel %vm395_vm0, %v1341_v33, 0 }
 0x5b0   : > { %2215 = vmatprep.subr.bf16.mxu0 %v1075_v42 }
 0x5b1   : > { %2216 = vmatpush3.bf16.msra.mxu0 %v1075_v42  ;;  %v1052_v52 = vmul.f32 9.171138, %v1049_v46 }
 0x5b2   : > { %v2463_v43 = vpop.eup %2462  ;;  %v1343_v38 = vpop.permute.xlu1 %1342  ;;  %2260 = vmatprep.subr.msk.bf16.mxu0 %vm690_vm4, %v1077_v39 }
 0x5b3   : > { %v1051_v56 = vmul.f32 %v2463_v43, %v2907_v45  ;;  %v1058_v58 = vmax.f32 %v1052_v52, -8.0  ;;  %v1354_v27 = vsel %vm395_vm0, %v1343_v38, 0 }
 0x5b5   : > { %v1054_v57 = vmul.f32 9.171138, %v1051_v56  ;;  %2218 = vmatpush3.bf16.msra.mxu0 %v1086_v47  ;;  %v1335_v55 = vpop.permute.xlu0 %1334  ;;  %v1061_v44 = vmin.f32 %v1058_v58, 7.0 }
 0x5b6   : > { %v2465_v18 = vpop.eup %2464  ;;  %v1337_v21 = vpop.permute.xlu1 %1336  ;;  %2261 = vmatprep.subr.msk.bf16.mxu0 %vm395_vm0, %v1341_v33 }
 0x5b7   : > { %v1060_v14 = vmax.f32 %v1054_v57, -8.0  ;;  %v1050_v59 = vmul.f32 %v2465_v18, %v2911_v34  ;;  %v2292_v49 = vround.rtne.f32 %v1061_v44 }
 0x5b9   : > { %v1063_v28 = vmin.f32 %v1060_v14, 7.0  ;;  %v2383_v30 = vpop.permute.xlu0 %2382  ;;  %v1053_v60 = vmul.f32 9.171138, %v1050_v59  ;;  %v2295_v22 = vround.rtne.f32 %v2292_v49 }
 0x5ba   : > { %v2385_v0 = vunpack.i.h.bf16 %v2383_v30  ;;  %v2384_v1 = vunpack.i.l.bf16 %v2383_v30  ;;  %v1632_v61 = vpop.permute.xlu1 %1631 }
 0x5bb   : > { %v1059_v2 = vmax.f32 %v1053_v60, -8.0  ;;  %v2294_v7 = vround.rtne.f32 %v1063_v28  ;;  %v1642_v34 = vsel %vm402_vm1, %v1632_v61, 0.0 }
 0x5bc   : > { %v1639_v45 = vsel %vm395_vm0, %v2385_v0, 0.0  ;;  %v1636_v40 = vsel %vm395_vm0, %v2384_v1, 0.0 }
 0x5bd   : > { %1640 = vadd.xlane.f32.xlu1 %v1639_v45  ;;  %1637 = vadd.xlane.f32.xlu0 %v1636_v40  ;;  %v2388_v37 = vpop.permute.xlu0 %2387  ;;  %v1062_v12 = vmin.f32 %v1059_v2, 7.0  ;;  %v2297_v48 = vround.rtne.f32 %v2294_v7 }
 0x5be   : > { %v2389_v15 = vunpack.i.l.bf16 %v2388_v37  ;;  %v1545_v16 = vpop.permute.xlu1 %1544  ;;  %v2390_v23 = vunpack.i.h.bf16 %v2388_v37 }
 0x5bf   : > { %v2293_v17 = vround.rtne.f32 %v1062_v12  ;;  %v1555_v19 = vsel %vm402_vm1, %v1545_v16, 0.0  ;;  %v1071_v25 = vpack.c.bf16 %v2297_v48, %v2297_v48 }
 0x5c0   : > { %v1549_v24 = vsel %vm395_vm0, %v2389_v15, 0.0  ;;  %v1552_v51 = vsel %vm395_vm0, %v2390_v23, 0.0 }
 0x5c1   : > { %1643 = vadd.xlane.f32.xlu0 %v1642_v34  ;;  %v2296_v53 = vround.rtne.f32 %v2293_v17  ;;  %1556 = vadd.xlane.f32.xlu1 %v1555_v19 }
 0x5c3   : > { %v1070_v62 = vpack.c.bf16 %v2296_v53, %v2295_v22 }
 0x5c5   : > { %2219 = vmatprep.mubr.msk.bf16.mxu0 %vm627_vm2, %v1070_v62  ;;  %1550 = vadd.xlane.f32.xlu0 %v1549_v24 }
 0x5c6   : > { %2220 = vmatmul.mubr.msk.bf16.vlgmr.msra.gmra.mrb[4].mxu0 %vm627_vm2, %v1071_v25 }
 0x5c7   : > { %2224 = vmatpush3.bf16.xpose.msra.mxu0 %v1351_v26  ;;  %2227 = vmatprep.mubr.msk.bf16.mxu0 %vm395_vm0, %v1335_v55 }
 0x5c8   : > { %2262 = vmatprep.subr.msk.bf16.mxu0 %vm395_vm0, %v1343_v38 }
 0x5c9   : > { %1553 = vadd.xlane.f32.xlu0 %v1552_v51 }
 0x5cf   : > { %2226 = vmatpush3.bf16.xpose.msra.mxu0 %v1354_v27 }
 0x5d6   : > { %2228 = vmatmul.mubr.msk.bf16.vlgmr.msra.gmra.mrb[8].mxu0 %vm395_vm0, %v1337_v21 }
 0x64a   : > { %v1641_v20 = vpop.xlane.xlu1 %1640  ;;  %v1638_v54 = vpop.xlane.xlu0 %1637 }
 0x64b   : > { %v1646_v29 = vmul.f32 0.0625, %v1641_v20  ;;  %v1645_v31 = vmul.f32 0.0625, %v1638_v54 }
 0x64d   : > { %v2957_v32 = vsub.f32 %v2608_v5, %v1646_v29  ;;  %v2960_v35 = vsub.f32 %v2604_v3, %v1645_v31  ;;  %v2502_v29 = vld [vmem:[%s3112_s5] ss:$0 sm:$0xff] }
 0x64e   : > { %v1644_v39 = vpop.xlane.xlu0 %1643  ;;  %v1557_v36 = vpop.xlane.xlu1 %1556  ;;  %v2503_v31 = vld [vmem:[%s3110_s3] ss:$0 sm:$0xff] }
 0x64f   : > { %v1647_v41 = vmul.f32 0.0625, %v1644_v39  ;;  %v1652_v33 = vmul.f32 %v2957_v32, %v2957_v32  ;;  %v1651_v46 = vmul.f32 %v2960_v35, %v2960_v35  ;;  %v1560_v5 = vmul.f32 0.0625, %v1557_v36  ;;  %v2504_v39 = vld [vmem:[%s3113_s6] ss:$0 sm:$0xff] }
 0x650   : > { %v2505_v36 = vld [vmem:[%s3111_s4] ss:$0 sm:$0xff] }
 0x651   : > { %v2967_v42 = vsub.f32 %v2606_v4, %v1647_v41  ;;  %1659 = vrot.lane.b32.xlu1 %v1652_v33, %s2534_s8  ;;  %1657 = vrot.lane.b32.xlu0 %v1651_v46, %s2534_s8  ;;  %v2978_v38 = vsub.f32 %v2622_v13, %v1560_v5 }
 0x652   : > { %v1551_v52 = vpop.xlane.xlu0 %1550 }
 0x653   : > { %v1653_v3 = vmul.f32 %v2967_v42, %v2967_v42  ;;  %v1558_v43 = vmul.f32 0.0625, %v1551_v52  ;;  %v1566_v55 = vmul.f32 %v2978_v38, %v2978_v38 }
 0x655   : > { %v2974_v47 = vsub.f32 %v2610_v6, %v1558_v43  ;;  %1661 = vrot.lane.b32.xlu1 %v1653_v3, %s2534_s8 }
 0x656   : > { %v1554_v4 = vpop.xlane.xlu0 %1553 }
 0x657   : > { %v1564_v56 = vmul.f32 %v2974_v47, %v2974_v47  ;;  %v1559_v57 = vmul.f32 0.0625, %v1554_v4 }
 0x659   : > { %v2985_v58 = vsub.f32 %v2618_v11, %v1559_v57  ;;  %1570 = vrot.lane.b32.xlu1 %v1564_v56, %s2534_s8 }
 0x65b   : > { %v1565_v6 = vmul.f32 %v2985_v58, %v2985_v58 }
 0x65d   : > { %1574 = vrot.lane.b32.xlu1 %v1566_v55, %s2534_s8  ;;  %1572 = vrot.lane.b32.xlu0 %v1565_v6, %s2534_s8 }
 0x699   : > { %v2992_v13 = vpop.f32.mrb[4].mxu0 }
 0x69a   : > { %v1122_v18 = vpop.f32.mrb[5].mxu0 }
 0x69b   : > { %v1136_v21 = vmul.f32 0.0121752005, %v1122_v18  ;;  %v2222_v14 = vpop.f32.mrb[6].mxu0 }
 0x69c   : > { %v1125_v59 = vpop.f32.mrb[7].mxu0 }
 0x69d   : > { %v1139_v28 = vmul.f32 9.070218, %v1136_v21  ;;  %v1137_v30 = vmul.f32 0.0121752005, %v1125_v59 }
 0x69f   : > { %v1145_v60 = vmax.f32 %v1139_v28, -8.0  ;;  %v1140_v11 = vmul.f32 9.070218, %v1137_v30 }
 0x6a1   : > { %v1148_v44 = vmin.f32 %v1145_v60, 7.0  ;;  %v1146_v0 = vmax.f32 %v1140_v11, -8.0 }
 0x6a3   : > { %v1149_v1 = vmin.f32 %v1146_v0, 7.0  ;;  %v2298_v61 = vround.rtne.f32 %v1148_v44 }
 0x6a5   : > { %v2299_v2 = vround.rtne.f32 %v1149_v1 }
 0x6a7   : > { %v2994_v45 = vpack.i.bf16 %v2299_v2, %v2298_v61 }
 0x6a9   : > { %v2229_v40 = vpop.f32.mrb[8].mxu0 }
 0x6aa   : > { %v1390_v7 = vpop.f32.mrb[9].mxu0  ;;  %v1406_v15 = vmul.f32 0.0030411496, %v2229_v40 }
 0x6ab   : > { %v1404_v37 = vmul.f32 0.0030411496, %v1390_v7  ;;  %v2230_v12 = vpop.f32.mrb[10].mxu0 }
 0x6ac   : > { %v1393_v49 = vpop.f32.mrb[11].mxu0  ;;  %v1413_v19 = vsel %vm634_vm3, %v1406_v15, -inf }
 0x6ad   : > { %v1405_v34 = vmul.f32 0.0030411496, %v1393_v49  ;;  %v1407_v16 = vsel %vm627_vm2, %v1404_v37, -inf }
 0x6ae   : > { %1408 = vmax.xlane.f32.xlu0 %v1407_v16 }
 0x6af   : > { %v1410_v17 = vsel %vm627_vm2, %v1405_v34, -inf }
 0x6b0   : > { %1411 = vmax.xlane.f32.xlu1 %v1410_v17 }
 0x6b2   : > { %1414 = vmax.xlane.f32.xlu0 %v1413_v19 }
 0x6c3   : > { %v1660_v48 = vpop.permute.xlu1 %1659  ;;  %v1658_v22 = vpop.permute.xlu0 %1657 }
 0x6c4   : > { %v1666_v53 = vsel %vm395_vm0, %v1658_v22, 0.0  ;;  %v1669_v23 = vsel %vm395_vm0, %v1660_v48, 0.0 }
 0x6c5   : > { %1667 = vadd.xlane.f32.xlu0 %v1666_v53 }
 0x6c7   : > { %v1662_v24 = vpop.permute.xlu1 %1661 }
 0x6c8   : > { %v1672_v62 = vsel %vm402_vm1, %v1662_v24, 0.0 }
 0x6c9   : > { %1673 = vadd.xlane.f32.xlu1 %v1672_v62  ;;  %1670 = vadd.xlane.f32.xlu0 %v1669_v23 }
 0x6cb   : > { %v1571_v25 = vpop.permute.xlu1 %1570 }
 0x6cc   : > { %v1579_v26 = vsel %vm395_vm0, %v1571_v25, 0.0 }
 0x6cd   : > { %1580 = vadd.xlane.f32.xlu0 %v1579_v26 }
 0x6cf   : > { %v1575_v51 = vpop.permute.xlu1 %1574  ;;  %v1573_v27 = vpop.permute.xlu0 %1572 }
 0x6d0   : > { %v1585_v20 = vsel %vm402_vm1, %v1575_v51, 0.0  ;;  %v1582_v54 = vsel %vm395_vm0, %v1573_v27, 0.0 }
 0x6d1   : > { %1586 = vadd.xlane.f32.xlu0 %v1585_v20  ;;  %1583 = vadd.xlane.f32.xlu1 %v1582_v54 }
 0x6e2   : > { %1687 = vrot.lane.b32.xlu1 %v2502_v29, %s2535_s11 }
 0x6e6   : > { %1600 = vrot.lane.b32.xlu1 %v2503_v31, %s2535_s11 }
 0x6e7   : > { %1693 = vrot.lane.b32.xlu0 %v2504_v39, %s2535_s11 }
 0x6ea   : > { %1606 = vrot.lane.b32.xlu1 %v2505_v36, %s2535_s11 }
 0x73b   : > { %v1409_v41 = vpop.xlane.xlu0 %1408 }
 0x73c   : > { %v1416_v33 = vsub.f32 %v1404_v37, %v1409_v41 }
 0x73d   : > { %v1412_v46 = vpop.xlane.xlu1 %1411 }
 0x73e   : > { %v1419_v5 = vmul.f32 1.442695, %v1416_v33  ;;  %v1417_v52 = vsub.f32 %v1405_v34, %v1412_v46 }
 0x73f   : > { %v1415_v3 = vpop.xlane.xlu0 %1414 }
 0x740   : > { %2466 = vpow2.f32 %v1419_v5  ;;  %v1418_v43 = vsub.f32 %v1406_v15, %v1415_v3  ;;  %v1421_v4 = vmul.f32 1.442695, %v1417_v52 }
 0x742   : > { %v1423_v56 = vmul.f32 1.442695, %v1418_v43 }
 0x744   : > { %2468 = vpow2.f32 %v1423_v56 }
 0x745   : > { %2470 = vpow2.f32 %v1421_v4 }
 0x74a   : > { %v3021_v57 = vpop.eup %2466 }
 0x74b   : > { %v1425_v55 = vsel %vm627_vm2, %v3021_v57, 0.0 }
 0x74c   : > { %1426 = vadd.xlane.f32.xlu1 %v1425_v55 }
 0x74e   : > { %v3025_v6 = vpop.eup %2468 }
 0x74f   : > { %v1431_v18 = vsel %vm634_vm3, %v3025_v6, 0.0  ;;  %v3029_v21 = vpop.eup %2470 }
 0x750   : > { %1432 = vadd.xlane.f32.xlu0 %v1431_v18  ;;  %v1428_v59 = vsel %vm627_vm2, %v3029_v21, 0.0 }
 0x752   : > { %v1668_v14 = vpop.xlane.xlu0 %1667 }
 0x753   : > { %v1675_v28 = vmul.f32 0.0625, %v1668_v14 }
 0x754   : > { %1429 = vadd.xlane.f32.xlu0 %v1428_v59 }
 0x755   : > { %v1678_v30 = vadd.f32 1e-05, %v1675_v28 }
 0x756   : > { %v1674_v60 = vpop.xlane.xlu1 %1673  ;;  %v1671_v11 = vpop.xlane.xlu0 %1670 }
 0x757   : > { %2472 = vrsqrt.f32 %v1678_v30  ;;  %v1677_v44 = vmul.f32 0.0625, %v1674_v60  ;;  %v1676_v0 = vmul.f32 0.0625, %v1671_v11 }
 0x759   : > { %v1680_v1 = vadd.f32 1e-05, %v1677_v44  ;;  %v1679_v61 = vadd.f32 1e-05, %v1676_v0 }
 0x75a   : > { %v1581_v2 = vpop.xlane.xlu0 %1580 }
 0x75b   : > { %2474 = vrsqrt.f32 %v1680_v1  ;;  %v1588_v40 = vmul.f32 0.0625, %v1581_v2 }
 0x75c   : > { %2476 = vrsqrt.f32 %v1679_v61 }
 0x75d   : > { %v1591_v7 = vadd.f32 1e-05, %v1588_v40  ;;  %1462 = vrot.lane.b32.xlu1 %v2807_v63, %s2532_s29 }
 0x75e   : > { %v1584_v37 = vpop.xlane.xlu1 %1583  ;;  %v1587_v12 = vpop.xlane.xlu0 %1586 }
 0x75f   : > { %2478 = vrsqrt.f32 %v1591_v7  ;;  %v1589_v49 = vmul.f32 0.0625, %v1584_v37  ;;  %v1590_v15 = vmul.f32 0.0625, %v1587_v12 }
 0x761   : > { %v2473_v34 = vpop.eup %2472  ;;  %v1592_v16 = vadd.f32 1e-05, %v1589_v49  ;;  %v1593_v17 = vadd.f32 1e-05, %v1590_v15 }
 0x762   : > { %v1688_v19 = vpop.permute.xlu1 %1687  ;;  %v1684_v48 = vmul.f32 %v2473_v34, %v2960_v35  ;;  %v1694_v22 = vpop.permute.xlu0 %1693 }
 0x763   : > { %2480 = vrsqrt.f32 %v1592_v16 }
 0x764   : > { %2482 = vrsqrt.f32 %v1593_v17  ;;  %v1690_v53 = vmul.f32 %v1688_v19, %v1684_v48 }
 0x765   : > { %v2475_v23 = vpop.eup %2474 }
 0x766   : > { %v2477_v24 = vpop.eup %2476  ;;  %v1686_v62 = vmul.f32 %v2475_v23, %v2967_v42  ;;  %v1696_v25 = vadd.f32 %v1694_v22, %v1690_v53  ;;  %v1601_v26 = vpop.permute.xlu1 %1600 }
 0x767   : > { %v1685_v51 = vmul.f32 %v2477_v24, %v2957_v32 }
 0x768   : > { %v1692_v27 = vmul.f32 %v1688_v19, %v1686_v62  ;;  %v1699_v20 = vmul.f32 8.980188, %v1696_v25 }
 0x769   : > { %v2479_v54 = vpop.eup %2478  ;;  %v1691_v29 = vmul.f32 %v1688_v19, %v1685_v51 }
 0x76a   : > { %v1698_v31 = vadd.f32 %v1694_v22, %v1692_v27  ;;  %v1597_v39 = vmul.f32 %v2479_v54, %v2974_v47  ;;  %1460 = vrot.lane.b32.xlu0 %v2802_v50, %s2532_s29  ;;  %v1705_v36 = vmax.f32 %v1699_v20, -8.0  ;;  %v1607_v41 = vpop.permute.xlu1 %1606 }
 0x76b   : > { %v1697_v35 = vadd.f32 %v1694_v22, %v1691_v29 }
 0x76c   : > { %v1701_v33 = vmul.f32 8.980188, %v1698_v31  ;;  %v1603_v46 = vmul.f32 %v1601_v26, %v1597_v39  ;;  %v1708_v56 = vmin.f32 %v1705_v36, 7.0 }
 0x76d   : > { %v2481_v42 = vpop.eup %2480  ;;  %v1700_v5 = vmul.f32 8.980188, %v1697_v35 }
 0x76e   : > { %v2483_v52 = vpop.eup %2482  ;;  %v1707_v3 = vmax.f32 %v1701_v33, -8.0  ;;  %v1598_v32 = vmul.f32 %v2481_v42, %v2985_v58  ;;  %v1609_v43 = vadd.f32 %v1607_v41, %v1603_v46  ;;  %v2319_v11 = vround.rtne.f32 %v1708_v56 }
 0x76f   : > { %v1706_v4 = vmax.f32 %v1700_v5, -8.0  ;;  %v1599_v55 = vmul.f32 %v2483_v52, %v2978_v38 }
 0x770   : > { %v1604_v47 = vmul.f32 %v1601_v26, %v1598_v32  ;;  %v1612_v18 = vmul.f32 9.154124, %v1609_v43  ;;  %v1710_v59 = vmin.f32 %v1707_v3, 7.0 }
 0x771   : > { %v1709_v14 = vmin.f32 %v1706_v4, 7.0  ;;  %v1605_v28 = vmul.f32 %v1601_v26, %v1599_v55 }
 0x772   : > { %v1610_v30 = vadd.f32 %v1607_v41, %v1604_v47  ;;  %v1618_v60 = vmax.f32 %v1612_v18, -8.0  ;;  %v2321_v61 = vround.rtne.f32 %v1710_v59 }
 0x773   : > { %v2320_v44 = vround.rtne.f32 %v1709_v14  ;;  %v1611_v0 = vadd.f32 %v1607_v41, %v1605_v28 }
 0x774   : > { %v1613_v1 = vmul.f32 9.154124, %v1610_v30  ;;  %v1621_v7 = vmin.f32 %v1618_v60, 7.0  ;;  %v1717_v12 = vpack.c.bf16 %v2321_v61, %v2321_v61 }
 0x775   : > { %v1614_v2 = vmul.f32 9.154124, %v1611_v0  ;;  %v1716_v40 = vpack.c.bf16 %v2320_v44, %v2319_v11 }
 0x776   : > { %v1619_v58 = vmax.f32 %v1613_v1, -8.0  ;;  %v2316_v15 = vround.rtne.f32 %v1621_v7 }
 0x777   : > { %v1620_v37 = vmax.f32 %v1614_v2, -8.0  ;;  %1726 = vrot.lane.b32.xlu1 %v1716_v40, %s2534_s8 }
 0x778   : > { %v1622_v38 = vmin.f32 %v1619_v58, 7.0 }
 0x779   : > { %v1623_v49 = vmin.f32 %v1620_v37, 7.0 }
 0x77a   : > { %v2317_v34 = vround.rtne.f32 %v1622_v38 }
 0x77b   : > { %v2318_v16 = vround.rtne.f32 %v1623_v49  ;;  %1728 = vrot.lane.b32.xlu1 %v1717_v12, %s2534_s8 }
 0x77c   : > { %v1714_v17 = vpack.c.bf16 %v2317_v34, %v2316_v15 }
 0x77d   : > { %v1715_v19 = vpack.c.bf16 %v2318_v16, %v2318_v16 }
 0x77e   : > { %1720 = vrot.lane.b32.xlu0 %v1714_v17, %s2534_s8 }
 0x77f   : > { %1722 = vrot.lane.b32.xlu1 %v1715_v19, %s2534_s8 }
 0x7d9   : > { %v1427_v48 = vpop.xlane.xlu1 %1426 }
 0x7da   : > { %2484 = vrcp.f32 %v1427_v48 }
 0x7dd   : > { %v1433_v22 = vpop.xlane.xlu0 %1432  ;;  %v1463_v23 = vpop.permute.xlu1 %1462 }
 0x7de   : > { %2486 = vrcp.f32 %v1433_v22  ;;  %v1472_v27 = vsel %vm690_vm4, %v1463_v23, 0 }
 0x7e1   : > { %v1430_v53 = vpop.xlane.xlu0 %1429 }
 0x7e2   : > { %2488 = vrcp.f32 %v1430_v53 }
 0x7e4   : > { %v2485_v24 = vpop.eup %2484 }
 0x7e5   : > { %v1437_v62 = vmul.f32 %v2485_v24, %v3021_v57  ;;  %v1461_v25 = vpop.permute.xlu0 %1460 }
 0x7e6   : > { %2231 = vmatprep.subr.bf16.mxu1 %v1461_v25 }
 0x7e7   : > { %2232 = vmatpush3.bf16.msra.mxu1 %v1461_v25  ;;  %v1440_v26 = vmul.f32 9.171138, %v1437_v62 }
 0x7e8   : > { %v2487_v51 = vpop.eup %2486  ;;  %2263 = vmatprep.subr.msk.bf16.mxu1 %vm690_vm4, %v1463_v23 }
 0x7e9   : > { %v1439_v20 = vmul.f32 %v2487_v51, %v3025_v6  ;;  %v1727_v54 = vpop.permute.xlu1 %1726  ;;  %v1446_v31 = vmax.f32 %v1440_v26, -8.0 }
 0x7ea   : > { %v1737_v55 = vsel %vm395_vm0, %v1727_v54, 0 }
 0x7eb   : > { %v1442_v29 = vmul.f32 9.171138, %v1439_v20  ;;  %2234 = vmatpush3.bf16.msra.mxu1 %v1472_v27  ;;  %v1449_v33 = vmin.f32 %v1446_v31, 7.0 }
 0x7ec   : > { %v2489_v39 = vpop.eup %2488  ;;  %2264 = vmatprep.subr.msk.bf16.mxu1 %vm395_vm0, %v1727_v54 }
 0x7ed   : > { %v1448_v35 = vmax.f32 %v1442_v29, -8.0  ;;  %v1438_v57 = vmul.f32 %v2489_v39, %v3029_v21  ;;  %v2307_v52 = vround.rtne.f32 %v1449_v33  ;;  %v1729_v21 = vpop.permute.xlu1 %1728 }
 0x7ee   : > { %v1740_v18 = vsel %vm395_vm0, %v1729_v21, 0 }
 0x7ef   : > { %v1451_v36 = vmin.f32 %v1448_v35, 7.0  ;;  %v1441_v41 = vmul.f32 9.171138, %v1438_v57  ;;  %v2310_v6 = vround.rtne.f32 %v2307_v52 }
 0x7f0   : > { %v1721_v47 = vpop.permute.xlu0 %1720 }
 0x7f1   : > { %v1447_v46 = vmax.f32 %v1441_v41, -8.0  ;;  %v2309_v42 = vround.rtne.f32 %v1451_v36  ;;  %v1723_v14 = vpop.permute.xlu1 %1722  ;;  %v1138_v41 = vmul.f32 0.0121752005, %v2992_v13 }
 0x7f3   : > { %v1450_v5 = vmin.f32 %v1447_v46, 7.0  ;;  %v2312_v32 = vround.rtne.f32 %v2309_v42  ;;  %v1141_v33 = vmul.f32 9.070218, %v1138_v41 }
 0x7f5   : > { %v2308_v3 = vround.rtne.f32 %v1450_v5  ;;  %v1459_v56 = vpack.c.bf16 %v2312_v32, %v2312_v32  ;;  %v1147_v42 = vmax.f32 %v1141_v33, -8.0  ;;  %v742_v33 = vmul.f32 0.0121752005, %v2882_v9 }
 0x7f7   : > { %v2311_v43 = vround.rtne.f32 %v2308_v3  ;;  %v1150_v52 = vmin.f32 %v1147_v42, 7.0 }
 0x7f9   : > { %v1458_v4 = vpack.c.bf16 %v2311_v43, %v2310_v6  ;;  %v2300_v32 = vround.rtne.f32 %v1150_v52 }
 0x7fb   : > { %2235 = vmatprep.mubr.msk.bf16.mxu1 %vm627_vm2, %v1458_v4 }
 0x7fc   : > { %2236 = vmatmul.mubr.msk.bf16.vlgmr.msra.gmra.mrb[8].mxu1 %vm627_vm2, %v1459_v56 }
 0x7fd   : > { %2240 = vmatpush3.bf16.xpose.msra.mxu1 %v1737_v55  ;;  %2243 = vmatprep.mubr.msk.bf16.mxu1 %vm395_vm0, %v1721_v47 }
 0x7fe   : > { %2265 = vmatprep.subr.msk.bf16.mxu1 %vm395_vm0, %v1729_v21 }
 0x805   : > { %2242 = vmatpush3.bf16.xpose.msra.mxu1 %v1740_v18 }
 0x80c   : > { %2244 = vmatmul.mubr.msk.bf16.vlgmr.msra.gmra.mrb[12].mxu1 %vm395_vm0, %v1723_v14 }
 0x8cf   : > { %v2237_v59 = vpop.f32.mrb[8].mxu1 }
 0x8d0   : > { %v1508_v28 = vpop.f32.mrb[9].mxu1  ;;  %v1524_v46 = vmul.f32 0.0121752005, %v2237_v59 }
 0x8d1   : > { %v1522_v30 = vmul.f32 0.0121752005, %v1508_v28  ;;  %v2238_v60 = vpop.f32.mrb[10].mxu1 }
 0x8d2   : > { %v1511_v11 = vpop.f32.mrb[11].mxu1  ;;  %v1527_v5 = vmul.f32 9.070218, %v1524_v46  ;;  %v743_v46 = vmul.f32 0.0121752005, %v2884_v10 }
 0x8d3   : > { %v1525_v44 = vmul.f32 9.070218, %v1522_v30  ;;  %v1523_v0 = vmul.f32 0.0121752005, %v1511_v11 }
 0x8d4   : > { %v1533_v3 = vmax.f32 %v1527_v5, -8.0  ;;  %v745_v5 = vmul.f32 9.070218, %v742_v33  ;;  %v746_v52 = vmul.f32 9.070218, %v743_v46 }
 0x8d5   : > { %v1531_v1 = vmax.f32 %v1525_v44, -8.0  ;;  %v1526_v61 = vmul.f32 9.070218, %v1523_v0 }
 0x8d6   : > { %v1536_v6 = vmin.f32 %v1533_v3, 7.0 }
 0x8d7   : > { %v1534_v2 = vmin.f32 %v1531_v1, 7.0  ;;  %v1532_v40 = vmax.f32 %v1526_v61, -8.0 }
 0x8d8   : > { %v2315_v13 = vround.rtne.f32 %v1536_v6  ;;  %v751_v6 = vmax.f32 %v745_v5, -8.0 }
 0x8d9   : > { %v1535_v58 = vmin.f32 %v1532_v40, 7.0  ;;  %v2313_v7 = vround.rtne.f32 %v1534_v2 }
 0x8db   : > { %v2314_v37 = vround.rtne.f32 %v1535_v58 }
 0x8dd   : > { %v2396_v38 = vpack.i.bf16 %v2314_v37, %v2313_v7 }
 0x8df   : > { %v2245_v12 = vpop.f32.mrb[12].mxu1 }
 0x8e0   : > { %v1776_v49 = vpop.f32.mrb[13].mxu1  ;;  %v1792_v17 = vmul.f32 0.0030411496, %v2245_v12 }
 0x8e1   : > { %v1790_v15 = vmul.f32 0.0030411496, %v1776_v49  ;;  %v2246_v34 = vpop.f32.mrb[14].mxu1 }
 0x8e2   : > { %v1779_v16 = vpop.f32.mrb[15].mxu1  ;;  %v1799_v53 = vsel %vm634_vm3, %v1792_v17, -inf }
 0x8e3   : > { %v1791_v19 = vmul.f32 0.0030411496, %v1779_v16  ;;  %v1793_v48 = vsel %vm627_vm2, %v1790_v15, -inf }
 0x8e4   : > { %1794 = vmax.xlane.f32.xlu0 %v1793_v48 }
 0x8e5   : > { %v1796_v22 = vsel %vm627_vm2, %v1791_v19, -inf }
 0x8e6   : > { %1797 = vmax.xlane.f32.xlu1 %v1796_v22 }
 0x8e8   : > { %1800 = vmax.xlane.f32.xlu0 %v1799_v53 }
 0x971   : > { %v1795_v23 = vpop.xlane.xlu0 %1794 }
 0x972   : > { %v1802_v24 = vsub.f32 %v1790_v15, %v1795_v23 }
 0x973   : > { %v1798_v62 = vpop.xlane.xlu1 %1797 }
 0x974   : > { %v1805_v25 = vmul.f32 1.442695, %v1802_v24  ;;  %v1803_v26 = vsub.f32 %v1791_v19, %v1798_v62 }
 0x975   : > { %v1801_v51 = vpop.xlane.xlu0 %1800 }
 0x976   : > { %2490 = vpow2.f32 %v1805_v25  ;;  %v1807_v27 = vmul.f32 1.442695, %v1803_v26  ;;  %v1804_v20 = vsub.f32 %v1792_v17, %v1801_v51 }
 0x978   : > { %2492 = vpow2.f32 %v1807_v27  ;;  %v1809_v54 = vmul.f32 1.442695, %v1804_v20 }
 0x97a   : > { %2494 = vpow2.f32 %v1809_v54 }
 0x980   : > { %v2491_v29 = vpop.eup %2490 }
 0x981   : > { %v1811_v31 = vsel %vm627_vm2, %v2491_v29, 0.0 }
 0x982   : > { %v2493_v39 = vpop.eup %2492  ;;  %1812 = vadd.xlane.f32.xlu0 %v1811_v31 }
 0x983   : > { %v1814_v36 = vsel %vm627_vm2, %v2493_v39, 0.0 }
 0x984   : > { %v2495_v35 = vpop.eup %2494 }
 0x985   : > { %v1817_v57 = vsel %vm634_vm3, %v2495_v35, 0.0 }
 0x986   : > { %1818 = vadd.xlane.f32.xlu1 %v1817_v57  ;;  %1815 = vadd.xlane.f32.xlu0 %v1814_v36  ;;  %v744_v57 = vmul.f32 0.0121752005, %v2880_v8 }
 0x988   : > { %v747_v41 = vmul.f32 9.070218, %v744_v57 }
 0x98a   : > { %v753_v42 = vmax.f32 %v747_v41, -8.0 }
 0x997   : > { %1848 = vrot.lane.b32.xlu1 %v2807_v63, %s2534_s8 }
 0x99b   : > { %2392 = vrot.lane.b32.xlu1 %v2994_v45, %s2531_s21 }
 0x99c   : > { %1846 = vrot.lane.b32.xlu0 %v2802_v50, %s2534_s8 }
 0x99f   : > { %1933 = vrot.lane.b32.xlu1 %v2300_v32, %s2531_s21  ;;  %v756_v32 = vmin.f32 %v753_v42, 7.0 }
 0x9a0   : > { %2397 = vrot.lane.b32.xlu0 %v2396_v38, %s2533_s30 }
 0x9a3   : > { %1945 = vrot.lane.b32.xlu1 %v2315_v13, %s2533_s30  ;;  %v752_v13 = vmax.f32 %v746_v52, -8.0 }
 0xa0f   : > { %v1813_v43 = vpop.xlane.xlu0 %1812 }
 0xa10   : > { %2496 = vrcp.f32 %v1813_v43 }
 0xa13   : > { %v1816_v63 = vpop.xlane.xlu0 %1815  ;;  %v1819_v4 = vpop.xlane.xlu1 %1818 }
 0xa14   : > { %2498 = vrcp.f32 %v1816_v63  ;;  %v2285_v63 = vround.rtne.f32 %v756_v32 }
 0xa15   : > { %2500 = vrcp.f32 %v1819_v4  ;;  %v754_v4 = vmin.f32 %v751_v6, 7.0 }
 0xa17   : > { %v1847_v56 = vpop.permute.xlu0 %1846  ;;  %v1849_v45 = vpop.permute.xlu1 %1848 }
 0xa18   : > { %2247 = vmatprep.subr.bf16.mxu0 %v1847_v56  ;;  %v1858_v55 = vsel %vm690_vm4, %v1849_v45, 0 }
 0xa19   : > { %2248 = vmatpush3.bf16.msra.mxu0 %v1847_v56  ;;  %v755_v56 = vmin.f32 %v752_v13, 7.0 }
 0xa1a   : > { %v2497_v50 = vpop.eup %2496  ;;  %2266 = vmatprep.subr.msk.bf16.mxu0 %vm690_vm4, %v1849_v45 }
 0xa1b   : > { %v1823_v47 = vmul.f32 %v2497_v50, %v2491_v29  ;;  %v2393_v36 = vpop.permute.xlu1 %2392  ;;  %v2398_v45 = vpop.permute.xlu0 %2397 }
 0xa1c   : > { %v2395_v9 = vunpack.i.h.bf16 %v2393_v36  ;;  %v2394_v50 = vunpack.i.l.bf16 %v2393_v36 }
 0xa1d   : > { %2250 = vmatpush3.bf16.msra.mxu0 %v1858_v55  ;;  %v1826_v21 = vmul.f32 9.171138, %v1823_v47 }
 0xa1e   : > { %v2499_v18 = vpop.eup %2498 }
 0xa1f   : > { %v2501_v14 = vpop.eup %2500  ;;  %v1824_v59 = vmul.f32 %v2499_v18, %v2493_v39  ;;  %v1832_v28 = vmax.f32 %v1826_v21, -8.0  ;;  %v1934_v3 = vpop.permute.xlu1 %1933  ;;  %v2283_v21 = vround.rtne.f32 %v754_v4  ;;  %v2284_v18 = vround.rtne.f32 %v755_v56 }
 0xa20   : > { %v1825_v30 = vmul.f32 %v2501_v14, %v2495_v35  ;;  %v1964_v8 = vsel %vm395_vm0, %v2285_v63, %v1934_v3 }
 0xa21   : > { %v1827_v60 = vmul.f32 9.171138, %v1824_v59  ;;  %v1835_v11 = vmin.f32 %v1832_v28, 7.0  ;;  %v2400_v59 = vunpack.i.h.bf16 %v2398_v45  ;;  %v2399_v28 = vunpack.i.l.bf16 %v2398_v45 }
 0xa22   : > { %v1828_v44 = vmul.f32 9.171138, %v1825_v30  ;;  %v1963_v30 = vsel %vm395_vm0, %v2284_v18, %v2395_v9 }
 0xa23   : > { %v1833_v0 = vmax.f32 %v1827_v60, -8.0  ;;  %v2322_v2 = vround.rtne.f32 %v1835_v11  ;;  %v1946_v43 = vpop.permute.xlu1 %1945  ;;  %v1962_v60 = vsel %vm395_vm0, %v2283_v21, %v2394_v50 }
 0xa24   : > { %v1834_v1 = vmax.f32 %v1828_v44, -8.0  ;;  %v1968_v10 = vsel %vm1965_vm6, %v1964_v8, %v1946_v43 }
 0xa25   : > { %v1836_v61 = vmin.f32 %v1833_v0, 7.0  ;;  %v2325_v37 = vround.rtne.f32 %v2322_v2 }
 0xa26   : > { %v1837_v40 = vmin.f32 %v1834_v1, 7.0  ;;  %v1966_v1 = vsel %vm1965_vm6, %v1962_v60, %v2399_v28 }
 0xa27   : > { %v2323_v58 = vround.rtne.f32 %v1836_v61  ;;  %v1967_v61 = vsel %vm1965_vm6, %v1963_v30, %v2400_v59 }
 0xa28   : > { %v2324_v7 = vround.rtne.f32 %v1837_v40 }
 0xa29   : > { %v2326_v38 = vround.rtne.f32 %v2323_v58 }
 0xa2a   : > { %v2327_v12 = vround.rtne.f32 %v2324_v7 }
 0xa2b   : > { %v1844_v49 = vpack.c.bf16 %v2326_v38, %v2325_v37 }
 0xa2c   : > { %v1845_v15 = vpack.c.bf16 %v2327_v12, %v2327_v12 }
 0xa2d   : > { %2251 = vmatprep.mubr.msk.bf16.mxu0 %vm627_vm2, %v1844_v49 }
 0xa2e   : > { %2252 = vmatmul.mubr.msk.bf16.vlgmr.msra.gmra.mrb[12].mxu0 %vm627_vm2, %v1845_v15 }
 0xb01   : > { %v2253_v34 = vpop.f32.mrb[12].mxu0 }
 0xb02   : > { %v1910_v16 = vmul.f32 0.0121752005, %v2253_v34  ;;  %v1894_v17 = vpop.f32.mrb[13].mxu0 }
 0xb03   : > { %v1908_v19 = vmul.f32 0.0121752005, %v1894_v17  ;;  %v2254_v48 = vpop.f32.mrb[14].mxu0 }
 0xb04   : > { %v1913_v22 = vmul.f32 9.070218, %v1910_v16  ;;  %v1897_v53 = vpop.f32.mrb[15].mxu0 }
 0xb05   : > { %v1911_v23 = vmul.f32 9.070218, %v1908_v19  ;;  %v1909_v24 = vmul.f32 0.0121752005, %v1897_v53 }
 0xb06   : > { %v1919_v62 = vmax.f32 %v1913_v22, -8.0 }
 0xb07   : > { %v1917_v25 = vmax.f32 %v1911_v23, -8.0  ;;  %v1912_v26 = vmul.f32 9.070218, %v1909_v24 }
 0xb08   : > { %v1922_v51 = vmin.f32 %v1919_v62, 7.0 }
 0xb09   : > { %v1920_v27 = vmin.f32 %v1917_v25, 7.0  ;;  %v1918_v20 = vmax.f32 %v1912_v26, -8.0 }
 0xb0a   : > { %v2330_v54 = vround.rtne.f32 %v1922_v51 }
 0xb0b   : > { %v1921_v29 = vmin.f32 %v1918_v20, 7.0  ;;  %v2328_v31 = vround.rtne.f32 %v1920_v27 }
 0xb0c   : > { %1957 = vrot.lane.b32.xlu1 %v2330_v54, %s2535_s11 }
 0xb0d   : > { %v2329_v39 = vround.rtne.f32 %v1921_v29 }
 0xb0f   : > { %v2401_v35 = vpack.i.bf16 %v2329_v39, %v2328_v31 }
 0xb11   : > { %2402 = vrot.lane.b32.xlu0 %v2401_v35, %s2535_s11 }
 0xb7e   : > { %v1958_v55 = vpop.permute.xlu1 %1957 }
 0xb7f   : > { %v1972_v47 = vsel %vm1969_vm5, %v1968_v10, %v1958_v55 }
 0xb80   : > { %v2146_v14 = vpack.c.bf16 %v1972_v47, %v1972_v47 }
 0xb82   : > { %1990 = vst.msk [vmem:[%s371_s20 + $0x8] sm:$0x1] %vm1989_vm7, %v2146_v14 }
 0xb83   : > { %v2403_v11 = vpop.permute.xlu0 %2402 }
 0xb84   : > { %v2405_v44 = vunpack.i.h.bf16 %v2403_v11  ;;  %v2404_v0 = vunpack.i.l.bf16 %v2403_v11 }
 0xb86   : > { %v1970_v2 = vsel %vm1969_vm5, %v1966_v1, %v2404_v0  ;;  %v1971_v40 = vsel %vm1969_vm5, %v1967_v61, %v2405_v44 }
 0xb87   : > { %v2144_v58 = vpack.c.bf16 %v1970_v2, %v1970_v2  ;;  %v2145_v7 = vpack.c.bf16 %v1971_v40, %v1971_v40 }
 0xb89   : > { %1987 = vst.msk [vmem:[%s371_s20] sm:$0xf] %vm1986_vm8, %v2144_v58  ;;  %1988 = vst.msk [vmem:[%s371_s20 + $0x4] sm:$0xf] %vm1986_vm8, %v2145_v7 }
 0xb8a PF: > { %s17_s26 = sadd.s32 1, %s2528_s26   ;;  %s3115_s24 = smov %s2524_s25 }
 0xb8b   : > { %p14_p5 = scmp.ge.s32.totalorder %s17_s26, 4   ;;  %s3116_s25 = smov %s3118_s27 }
 0xb8d   :  { %16 = sbr.rel (!%p14_p5) target bundleno = 2 (0x2), region = 84 }

// kernel: _lambda_.19
= control target key start
LH: loop header
LB: loop body
LE: loop exit
PB: predicated region body
PF: predicated region fallthrough
CT: control target
= control target key end

     0   :  { %vm29_vm0 = vcmask 523264   ;;  %vm42_vm1 = vcmask 519168   ;;  %v417_v42 = vmov 0   ;;  %vm343_vm2 = vcmask 1043456   ;;  %s572_s0 = inlined_call_operand.vmem [shape: f32[36,64], index: 0, kind: input, shape index: {}]   ;;  %s573_s1 = inlined_call_operand.vmem [shape: bf16[64,192], index: 1, kind: input, shape index: {}]   ;;  %s574_s4 = inlined_call_operand.vmem [shape: f32[1,64], index: 4, kind: input, shape index: {}]   ;;  %s575_s5 = inlined_call_operand.vmem [shape: f32[1,64], index: 5, kind: input, shape index: {}]   ;;  %s576_s2 = inlined_call_operand.vmem [shape: f32[1,192], index: 2, kind: input, shape index: {}]   ;;  %s577_s3 = inlined_call_operand.vmem [shape: f32[1,192], index: 3, kind: input, shape index: {}]   ;;  %s578_s6 = inlined_call_operand.vmem [shape: bf16[36,192], index: 6, kind: output, shape index: {}]  }
   0x1   :  { %v26_v0 = vld [vmem:[%s572_s0 + $0x10] sm:$0xff]  ;;  %v27_v1 = vld [vmem:[%s572_s0 + $0x18] sm:$0xff]  ;;  %v24_v2 = vld [vmem:[%s572_s0] sm:$0xff]  ;;  %248 = vmatprep.mubr.bf16.mxu1 %v417_v42  ;;  %238 = vmatprep.mubr.bf16.mxu0 %v417_v42  ;;  %vm344_vm3 = vcmask 523268   ;;  %vm350_vm5 = vcmask 1041408   ;;  %vm351_vm6 = vcmask 521220  }
   0x2   :  { %v36_v3 = vsel %vm29_vm0, %v26_v0, 0.0  ;;  %v30_v4 = vsel %vm29_vm0, %v24_v2, 0.0  ;;  %v25_v5 = vld [vmem:[%s572_s0 + $0x8] sm:$0xff]  ;;  %v39_v6 = vsel %vm29_vm0, %v27_v1, 0.0  ;;  %v28_v8 = vld [vmem:[%s572_s0 + $0x20] sm:$0xf]  ;;  %vm545_vm4 = vmor %vm344_vm3, %vm343_vm2 }
   0x3   :  { %37 = vadd.xlane.f32.xlu0 %v36_v3  ;;  %31 = vadd.xlane.f32.xlu1 %v30_v4  ;;  %v33_v7 = vsel %vm29_vm0, %v25_v5, 0.0  ;;  %v43_v9 = vsel %vm42_vm1, %v28_v8, 0.0  ;;  %v395_v35 = vld [vmem:[%s573_s1 + $0x4] ss:$8 sps:$4 sm:$0xff]   ;;  %v397_v36 = vld [vmem:[%s573_s1] ss:$8 sps:$4 sm:$0xff]   ;;  %vm352_vm7 = vmor %vm351_vm6, %vm350_vm5 }
   0x4   :  { %381 = vmatprep.subr.bf16.mxu1 %v395_v35  ;;  %206 = vmatprep.subr.bf16.mxu0 %v395_v35  ;;  %v398_v37 = vld [vmem:[%s573_s1 + $0x14] ss:$8 sps:$4 sm:$0xff]   ;;  %v400_v38 = vld [vmem:[%s573_s1 + $0x10] ss:$8 sps:$4 sm:$0xff]   ;;  %v401_v39 = vld [vmem:[%s573_s1 + $0x24] ss:$8 sps:$4 sm:$0xff]  }
   0x5   :  { %385 = vmatpush1.bf16.msra.mxu1 %v397_v36  ;;  %207 = vmatpush1.bf16.msra.mxu0 %v397_v36  ;;  %v403_v40 = vld [vmem:[%s573_s1 + $0x20] ss:$8 sps:$4 sm:$0xff]   ;;  %v404_v41 = vld [vmem:[%s573_s1 + $0x34] ss:$8 sps:$4 sm:$0xff]   ;;  %v406_v43 = vld [vmem:[%s573_s1 + $0x30] ss:$8 sps:$4 sm:$0xff]  }
   0x6   :  { %382 = vmatprep.subr.bf16.mxu1 %v398_v37  ;;  %208 = vmatprep.subr.bf16.mxu0 %v398_v37  ;;  %v358_v60 = vld [vmem:[%s574_s4] ss:$0 sm:$0xff] }
   0x7   :  { %40 = vadd.xlane.f32.xlu0 %v39_v6  ;;  %34 = vadd.xlane.f32.xlu1 %v33_v7  ;;  %v359_v62 = vld [vmem:[%s575_s5] ss:$0 sm:$0xff] }
   0x9   :  { %386 = vmatpush1.bf16.msra.mxu1 %v400_v38  ;;  %209 = vmatpush1.bf16.msra.mxu0 %v400_v38 }
   0xa   :  { %383 = vmatprep.subr.bf16.mxu1 %v401_v39  ;;  %210 = vmatprep.subr.bf16.mxu0 %v401_v39 }
   0xb   :  { %44 = vadd.xlane.f32.xlu0 %v43_v9 }
   0xd   :  { %387 = vmatpush1.bf16.msra.mxu1 %v403_v40  ;;  %211 = vmatpush1.bf16.msra.mxu0 %v403_v40  ;;  %v269_v40 = vlaneseq }
   0xe   :  { %384 = vmatprep.subr.bf16.mxu1 %v404_v41  ;;  %212 = vmatprep.subr.bf16.mxu0 %v404_v41 }
   0xf   :  { %v270_v41 = vshrl.u32 %v269_v40, 7 }
  0x11   :  { %388 = vmatpush1.bf16.msra.mxu1 %v406_v43  ;;  %213 = vmatpush1.bf16.msra.mxu0 %v406_v43  ;;  %v271_v43 = vsub.s32 0, %v270_v41 }
  0x90   :  { %v38_v10 = vpop.xlane.xlu0 %37  ;;  %v32_v11 = vpop.xlane.xlu1 %31 }
  0x91   :  { %v49_v12 = vmul.f32 0.015625, %v38_v10  ;;  %v47_v13 = vmul.f32 0.015625, %v32_v11 }
  0x93   :  { %v473_v14 = vsub.f32 %v26_v0, %v49_v12  ;;  %v475_v15 = vsub.f32 %v24_v2, %v47_v13 }
  0x94   :  { %v41_v16 = vpop.xlane.xlu0 %40  ;;  %v35_v17 = vpop.xlane.xlu1 %34 }
  0x95   :  { %v50_v18 = vmul.f32 0.015625, %v41_v16  ;;  %v59_v19 = vmul.f32 %v473_v14, %v473_v14  ;;  %v48_v20 = vmul.f32 0.015625, %v35_v17  ;;  %v57_v21 = vmul.f32 %v475_v15, %v475_v15 }
  0x97   :  { %v481_v22 = vsub.f32 %v27_v1, %v50_v18  ;;  %v68_v23 = vsel %vm29_vm0, %v59_v19, 0.0  ;;  %v484_v24 = vsub.f32 %v25_v5, %v48_v20  ;;  %v62_v28 = vsel %vm29_vm0, %v57_v21, 0.0 }
  0x98   :  { %v45_v25 = vpop.xlane.xlu0 %44  ;;  %69 = vadd.xlane.f32.xlu1 %v68_v23 }
  0x99   :  { %v51_v26 = vmul.f32 0.015625, %v45_v25  ;;  %v60_v27 = vmul.f32 %v481_v22, %v481_v22  ;;  %v58_v29 = vmul.f32 %v484_v24, %v484_v24 }
  0x9b   :  { %v491_v30 = vsub.f32 %v28_v8, %v51_v26  ;;  %v71_v31 = vsel %vm29_vm0, %v60_v27, 0.0  ;;  %v65_v33 = vsel %vm29_vm0, %v58_v29, 0.0 }
  0x9c   :  { %72 = vadd.xlane.f32.xlu0 %v71_v31  ;;  %63 = vadd.xlane.f32.xlu1 %v62_v28 }
  0x9d   :  { %v61_v32 = vmul.f32 %v491_v30, %v491_v30 }
  0x9f   :  { %v74_v34 = vsel %vm42_vm1, %v61_v32, 0.0 }
  0xa0   :  { %75 = vadd.xlane.f32.xlu1 %v74_v34  ;;  %66 = vadd.xlane.f32.xlu0 %v65_v33 }
 0x125   :  { %v70_v44 = vpop.xlane.xlu1 %69 }
 0x126   :  { %v79_v45 = vmul.f32 0.015625, %v70_v44  ;;  %v267_v44 = vld [vmem:[%s576_s2] sm:$0x3] }
 0x128   :  { %v84_v46 = vadd.f32 1e-06, %v79_v45  ;;  %v275_v45 = vsub.s32 1, %v270_v41 }
 0x129   :  { %v73_v47 = vpop.xlane.xlu0 %72  ;;  %v64_v48 = vpop.xlane.xlu1 %63 }
 0x12a   :  { %407 = vrsqrt.f32 %v84_v46  ;;  %v80_v49 = vmul.f32 0.015625, %v73_v47  ;;  %v77_v50 = vmul.f32 0.015625, %v64_v48  ;;  %v289_v46 = vld [vmem:[%s577_s3] sm:$0x3]  ;;  %v276_v47 = vrot.slane %v267_v44, %v275_v45 }
 0x12b   :  { %v294_v48 = vrot.slane %v289_v46, %v271_v43 }
 0x12c   :  { %v85_v51 = vadd.f32 1e-06, %v80_v49  ;;  %v82_v52 = vadd.f32 1e-06, %v77_v50  ;;  %v298_v50 = vrot.slane %v289_v46, %v275_v45 }
 0x12d   :  { %v67_v53 = vpop.xlane.xlu0 %66  ;;  %v76_v54 = vpop.xlane.xlu1 %75 }
 0x12e   :  { %409 = vrsqrt.f32 %v85_v51  ;;  %v78_v55 = vmul.f32 0.015625, %v67_v53  ;;  %v81_v56 = vmul.f32 0.015625, %v76_v54 }
 0x12f   :  { %411 = vrsqrt.f32 %v82_v52 }
 0x130   :  { %v83_v57 = vadd.f32 1e-06, %v78_v55  ;;  %v86_v58 = vadd.f32 1e-06, %v81_v56 }
 0x132   :  { %413 = vrsqrt.f32 %v83_v57 }
 0x133   :  { %415 = vrsqrt.f32 %v86_v58 }
 0x134   :  { %v408_v59 = vpop.eup %407 }
 0x135   :  { %v94_v61 = vmul.f32 %v408_v59, %v473_v14 }
 0x137   :  { %v106_v63 = vmul.f32 %v358_v60, %v94_v61 }
 0x138   :  { %v410_v0 = vpop.eup %409 }
 0x139   :  { %v412_v1 = vpop.eup %411  ;;  %v95_v2 = vmul.f32 %v410_v0, %v481_v22  ;;  %v118_v3 = vadd.f32 %v359_v62, %v106_v63 }
 0x13a   :  { %v92_v4 = vmul.f32 %v412_v1, %v475_v15 }
 0x13b   :  { %v107_v5 = vmul.f32 %v358_v60, %v95_v2  ;;  %v123_v6 = vmul.f32 9.002364, %v118_v3 }
 0x13c   :  { %v414_v7 = vpop.eup %413  ;;  %v104_v8 = vmul.f32 %v358_v60, %v92_v4 }
 0x13d   :  { %v416_v9 = vpop.eup %415  ;;  %v93_v10 = vmul.f32 %v414_v7, %v484_v24  ;;  %v119_v11 = vadd.f32 %v359_v62, %v107_v5  ;;  %v133_v12 = vmax.f32 %v123_v6, -8.0 }
 0x13e   :  { %v96_v13 = vmul.f32 %v416_v9, %v491_v30  ;;  %v116_v14 = vadd.f32 %v359_v62, %v104_v8 }
 0x13f   :  { %v124_v16 = vmul.f32 9.002364, %v119_v11  ;;  %v105_v17 = vmul.f32 %v358_v60, %v93_v10  ;;  %v138_v21 = vmin.f32 %v133_v12, 7.0 }
 0x140   :  { %v121_v18 = vmul.f32 9.002364, %v116_v14  ;;  %v108_v19 = vmul.f32 %v358_v60, %v96_v13 }
 0x141   :  { %v134_v20 = vmax.f32 %v124_v16, -8.0  ;;  %v117_v22 = vadd.f32 %v359_v62, %v105_v17  ;;  %v391_v28 = vround.rtne.f32 %v138_v21 }
 0x142   :  { %v131_v15 = vmax.f32 %v121_v18, -8.0  ;;  %v120_v23 = vadd.f32 %v359_v62, %v108_v19 }
 0x143   :  { %v139_v25 = vmin.f32 %v134_v20, 7.0  ;;  %v122_v26 = vmul.f32 9.002364, %v117_v22 }
 0x144   :  { %v125_v27 = vmul.f32 9.002364, %v120_v23  ;;  %v136_v31 = vmin.f32 %v131_v15, 7.0 }
 0x145   :  { %v392_v29 = vround.rtne.f32 %v139_v25  ;;  %v132_v24 = vmax.f32 %v122_v26, -8.0 }
 0x146   :  { %v135_v32 = vmax.f32 %v125_v27, -8.0  ;;  %v389_v35 = vround.rtne.f32 %v136_v31 }
 0x147   :  { %v147_v33 = vpack.c.bf16 %v392_v29, %v391_v28  ;;  %v137_v30 = vmin.f32 %v132_v24, 7.0 }
 0x148   :  { %v140_v34 = vmin.f32 %v135_v32, 7.0 }
 0x149   :  { %369 = vmatmul.mubr.msk.bf16.vlgmr.msra.gmra.mrb[0].mxu1 %vm29_vm0, %v147_v33  ;;  %v390_v36 = vround.rtne.f32 %v137_v30 }
 0x14a   :  { %258 = vmatprep.mubr.bf16.mxu1 %v417_v42  ;;  %v393_v38 = vround.rtne.f32 %v140_v34  ;;  %v272_v42 = vrot.slane %v267_v44, %v271_v43 }
 0x14b   :  { %v146_v37 = vpack.c.bf16 %v390_v36, %v389_v35 }
 0x14c   :  { %v148_v39 = vpack.c.bf16 %v393_v38, %v393_v38 }
 0x14d   :  { %368 = vmatmul.mubr.msk.bf16.vlgmr.msra.gmra.mrb[0].mxu0 %vm29_vm0, %v146_v37 }
 0x151   :  { %370 = vmatmul.mubr.msk.bf16.gmra.mrb[4].mxu1 %vm29_vm0, %v148_v39 }
 0x21c   :  { %v250_v49 = vpop.f32.mrb[0].mxu1 }
 0x21d   :  { %v283_v51 = vmul.f32 %v272_v42, %v250_v49  ;;  %v252_v52 = vpop.f32.mrb[1].mxu1 }
 0x21e   :  { %v284_v53 = vmul.f32 %v276_v47, %v252_v52  ;;  %v254_v54 = vpop.f32.mrb[2].mxu1 }
 0x21f   :  { %v305_v55 = vadd.f32 %v294_v48, %v283_v51  ;;  %v285_v56 = vmul.f32 %v272_v42, %v254_v54  ;;  %v256_v57 = vpop.f32.mrb[3].mxu1 }
 0x220   :  { %v306_v58 = vadd.f32 %v298_v50, %v284_v53  ;;  %v286_v59 = vmul.f32 %v276_v47, %v256_v57  ;;  %v240_v60 = vpop.f32.mrb[0].mxu0 }
 0x221   :  { %v307_v62 = vadd.f32 %v294_v48, %v285_v56  ;;  %v279_v63 = vmul.f32 %v272_v42, %v240_v60  ;;  %v242_v0 = vpop.f32.mrb[1].mxu0 }
 0x222   :  { %v378_v1 = vpack.c.bf16 %v306_v58, %v305_v55  ;;  %v308_v2 = vadd.f32 %v298_v50, %v286_v59  ;;  %v280_v3 = vmul.f32 %v276_v47, %v242_v0  ;;  %v244_v4 = vpop.f32.mrb[2].mxu0 }
 0x223   :  { %v301_v5 = vadd.f32 %v294_v48, %v279_v63  ;;  %v281_v6 = vmul.f32 %v272_v42, %v244_v4  ;;  %v246_v7 = vpop.f32.mrb[3].mxu0 }
 0x224   :  { %348 = vst.msk [vmem:[%s578_s6 + $0x10] sm:$0xff] %vm545_vm4, %v378_v1  ;;  %v379_v8 = vpack.c.bf16 %v308_v2, %v307_v62  ;;  %v302_v9 = vadd.f32 %v298_v50, %v280_v3  ;;  %v282_v10 = vmul.f32 %v276_v47, %v246_v7  ;;  %v260_v11 = vpop.f32.mrb[4].mxu1 }
 0x225   :  { %v303_v12 = vadd.f32 %v294_v48, %v281_v6  ;;  %v287_v13 = vmul.f32 %v272_v42, %v260_v11  ;;  %v262_v14 = vpop.f32.mrb[5].mxu1 }
 0x226   :  { %349 = vst.msk [vmem:[%s578_s6 + $0x18] sm:$0xff] %vm545_vm4, %v379_v8  ;;  %v376_v16 = vpack.c.bf16 %v302_v9, %v301_v5  ;;  %v304_v17 = vadd.f32 %v298_v50, %v282_v10  ;;  %v288_v18 = vmul.f32 %v276_v47, %v262_v14  ;;  %v264_v19 = vpop.f32.mrb[6].mxu1 }
 0x227   :  { %v309_v20 = vadd.f32 %v294_v48, %v287_v13  ;;  %v265_v21 = vpop.f32.mrb[7].mxu1 }
 0x228   :  { %346 = vst.msk [vmem:[%s578_s6] sm:$0xff] %vm545_vm4, %v376_v16  ;;  %v377_v22 = vpack.c.bf16 %v304_v17, %v303_v12  ;;  %v310_v15 = vadd.f32 %v298_v50, %v288_v18 }
 0x22a   :  { %347 = vst.msk [vmem:[%s578_s6 + $0x8] sm:$0xff] %vm545_vm4, %v377_v22  ;;  %v380_v23 = vpack.c.bf16 %v310_v15, %v309_v20 }
 0x22c   :  { %353 = vst.msk [vmem:[%s578_s6 + $0x20] sm:$0x33] %vm352_vm7, %v380_v23 }

// kernel: _lambda_.24
= control target key start
LH: loop header
LB: loop body
LE: loop exit
PB: predicated region body
PF: predicated region fallthrough
CT: control target
= control target key end

     0   :  { %vm25_vm0 = vcmask 517120   ;;  %v195_v8 = vmov 0.0   ;;  %vm196_vm1 = vmmov 0   ;;  %vm94_vm2 = vcmask 523264   ;;  %s262_s0 = inlined_call_operand.vmem [shape: f32[2,64], index: 0, kind: input, shape index: {}]   ;;  %s263_s1 = inlined_call_operand.vmem [shape: bf16[64,10], index: 1, kind: input, shape index: {}]   ;;  %s264_s4 = inlined_call_operand.vmem [shape: f32[1,64], index: 4, kind: input, shape index: {}]   ;;  %s265_s5 = inlined_call_operand.vmem [shape: f32[1,64], index: 5, kind: input, shape index: {}]   ;;  %s266_s2 = inlined_call_operand.vmem [shape: f32[1,10], index: 2, kind: input, shape index: {}]   ;;  %s267_s3 = inlined_call_operand.vmem [shape: f32[1,10], index: 3, kind: input, shape index: {}]   ;;  %s268_s6 = inlined_call_operand.vmem [shape: f32[2,10], index: 6, kind: output, shape index: {}]  }
   0x1   :  { %v24_v0 = vld [vmem:[%s262_s0] sm:$0x3]  ;;  %174 = vmatprep.subr.bf16.mxu0 %v195_v8  ;;  %v190_v9 = vld [vmem:[%s263_s1 + $0x8] sm:$0xff]   ;;  %182 = vmatprep.mubr.msk.bf16.mxu0 %vm196_vm1, %v195_v8  ;;  %v191_v10 = vld [vmem:[%s263_s1 + $0x10] sm:$0xff]   ;;  %vm154_vm3 = vcmask 74752  }
   0x2   :  { %v26_v1 = vsel %vm25_vm0, %v24_v0, 0.0  ;;  %v189_v7 = vld [vmem:[%s263_s1] sm:$0xff]   ;;  %v192_v11 = vld [vmem:[%s263_s1 + $0x18] sm:$0xff]  }
   0x3   :  { %27 = vadd.xlane.f32.xlu0 %v26_v1  ;;  %175 = vmatpush3.bf16.msra.mxu0 %v189_v7  ;;  %v160_v16 = vld [vmem:[%s264_s4] ss:$0 sm:$0xff] }
   0x4   :  { %176 = vmatprep.subr.bf16.mxu0 %v195_v8  ;;  %v161_v18 = vld [vmem:[%s265_s5] ss:$0 sm:$0xff] }
   0x5   :  { %v167_v26 = vld [vmem:[%s266_s2] ss:$0 sm:$0xff] }
   0x6   :  { %v168_v28 = vld [vmem:[%s267_s3] ss:$0 sm:$0xff] }
   0x7   :  { %177 = vmatpush3.bf16.msra.mxu0 %v190_v9 }
   0x8   :  { %178 = vmatprep.subr.bf16.mxu0 %v195_v8 }
   0xb   :  { %179 = vmatpush3.bf16.msra.mxu0 %v191_v10 }
   0xc   :  { %180 = vmatprep.subr.bf16.mxu0 %v195_v8 }
   0xf   :  { %181 = vmatpush3.bf16.msra.mxu0 %v192_v11 }
  0x90   :  { %v28_v2 = vpop.xlane.xlu0 %27 }
  0x91   :  { %v30_v3 = vmul.f32 0.015625, %v28_v2 }
  0x93   :  { %v31_v4 = vsub.f32 %v24_v0, %v30_v3 }
  0x95   :  { %v32_v5 = vmul.f32 %v31_v4, %v31_v4 }
  0x97   :  { %v33_v6 = vsel %vm25_vm0, %v32_v5, 0.0 }
  0x98   :  { %34 = vadd.xlane.f32.xlu0 %v33_v6 }
 0x125   :  { %v35_v12 = vpop.xlane.xlu0 %34 }
 0x126   :  { %v36_v13 = vmul.f32 0.015625, %v35_v12 }
 0x128   :  { %v37_v14 = vadd.f32 1e-06, %v36_v13 }
 0x12a   :  { %193 = vrsqrt.f32 %v37_v14 }
 0x134   :  { %v194_v15 = vpop.eup %193 }
 0x135   :  { %v39_v17 = vmul.f32 %v194_v15, %v31_v4 }
 0x137   :  { %v47_v19 = vmul.f32 %v160_v16, %v39_v17 }
 0x139   :  { %v55_v20 = vadd.f32 %v161_v18, %v47_v19 }
 0x13b   :  { %v56_v21 = vmul.f32 9.082127, %v55_v20 }
 0x13d   :  { %v58_v22 = vmax.f32 %v56_v21, -128.0 }
 0x13f   :  { %v59_v23 = vmin.f32 %v58_v22, 127.0 }
 0x141   :  { %v186_v24 = vround.rtne.f32 %v59_v23 }
 0x143   :  { %v61_v25 = vpack.c.bf16 %v186_v24, %v186_v24 }
 0x145   :  { %183 = vmatmul.mubr.msk.bf16.vlgmr.msra.gmra.mrb[0].mxu0 %vm94_vm2, %v61_v25 }
 0x218   :  { %v132_v27 = vpop.f32.mrb[0].mxu0 }
 0x219   :  { %v145_v29 = vmul.f32 %v167_v26, %v132_v27  ;;  %v184_v30 = vpop.f32.mrb[1].mxu0 }
 0x21a   :  { %v135_v31 = vpop.f32.mrb[2].mxu0 }
 0x21b   :  { %v153_v32 = vadd.f32 %v168_v28, %v145_v29  ;;  %v185_v33 = vpop.f32.mrb[3].mxu0 }
 0x21d   :  { %155 = vst.msk [vmem:[%s268_s6] sm:$0x3] %vm154_vm3, %v153_v32 }

// kernel: _lambda_.22
= control target key start
LH: loop header
LB: loop body
LE: loop exit
PB: predicated region body
PF: predicated region fallthrough
CT: control target
= control target key end

     0   :  { %vm29_vm0 = vcmask 523264   ;;  %vm42_vm1 = vcmask 519168   ;;  %v581_v42 = vmov 0   ;;  %s822_s0 = inlined_call_operand.vmem [shape: f32[36,64], index: 0, kind: input, shape index: {}]   ;;  %s823_s1 = inlined_call_operand.vmem [shape: bf16[64,256], index: 1, kind: input, shape index: {}]   ;;  %s824_s4 = inlined_call_operand.vmem [shape: f32[1,64], index: 4, kind: input, shape index: {}]   ;;  %s825_s5 = inlined_call_operand.vmem [shape: f32[1,64], index: 5, kind: input, shape index: {}]   ;;  %s826_s2 = inlined_call_operand.vmem [shape: f32[1,256], index: 2, kind: input, shape index: {}]   ;;  %s827_s3 = inlined_call_operand.vmem [shape: f32[1,256], index: 3, kind: input, shape index: {}]   ;;  %s828_s6 = inlined_call_operand.vmem [shape: bf16[36,256], index: 6, kind: output, shape index: {}]  }
   0x1   :  { %v26_v0 = vld [vmem:[%s822_s0 + $0x10] sm:$0xff]  ;;  %v27_v1 = vld [vmem:[%s822_s0 + $0x18] sm:$0xff]  ;;  %v24_v2 = vld [vmem:[%s822_s0] sm:$0xff]  ;;  %248 = vmatprep.mubr.bf16.mxu1 %v581_v42  ;;  %238 = vmatprep.mubr.bf16.mxu0 %v581_v42 }
   0x2   :  { %v36_v3 = vsel %vm29_vm0, %v26_v0, 0.0  ;;  %v30_v4 = vsel %vm29_vm0, %v24_v2, 0.0  ;;  %v25_v5 = vld [vmem:[%s822_s0 + $0x8] sm:$0xff]  ;;  %v39_v6 = vsel %vm29_vm0, %v27_v1, 0.0  ;;  %v28_v8 = vld [vmem:[%s822_s0 + $0x20] sm:$0xf] }
   0x3   :  { %37 = vadd.xlane.f32.xlu0 %v36_v3  ;;  %31 = vadd.xlane.f32.xlu1 %v30_v4  ;;  %v33_v7 = vsel %vm29_vm0, %v25_v5, 0.0  ;;  %v43_v9 = vsel %vm42_vm1, %v28_v8, 0.0  ;;  %v539_v35 = vld [vmem:[%s823_s1 + $0x4] ss:$8 sps:$4 sm:$0xff]   ;;  %v541_v36 = vld [vmem:[%s823_s1] ss:$8 sps:$4 sm:$0xff]  }
   0x4   :  { %515 = vmatprep.subr.bf16.mxu1 %v539_v35  ;;  %206 = vmatprep.subr.bf16.mxu0 %v539_v35  ;;  %v542_v37 = vld [vmem:[%s823_s1 + $0x14] ss:$8 sps:$4 sm:$0xff]   ;;  %v544_v38 = vld [vmem:[%s823_s1 + $0x10] ss:$8 sps:$4 sm:$0xff]   ;;  %v545_v39 = vld [vmem:[%s823_s1 + $0x24] ss:$8 sps:$4 sm:$0xff]  }
   0x5   :  { %519 = vmatpush1.bf16.msra.mxu1 %v541_v36  ;;  %207 = vmatpush1.bf16.msra.mxu0 %v541_v36  ;;  %v547_v40 = vld [vmem:[%s823_s1 + $0x20] ss:$8 sps:$4 sm:$0xff]   ;;  %v548_v41 = vld [vmem:[%s823_s1 + $0x34] ss:$8 sps:$4 sm:$0xff]   ;;  %v550_v43 = vld [vmem:[%s823_s1 + $0x30] ss:$8 sps:$4 sm:$0xff]  }
   0x6   :  { %516 = vmatprep.subr.bf16.mxu1 %v542_v37  ;;  %208 = vmatprep.subr.bf16.mxu0 %v542_v37  ;;  %v492_v60 = vld [vmem:[%s824_s4] ss:$0 sm:$0xff] }
   0x7   :  { %40 = vadd.xlane.f32.xlu0 %v39_v6  ;;  %34 = vadd.xlane.f32.xlu1 %v33_v7  ;;  %v493_v62 = vld [vmem:[%s825_s5] ss:$0 sm:$0xff] }
   0x9   :  { %520 = vmatpush1.bf16.msra.mxu1 %v544_v38  ;;  %209 = vmatpush1.bf16.msra.mxu0 %v544_v38 }
   0xa   :  { %517 = vmatprep.subr.bf16.mxu1 %v545_v39  ;;  %210 = vmatprep.subr.bf16.mxu0 %v545_v39 }
   0xb   :  { %44 = vadd.xlane.f32.xlu0 %v43_v9 }
   0xd   :  { %521 = vmatpush1.bf16.msra.mxu1 %v547_v40  ;;  %211 = vmatpush1.bf16.msra.mxu0 %v547_v40  ;;  %v269_v40 = vlaneseq }
   0xe   :  { %518 = vmatprep.subr.bf16.mxu1 %v548_v41  ;;  %212 = vmatprep.subr.bf16.mxu0 %v548_v41 }
   0xf   :  { %v270_v41 = vshrl.u32 %v269_v40, 7 }
  0x11   :  { %522 = vmatpush1.bf16.msra.mxu1 %v550_v43  ;;  %213 = vmatpush1.bf16.msra.mxu0 %v550_v43  ;;  %v271_v43 = vsub.s32 0, %v270_v41 }
  0x90   :  { %v38_v10 = vpop.xlane.xlu0 %37  ;;  %v32_v11 = vpop.xlane.xlu1 %31 }
  0x91   :  { %v49_v12 = vmul.f32 0.015625, %v38_v10  ;;  %v47_v13 = vmul.f32 0.015625, %v32_v11 }
  0x93   :  { %v637_v14 = vsub.f32 %v26_v0, %v49_v12  ;;  %v639_v15 = vsub.f32 %v24_v2, %v47_v13 }
  0x94   :  { %v41_v16 = vpop.xlane.xlu0 %40  ;;  %v35_v17 = vpop.xlane.xlu1 %34 }
  0x95   :  { %v50_v18 = vmul.f32 0.015625, %v41_v16  ;;  %v59_v19 = vmul.f32 %v637_v14, %v637_v14  ;;  %v48_v20 = vmul.f32 0.015625, %v35_v17  ;;  %v57_v21 = vmul.f32 %v639_v15, %v639_v15 }
  0x97   :  { %v645_v22 = vsub.f32 %v27_v1, %v50_v18  ;;  %v68_v23 = vsel %vm29_vm0, %v59_v19, 0.0  ;;  %v648_v24 = vsub.f32 %v25_v5, %v48_v20  ;;  %v62_v28 = vsel %vm29_vm0, %v57_v21, 0.0 }
  0x98   :  { %v45_v25 = vpop.xlane.xlu0 %44  ;;  %69 = vadd.xlane.f32.xlu1 %v68_v23 }
  0x99   :  { %v51_v26 = vmul.f32 0.015625, %v45_v25  ;;  %v60_v27 = vmul.f32 %v645_v22, %v645_v22  ;;  %v58_v29 = vmul.f32 %v648_v24, %v648_v24 }
  0x9b   :  { %v655_v30 = vsub.f32 %v28_v8, %v51_v26  ;;  %v71_v31 = vsel %vm29_vm0, %v60_v27, 0.0  ;;  %v65_v33 = vsel %vm29_vm0, %v58_v29, 0.0 }
  0x9c   :  { %72 = vadd.xlane.f32.xlu0 %v71_v31  ;;  %63 = vadd.xlane.f32.xlu1 %v62_v28 }
  0x9d   :  { %v61_v32 = vmul.f32 %v655_v30, %v655_v30 }
  0x9f   :  { %v74_v34 = vsel %vm42_vm1, %v61_v32, 0.0 }
  0xa0   :  { %75 = vadd.xlane.f32.xlu1 %v74_v34  ;;  %66 = vadd.xlane.f32.xlu0 %v65_v33 }
 0x125   :  { %v70_v44 = vpop.xlane.xlu1 %69 }
 0x126   :  { %v79_v45 = vmul.f32 0.015625, %v70_v44  ;;  %v267_v44 = vld [vmem:[%s826_s2] sm:$0x3] }
 0x128   :  { %v84_v46 = vadd.f32 1e-06, %v79_v45  ;;  %v275_v45 = vsub.s32 1, %v270_v41 }
 0x129   :  { %v73_v47 = vpop.xlane.xlu0 %72  ;;  %v64_v48 = vpop.xlane.xlu1 %63 }
 0x12a   :  { %551 = vrsqrt.f32 %v84_v46  ;;  %v80_v49 = vmul.f32 0.015625, %v73_v47  ;;  %v77_v50 = vmul.f32 0.015625, %v64_v48  ;;  %v289_v46 = vld [vmem:[%s827_s3] sm:$0x3]  ;;  %v711_v47 = vrot.slane %v267_v44, %v275_v45 }
 0x12b   :  { %v713_v48 = vrot.slane %v289_v46, %v271_v43 }
 0x12c   :  { %v85_v51 = vadd.f32 1e-06, %v80_v49  ;;  %v82_v52 = vadd.f32 1e-06, %v77_v50  ;;  %v715_v50 = vrot.slane %v289_v46, %v275_v45 }
 0x12d   :  { %v67_v53 = vpop.xlane.xlu0 %66  ;;  %v76_v54 = vpop.xlane.xlu1 %75 }
 0x12e   :  { %553 = vrsqrt.f32 %v85_v51  ;;  %v78_v55 = vmul.f32 0.015625, %v67_v53  ;;  %v81_v56 = vmul.f32 0.015625, %v76_v54 }
 0x12f   :  { %555 = vrsqrt.f32 %v82_v52 }
 0x130   :  { %v83_v57 = vadd.f32 1e-06, %v78_v55  ;;  %v86_v58 = vadd.f32 1e-06, %v81_v56 }
 0x132   :  { %557 = vrsqrt.f32 %v83_v57 }
 0x133   :  { %559 = vrsqrt.f32 %v86_v58 }
 0x134   :  { %v552_v59 = vpop.eup %551 }
 0x135   :  { %v94_v61 = vmul.f32 %v552_v59, %v637_v14 }
 0x137   :  { %v106_v63 = vmul.f32 %v492_v60, %v94_v61 }
 0x138   :  { %v554_v0 = vpop.eup %553 }
 0x139   :  { %v556_v1 = vpop.eup %555  ;;  %v95_v2 = vmul.f32 %v554_v0, %v645_v22  ;;  %v118_v3 = vadd.f32 %v493_v62, %v106_v63 }
 0x13a   :  { %v92_v4 = vmul.f32 %v556_v1, %v639_v15 }
 0x13b   :  { %v107_v5 = vmul.f32 %v492_v60, %v95_v2  ;;  %v123_v6 = vmul.f32 9.099098, %v118_v3 }
 0x13c   :  { %v558_v7 = vpop.eup %557  ;;  %v104_v8 = vmul.f32 %v492_v60, %v92_v4 }
 0x13d   :  { %v560_v9 = vpop.eup %559  ;;  %v93_v10 = vmul.f32 %v558_v7, %v648_v24  ;;  %v119_v11 = vadd.f32 %v493_v62, %v107_v5  ;;  %v133_v12 = vmax.f32 %v123_v6, -8.0 }
 0x13e   :  { %v96_v13 = vmul.f32 %v560_v9, %v655_v30  ;;  %v116_v14 = vadd.f32 %v493_v62, %v104_v8 }
 0x13f   :  { %v124_v16 = vmul.f32 9.099098, %v119_v11  ;;  %v105_v17 = vmul.f32 %v492_v60, %v93_v10  ;;  %v138_v21 = vmin.f32 %v133_v12, 7.0 }
 0x140   :  { %v121_v18 = vmul.f32 9.099098, %v116_v14  ;;  %v108_v19 = vmul.f32 %v492_v60, %v96_v13 }
 0x141   :  { %v134_v20 = vmax.f32 %v124_v16, -8.0  ;;  %v117_v22 = vadd.f32 %v493_v62, %v105_v17  ;;  %v525_v28 = vround.rtne.f32 %v138_v21 }
 0x142   :  { %v131_v15 = vmax.f32 %v121_v18, -8.0  ;;  %v120_v23 = vadd.f32 %v493_v62, %v108_v19 }
 0x143   :  { %v139_v25 = vmin.f32 %v134_v20, 7.0  ;;  %v122_v26 = vmul.f32 9.099098, %v117_v22 }
 0x144   :  { %v125_v27 = vmul.f32 9.099098, %v120_v23  ;;  %v136_v31 = vmin.f32 %v131_v15, 7.0 }
 0x145   :  { %v526_v29 = vround.rtne.f32 %v139_v25  ;;  %v132_v24 = vmax.f32 %v122_v26, -8.0 }
 0x146   :  { %v135_v32 = vmax.f32 %v125_v27, -8.0  ;;  %v523_v35 = vround.rtne.f32 %v136_v31 }
 0x147   :  { %v147_v33 = vpack.c.bf16 %v526_v29, %v525_v28  ;;  %v137_v30 = vmin.f32 %v132_v24, 7.0 }
 0x148   :  { %v140_v34 = vmin.f32 %v135_v32, 7.0 }
 0x149   :  { %503 = vmatmul.mubr.msk.bf16.vlgmr.msra.gmra.mrb[0].mxu1 %vm29_vm0, %v147_v33  ;;  %v524_v36 = vround.rtne.f32 %v137_v30 }
 0x14a   :  { %258 = vmatprep.mubr.bf16.mxu1 %v581_v42  ;;  %v527_v38 = vround.rtne.f32 %v140_v34  ;;  %v709_v42 = vrot.slane %v267_v44, %v271_v43 }
 0x14b   :  { %v146_v37 = vpack.c.bf16 %v524_v36, %v523_v35 }
 0x14c   :  { %v148_v39 = vpack.c.bf16 %v527_v38, %v527_v38 }
 0x14d   :  { %502 = vmatmul.mubr.msk.bf16.vlgmr.msra.gmra.mrb[0].mxu0 %vm29_vm0, %v146_v37 }
 0x151   :  { %504 = vmatmul.mubr.msk.bf16.gmra.mrb[4].mxu1 %vm29_vm0, %v148_v39 }
 0x21c   :  { %v250_v49 = vpop.f32.mrb[0].mxu1 }
 0x21d   :  { %v283_v51 = vmul.f32 %v709_v42, %v250_v49  ;;  %v252_v52 = vpop.f32.mrb[1].mxu1 }
 0x21e   :  { %v284_v53 = vmul.f32 %v711_v47, %v252_v52  ;;  %v254_v54 = vpop.f32.mrb[2].mxu1 }
 0x21f   :  { %v720_v55 = vadd.f32 %v713_v48, %v283_v51  ;;  %v285_v56 = vmul.f32 %v709_v42, %v254_v54  ;;  %v256_v57 = vpop.f32.mrb[3].mxu1 }
 0x220   :  { %v724_v58 = vadd.f32 %v715_v50, %v284_v53  ;;  %v286_v59 = vmul.f32 %v711_v47, %v256_v57  ;;  %v240_v60 = vpop.f32.mrb[0].mxu0 }
 0x221   :  { %v315_v61 = vmul.f32 %v720_v55, %v720_v55  ;;  %v730_v62 = vadd.f32 %v713_v48, %v285_v56  ;;  %v279_v63 = vmul.f32 %v709_v42, %v240_v60  ;;  %v242_v0 = vpop.f32.mrb[1].mxu0 }
 0x222   :  { %v316_v1 = vmul.f32 %v724_v58, %v724_v58  ;;  %v736_v2 = vadd.f32 %v715_v50, %v286_v59  ;;  %v280_v3 = vmul.f32 %v711_v47, %v242_v0  ;;  %v244_v4 = vpop.f32.mrb[2].mxu0 }
 0x223   :  { %v325_v5 = vmul.f32 %v315_v61, %v720_v55  ;;  %v317_v6 = vmul.f32 %v730_v62, %v730_v62  ;;  %v743_v7 = vadd.f32 %v713_v48, %v279_v63  ;;  %v281_v8 = vmul.f32 %v709_v42, %v244_v4  ;;  %v246_v9 = vpop.f32.mrb[3].mxu0 }
 0x224   :  { %v326_v10 = vmul.f32 %v316_v1, %v724_v58  ;;  %v318_v11 = vmul.f32 %v736_v2, %v736_v2  ;;  %v750_v12 = vadd.f32 %v715_v50, %v280_v3  ;;  %v282_v13 = vmul.f32 %v711_v47, %v246_v9  ;;  %v260_v14 = vpop.f32.mrb[4].mxu1 }
 0x225   :  { %v335_v16 = vmul.f32 0.044715, %v325_v5  ;;  %v327_v17 = vmul.f32 %v317_v6, %v730_v62  ;;  %v311_v18 = vmul.f32 %v743_v7, %v743_v7  ;;  %v757_v19 = vadd.f32 %v713_v48, %v281_v8  ;;  %v262_v20 = vpop.f32.mrb[5].mxu1 }
 0x226   :  { %v336_v21 = vmul.f32 0.044715, %v326_v10  ;;  %v328_v22 = vmul.f32 %v318_v11, %v736_v2  ;;  %v312_v15 = vmul.f32 %v750_v12, %v750_v12  ;;  %v763_v23 = vadd.f32 %v715_v50, %v282_v13  ;;  %v264_v25 = vpop.f32.mrb[6].mxu1 }
 0x227   :  { %v345_v26 = vadd.f32 %v335_v16, %v720_v55  ;;  %v337_v27 = vmul.f32 0.044715, %v327_v17  ;;  %v321_v28 = vmul.f32 %v311_v18, %v743_v7  ;;  %v313_v29 = vmul.f32 %v757_v19, %v757_v19  ;;  %v265_v24 = vpop.f32.mrb[7].mxu1 }
 0x228   :  { %v346_v31 = vadd.f32 %v336_v21, %v724_v58  ;;  %v338_v32 = vmul.f32 0.044715, %v328_v22  ;;  %v322_v33 = vmul.f32 %v312_v15, %v750_v12  ;;  %v314_v30 = vmul.f32 %v763_v23, %v763_v23 }
 0x229   :  { %v355_v34 = vmul.f32 0.7978846, %v345_v26  ;;  %v347_v35 = vadd.f32 %v337_v27, %v730_v62  ;;  %v331_v36 = vmul.f32 0.044715, %v321_v28  ;;  %v323_v37 = vmul.f32 %v313_v29, %v757_v19 }
 0x22a   :  { %v356_v38 = vmul.f32 0.7978846, %v346_v31  ;;  %v348_v39 = vadd.f32 %v338_v32, %v736_v2  ;;  %v332_v40 = vmul.f32 0.044715, %v322_v33  ;;  %v324_v41 = vmul.f32 %v314_v30, %v763_v23 }
 0x22b   :  { %561 = vtanh.f32 %v355_v34  ;;  %v357_v43 = vmul.f32 0.7978846, %v347_v35  ;;  %v341_v44 = vadd.f32 %v331_v36, %v743_v7  ;;  %v333_v45 = vmul.f32 0.044715, %v323_v37 }
 0x22c   :  { %563 = vtanh.f32 %v356_v38  ;;  %v358_v46 = vmul.f32 0.7978846, %v348_v39  ;;  %v342_v49 = vadd.f32 %v332_v40, %v750_v12  ;;  %v334_v51 = vmul.f32 0.044715, %v324_v41 }
 0x22d   :  { %565 = vtanh.f32 %v357_v43  ;;  %v351_v52 = vmul.f32 0.7978846, %v341_v44  ;;  %v343_v53 = vadd.f32 %v333_v45, %v757_v19  ;;  %v287_v54 = vmul.f32 %v709_v42, %v260_v14 }
 0x22e   :  { %567 = vtanh.f32 %v358_v46  ;;  %v352_v56 = vmul.f32 0.7978846, %v342_v49  ;;  %v344_v57 = vadd.f32 %v334_v51, %v763_v23  ;;  %v288_v59 = vmul.f32 %v711_v47, %v262_v20 }
 0x22f   :  { %569 = vtanh.f32 %v351_v52  ;;  %v353_v60 = vmul.f32 0.7978846, %v343_v53  ;;  %v784_v61 = vadd.f32 %v713_v48, %v287_v54 }
 0x230   :  { %571 = vtanh.f32 %v352_v56  ;;  %v354_v63 = vmul.f32 0.7978846, %v344_v57  ;;  %v787_v0 = vadd.f32 %v715_v50, %v288_v59 }
 0x231   :  { %573 = vtanh.f32 %v353_v60  ;;  %v319_v42 = vmul.f32 %v784_v61, %v784_v61 }
 0x232   :  { %575 = vtanh.f32 %v354_v63  ;;  %v320_v1 = vmul.f32 %v787_v0, %v787_v0 }
 0x233   :  { %v329_v47 = vmul.f32 %v319_v42, %v784_v61 }
 0x234   :  { %v330_v3 = vmul.f32 %v320_v1, %v787_v0 }
 0x235   :  { %v562_v4 = vpop.eup %561  ;;  %v339_v48 = vmul.f32 0.044715, %v329_v47 }
 0x236   :  { %v564_v5 = vpop.eup %563  ;;  %v375_v6 = vadd.f32 1.0, %v562_v4  ;;  %v340_v8 = vmul.f32 0.044715, %v330_v3 }
 0x237   :  { %v566_v9 = vpop.eup %565  ;;  %v376_v50 = vadd.f32 1.0, %v564_v5  ;;  %v349_v10 = vadd.f32 %v339_v48, %v784_v61 }
 0x238   :  { %v568_v11 = vpop.eup %567  ;;  %v385_v13 = vmul.f32 0.5, %v375_v6  ;;  %v377_v14 = vadd.f32 1.0, %v566_v9  ;;  %v350_v16 = vadd.f32 %v340_v8, %v787_v0 }
 0x239   :  { %v570_v17 = vpop.eup %569  ;;  %v386_v18 = vmul.f32 0.5, %v376_v50  ;;  %v378_v20 = vadd.f32 1.0, %v568_v11  ;;  %v359_v21 = vmul.f32 0.7978846, %v349_v10 }
 0x23a   :  { %v572_v22 = vpop.eup %571  ;;  %v395_v15 = vmul.f32 %v385_v13, %v720_v55  ;;  %v387_v25 = vmul.f32 0.5, %v377_v14  ;;  %v371_v26 = vadd.f32 1.0, %v570_v17  ;;  %v360_v27 = vmul.f32 0.7978846, %v350_v16 }
 0x23b   :  { %v574_v28 = vpop.eup %573  ;;  %v396_v29 = vmul.f32 %v386_v18, %v724_v58  ;;  %v388_v24 = vmul.f32 0.5, %v378_v20  ;;  %v372_v31 = vadd.f32 1.0, %v572_v22  ;;  %577 = vtanh.f32 %v359_v21 }
 0x23c   :  { %v576_v32 = vpop.eup %575  ;;  %v405_v33 = vmul.f32 9.096591, %v395_v15  ;;  %v397_v30 = vmul.f32 %v387_v25, %v730_v62  ;;  %v381_v34 = vmul.f32 0.5, %v371_v26  ;;  %v373_v35 = vadd.f32 1.0, %v574_v28 }
 0x23d   :  { %v406_v36 = vmul.f32 9.096591, %v396_v29  ;;  %v398_v37 = vmul.f32 %v388_v24, %v736_v2  ;;  %v382_v38 = vmul.f32 0.5, %v372_v31  ;;  %v374_v55 = vadd.f32 1.0, %v576_v32 }
 0x23e   :  { %v425_v39 = vmax.f32 %v405_v33, -8.0  ;;  %v407_v40 = vmul.f32 9.096591, %v397_v30  ;;  %v391_v41 = vmul.f32 %v381_v34, %v743_v7  ;;  %v383_v43 = vmul.f32 0.5, %v373_v35 }
 0x23f   :  { %v426_v58 = vmax.f32 %v406_v36, -8.0  ;;  %v408_v44 = vmul.f32 9.096591, %v398_v37  ;;  %v392_v45 = vmul.f32 %v382_v38, %v750_v12  ;;  %v384_v46 = vmul.f32 0.5, %v374_v55 }
 0x240   :  { %v435_v49 = vmin.f32 %v425_v39, 7.0  ;;  %v427_v51 = vmax.f32 %v407_v40, -8.0  ;;  %v401_v62 = vmul.f32 9.096591, %v391_v41  ;;  %v393_v52 = vmul.f32 %v383_v43, %v757_v19 }
 0x241   :  { %v436_v53 = vmin.f32 %v426_v58, 7.0  ;;  %v428_v54 = vmax.f32 %v408_v44, -8.0  ;;  %v402_v2 = vmul.f32 9.096591, %v392_v45  ;;  %v394_v56 = vmul.f32 %v384_v46, %v763_v23 }
 0x242   :  { %v532_v57 = vround.rtne.f32 %v435_v49  ;;  %v437_v59 = vmin.f32 %v427_v51, 7.0  ;;  %v421_v60 = vmax.f32 %v401_v62, -8.0  ;;  %v403_v7 = vmul.f32 9.096591, %v393_v52 }
 0x243   :  { %v533_v63 = vround.rtne.f32 %v436_v53  ;;  %v438_v42 = vmin.f32 %v428_v54, 7.0  ;;  %v422_v1 = vmax.f32 %v402_v2, -8.0  ;;  %v404_v47 = vmul.f32 9.096591, %v394_v56 }
 0x244   :  { %v534_v12 = vround.rtne.f32 %v437_v59  ;;  %v431_v3 = vmin.f32 %v421_v60, 7.0  ;;  %v423_v4 = vmax.f32 %v403_v7, -8.0  ;;  %579 = vtanh.f32 %v360_v27 }
 0x245   :  { %v578_v48 = vpop.eup %577  ;;  %v512_v5 = vpack.c.bf16 %v533_v63, %v532_v57  ;;  %v535_v19 = vround.rtne.f32 %v438_v42  ;;  %v432_v6 = vmin.f32 %v422_v1, 7.0  ;;  %v424_v8 = vmax.f32 %v404_v47, -8.0 }
 0x246   :  { %v528_v9 = vround.rtne.f32 %v431_v3  ;;  %v433_v50 = vmin.f32 %v423_v4, 7.0  ;;  %v379_v23 = vadd.f32 1.0, %v578_v48 }
 0x247   :  { %485 = vst [vmem:[%s828_s6 + $0x10] sm:$0xff] %v512_v5  ;;  %v513_v10 = vpack.c.bf16 %v535_v19, %v534_v12  ;;  %v529_v11 = vround.rtne.f32 %v432_v6  ;;  %v434_v13 = vmin.f32 %v424_v8, 7.0 }
 0x248   :  { %v530_v14 = vround.rtne.f32 %v433_v50  ;;  %v389_v16 = vmul.f32 0.5, %v379_v23 }
 0x249   :  { %486 = vst [vmem:[%s828_s6 + $0x18] sm:$0xff] %v513_v10  ;;  %v510_v17 = vpack.c.bf16 %v529_v11, %v528_v9  ;;  %v531_v18 = vround.rtne.f32 %v434_v13 }
 0x24a   :  { %v399_v20 = vmul.f32 %v389_v16, %v784_v61 }
 0x24b   :  { %483 = vst [vmem:[%s828_s6] sm:$0xff] %v510_v17  ;;  %v511_v21 = vpack.c.bf16 %v531_v18, %v530_v14 }
 0x24c   :  { %v409_v22 = vmul.f32 9.096591, %v399_v20 }
 0x24d   :  { %484 = vst [vmem:[%s828_s6 + $0x8] sm:$0xff] %v511_v21 }
 0x24e   :  { %v580_v15 = vpop.eup %579  ;;  %v429_v26 = vmax.f32 %v409_v22, -8.0 }
 0x24f   :  { %v380_v25 = vadd.f32 1.0, %v580_v15 }
 0x250   :  { %v439_v29 = vmin.f32 %v429_v26, 7.0 }
 0x251   :  { %v390_v27 = vmul.f32 0.5, %v380_v25 }
 0x252   :  { %v536_v61 = vround.rtne.f32 %v439_v29 }
 0x253   :  { %v400_v28 = vmul.f32 %v390_v27, %v787_v0 }
 0x255   :  { %v410_v24 = vmul.f32 9.096591, %v400_v28 }
 0x257   :  { %v430_v31 = vmax.f32 %v410_v24, -8.0 }
 0x259   :  { %v440_v32 = vmin.f32 %v430_v31, 7.0 }
 0x25b   :  { %v537_v33 = vround.rtne.f32 %v440_v32 }
 0x25d   :  { %v514_v30 = vpack.c.bf16 %v537_v33, %v536_v61 }
 0x25f   :  { %487 = vst [vmem:[%s828_s6 + $0x20] sm:$0x33] %v514_v30 }

// kernel: _lambda_.25
= control target key start
LH: loop header
LB: loop body
LE: loop exit
PB: predicated region body
PF: predicated region fallthrough
CT: control target
= control target key end

     0   :  { %vm25_vm0 = vcmask 517120   ;;  %v195_v8 = vmov 0.0   ;;  %vm196_vm1 = vmmov 0   ;;  %vm94_vm2 = vcmask 523264   ;;  %s262_s0 = inlined_call_operand.vmem [shape: f32[2,64], index: 0, kind: input, shape index: {}]   ;;  %s263_s1 = inlined_call_operand.vmem [shape: bf16[64,10], index: 1, kind: input, shape index: {}]   ;;  %s264_s4 = inlined_call_operand.vmem [shape: f32[1,64], index: 4, kind: input, shape index: {}]   ;;  %s265_s5 = inlined_call_operand.vmem [shape: f32[1,64], index: 5, kind: input, shape index: {}]   ;;  %s266_s2 = inlined_call_operand.vmem [shape: f32[1,10], index: 2, kind: input, shape index: {}]   ;;  %s267_s3 = inlined_call_operand.vmem [shape: f32[1,10], index: 3, kind: input, shape index: {}]   ;;  %s268_s6 = inlined_call_operand.vmem [shape: f32[2,10], index: 6, kind: output, shape index: {}]  }
   0x1   :  { %v24_v0 = vld [vmem:[%s262_s0] sm:$0x3]  ;;  %174 = vmatprep.subr.bf16.mxu0 %v195_v8  ;;  %v190_v9 = vld [vmem:[%s263_s1 + $0x8] sm:$0xff]   ;;  %182 = vmatprep.mubr.msk.bf16.mxu0 %vm196_vm1, %v195_v8  ;;  %v191_v10 = vld [vmem:[%s263_s1 + $0x10] sm:$0xff]   ;;  %vm154_vm3 = vcmask 74752  }
   0x2   :  { %v26_v1 = vsel %vm25_vm0, %v24_v0, 0.0  ;;  %v189_v7 = vld [vmem:[%s263_s1] sm:$0xff]   ;;  %v192_v11 = vld [vmem:[%s263_s1 + $0x18] sm:$0xff]  }
   0x3   :  { %27 = vadd.xlane.f32.xlu0 %v26_v1  ;;  %175 = vmatpush3.bf16.msra.mxu0 %v189_v7  ;;  %v160_v16 = vld [vmem:[%s264_s4] ss:$0 sm:$0xff] }
   0x4   :  { %176 = vmatprep.subr.bf16.mxu0 %v195_v8  ;;  %v161_v18 = vld [vmem:[%s265_s5] ss:$0 sm:$0xff] }
   0x5   :  { %v167_v26 = vld [vmem:[%s266_s2] ss:$0 sm:$0xff] }
   0x6   :  { %v168_v28 = vld [vmem:[%s267_s3] ss:$0 sm:$0xff] }
   0x7   :  { %177 = vmatpush3.bf16.msra.mxu0 %v190_v9 }
   0x8   :  { %178 = vmatprep.subr.bf16.mxu0 %v195_v8 }
   0xb   :  { %179 = vmatpush3.bf16.msra.mxu0 %v191_v10 }
   0xc   :  { %180 = vmatprep.subr.bf16.mxu0 %v195_v8 }
   0xf   :  { %181 = vmatpush3.bf16.msra.mxu0 %v192_v11 }
  0x90   :  { %v28_v2 = vpop.xlane.xlu0 %27 }
  0x91   :  { %v30_v3 = vmul.f32 0.015625, %v28_v2 }
  0x93   :  { %v31_v4 = vsub.f32 %v24_v0, %v30_v3 }
  0x95   :  { %v32_v5 = vmul.f32 %v31_v4, %v31_v4 }
  0x97   :  { %v33_v6 = vsel %vm25_vm0, %v32_v5, 0.0 }
  0x98   :  { %34 = vadd.xlane.f32.xlu0 %v33_v6 }
 0x125   :  { %v35_v12 = vpop.xlane.xlu0 %34 }
 0x126   :  { %v36_v13 = vmul.f32 0.015625, %v35_v12 }
 0x128   :  { %v37_v14 = vadd.f32 1e-06, %v36_v13 }
 0x12a   :  { %193 = vrsqrt.f32 %v37_v14 }
 0x134   :  { %v194_v15 = vpop.eup %193 }
 0x135   :  { %v39_v17 = vmul.f32 %v194_v15, %v31_v4 }
 0x137   :  { %v47_v19 = vmul.f32 %v160_v16, %v39_v17 }
 0x139   :  { %v55_v20 = vadd.f32 %v161_v18, %v47_v19 }
 0x13b   :  { %v56_v21 = vmul.f32 9.11758, %v55_v20 }
 0x13d   :  { %v58_v22 = vmax.f32 %v56_v21, -128.0 }
 0x13f   :  { %v59_v23 = vmin.f32 %v58_v22, 127.0 }
 0x141   :  { %v186_v24 = vround.rtne.f32 %v59_v23 }
 0x143   :  { %v61_v25 = vpack.c.bf16 %v186_v24, %v186_v24 }
 0x145   :  { %183 = vmatmul.mubr.msk.bf16.vlgmr.msra.gmra.mrb[0].mxu0 %vm94_vm2, %v61_v25 }
 0x218   :  { %v132_v27 = vpop.f32.mrb[0].mxu0 }
 0x219   :  { %v145_v29 = vmul.f32 %v167_v26, %v132_v27  ;;  %v184_v30 = vpop.f32.mrb[1].mxu0 }
 0x21a   :  { %v135_v31 = vpop.f32.mrb[2].mxu0 }
 0x21b   :  { %v153_v32 = vadd.f32 %v168_v28, %v145_v29  ;;  %v185_v33 = vpop.f32.mrb[3].mxu0 }
 0x21d   :  { %155 = vst.msk [vmem:[%s268_s6] sm:$0x3] %vm154_vm3, %v153_v32 }

// kernel: _lambda_.20
= control target key start
LH: loop header
LB: loop body
LE: loop exit
PB: predicated region body
PF: predicated region fallthrough
CT: control target
= control target key end

     0   :  { %s2576_s24 = smov 0   ;;  %s2578_s25 = smov 0   ;;  %s3107_s0 = inlined_call_operand.vmem [shape: bf16[2,18,64], index: 0, kind: input, shape index: {}]   ;;  %s3108_s1 = inlined_call_operand.vmem [shape: bf16[2,18,64], index: 1, kind: input, shape index: {}]   ;;  %s3109_s2 = inlined_call_operand.vmem [shape: bf16[2,18,64], index: 2, kind: input, shape index: {}]   ;;  %s3110_s3 = inlined_call_operand.vmem [shape: f32[1,16], index: 3, kind: input, shape index: {}, may-alias: {3,5}]   ;;  %s3111_s4 = inlined_call_operand.vmem [shape: f32[1,16], index: 4, kind: input, shape index: {}, may-alias: {4,6}]   ;;  %s3112_s5 = inlined_call_operand.vmem [shape: f32[1,16], index: 5, kind: input, shape index: {}, may-alias: {3,5}]   ;;  %s3113_s6 = inlined_call_operand.vmem [shape: f32[1,16], index: 6, kind: input, shape index: {}, may-alias: {4,6}]   ;;  %s3114_s7 = inlined_call_operand.vmem [shape: bf16[2,18,64], index: 7, kind: output, shape index: {}]  }
   0x1   :  { %s2580_s26 = smov 0  }
   0x2 LB: > { %s29_s27 = sadd.s32 1, %s2524_s25  ;;  %p2114_p0 = scmp.ge.s32.totalorder %s2528_s26, 1  ;;  %s2528_s26 = sphi %s2580_s26, %s17_s26   ;;  %s2524_s25 = sphi %s2578_s25, %s3116_s25   ;;  %s2520_s24 = sphi %s2576_s24, %s3115_s24  }
   0x3   : > { %p31_p1 = scmp.ge.s32.totalorder %s29_s27, 2  ;;  %p286_p2 = scmp.lt.s32.totalorder %s2528_s26, 3 }
   0x5   : > { %s3118_s27 = smov (%p31_p1, %s29_s27), 0  ;;  %p287_p3 = pnand %p2114_p0, %p286_p2 }
   0x6   : > { %p340_p4 = scmp.lt.s32.totalorder (!%p287_p3), %s2520_s24, 1  ;;  %vm395_vm0 = vcmask (!%p287_p3), 130048   ;;  %vm402_vm1 = vcmask (!%p287_p3), 123904   ;;  %s2530_s12 = smov (!%p287_p3), 112   ;;  %vm627_vm2 = vcmask (!%p287_p3), 146432   ;;  %vm634_vm3 = vcmask (!%p287_p3), 140288  }
   0x7   : > { %290 = sbr.rel (%p287_p3) target bundleno = 2954 (0xb8a), region = 48  ;;  %s2531_s21 = smov (!%p287_p3), 16   ;;  %vm690_vm4 = vcmask (!%p287_p3), 1040384   ;;  %vm1969_vm5 = vcmask (!%p287_p3), 392192   ;;  %vm1965_vm6 = vcmask (!%p287_p3), 261120   ;;  %vm1989_vm7 = vcmask (!%p287_p3), 516096  }
   0x8   : > { %s2532_s29 = smov (!%p287_p3), 96   ;;  %s2533_s30 = smov (!%p287_p3), 32   ;;  %vm1986_vm8 = vcmask (!%p287_p3), 519168  }
   0xe   : > { %s3120_s24 = smov (!%p340_p4, %s2520_s24), 1 }
   0xf   : > { %s2594_s28 = smul.u32 12, %s3120_s24 }
  0x11   : > { %s355_s8 = scalar_lea.vmem %s3108_s1, %s2594_s28  ;;  %s347_s11 = scalar_lea.vmem %s3107_s0, %s2594_s28 }
  0x12   : > { %v2152_v0 = vld [vmem:[%s355_s8] sm:$0xff]   ;;  %v385_v1 = vld [vmem:[%s355_s8 + $0x8] sm:$0x1]  ;;  %s363_s24 = scalar_lea.vmem %s3109_s2, %s2594_s28  ;;  %s2534_s8 = smov 80  }
  0x13   : > { %v2148_v2 = vld [vmem:[%s347_s11] sm:$0xff]   ;;  %v2604_v3 = vunpack.c.l.bf16 %v2152_v0  ;;  %v2606_v4 = vunpack.c.l.bf16 %v385_v1  ;;  %v2608_v5 = vunpack.c.h.bf16 %v2152_v0  ;;  %v379_v7 = vld [vmem:[%s347_s11 + $0x8] sm:$0x1]  ;;  %s2535_s11 = smov 48   ;;  %s371_s20 = scalar_lea.vmem %s3114_s7, %s2594_s28 }
  0x14   : > { %v2610_v6 = vunpack.c.l.bf16 %v2148_v2  ;;  %v2618_v11 = vunpack.c.h.bf16 %v2148_v2  ;;  %v2622_v13 = vunpack.c.l.bf16 %v379_v7 }
  0x15   : > { %v470_v8 = vsel %vm395_vm0, %v2604_v3, 0.0  ;;  %v476_v9 = vsel %vm402_vm1, %v2606_v4, 0.0  ;;  %v473_v10 = vsel %vm395_vm0, %v2608_v5, 0.0  ;;  %v2666_v46 = vpack.i.bf16 %v2608_v5, %v2604_v3 }
  0x16   : > { %471 = vadd.xlane.f32.xlu0 %v470_v8  ;;  %477 = vadd.xlane.f32.xlu1 %v476_v9  ;;  %v396_v12 = vsel %vm395_vm0, %v2610_v6, 0.0  ;;  %v399_v14 = vsel %vm395_vm0, %v2618_v11, 0.0  ;;  %v403_v15 = vsel %vm402_vm1, %v2622_v13, 0.0  ;;  %v2672_v47 = vpack.i.bf16 %v2618_v11, %v2610_v6 }
  0x1a   : > { %474 = vadd.xlane.f32.xlu0 %v473_v10  ;;  %397 = vadd.xlane.f32.xlu1 %v396_v12 }
  0x1e   : > { %400 = vadd.xlane.f32.xlu0 %v399_v14  ;;  %404 = vadd.xlane.f32.xlu1 %v403_v15  ;;  %v2685_v14 = vld [vmem:[%s3112_s5] ss:$0 sm:$0xff] }
  0xa3   : > { %v472_v16 = vpop.xlane.xlu0 %471  ;;  %v478_v17 = vpop.xlane.xlu1 %477 }
  0xa4   : > { %v479_v18 = vmul.f32 0.0625, %v472_v16  ;;  %v481_v19 = vmul.f32 0.0625, %v478_v17 }
  0xa6   : > { %v2629_v20 = vsub.f32 %v2604_v3, %v479_v18  ;;  %v2632_v21 = vsub.f32 %v2606_v4, %v481_v19  ;;  %v2692_v18 = vld [vmem:[%s3113_s6] ss:$0 sm:$0xff] }
  0xa7   : > { %v475_v22 = vpop.xlane.xlu0 %474  ;;  %v398_v23 = vpop.xlane.xlu1 %397 }
  0xa8   : > { %v480_v24 = vmul.f32 0.0625, %v475_v22  ;;  %v485_v25 = vmul.f32 %v2629_v20, %v2629_v20  ;;  %v407_v26 = vmul.f32 0.0625, %v398_v23  ;;  %v487_v27 = vmul.f32 %v2632_v21, %v2632_v21 }
  0xaa   : > { %v2639_v28 = vsub.f32 %v2608_v5, %v480_v24  ;;  %v488_v29 = vsel %vm395_vm0, %v485_v25, 0.0  ;;  %v2643_v30 = vsub.f32 %v2610_v6, %v407_v26  ;;  %v494_v32 = vsel %vm402_vm1, %v487_v27, 0.0 }
  0xab   : > { %489 = vadd.xlane.f32.xlu0 %v488_v29  ;;  %v401_v31 = vpop.xlane.xlu0 %400  ;;  %v405_v33 = vpop.xlane.xlu1 %404 }
  0xac   : > { %v408_v34 = vmul.f32 0.0625, %v401_v31  ;;  %v486_v35 = vmul.f32 %v2639_v28, %v2639_v28  ;;  %v409_v36 = vmul.f32 0.0625, %v405_v33  ;;  %v413_v37 = vmul.f32 %v2643_v30, %v2643_v30 }
  0xae   : > { %v2651_v38 = vsub.f32 %v2618_v11, %v408_v34  ;;  %v491_v39 = vsel %vm395_vm0, %v486_v35, 0.0  ;;  %v2655_v40 = vsub.f32 %v2622_v13, %v409_v36  ;;  %v416_v42 = vsel %vm395_vm0, %v413_v37, 0.0 }
  0xaf   : > { %495 = vadd.xlane.f32.xlu0 %v494_v32  ;;  %492 = vadd.xlane.f32.xlu1 %v491_v39 }
  0xb0   : > { %v414_v41 = vmul.f32 %v2651_v38, %v2651_v38  ;;  %v415_v43 = vmul.f32 %v2655_v40, %v2655_v40 }
  0xb2   : > { %v419_v44 = vsel %vm395_vm0, %v414_v41, 0.0  ;;  %v422_v45 = vsel %vm402_vm1, %v415_v43, 0.0 }
  0xb3   : > { %420 = vadd.xlane.f32.xlu0 %v419_v44  ;;  %417 = vadd.xlane.f32.xlu1 %v416_v42 }
  0xb7   : > { %423 = vadd.xlane.f32.xlu1 %v422_v45  ;;  %v2714_v45 = vld [vmem:[%s3111_s4] ss:$0 sm:$0xff] }
  0xc8   : > { %857 = vrot.lane.b32.xlu1 %v2606_v4, %s2530_s12 }
  0xc9   : > { %2362 = vrot.lane.b32.xlu0 %v2666_v46, %s2530_s12 }
  0xcc   : > { %2367 = vrot.lane.b32.xlu1 %v2672_v47, %s2530_s12 }
  0xd0   : > { %767 = vrot.lane.b32.xlu1 %v2622_v13, %s2530_s12 }
 0x138   : > { %v490_v48 = vpop.xlane.xlu0 %489 }
 0x139   : > { %v497_v49 = vmul.f32 0.0625, %v490_v48 }
 0x13b   : > { %v500_v50 = vadd.f32 1e-05, %v497_v49 }
 0x13c   : > { %v496_v51 = vpop.xlane.xlu0 %495  ;;  %v493_v52 = vpop.xlane.xlu1 %492 }
 0x13d   : > { %2406 = vrsqrt.f32 %v500_v50  ;;  %v499_v53 = vmul.f32 0.0625, %v496_v51  ;;  %v498_v54 = vmul.f32 0.0625, %v493_v52 }
 0x13f   : > { %v502_v55 = vadd.f32 1e-05, %v499_v53  ;;  %v501_v56 = vadd.f32 1e-05, %v498_v54 }
 0x140   : > { %v421_v57 = vpop.xlane.xlu0 %420  ;;  %v418_v58 = vpop.xlane.xlu1 %417 }
 0x141   : > { %2408 = vrsqrt.f32 %v502_v55  ;;  %v426_v59 = vmul.f32 0.0625, %v421_v57  ;;  %v425_v60 = vmul.f32 0.0625, %v418_v58 }
 0x142   : > { %2410 = vrsqrt.f32 %v501_v56 }
 0x143   : > { %v429_v61 = vadd.f32 1e-05, %v426_v59  ;;  %v428_v62 = vadd.f32 1e-05, %v425_v60 }
 0x144   : > { %v2363_v63 = vpop.permute.xlu0 %2362  ;;  %v424_v0 = vpop.xlane.xlu1 %423 }
 0x145   : > { %2412 = vrsqrt.f32 %v429_v61  ;;  %v427_v1 = vmul.f32 0.0625, %v424_v0  ;;  %v2364_v2 = vunpack.i.l.bf16 %v2363_v63  ;;  %v2365_v7 = vunpack.i.h.bf16 %v2363_v63 }
 0x146   : > { %2414 = vrsqrt.f32 %v428_v62 }
 0x147   : > { %v2407_v8 = vpop.eup %2406  ;;  %v430_v9 = vadd.f32 1e-05, %v427_v1  ;;  %v862_v10 = vsel %vm395_vm0, %v2364_v2, 0.0  ;;  %v865_v12 = vsel %vm395_vm0, %v2365_v7, 0.0 }
 0x148   : > { %863 = vadd.xlane.f32.xlu0 %v862_v10  ;;  %866 = vadd.xlane.f32.xlu1 %v865_v12  ;;  %v858_v15 = vpop.permute.xlu1 %857  ;;  %v506_v16 = vmul.f32 %v2407_v8, %v2629_v20 }
 0x149   : > { %2416 = vrsqrt.f32 %v430_v9  ;;  %v868_v17 = vsel %vm402_vm1, %v858_v15, 0.0 }
 0x14a   : > { %v515_v19 = vmul.f32 %v2685_v14, %v506_v16 }
 0x14b   : > { %v2409_v22 = vpop.eup %2408 }
 0x14c   : > { %v2411_v23 = vpop.eup %2410  ;;  %v508_v24 = vmul.f32 %v2409_v22, %v2632_v21  ;;  %869 = vadd.xlane.f32.xlu0 %v868_v17  ;;  %v2368_v25 = vpop.permute.xlu1 %2367  ;;  %v524_v26 = vadd.f32 %v2692_v18, %v515_v19  ;;  %v2704_v21 = vld [vmem:[%s3110_s3] ss:$0 sm:$0xff] }
 0x14d   : > { %v2369_v27 = vunpack.i.l.bf16 %v2368_v25  ;;  %v2370_v20 = vunpack.i.h.bf16 %v2368_v25  ;;  %v507_v29 = vmul.f32 %v2411_v23, %v2639_v28 }
 0x14e   : > { %v527_v31 = vmul.f32 9.119007, %v524_v26  ;;  %v517_v32 = vmul.f32 %v2685_v14, %v508_v24 }
 0x14f   : > { %v2413_v33 = vpop.eup %2412  ;;  %v772_v34 = vsel %vm395_vm0, %v2369_v27, 0.0  ;;  %v516_v35 = vmul.f32 %v2685_v14, %v507_v29  ;;  %v775_v39 = vsel %vm395_vm0, %v2370_v20, 0.0 }
 0x150   : > { %v2415_v36 = vpop.eup %2414  ;;  %773 = vadd.xlane.f32.xlu0 %v772_v34  ;;  %v768_v37 = vpop.permute.xlu1 %767  ;;  %v526_v28 = vadd.f32 %v2692_v18, %v517_v32  ;;  %v435_v41 = vmul.f32 %v2413_v33, %v2651_v38  ;;  %v533_v44 = vmax.f32 %v527_v31, -8.0 }
 0x151   : > { %v778_v42 = vsel %vm402_vm1, %v768_v37, 0.0  ;;  %v525_v43 = vadd.f32 %v2692_v18, %v516_v35  ;;  %v434_v48 = vmul.f32 %v2415_v36, %v2643_v30 }
 0x152   : > { %779 = vadd.xlane.f32.xlu1 %v778_v42  ;;  %v529_v49 = vmul.f32 9.119007, %v526_v28  ;;  %v444_v50 = vmul.f32 %v2704_v21, %v435_v41  ;;  %v536_v57 = vmin.f32 %v533_v44, 7.0 }
 0x153   : > { %v2417_v51 = vpop.eup %2416  ;;  %v528_v52 = vmul.f32 9.119007, %v525_v43  ;;  %v443_v38 = vmul.f32 %v2704_v21, %v434_v48 }
 0x154   : > { %v436_v53 = vmul.f32 %v2417_v51, %v2655_v40  ;;  %776 = vadd.xlane.f32.xlu0 %v775_v39  ;;  %v535_v54 = vmax.f32 %v529_v49, -8.0  ;;  %v453_v55 = vadd.f32 %v2714_v45, %v444_v50  ;;  %v2271_v1 = vround.rtne.f32 %v536_v57 }
 0x155   : > { %v534_v56 = vmax.f32 %v528_v52, -8.0  ;;  %v452_v58 = vadd.f32 %v2714_v45, %v443_v38 }
 0x156   : > { %v538_v59 = vmin.f32 %v535_v54, 7.0  ;;  %v456_v30 = vmul.f32 8.666576, %v453_v55  ;;  %v445_v60 = vmul.f32 %v2704_v21, %v436_v53 }
 0x157   : > { %v537_v61 = vmin.f32 %v534_v56, 7.0  ;;  %v455_v62 = vmul.f32 8.666576, %v452_v58 }
 0x158   : > { %v462_v63 = vmax.f32 %v456_v30, -8.0  ;;  %v454_v0 = vadd.f32 %v2714_v45, %v445_v60  ;;  %v2273_v40 = vround.rtne.f32 %v538_v59 }
 0x159   : > { %v2272_v2 = vround.rtne.f32 %v537_v61  ;;  %v461_v7 = vmax.f32 %v455_v62, -8.0 }
 0x15a   : > { %v465_v8 = vmin.f32 %v462_v63, 7.0  ;;  %v457_v12 = vmul.f32 8.666576, %v454_v0  ;;  %v563_v17 = vpack.c.bf16 %v2273_v40, %v2273_v40 }
 0x15b   : > { %v562_v9 = vpack.c.bf16 %v2272_v2, %v2271_v1  ;;  %v464_v10 = vmin.f32 %v461_v7, 7.0 }
 0x15c   : > { %v2269_v15 = vround.rtne.f32 %v465_v8  ;;  %v463_v23 = vmax.f32 %v457_v12, -8.0  ;;  %v574_v25 = vsel %vm395_vm0, %v563_v17, 0 }
 0x15d   : > { %2255 = vmatprep.subr.msk.bf16.mxu0 %vm395_vm0, %v562_v9  ;;  %v571_v16 = vsel %vm395_vm0, %v562_v9, 0  ;;  %v2268_v19 = vround.rtne.f32 %v464_v10 }
 0x15e   : > { %2192 = vmatpush3.bf16.xpose.msra.mxu0 %v571_v16  ;;  %v466_v24 = vmin.f32 %v463_v23, 7.0 }
 0x15f   : > { %2256 = vmatprep.subr.msk.bf16.mxu0 %vm395_vm0, %v563_v17  ;;  %v560_v22 = vpack.c.bf16 %v2269_v15, %v2268_v19 }
 0x160   : > { %v2270_v26 = vround.rtne.f32 %v466_v24 }
 0x161   : > { %2195 = vmatprep.mubr.msk.bf16.mxu0 %vm395_vm0, %v560_v22 }
 0x162   : > { %v561_v27 = vpack.c.bf16 %v2270_v26, %v2270_v26 }
 0x166   : > { %2194 = vmatpush3.bf16.xpose.msra.mxu0 %v574_v25 }
 0x16d   : > { %2196 = vmatmul.mubr.msk.bf16.vlgmr.msra.gmra.mrb[0].mxu0 %vm395_vm0, %v561_v27 }
 0x1d5   : > { %v864_v20 = vpop.xlane.xlu0 %863  ;;  %v867_v29 = vpop.xlane.xlu1 %866 }
 0x1d6   : > { %v871_v31 = vmul.f32 0.0625, %v864_v20  ;;  %v872_v32 = vmul.f32 0.0625, %v867_v29 }
 0x1d8   : > { %v2731_v33 = vsub.f32 %v2604_v3, %v871_v31  ;;  %v2734_v34 = vsub.f32 %v2608_v5, %v872_v32 }
 0x1d9   : > { %v870_v35 = vpop.xlane.xlu0 %869 }
 0x1da   : > { %v873_v36 = vmul.f32 0.0625, %v870_v35  ;;  %v878_v37 = vmul.f32 %v2734_v34, %v2734_v34  ;;  %v877_v39 = vmul.f32 %v2731_v33, %v2731_v33 }
 0x1dc   : > { %v2741_v28 = vsub.f32 %v2606_v4, %v873_v36  ;;  %885 = vrot.lane.b32.xlu1 %v878_v37, %s2530_s12  ;;  %883 = vrot.lane.b32.xlu0 %v877_v39, %s2530_s12 }
 0x1dd   : > { %v774_v41 = vpop.xlane.xlu0 %773 }
 0x1de   : > { %v781_v42 = vmul.f32 0.0625, %v774_v41  ;;  %v879_v43 = vmul.f32 %v2741_v28, %v2741_v28 }
 0x1df   : > { %v780_v44 = vpop.xlane.xlu1 %779 }
 0x1e0   : > { %v2748_v48 = vsub.f32 %v2610_v6, %v781_v42  ;;  %887 = vrot.lane.b32.xlu1 %v879_v43, %s2530_s12  ;;  %v783_v49 = vmul.f32 0.0625, %v780_v44 }
 0x1e1   : > { %v777_v50 = vpop.xlane.xlu0 %776 }
 0x1e2   : > { %v2752_v51 = vsub.f32 %v2622_v13, %v783_v49  ;;  %v782_v52 = vmul.f32 0.0625, %v777_v50  ;;  %v787_v38 = vmul.f32 %v2748_v48, %v2748_v48 }
 0x1e4   : > { %v2757_v53 = vsub.f32 %v2618_v11, %v782_v52  ;;  %793 = vrot.lane.b32.xlu1 %v787_v38, %s2530_s12  ;;  %v789_v54 = vmul.f32 %v2752_v51, %v2752_v51 }
 0x1e6   : > { %v788_v55 = vmul.f32 %v2757_v53, %v2757_v53 }
 0x1e8   : > { %797 = vrot.lane.b32.xlu1 %v789_v54, %s2530_s12  ;;  %795 = vrot.lane.b32.xlu0 %v788_v55, %s2530_s12 }
 0x240   : > { %v2197_v56 = vpop.f32.mrb[0].mxu0 }
 0x241   : > { %v610_v57 = vpop.f32.mrb[1].mxu0  ;;  %v626_v60 = vmul.f32 0.0031633326, %v2197_v56 }
 0x242   : > { %v624_v58 = vmul.f32 0.0031633326, %v610_v57  ;;  %v2198_v59 = vpop.f32.mrb[2].mxu0  ;;  %v2156_v57 = vld [vmem:[%s363_s24] sm:$0xff]  }
 0x243   : > { %v613_v30 = vpop.f32.mrb[3].mxu0  ;;  %v635_v0 = vsel %vm634_vm3, %v626_v60, -inf  ;;  %v2158_v59 = vunpack.c.h.bf16 %v2156_v57 }
 0x244   : > { %v625_v61 = vmul.f32 0.0031633326, %v613_v30  ;;  %v628_v62 = vsel %vm627_vm2, %v624_v58, -inf }
 0x245   : > { %629 = vmax.xlane.f32.xlu0 %v628_v62 }
 0x246   : > { %v631_v63 = vsel %vm627_vm2, %v625_v61, -inf }
 0x247   : > { %632 = vmax.xlane.f32.xlu1 %v631_v63 }
 0x249   : > { %636 = vmax.xlane.f32.xlu0 %v635_v0  ;;  %v543_v0 = vmul.f32 0.11108193, %v2158_v59 }
 0x24e   : > { %v886_v1 = vpop.permute.xlu1 %885  ;;  %v884_v2 = vpop.permute.xlu0 %883 }
 0x24f   : > { %v892_v40 = vsel %vm395_vm0, %v884_v2, 0.0  ;;  %v895_v7 = vsel %vm395_vm0, %v886_v1, 0.0 }
 0x250   : > { %893 = vadd.xlane.f32.xlu0 %v892_v40  ;;  %v391_v40 = vld [vmem:[%s363_s24 + $0x8] sm:$0x1] }
 0x252   : > { %v888_v8 = vpop.permute.xlu1 %887 }
 0x253   : > { %v898_v9 = vsel %vm402_vm1, %v888_v8, 0.0  ;;  %v546_v8 = vmul.f32 9.344508, %v543_v0 }
 0x254   : > { %899 = vadd.xlane.f32.xlu1 %v898_v9  ;;  %896 = vadd.xlane.f32.xlu0 %v895_v7  ;;  %v394_v9 = vunpack.c.l.bf16 %v391_v40 }
 0x256   : > { %v794_v10 = vpop.permute.xlu1 %793 }
 0x257   : > { %v802_v12 = vsel %vm395_vm0, %v794_v10, 0.0 }
 0x258   : > { %803 = vadd.xlane.f32.xlu0 %v802_v12 }
 0x25a   : > { %v798_v15 = vpop.permute.xlu1 %797  ;;  %v796_v16 = vpop.permute.xlu0 %795 }
 0x25b   : > { %v808_v17 = vsel %vm402_vm1, %v798_v15, 0.0  ;;  %v805_v19 = vsel %vm395_vm0, %v796_v16, 0.0 }
 0x25c   : > { %809 = vadd.xlane.f32.xlu0 %v808_v17  ;;  %806 = vadd.xlane.f32.xlu1 %v805_v19 }
 0x26d   : > { %913 = vrot.lane.b32.xlu1 %v2685_v14, %s2531_s21 }
 0x271   : > { %823 = vrot.lane.b32.xlu1 %v2704_v21, %s2531_s21 }
 0x272   : > { %919 = vrot.lane.b32.xlu0 %v2692_v18, %s2531_s21 }
 0x275   : > { %829 = vrot.lane.b32.xlu1 %v2714_v45, %s2531_s21 }
 0x2d2   : > { %v630_v22 = vpop.xlane.xlu0 %629 }
 0x2d3   : > { %v638_v23 = vsub.f32 %v624_v58, %v630_v22  ;;  %v2157_v58 = vunpack.c.l.bf16 %v2156_v57  ;;  %v552_v22 = vmax.f32 %v546_v8, -8.0 }
 0x2d4   : > { %v633_v24 = vpop.xlane.xlu1 %632 }
 0x2d5   : > { %v641_v25 = vmul.f32 1.442695, %v638_v23  ;;  %v639_v26 = vsub.f32 %v625_v61, %v633_v24  ;;  %v542_v63 = vmul.f32 0.11108193, %v2157_v58  ;;  %v544_v23 = vmul.f32 0.11108193, %v394_v9 }
 0x2d6   : > { %v637_v27 = vpop.xlane.xlu0 %636 }
 0x2d7   : > { %2418 = vpow2.f32 %v641_v25  ;;  %v643_v20 = vmul.f32 1.442695, %v639_v26  ;;  %v640_v29 = vsub.f32 %v626_v60, %v637_v27  ;;  %v545_v7 = vmul.f32 9.344508, %v542_v63 }
 0x2d8   : > { %v555_v27 = vmin.f32 %v552_v22, 7.0 }
 0x2d9   : > { %2420 = vpow2.f32 %v643_v20  ;;  %v645_v31 = vmul.f32 1.442695, %v640_v29  ;;  %v551_v19 = vmax.f32 %v545_v7, -8.0  ;;  %v547_v29 = vmul.f32 9.344508, %v544_v23 }
 0x2db   : > { %2422 = vpow2.f32 %v645_v31  ;;  %v554_v26 = vmin.f32 %v551_v19, 7.0 }
 0x2dd   : > { %v894_v32 = vpop.xlane.xlu0 %893 }
 0x2de   : > { %v901_v35 = vmul.f32 0.0625, %v894_v32 }
 0x2e0   : > { %v904_v36 = vadd.f32 1e-05, %v901_v35 }
 0x2e1   : > { %v2783_v37 = vpop.eup %2418  ;;  %v900_v39 = vpop.xlane.xlu1 %899 }
 0x2e2   : > { %v897_v41 = vpop.xlane.xlu0 %896  ;;  %2424 = vrsqrt.f32 %v904_v36  ;;  %v903_v42 = vmul.f32 0.0625, %v900_v39  ;;  %v647_v44 = vsel %vm627_vm2, %v2783_v37, 0.0  ;;  %v2274_v39 = vround.rtne.f32 %v554_v26 }
 0x2e3   : > { %v902_v43 = vmul.f32 0.0625, %v897_v41  ;;  %v2787_v49 = vpop.eup %2420  ;;  %648 = vadd.xlane.f32.xlu1 %v647_v44  ;;  %v2275_v41 = vround.rtne.f32 %v555_v27 }
 0x2e4   : > { %v906_v50 = vadd.f32 1e-05, %v903_v42  ;;  %v650_v38 = vsel %vm627_vm2, %v2787_v49, 0.0  ;;  %v553_v42 = vmax.f32 %v547_v29, -8.0 }
 0x2e5   : > { %v905_v52 = vadd.f32 1e-05, %v902_v43  ;;  %v2791_v54 = vpop.eup %2422  ;;  %651 = vadd.xlane.f32.xlu0 %v650_v38 }
 0x2e6   : > { %v804_v55 = vpop.xlane.xlu0 %803  ;;  %2426 = vrsqrt.f32 %v906_v50  ;;  %v653_v60 = vsel %vm634_vm3, %v2791_v54, 0.0  ;;  %v2802_v50 = vpack.c.bf16 %v2275_v41, %v2274_v39 }
 0x2e7   : > { %v811_v56 = vmul.f32 0.0625, %v804_v55  ;;  %2428 = vrsqrt.f32 %v905_v52  ;;  %v556_v55 = vmin.f32 %v553_v42, 7.0 }
 0x2e8   : > { %2199 = vmatprep.subr.bf16.mxu1 %v2802_v50 }
 0x2e9   : > { %v814_v30 = vadd.f32 1e-05, %v811_v56  ;;  %654 = vadd.xlane.f32.xlu0 %v653_v60  ;;  %v807_v61 = vpop.xlane.xlu1 %806  ;;  %2200 = vmatpush3.bf16.msra.mxu1 %v2802_v50 }
 0x2ea   : > { %v810_v62 = vpop.xlane.xlu0 %809  ;;  %v812_v1 = vmul.f32 0.0625, %v807_v61 }
 0x2eb   : > { %2430 = vrsqrt.f32 %v814_v30  ;;  %v813_v2 = vmul.f32 0.0625, %v810_v62  ;;  %v2276_v30 = vround.rtne.f32 %v556_v55 }
 0x2ec   : > { %v2425_v10 = vpop.eup %2424  ;;  %v815_v12 = vadd.f32 1e-05, %v812_v1 }
 0x2ed   : > { %v816_v15 = vadd.f32 1e-05, %v813_v2  ;;  %v914_v16 = vpop.permute.xlu1 %913  ;;  %v910_v17 = vmul.f32 %v2425_v10, %v2731_v33  ;;  %v2807_v63 = vpack.c.bf16 %v2276_v30, %v2276_v30 }
 0x2ee   : > { %2432 = vrsqrt.f32 %v815_v12  ;;  %v920_v24 = vpop.permute.xlu0 %919 }
 0x2ef   : > { %2434 = vrsqrt.f32 %v816_v15  ;;  %v916_v25 = vmul.f32 %v914_v16, %v910_v17  ;;  %2257 = vmatprep.subr.msk.bf16.mxu1 %vm690_vm4, %v2807_v63  ;;  %v692_v9 = vsel %vm690_vm4, %v2807_v63, 0 }
 0x2f0   : > { %v2427_v20 = vpop.eup %2426  ;;  %2202 = vmatpush3.bf16.msra.mxu1 %v692_v9 }
 0x2f1   : > { %v2429_v31 = vpop.eup %2428  ;;  %v912_v32 = vmul.f32 %v2427_v20, %v2741_v28  ;;  %v922_v35 = vadd.f32 %v920_v24, %v916_v25  ;;  %v824_v36 = vpop.permute.xlu1 %823 }
 0x2f2   : > { %v911_v33 = vmul.f32 %v2429_v31, %v2734_v34 }
 0x2f3   : > { %v918_v43 = vmul.f32 %v914_v16, %v912_v32  ;;  %v925_v44 = vmul.f32 9.119007, %v922_v35 }
 0x2f4   : > { %v917_v38 = vmul.f32 %v914_v16, %v911_v33 }
 0x2f5   : > { %v2431_v52 = vpop.eup %2430  ;;  %v924_v56 = vadd.f32 %v920_v24, %v918_v43  ;;  %v931_v58 = vmax.f32 %v925_v44, -8.0  ;;  %v830_v59 = vpop.permute.xlu1 %829 }
 0x2f6   : > { %v820_v57 = vmul.f32 %v2431_v52, %v2748_v48  ;;  %v923_v28 = vadd.f32 %v920_v24, %v917_v38 }
 0x2f7   : > { %v927_v34 = vmul.f32 9.119007, %v924_v56  ;;  %v934_v7 = vmin.f32 %v931_v58, 7.0 }
 0x2f8   : > { %v826_v60 = vmul.f32 %v824_v36, %v820_v57  ;;  %v2433_v61 = vpop.eup %2432  ;;  %v926_v62 = vmul.f32 9.119007, %v923_v28 }
 0x2f9   : > { %v2435_v0 = vpop.eup %2434  ;;  %v933_v1 = vmax.f32 %v927_v34, -8.0  ;;  %v821_v2 = vmul.f32 %v2433_v61, %v2757_v53  ;;  %v2289_v23 = vround.rtne.f32 %v934_v7 }
 0x2fa   : > { %v832_v48 = vadd.f32 %v830_v59, %v826_v60  ;;  %v932_v40 = vmax.f32 %v926_v62, -8.0  ;;  %v822_v8 = vmul.f32 %v2435_v0, %v2752_v51 }
 0x2fb   : > { %v827_v10 = vmul.f32 %v824_v36, %v821_v2  ;;  %v936_v15 = vmin.f32 %v933_v1, 7.0 }
 0x2fc   : > { %v835_v12 = vmul.f32 8.666576, %v832_v48  ;;  %v935_v16 = vmin.f32 %v932_v40, 7.0  ;;  %v828_v17 = vmul.f32 %v824_v36, %v822_v8 }
 0x2fd   : > { %v833_v19 = vadd.f32 %v830_v59, %v827_v10  ;;  %v2291_v53 = vround.rtne.f32 %v936_v15 }
 0x2fe   : > { %v841_v22 = vmax.f32 %v835_v12, -8.0  ;;  %v2290_v24 = vround.rtne.f32 %v935_v16  ;;  %v834_v25 = vadd.f32 %v830_v59, %v828_v17 }
 0x2ff   : > { %v836_v26 = vmul.f32 8.666576, %v833_v19  ;;  %v943_v51 = vpack.c.bf16 %v2291_v53, %v2291_v53 }
 0x300   : > { %v942_v27 = vpack.c.bf16 %v2290_v24, %v2289_v23  ;;  %v837_v20 = vmul.f32 8.666576, %v834_v25  ;;  %v844_v31 = vmin.f32 %v841_v22, 7.0 }
 0x301   : > { %v842_v29 = vmax.f32 %v836_v26, -8.0  ;;  %954 = vrot.lane.b32.xlu1 %v943_v51, %s2530_s12 }
 0x302   : > { %952 = vrot.lane.b32.xlu0 %v942_v27, %s2530_s12  ;;  %v843_v32 = vmax.f32 %v837_v20, -8.0  ;;  %v2286_v36 = vround.rtne.f32 %v844_v31 }
 0x303   : > { %v845_v35 = vmin.f32 %v842_v29, 7.0 }
 0x304   : > { %v846_v39 = vmin.f32 %v843_v32, 7.0 }
 0x305   : > { %v2287_v41 = vround.rtne.f32 %v845_v35 }
 0x306   : > { %2372 = vrot.lane.b32.xlu0 %v2666_v46, %s2532_s29  ;;  %v2288_v42 = vround.rtne.f32 %v846_v39 }
 0x307   : > { %v940_v33 = vpack.c.bf16 %v2287_v41, %v2286_v36 }
 0x308   : > { %v941_v43 = vpack.c.bf16 %v2288_v42, %v2288_v42 }
 0x309   : > { %946 = vrot.lane.b32.xlu1 %v940_v33, %s2530_s12 }
 0x30a   : > { %2377 = vrot.lane.b32.xlu0 %v2672_v47, %s2532_s29 }
 0x30d   : > { %948 = vrot.lane.b32.xlu1 %v941_v43, %s2530_s12 }
 0x311   : > { %1245 = vrot.lane.b32.xlu1 %v2606_v4, %s2532_s29 }
 0x315   : > { %1158 = vrot.lane.b32.xlu1 %v2622_v13, %s2532_s29 }
 0x370   : > { %v649_v44 = vpop.xlane.xlu1 %648 }
 0x371   : > { %2436 = vrcp.f32 %v649_v44 }
 0x372   : > { %v652_v52 = vpop.xlane.xlu0 %651 }
 0x373   : > { %2438 = vrcp.f32 %v652_v52 }
 0x374   : > { %v955_v55 = vpop.permute.xlu1 %954 }
 0x375   : > { %v966_v36 = vsel %vm395_vm0, %v955_v55, 0 }
 0x376   : > { %v655_v38 = vpop.xlane.xlu0 %654 }
 0x377   : > { %2440 = vrcp.f32 %v655_v38 }
 0x37a   : > { %v953_v56 = vpop.permute.xlu0 %952 }
 0x37b   : > { %v2437_v57 = vpop.eup %2436  ;;  %2258 = vmatprep.subr.msk.bf16.mxu1 %vm395_vm0, %v953_v56  ;;  %v947_v28 = vpop.permute.xlu1 %946  ;;  %v963_v39 = vsel %vm395_vm0, %v953_v56, 0 }
 0x37c   : > { %v659_v58 = vmul.f32 %v2437_v57, %v2783_v37 }
 0x37d   : > { %v2439_v59 = vpop.eup %2438 }
 0x37e   : > { %v2373_v30 = vpop.permute.xlu0 %2372  ;;  %v660_v34 = vmul.f32 %v2439_v59, %v2787_v49  ;;  %v662_v60 = vmul.f32 9.519897, %v659_v58 }
 0x37f   : > { %v2375_v61 = vunpack.i.h.bf16 %v2373_v30  ;;  %v2374_v62 = vunpack.i.l.bf16 %v2373_v30  ;;  %v949_v0 = vpop.permute.xlu1 %948 }
 0x380   : > { %v663_v1 = vmul.f32 9.519897, %v660_v34  ;;  %v668_v2 = vmax.f32 %v662_v60, -8.0 }
 0x381   : > { %v2441_v48 = vpop.eup %2440  ;;  %v1253_v40 = vsel %vm395_vm0, %v2375_v61, 0.0  ;;  %v1250_v7 = vsel %vm395_vm0, %v2374_v62, 0.0 }
 0x382   : > { %1254 = vadd.xlane.f32.xlu1 %v1253_v40  ;;  %1251 = vadd.xlane.f32.xlu0 %v1250_v7  ;;  %v2378_v8 = vpop.permute.xlu0 %2377  ;;  %v669_v9 = vmax.f32 %v663_v1, -8.0  ;;  %v671_v37 = vmin.f32 %v668_v2, 7.0  ;;  %v661_v10 = vmul.f32 %v2441_v48, %v2791_v54 }
 0x383   : > { %v1246_v12 = vpop.permute.xlu1 %1245  ;;  %v2379_v49 = vunpack.i.l.bf16 %v2378_v8  ;;  %v2380_v23 = vunpack.i.h.bf16 %v2378_v8 }
 0x384   : > { %v1256_v15 = vsel %vm402_vm1, %v1246_v12, 0.0  ;;  %v672_v16 = vmin.f32 %v669_v9, 7.0  ;;  %v2277_v17 = vround.rtne.f32 %v671_v37  ;;  %v664_v19 = vmul.f32 9.519897, %v661_v10 }
 0x385   : > { %v1163_v24 = vsel %vm395_vm0, %v2379_v49, 0.0  ;;  %v1166_v31 = vsel %vm395_vm0, %v2380_v23, 0.0 }
 0x386   : > { %1257 = vadd.xlane.f32.xlu0 %v1256_v15  ;;  %v2278_v22 = vround.rtne.f32 %v672_v16  ;;  %v670_v53 = vmax.f32 %v664_v19, -8.0  ;;  %v2280_v26 = vround.rtne.f32 %v2277_v17 }
 0x387   : > { %v1159_v25 = vpop.permute.xlu1 %1158 }
 0x388   : > { %v2281_v51 = vround.rtne.f32 %v2278_v22  ;;  %v1169_v27 = vsel %vm402_vm1, %v1159_v25, 0.0  ;;  %v673_v20 = vmin.f32 %v670_v53, 7.0 }
 0x389   : > { %1170 = vadd.xlane.f32.xlu1 %v1169_v27 }
 0x38a   : > { %1164 = vadd.xlane.f32.xlu0 %v1163_v24  ;;  %v680_v54 = vpack.c.bf16 %v2281_v51, %v2280_v26  ;;  %v2279_v29 = vround.rtne.f32 %v673_v20 }
 0x38c   : > { %2203 = vmatprep.mubr.msk.bf16.mxu1 %vm627_vm2, %v680_v54  ;;  %v2282_v32 = vround.rtne.f32 %v2279_v29 }
 0x38e   : > { %1167 = vadd.xlane.f32.xlu0 %v1166_v31  ;;  %v681_v35 = vpack.c.bf16 %v2282_v32, %v2282_v32 }
 0x390   : > { %2204 = vmatmul.mubr.msk.bf16.vlgmr.msra.gmra.mrb[0].mxu1 %vm627_vm2, %v681_v35 }
 0x391   : > { %2208 = vmatpush3.bf16.xpose.msra.mxu1 %v963_v39  ;;  %2211 = vmatprep.mubr.msk.bf16.mxu1 %vm395_vm0, %v947_v28 }
 0x392   : > { %2259 = vmatprep.subr.msk.bf16.mxu1 %vm395_vm0, %v955_v55 }
 0x399   : > { %2210 = vmatpush3.bf16.xpose.msra.mxu1 %v966_v36 }
 0x3a0   : > { %2212 = vmatmul.mubr.msk.bf16.vlgmr.msra.gmra.mrb[4].mxu1 %vm395_vm0, %v949_v0 }
 0x40f   : > { %v1255_v41 = vpop.xlane.xlu1 %1254  ;;  %v1252_v33 = vpop.xlane.xlu0 %1251 }
 0x410   : > { %v1260_v42 = vmul.f32 0.0625, %v1255_v41  ;;  %v1259_v43 = vmul.f32 0.0625, %v1252_v33 }
 0x412   : > { %v2845_v44 = vsub.f32 %v2608_v5, %v1260_v42  ;;  %v2848_v52 = vsub.f32 %v2604_v3, %v1259_v43 }
 0x413   : > { %v1258_v38 = vpop.xlane.xlu0 %1257 }
 0x414   : > { %v1261_v56 = vmul.f32 0.0625, %v1258_v38  ;;  %v1266_v57 = vmul.f32 %v2845_v44, %v2845_v44  ;;  %v1265_v55 = vmul.f32 %v2848_v52, %v2848_v52 }
 0x416   : > { %v2855_v28 = vsub.f32 %v2606_v4, %v1261_v56  ;;  %1273 = vrot.lane.b32.xlu1 %v1266_v57, %s2532_s29  ;;  %1271 = vrot.lane.b32.xlu0 %v1265_v55, %s2532_s29  ;;  %v1171_v58 = vpop.xlane.xlu1 %1170 }
 0x417   : > { %v1165_v59 = vpop.xlane.xlu0 %1164  ;;  %v1174_v30 = vmul.f32 0.0625, %v1171_v58 }
 0x418   : > { %v1172_v34 = vmul.f32 0.0625, %v1165_v59  ;;  %v1267_v60 = vmul.f32 %v2855_v28, %v2855_v28 }
 0x419   : > { %v2866_v62 = vsub.f32 %v2622_v13, %v1174_v30 }
 0x41a   : > { %v2862_v61 = vsub.f32 %v2610_v6, %v1172_v34  ;;  %1275 = vrot.lane.b32.xlu1 %v1267_v60, %s2532_s29 }
 0x41b   : > { %v1168_v0 = vpop.xlane.xlu0 %1167  ;;  %v1180_v40 = vmul.f32 %v2866_v62, %v2866_v62 }
 0x41c   : > { %v1173_v1 = vmul.f32 0.0625, %v1168_v0  ;;  %v1178_v2 = vmul.f32 %v2862_v61, %v2862_v61 }
 0x41e   : > { %v2871_v48 = vsub.f32 %v2618_v11, %v1173_v1  ;;  %1184 = vrot.lane.b32.xlu1 %v1178_v2, %s2532_s29 }
 0x420   : > { %v1179_v7 = vmul.f32 %v2871_v48, %v2871_v48 }
 0x422   : > { %1188 = vrot.lane.b32.xlu1 %v1180_v40, %s2532_s29  ;;  %1186 = vrot.lane.b32.xlu0 %v1179_v7, %s2532_s29 }
 0x463   : > { %v2880_v8 = vpop.f32.mrb[0].mxu1 }
 0x464   : > { %v2882_v9 = vpop.f32.mrb[1].mxu1 }
 0x465   : > { %v2206_v37 = vpop.f32.mrb[2].mxu1 }
 0x466   : > { %v2884_v10 = vpop.f32.mrb[3].mxu1 }
 0x473   : > { %v2213_v12 = vpop.f32.mrb[4].mxu1 }
 0x474   : > { %v1002_v49 = vpop.f32.mrb[5].mxu1  ;;  %v1018_v19 = vmul.f32 0.0031633326, %v2213_v12 }
 0x475   : > { %v1016_v15 = vmul.f32 0.0031633326, %v1002_v49  ;;  %v2214_v16 = vpop.f32.mrb[6].mxu1 }
 0x476   : > { %v1005_v17 = vpop.f32.mrb[7].mxu1  ;;  %v1025_v24 = vsel %vm634_vm3, %v1018_v19, -inf }
 0x477   : > { %v1017_v22 = vmul.f32 0.0031633326, %v1005_v17  ;;  %v1019_v53 = vsel %vm627_vm2, %v1016_v15, -inf }
 0x478   : > { %1020 = vmax.xlane.f32.xlu0 %v1019_v53 }
 0x479   : > { %v1022_v23 = vsel %vm627_vm2, %v1017_v22, -inf }
 0x47a   : > { %1023 = vmax.xlane.f32.xlu1 %v1022_v23 }
 0x47c   : > { %1026 = vmax.xlane.f32.xlu0 %v1025_v24 }
 0x488   : > { %v1274_v25 = vpop.permute.xlu1 %1273  ;;  %v1272_v26 = vpop.permute.xlu0 %1271 }
 0x489   : > { %v1280_v51 = vsel %vm395_vm0, %v1272_v26, 0.0  ;;  %v1283_v27 = vsel %vm395_vm0, %v1274_v25, 0.0 }
 0x48a   : > { %1281 = vadd.xlane.f32.xlu0 %v1280_v51 }
 0x48c   : > { %v1276_v20 = vpop.permute.xlu1 %1275 }
 0x48d   : > { %v1286_v54 = vsel %vm402_vm1, %v1276_v20, 0.0 }
 0x48e   : > { %1287 = vadd.xlane.f32.xlu1 %v1286_v54  ;;  %1284 = vadd.xlane.f32.xlu0 %v1283_v27 }
 0x490   : > { %v1185_v29 = vpop.permute.xlu1 %1184 }
 0x491   : > { %v1193_v31 = vsel %vm395_vm0, %v1185_v29, 0.0 }
 0x492   : > { %1194 = vadd.xlane.f32.xlu0 %v1193_v31 }
 0x494   : > { %v1189_v32 = vpop.permute.xlu1 %1188  ;;  %v1187_v35 = vpop.permute.xlu0 %1186 }
 0x495   : > { %v1199_v39 = vsel %vm402_vm1, %v1189_v32, 0.0  ;;  %v1196_v36 = vsel %vm395_vm0, %v1187_v35, 0.0 }
 0x496   : > { %1200 = vadd.xlane.f32.xlu0 %v1199_v39  ;;  %1197 = vadd.xlane.f32.xlu1 %v1196_v36 }
 0x4a7   : > { %1301 = vrot.lane.b32.xlu1 %v2685_v14, %s2533_s30 }
 0x4ab   : > { %1214 = vrot.lane.b32.xlu1 %v2704_v21, %s2533_s30 }
 0x4ac   : > { %1307 = vrot.lane.b32.xlu0 %v2692_v18, %s2533_s30 }
 0x4af   : > { %1220 = vrot.lane.b32.xlu1 %v2714_v45, %s2533_s30 }
 0x505   : > { %v1021_v41 = vpop.xlane.xlu0 %1020 }
 0x506   : > { %v1028_v33 = vsub.f32 %v1016_v15, %v1021_v41 }
 0x507   : > { %v1024_v42 = vpop.xlane.xlu1 %1023 }
 0x508   : > { %v1031_v43 = vmul.f32 1.442695, %v1028_v33  ;;  %v1029_v38 = vsub.f32 %v1017_v22, %v1024_v42 }
 0x509   : > { %v1027_v56 = vpop.xlane.xlu0 %1026 }
 0x50a   : > { %2442 = vpow2.f32 %v1031_v43  ;;  %v1030_v57 = vsub.f32 %v1018_v19, %v1027_v56  ;;  %v1033_v55 = vmul.f32 1.442695, %v1029_v38 }
 0x50c   : > { %v1035_v58 = vmul.f32 1.442695, %v1030_v57 }
 0x50e   : > { %2444 = vpow2.f32 %v1035_v58 }
 0x50f   : > { %2446 = vpow2.f32 %v1033_v55 }
 0x514   : > { %v2903_v14 = vpop.eup %2442 }
 0x515   : > { %v1037_v18 = vsel %vm627_vm2, %v2903_v14, 0.0 }
 0x516   : > { %1038 = vadd.xlane.f32.xlu1 %v1037_v18 }
 0x517   : > { %v1282_v21 = vpop.xlane.xlu0 %1281 }
 0x518   : > { %v2907_v45 = vpop.eup %2444  ;;  %v1289_v59 = vmul.f32 0.0625, %v1282_v21 }
 0x519   : > { %v1043_v30 = vsel %vm634_vm3, %v2907_v45, 0.0  ;;  %v2911_v34 = vpop.eup %2446 }
 0x51a   : > { %v1292_v60 = vadd.f32 1e-05, %v1289_v59  ;;  %1044 = vadd.xlane.f32.xlu0 %v1043_v30  ;;  %v1040_v7 = vsel %vm627_vm2, %v2911_v34, 0.0 }
 0x51b   : > { %v1288_v0 = vpop.xlane.xlu1 %1287  ;;  %v1285_v1 = vpop.xlane.xlu0 %1284 }
 0x51c   : > { %2448 = vrsqrt.f32 %v1292_v60  ;;  %v1291_v2 = vmul.f32 0.0625, %v1288_v0  ;;  %v1290_v40 = vmul.f32 0.0625, %v1285_v1 }
 0x51e   : > { %v1294_v37 = vadd.f32 1e-05, %v1291_v2  ;;  %v1293_v12 = vadd.f32 1e-05, %v1290_v40  ;;  %1041 = vadd.xlane.f32.xlu0 %v1040_v7 }
 0x51f   : > { %v1195_v49 = vpop.xlane.xlu0 %1194 }
 0x520   : > { %2450 = vrsqrt.f32 %v1294_v37  ;;  %v1202_v15 = vmul.f32 0.0625, %v1195_v49 }
 0x521   : > { %2452 = vrsqrt.f32 %v1293_v12 }
 0x522   : > { %v1205_v16 = vadd.f32 1e-05, %v1202_v15 }
 0x523   : > { %v1198_v17 = vpop.xlane.xlu1 %1197  ;;  %v1201_v19 = vpop.xlane.xlu0 %1200 }
 0x524   : > { %2454 = vrsqrt.f32 %v1205_v16  ;;  %v1203_v22 = vmul.f32 0.0625, %v1198_v17  ;;  %v1204_v53 = vmul.f32 0.0625, %v1201_v19 }
 0x526   : > { %v2449_v23 = vpop.eup %2448  ;;  %v1206_v24 = vadd.f32 1e-05, %v1203_v22  ;;  %v1207_v25 = vadd.f32 1e-05, %v1204_v53 }
 0x527   : > { %v1302_v26 = vpop.permute.xlu1 %1301  ;;  %v1298_v51 = vmul.f32 %v2449_v23, %v2848_v52  ;;  %1076 = vrot.lane.b32.xlu1 %v2807_v63, %s2530_s12  ;;  %v1308_v27 = vpop.permute.xlu0 %1307 }
 0x528   : > { %2456 = vrsqrt.f32 %v1206_v24 }
 0x529   : > { %2458 = vrsqrt.f32 %v1207_v25  ;;  %v1304_v20 = vmul.f32 %v1302_v26, %v1298_v51 }
 0x52a   : > { %v2451_v54 = vpop.eup %2450 }
 0x52b   : > { %v2453_v29 = vpop.eup %2452  ;;  %v1300_v31 = vmul.f32 %v2451_v54, %v2855_v28  ;;  %v1310_v32 = vadd.f32 %v1308_v27, %v1304_v20  ;;  %v1215_v35 = vpop.permute.xlu1 %1214 }
 0x52c   : > { %v1299_v39 = vmul.f32 %v2453_v29, %v2845_v44 }
 0x52d   : > { %v1306_v36 = vmul.f32 %v1302_v26, %v1300_v31  ;;  %v1313_v41 = vmul.f32 9.119007, %v1310_v32 }
 0x52e   : > { %v2455_v33 = vpop.eup %2454  ;;  %v1305_v42 = vmul.f32 %v1302_v26, %v1299_v39 }
 0x52f   : > { %v1312_v52 = vadd.f32 %v1308_v27, %v1306_v36  ;;  %v1211_v43 = vmul.f32 %v2455_v33, %v2862_v61  ;;  %v1319_v56 = vmax.f32 %v1313_v41, -8.0  ;;  %v1221_v57 = vpop.permute.xlu1 %1220 }
 0x530   : > { %v1311_v38 = vadd.f32 %v1308_v27, %v1305_v42 }
 0x531   : > { %v1315_v55 = vmul.f32 9.119007, %v1312_v52  ;;  %v1217_v58 = vmul.f32 %v1215_v35, %v1211_v43  ;;  %v1322_v0 = vmin.f32 %v1319_v56, 7.0 }
 0x532   : > { %v2457_v18 = vpop.eup %2456  ;;  %v1314_v21 = vmul.f32 9.119007, %v1311_v38 }
 0x533   : > { %v2459_v59 = vpop.eup %2458  ;;  %v1321_v28 = vmax.f32 %v1315_v55, -8.0  ;;  %v1212_v30 = vmul.f32 %v2457_v18, %v2871_v48  ;;  %v1223_v60 = vadd.f32 %v1221_v57, %v1217_v58  ;;  %v2304_v15 = vround.rtne.f32 %v1322_v0 }
 0x534   : > { %v1320_v44 = vmax.f32 %v1314_v21, -8.0  ;;  %v1213_v1 = vmul.f32 %v2459_v59, %v2866_v62  ;;  %1074 = vrot.lane.b32.xlu0 %v2802_v50, %s2530_s12 }
 0x535   : > { %v1218_v61 = vmul.f32 %v1215_v35, %v1212_v30  ;;  %v1226_v2 = vmul.f32 8.666576, %v1223_v60  ;;  %v1324_v37 = vmin.f32 %v1321_v28, 7.0 }
 0x536   : > { %v1323_v40 = vmin.f32 %v1320_v44, 7.0  ;;  %v1219_v7 = vmul.f32 %v1215_v35, %v1213_v1 }
 0x537   : > { %v1224_v12 = vadd.f32 %v1221_v57, %v1218_v61  ;;  %v1232_v49 = vmax.f32 %v1226_v2, -8.0  ;;  %v2306_v53 = vround.rtne.f32 %v1324_v37 }
 0x538   : > { %v2305_v16 = vround.rtne.f32 %v1323_v40  ;;  %v1225_v17 = vadd.f32 %v1221_v57, %v1219_v7 }
 0x539   : > { %v1227_v19 = vmul.f32 8.666576, %v1224_v12  ;;  %v1235_v24 = vmin.f32 %v1232_v49, 7.0  ;;  %v1331_v26 = vpack.c.bf16 %v2306_v53, %v2306_v53 }
 0x53a   : > { %v1228_v48 = vmul.f32 8.666576, %v1225_v17  ;;  %v1330_v22 = vpack.c.bf16 %v2305_v16, %v2304_v15 }
 0x53b   : > { %v1233_v23 = vmax.f32 %v1227_v19, -8.0  ;;  %v2301_v27 = vround.rtne.f32 %v1235_v24 }
 0x53c   : > { %v1234_v62 = vmax.f32 %v1228_v48, -8.0  ;;  %1340 = vrot.lane.b32.xlu1 %v1330_v22, %s2532_s29 }
 0x53d   : > { %v1236_v25 = vmin.f32 %v1233_v23, 7.0 }
 0x53e   : > { %v1237_v51 = vmin.f32 %v1234_v62, 7.0 }
 0x53f   : > { %v2302_v20 = vround.rtne.f32 %v1236_v25 }
 0x540   : > { %1342 = vrot.lane.b32.xlu1 %v1331_v26, %s2532_s29  ;;  %v2303_v54 = vround.rtne.f32 %v1237_v51 }
 0x541   : > { %v1328_v29 = vpack.c.bf16 %v2302_v20, %v2301_v27 }
 0x542   : > { %v1329_v31 = vpack.c.bf16 %v2303_v54, %v2303_v54 }
 0x543   : > { %1334 = vrot.lane.b32.xlu0 %v1328_v29, %s2532_s29 }
 0x544   : > { %1336 = vrot.lane.b32.xlu1 %v1329_v31, %s2532_s29 }
 0x547   : > { %2382 = vrot.lane.b32.xlu0 %v2666_v46, %s2534_s8 }
 0x548   : > { %1631 = vrot.lane.b32.xlu1 %v2606_v4, %s2534_s8 }
 0x54b   : > { %2387 = vrot.lane.b32.xlu0 %v2672_v47, %s2534_s8 }
 0x54c   : > { %1544 = vrot.lane.b32.xlu1 %v2622_v13, %s2534_s8 }
 0x5a3   : > { %v1039_v32 = vpop.xlane.xlu1 %1038 }
 0x5a4   : > { %2460 = vrcp.f32 %v1039_v32 }
 0x5a7   : > { %v1045_v35 = vpop.xlane.xlu0 %1044  ;;  %v1077_v39 = vpop.permute.xlu1 %1076 }
 0x5a8   : > { %2462 = vrcp.f32 %v1045_v35  ;;  %v1086_v47 = vsel %vm690_vm4, %v1077_v39, 0 }
 0x5ab   : > { %v1042_v36 = vpop.xlane.xlu0 %1041 }
 0x5ac   : > { %2464 = vrcp.f32 %v1042_v36 }
 0x5ae   : > { %v2461_v41 = vpop.eup %2460  ;;  %v1341_v33 = vpop.permute.xlu1 %1340 }
 0x5af   : > { %v1049_v46 = vmul.f32 %v2461_v41, %v2903_v14  ;;  %v1075_v42 = vpop.permute.xlu0 %1074  ;;  %v1351_v26 = vsel %vm395_vm0, %v1341_v33, 0 }
 0x5b0   : > { %2215 = vmatprep.subr.bf16.mxu0 %v1075_v42 }
 0x5b1   : > { %2216 = vmatpush3.bf16.msra.mxu0 %v1075_v42  ;;  %v1052_v52 = vmul.f32 9.519897, %v1049_v46 }
 0x5b2   : > { %v2463_v43 = vpop.eup %2462  ;;  %v1343_v38 = vpop.permute.xlu1 %1342  ;;  %2260 = vmatprep.subr.msk.bf16.mxu0 %vm690_vm4, %v1077_v39 }
 0x5b3   : > { %v1051_v56 = vmul.f32 %v2463_v43, %v2907_v45  ;;  %v1058_v58 = vmax.f32 %v1052_v52, -8.0  ;;  %v1354_v27 = vsel %vm395_vm0, %v1343_v38, 0 }
 0x5b5   : > { %v1054_v57 = vmul.f32 9.519897, %v1051_v56  ;;  %2218 = vmatpush3.bf16.msra.mxu0 %v1086_v47  ;;  %v1335_v55 = vpop.permute.xlu0 %1334  ;;  %v1061_v44 = vmin.f32 %v1058_v58, 7.0 }
 0x5b6   : > { %v2465_v18 = vpop.eup %2464  ;;  %v1337_v21 = vpop.permute.xlu1 %1336  ;;  %2261 = vmatprep.subr.msk.bf16.mxu0 %vm395_vm0, %v1341_v33 }
 0x5b7   : > { %v1060_v14 = vmax.f32 %v1054_v57, -8.0  ;;  %v1050_v59 = vmul.f32 %v2465_v18, %v2911_v34  ;;  %v2292_v49 = vround.rtne.f32 %v1061_v44 }
 0x5b9   : > { %v1063_v28 = vmin.f32 %v1060_v14, 7.0  ;;  %v2383_v30 = vpop.permute.xlu0 %2382  ;;  %v1053_v60 = vmul.f32 9.519897, %v1050_v59  ;;  %v2295_v22 = vround.rtne.f32 %v2292_v49 }
 0x5ba   : > { %v2385_v0 = vunpack.i.h.bf16 %v2383_v30  ;;  %v2384_v1 = vunpack.i.l.bf16 %v2383_v30  ;;  %v1632_v61 = vpop.permute.xlu1 %1631 }
 0x5bb   : > { %v1059_v2 = vmax.f32 %v1053_v60, -8.0  ;;  %v2294_v7 = vround.rtne.f32 %v1063_v28  ;;  %v1642_v34 = vsel %vm402_vm1, %v1632_v61, 0.0 }
 0x5bc   : > { %v1639_v45 = vsel %vm395_vm0, %v2385_v0, 0.0  ;;  %v1636_v40 = vsel %vm395_vm0, %v2384_v1, 0.0 }
 0x5bd   : > { %1640 = vadd.xlane.f32.xlu1 %v1639_v45  ;;  %1637 = vadd.xlane.f32.xlu0 %v1636_v40  ;;  %v2388_v37 = vpop.permute.xlu0 %2387  ;;  %v1062_v12 = vmin.f32 %v1059_v2, 7.0  ;;  %v2297_v48 = vround.rtne.f32 %v2294_v7 }
 0x5be   : > { %v2389_v15 = vunpack.i.l.bf16 %v2388_v37  ;;  %v1545_v16 = vpop.permute.xlu1 %1544  ;;  %v2390_v23 = vunpack.i.h.bf16 %v2388_v37 }
 0x5bf   : > { %v2293_v17 = vround.rtne.f32 %v1062_v12  ;;  %v1555_v19 = vsel %vm402_vm1, %v1545_v16, 0.0  ;;  %v1071_v25 = vpack.c.bf16 %v2297_v48, %v2297_v48 }
 0x5c0   : > { %v1549_v24 = vsel %vm395_vm0, %v2389_v15, 0.0  ;;  %v1552_v51 = vsel %vm395_vm0, %v2390_v23, 0.0 }
 0x5c1   : > { %1643 = vadd.xlane.f32.xlu0 %v1642_v34  ;;  %v2296_v53 = vround.rtne.f32 %v2293_v17  ;;  %1556 = vadd.xlane.f32.xlu1 %v1555_v19 }
 0x5c3   : > { %v1070_v62 = vpack.c.bf16 %v2296_v53, %v2295_v22 }
 0x5c5   : > { %2219 = vmatprep.mubr.msk.bf16.mxu0 %vm627_vm2, %v1070_v62  ;;  %1550 = vadd.xlane.f32.xlu0 %v1549_v24 }
 0x5c6   : > { %2220 = vmatmul.mubr.msk.bf16.vlgmr.msra.gmra.mrb[4].mxu0 %vm627_vm2, %v1071_v25 }
 0x5c7   : > { %2224 = vmatpush3.bf16.xpose.msra.mxu0 %v1351_v26  ;;  %2227 = vmatprep.mubr.msk.bf16.mxu0 %vm395_vm0, %v1335_v55 }
 0x5c8   : > { %2262 = vmatprep.subr.msk.bf16.mxu0 %vm395_vm0, %v1343_v38 }
 0x5c9   : > { %1553 = vadd.xlane.f32.xlu0 %v1552_v51 }
 0x5cf   : > { %2226 = vmatpush3.bf16.xpose.msra.mxu0 %v1354_v27 }
 0x5d6   : > { %2228 = vmatmul.mubr.msk.bf16.vlgmr.msra.gmra.mrb[8].mxu0 %vm395_vm0, %v1337_v21 }
 0x64a   : > { %v1641_v20 = vpop.xlane.xlu1 %1640  ;;  %v1638_v54 = vpop.xlane.xlu0 %1637 }
 0x64b   : > { %v1646_v29 = vmul.f32 0.0625, %v1641_v20  ;;  %v1645_v31 = vmul.f32 0.0625, %v1638_v54 }
 0x64d   : > { %v2957_v32 = vsub.f32 %v2608_v5, %v1646_v29  ;;  %v2960_v35 = vsub.f32 %v2604_v3, %v1645_v31  ;;  %v2502_v29 = vld [vmem:[%s3112_s5] ss:$0 sm:$0xff] }
 0x64e   : > { %v1644_v39 = vpop.xlane.xlu0 %1643  ;;  %v1557_v36 = vpop.xlane.xlu1 %1556  ;;  %v2503_v31 = vld [vmem:[%s3110_s3] ss:$0 sm:$0xff] }
 0x64f   : > { %v1647_v41 = vmul.f32 0.0625, %v1644_v39  ;;  %v1652_v33 = vmul.f32 %v2957_v32, %v2957_v32  ;;  %v1651_v46 = vmul.f32 %v2960_v35, %v2960_v35  ;;  %v1560_v5 = vmul.f32 0.0625, %v1557_v36  ;;  %v2504_v39 = vld [vmem:[%s3113_s6] ss:$0 sm:$0xff] }
 0x650   : > { %v2505_v36 = vld [vmem:[%s3111_s4] ss:$0 sm:$0xff] }
 0x651   : > { %v2967_v42 = vsub.f32 %v2606_v4, %v1647_v41  ;;  %1659 = vrot.lane.b32.xlu1 %v1652_v33, %s2534_s8  ;;  %1657 = vrot.lane.b32.xlu0 %v1651_v46, %s2534_s8  ;;  %v2978_v38 = vsub.f32 %v2622_v13, %v1560_v5 }
 0x652   : > { %v1551_v52 = vpop.xlane.xlu0 %1550 }
 0x653   : > { %v1653_v3 = vmul.f32 %v2967_v42, %v2967_v42  ;;  %v1558_v43 = vmul.f32 0.0625, %v1551_v52  ;;  %v1566_v55 = vmul.f32 %v2978_v38, %v2978_v38 }
 0x655   : > { %v2974_v47 = vsub.f32 %v2610_v6, %v1558_v43  ;;  %1661 = vrot.lane.b32.xlu1 %v1653_v3, %s2534_s8 }
 0x656   : > { %v1554_v4 = vpop.xlane.xlu0 %1553 }
 0x657   : > { %v1564_v56 = vmul.f32 %v2974_v47, %v2974_v47  ;;  %v1559_v57 = vmul.f32 0.0625, %v1554_v4 }
 0x659   : > { %v2985_v58 = vsub.f32 %v2618_v11, %v1559_v57  ;;  %1570 = vrot.lane.b32.xlu1 %v1564_v56, %s2534_s8 }
 0x65b   : > { %v1565_v6 = vmul.f32 %v2985_v58, %v2985_v58 }
 0x65d   : > { %1574 = vrot.lane.b32.xlu1 %v1566_v55, %s2534_s8  ;;  %1572 = vrot.lane.b32.xlu0 %v1565_v6, %s2534_s8 }
 0x699   : > { %v2992_v13 = vpop.f32.mrb[4].mxu0 }
 0x69a   : > { %v1122_v18 = vpop.f32.mrb[5].mxu0 }
 0x69b   : > { %v1136_v21 = vmul.f32 0.011241163, %v1122_v18  ;;  %v2222_v14 = vpop.f32.mrb[6].mxu0 }
 0x69c   : > { %v1125_v59 = vpop.f32.mrb[7].mxu0 }
 0x69d   : > { %v1139_v28 = vmul.f32 9.068083, %v1136_v21  ;;  %v1137_v30 = vmul.f32 0.011241163, %v1125_v59 }
 0x69f   : > { %v1145_v60 = vmax.f32 %v1139_v28, -8.0  ;;  %v1140_v11 = vmul.f32 9.068083, %v1137_v30 }
 0x6a1   : > { %v1148_v44 = vmin.f32 %v1145_v60, 7.0  ;;  %v1146_v0 = vmax.f32 %v1140_v11, -8.0 }
 0x6a3   : > { %v1149_v1 = vmin.f32 %v1146_v0, 7.0  ;;  %v2298_v61 = vround.rtne.f32 %v1148_v44 }
 0x6a5   : > { %v2299_v2 = vround.rtne.f32 %v1149_v1 }
 0x6a7   : > { %v2994_v45 = vpack.i.bf16 %v2299_v2, %v2298_v61 }
 0x6a9   : > { %v2229_v40 = vpop.f32.mrb[8].mxu0 }
 0x6aa   : > { %v1390_v7 = vpop.f32.mrb[9].mxu0  ;;  %v1406_v15 = vmul.f32 0.0031633326, %v2229_v40 }
 0x6ab   : > { %v1404_v37 = vmul.f32 0.0031633326, %v1390_v7  ;;  %v2230_v12 = vpop.f32.mrb[10].mxu0 }
 0x6ac   : > { %v1393_v49 = vpop.f32.mrb[11].mxu0  ;;  %v1413_v19 = vsel %vm634_vm3, %v1406_v15, -inf }
 0x6ad   : > { %v1405_v34 = vmul.f32 0.0031633326, %v1393_v49  ;;  %v1407_v16 = vsel %vm627_vm2, %v1404_v37, -inf }
 0x6ae   : > { %1408 = vmax.xlane.f32.xlu0 %v1407_v16 }
 0x6af   : > { %v1410_v17 = vsel %vm627_vm2, %v1405_v34, -inf }
 0x6b0   : > { %1411 = vmax.xlane.f32.xlu1 %v1410_v17 }
 0x6b2   : > { %1414 = vmax.xlane.f32.xlu0 %v1413_v19 }
 0x6c3   : > { %v1660_v48 = vpop.permute.xlu1 %1659  ;;  %v1658_v22 = vpop.permute.xlu0 %1657 }
 0x6c4   : > { %v1666_v53 = vsel %vm395_vm0, %v1658_v22, 0.0  ;;  %v1669_v23 = vsel %vm395_vm0, %v1660_v48, 0.0 }
 0x6c5   : > { %1667 = vadd.xlane.f32.xlu0 %v1666_v53 }
 0x6c7   : > { %v1662_v24 = vpop.permute.xlu1 %1661 }
 0x6c8   : > { %v1672_v62 = vsel %vm402_vm1, %v1662_v24, 0.0 }
 0x6c9   : > { %1673 = vadd.xlane.f32.xlu1 %v1672_v62  ;;  %1670 = vadd.xlane.f32.xlu0 %v1669_v23 }
 0x6cb   : > { %v1571_v25 = vpop.permute.xlu1 %1570 }
 0x6cc   : > { %v1579_v26 = vsel %vm395_vm0, %v1571_v25, 0.0 }
 0x6cd   : > { %1580 = vadd.xlane.f32.xlu0 %v1579_v26 }
 0x6cf   : > { %v1575_v51 = vpop.permute.xlu1 %1574  ;;  %v1573_v27 = vpop.permute.xlu0 %1572 }
 0x6d0   : > { %v1585_v20 = vsel %vm402_vm1, %v1575_v51, 0.0  ;;  %v1582_v54 = vsel %vm395_vm0, %v1573_v27, 0.0 }
 0x6d1   : > { %1586 = vadd.xlane.f32.xlu0 %v1585_v20  ;;  %1583 = vadd.xlane.f32.xlu1 %v1582_v54 }
 0x6e2   : > { %1687 = vrot.lane.b32.xlu1 %v2502_v29, %s2535_s11 }
 0x6e6   : > { %1600 = vrot.lane.b32.xlu1 %v2503_v31, %s2535_s11 }
 0x6e7   : > { %1693 = vrot.lane.b32.xlu0 %v2504_v39, %s2535_s11 }
 0x6ea   : > { %1606 = vrot.lane.b32.xlu1 %v2505_v36, %s2535_s11 }
 0x73b   : > { %v1409_v41 = vpop.xlane.xlu0 %1408 }
 0x73c   : > { %v1416_v33 = vsub.f32 %v1404_v37, %v1409_v41 }
 0x73d   : > { %v1412_v46 = vpop.xlane.xlu1 %1411 }
 0x73e   : > { %v1419_v5 = vmul.f32 1.442695, %v1416_v33  ;;  %v1417_v52 = vsub.f32 %v1405_v34, %v1412_v46 }
 0x73f   : > { %v1415_v3 = vpop.xlane.xlu0 %1414 }
 0x740   : > { %2466 = vpow2.f32 %v1419_v5  ;;  %v1418_v43 = vsub.f32 %v1406_v15, %v1415_v3  ;;  %v1421_v4 = vmul.f32 1.442695, %v1417_v52 }
 0x742   : > { %v1423_v56 = vmul.f32 1.442695, %v1418_v43 }
 0x744   : > { %2468 = vpow2.f32 %v1423_v56 }
 0x745   : > { %2470 = vpow2.f32 %v1421_v4 }
 0x74a   : > { %v3021_v57 = vpop.eup %2466 }
 0x74b   : > { %v1425_v55 = vsel %vm627_vm2, %v3021_v57, 0.0 }
 0x74c   : > { %1426 = vadd.xlane.f32.xlu1 %v1425_v55 }
 0x74e   : > { %v3025_v6 = vpop.eup %2468 }
 0x74f   : > { %v1431_v18 = vsel %vm634_vm3, %v3025_v6, 0.0  ;;  %v3029_v21 = vpop.eup %2470 }
 0x750   : > { %1432 = vadd.xlane.f32.xlu0 %v1431_v18  ;;  %v1428_v59 = vsel %vm627_vm2, %v3029_v21, 0.0 }
 0x752   : > { %v1668_v14 = vpop.xlane.xlu0 %1667 }
 0x753   : > { %v1675_v28 = vmul.f32 0.0625, %v1668_v14 }
 0x754   : > { %1429 = vadd.xlane.f32.xlu0 %v1428_v59 }
 0x755   : > { %v1678_v30 = vadd.f32 1e-05, %v1675_v28 }
 0x756   : > { %v1674_v60 = vpop.xlane.xlu1 %1673  ;;  %v1671_v11 = vpop.xlane.xlu0 %1670 }
 0x757   : > { %2472 = vrsqrt.f32 %v1678_v30  ;;  %v1677_v44 = vmul.f32 0.0625, %v1674_v60  ;;  %v1676_v0 = vmul.f32 0.0625, %v1671_v11 }
 0x759   : > { %v1680_v1 = vadd.f32 1e-05, %v1677_v44  ;;  %v1679_v61 = vadd.f32 1e-05, %v1676_v0 }
 0x75a   : > { %v1581_v2 = vpop.xlane.xlu0 %1580 }
 0x75b   : > { %2474 = vrsqrt.f32 %v1680_v1  ;;  %v1588_v40 = vmul.f32 0.0625, %v1581_v2 }
 0x75c   : > { %2476 = vrsqrt.f32 %v1679_v61 }
 0x75d   : > { %v1591_v7 = vadd.f32 1e-05, %v1588_v40  ;;  %1462 = vrot.lane.b32.xlu1 %v2807_v63, %s2532_s29 }
 0x75e   : > { %v1584_v37 = vpop.xlane.xlu1 %1583  ;;  %v1587_v12 = vpop.xlane.xlu0 %1586 }
 0x75f   : > { %2478 = vrsqrt.f32 %v1591_v7  ;;  %v1589_v49 = vmul.f32 0.0625, %v1584_v37  ;;  %v1590_v15 = vmul.f32 0.0625, %v1587_v12 }
 0x761   : > { %v2473_v34 = vpop.eup %2472  ;;  %v1592_v16 = vadd.f32 1e-05, %v1589_v49  ;;  %v1593_v17 = vadd.f32 1e-05, %v1590_v15 }
 0x762   : > { %v1688_v19 = vpop.permute.xlu1 %1687  ;;  %v1684_v48 = vmul.f32 %v2473_v34, %v2960_v35  ;;  %v1694_v22 = vpop.permute.xlu0 %1693 }
 0x763   : > { %2480 = vrsqrt.f32 %v1592_v16 }
 0x764   : > { %2482 = vrsqrt.f32 %v1593_v17  ;;  %v1690_v53 = vmul.f32 %v1688_v19, %v1684_v48 }
 0x765   : > { %v2475_v23 = vpop.eup %2474 }
 0x766   : > { %v2477_v24 = vpop.eup %2476  ;;  %v1686_v62 = vmul.f32 %v2475_v23, %v2967_v42  ;;  %v1696_v25 = vadd.f32 %v1694_v22, %v1690_v53  ;;  %v1601_v26 = vpop.permute.xlu1 %1600 }
 0x767   : > { %v1685_v51 = vmul.f32 %v2477_v24, %v2957_v32 }
 0x768   : > { %v1692_v27 = vmul.f32 %v1688_v19, %v1686_v62  ;;  %v1699_v20 = vmul.f32 9.119007, %v1696_v25 }
 0x769   : > { %v2479_v54 = vpop.eup %2478  ;;  %v1691_v29 = vmul.f32 %v1688_v19, %v1685_v51 }
 0x76a   : > { %v1698_v31 = vadd.f32 %v1694_v22, %v1692_v27  ;;  %v1597_v39 = vmul.f32 %v2479_v54, %v2974_v47  ;;  %1460 = vrot.lane.b32.xlu0 %v2802_v50, %s2532_s29  ;;  %v1705_v36 = vmax.f32 %v1699_v20, -8.0  ;;  %v1607_v41 = vpop.permute.xlu1 %1606 }
 0x76b   : > { %v1697_v35 = vadd.f32 %v1694_v22, %v1691_v29 }
 0x76c   : > { %v1701_v33 = vmul.f32 9.119007, %v1698_v31  ;;  %v1603_v46 = vmul.f32 %v1601_v26, %v1597_v39  ;;  %v1708_v56 = vmin.f32 %v1705_v36, 7.0 }
 0x76d   : > { %v2481_v42 = vpop.eup %2480  ;;  %v1700_v5 = vmul.f32 9.119007, %v1697_v35 }
 0x76e   : > { %v2483_v52 = vpop.eup %2482  ;;  %v1707_v3 = vmax.f32 %v1701_v33, -8.0  ;;  %v1598_v32 = vmul.f32 %v2481_v42, %v2985_v58  ;;  %v1609_v43 = vadd.f32 %v1607_v41, %v1603_v46  ;;  %v2319_v11 = vround.rtne.f32 %v1708_v56 }
 0x76f   : > { %v1706_v4 = vmax.f32 %v1700_v5, -8.0  ;;  %v1599_v55 = vmul.f32 %v2483_v52, %v2978_v38 }
 0x770   : > { %v1604_v47 = vmul.f32 %v1601_v26, %v1598_v32  ;;  %v1612_v18 = vmul.f32 8.666576, %v1609_v43  ;;  %v1710_v59 = vmin.f32 %v1707_v3, 7.0 }
 0x771   : > { %v1709_v14 = vmin.f32 %v1706_v4, 7.0  ;;  %v1605_v28 = vmul.f32 %v1601_v26, %v1599_v55 }
 0x772   : > { %v1610_v30 = vadd.f32 %v1607_v41, %v1604_v47  ;;  %v1618_v60 = vmax.f32 %v1612_v18, -8.0  ;;  %v2321_v61 = vround.rtne.f32 %v1710_v59 }
 0x773   : > { %v2320_v44 = vround.rtne.f32 %v1709_v14  ;;  %v1611_v0 = vadd.f32 %v1607_v41, %v1605_v28 }
 0x774   : > { %v1613_v1 = vmul.f32 8.666576, %v1610_v30  ;;  %v1621_v7 = vmin.f32 %v1618_v60, 7.0  ;;  %v1717_v12 = vpack.c.bf16 %v2321_v61, %v2321_v61 }
 0x775   : > { %v1614_v2 = vmul.f32 8.666576, %v1611_v0  ;;  %v1716_v40 = vpack.c.bf16 %v2320_v44, %v2319_v11 }
 0x776   : > { %v1619_v58 = vmax.f32 %v1613_v1, -8.0  ;;  %v2316_v15 = vround.rtne.f32 %v1621_v7 }
 0x777   : > { %v1620_v37 = vmax.f32 %v1614_v2, -8.0  ;;  %1726 = vrot.lane.b32.xlu1 %v1716_v40, %s2534_s8 }
 0x778   : > { %v1622_v38 = vmin.f32 %v1619_v58, 7.0 }
 0x779   : > { %v1623_v49 = vmin.f32 %v1620_v37, 7.0 }
 0x77a   : > { %v2317_v34 = vround.rtne.f32 %v1622_v38 }
 0x77b   : > { %v2318_v16 = vround.rtne.f32 %v1623_v49  ;;  %1728 = vrot.lane.b32.xlu1 %v1717_v12, %s2534_s8 }
 0x77c   : > { %v1714_v17 = vpack.c.bf16 %v2317_v34, %v2316_v15 }
 0x77d   : > { %v1715_v19 = vpack.c.bf16 %v2318_v16, %v2318_v16 }
 0x77e   : > { %1720 = vrot.lane.b32.xlu0 %v1714_v17, %s2534_s8 }
 0x77f   : > { %1722 = vrot.lane.b32.xlu1 %v1715_v19, %s2534_s8 }
 0x7d9   : > { %v1427_v48 = vpop.xlane.xlu1 %1426 }
 0x7da   : > { %2484 = vrcp.f32 %v1427_v48 }
 0x7dd   : > { %v1433_v22 = vpop.xlane.xlu0 %1432  ;;  %v1463_v23 = vpop.permute.xlu1 %1462 }
 0x7de   : > { %2486 = vrcp.f32 %v1433_v22  ;;  %v1472_v27 = vsel %vm690_vm4, %v1463_v23, 0 }
 0x7e1   : > { %v1430_v53 = vpop.xlane.xlu0 %1429 }
 0x7e2   : > { %2488 = vrcp.f32 %v1430_v53 }
 0x7e4   : > { %v2485_v24 = vpop.eup %2484 }
 0x7e5   : > { %v1437_v62 = vmul.f32 %v2485_v24, %v3021_v57  ;;  %v1461_v25 = vpop.permute.xlu0 %1460 }
 0x7e6   : > { %2231 = vmatprep.subr.bf16.mxu1 %v1461_v25 }
 0x7e7   : > { %2232 = vmatpush3.bf16.msra.mxu1 %v1461_v25  ;;  %v1440_v26 = vmul.f32 9.519897, %v1437_v62 }
 0x7e8   : > { %v2487_v51 = vpop.eup %2486  ;;  %2263 = vmatprep.subr.msk.bf16.mxu1 %vm690_vm4, %v1463_v23 }
 0x7e9   : > { %v1439_v20 = vmul.f32 %v2487_v51, %v3025_v6  ;;  %v1727_v54 = vpop.permute.xlu1 %1726  ;;  %v1446_v31 = vmax.f32 %v1440_v26, -8.0 }
 0x7ea   : > { %v1737_v55 = vsel %vm395_vm0, %v1727_v54, 0 }
 0x7eb   : > { %v1442_v29 = vmul.f32 9.519897, %v1439_v20  ;;  %2234 = vmatpush3.bf16.msra.mxu1 %v1472_v27  ;;  %v1449_v33 = vmin.f32 %v1446_v31, 7.0 }
 0x7ec   : > { %v2489_v39 = vpop.eup %2488  ;;  %2264 = vmatprep.subr.msk.bf16.mxu1 %vm395_vm0, %v1727_v54 }
 0x7ed   : > { %v1448_v35 = vmax.f32 %v1442_v29, -8.0  ;;  %v1438_v57 = vmul.f32 %v2489_v39, %v3029_v21  ;;  %v2307_v52 = vround.rtne.f32 %v1449_v33  ;;  %v1729_v21 = vpop.permute.xlu1 %1728 }
 0x7ee   : > { %v1740_v18 = vsel %vm395_vm0, %v1729_v21, 0 }
 0x7ef   : > { %v1451_v36 = vmin.f32 %v1448_v35, 7.0  ;;  %v1441_v41 = vmul.f32 9.519897, %v1438_v57  ;;  %v2310_v6 = vround.rtne.f32 %v2307_v52 }
 0x7f0   : > { %v1721_v47 = vpop.permute.xlu0 %1720 }
 0x7f1   : > { %v1447_v46 = vmax.f32 %v1441_v41, -8.0  ;;  %v2309_v42 = vround.rtne.f32 %v1451_v36  ;;  %v1723_v14 = vpop.permute.xlu1 %1722  ;;  %v1138_v41 = vmul.f32 0.011241163, %v2992_v13 }
 0x7f3   : > { %v1450_v5 = vmin.f32 %v1447_v46, 7.0  ;;  %v2312_v32 = vround.rtne.f32 %v2309_v42  ;;  %v1141_v33 = vmul.f32 9.068083, %v1138_v41 }
 0x7f5   : > { %v2308_v3 = vround.rtne.f32 %v1450_v5  ;;  %v1459_v56 = vpack.c.bf16 %v2312_v32, %v2312_v32  ;;  %v1147_v42 = vmax.f32 %v1141_v33, -8.0  ;;  %v742_v33 = vmul.f32 0.011241163, %v2882_v9 }
 0x7f7   : > { %v2311_v43 = vround.rtne.f32 %v2308_v3  ;;  %v1150_v52 = vmin.f32 %v1147_v42, 7.0 }
 0x7f9   : > { %v1458_v4 = vpack.c.bf16 %v2311_v43, %v2310_v6  ;;  %v2300_v32 = vround.rtne.f32 %v1150_v52 }
 0x7fb   : > { %2235 = vmatprep.mubr.msk.bf16.mxu1 %vm627_vm2, %v1458_v4 }
 0x7fc   : > { %2236 = vmatmul.mubr.msk.bf16.vlgmr.msra.gmra.mrb[8].mxu1 %vm627_vm2, %v1459_v56 }
 0x7fd   : > { %2240 = vmatpush3.bf16.xpose.msra.mxu1 %v1737_v55  ;;  %2243 = vmatprep.mubr.msk.bf16.mxu1 %vm395_vm0, %v1721_v47 }
 0x7fe   : > { %2265 = vmatprep.subr.msk.bf16.mxu1 %vm395_vm0, %v1729_v21 }
 0x805   : > { %2242 = vmatpush3.bf16.xpose.msra.mxu1 %v1740_v18 }
 0x80c   : > { %2244 = vmatmul.mubr.msk.bf16.vlgmr.msra.gmra.mrb[12].mxu1 %vm395_vm0, %v1723_v14 }
 0x8cf   : > { %v2237_v59 = vpop.f32.mrb[8].mxu1 }
 0x8d0   : > { %v1508_v28 = vpop.f32.mrb[9].mxu1  ;;  %v1524_v46 = vmul.f32 0.011241163, %v2237_v59 }
 0x8d1   : > { %v1522_v30 = vmul.f32 0.011241163, %v1508_v28  ;;  %v2238_v60 = vpop.f32.mrb[10].mxu1 }
 0x8d2   : > { %v1511_v11 = vpop.f32.mrb[11].mxu1  ;;  %v1527_v5 = vmul.f32 9.068083, %v1524_v46  ;;  %v743_v46 = vmul.f32 0.011241163, %v2884_v10 }
 0x8d3   : > { %v1525_v44 = vmul.f32 9.068083, %v1522_v30  ;;  %v1523_v0 = vmul.f32 0.011241163, %v1511_v11 }
 0x8d4   : > { %v1533_v3 = vmax.f32 %v1527_v5, -8.0  ;;  %v745_v5 = vmul.f32 9.068083, %v742_v33  ;;  %v746_v52 = vmul.f32 9.068083, %v743_v46 }
 0x8d5   : > { %v1531_v1 = vmax.f32 %v1525_v44, -8.0  ;;  %v1526_v61 = vmul.f32 9.068083, %v1523_v0 }
 0x8d6   : > { %v1536_v6 = vmin.f32 %v1533_v3, 7.0 }
 0x8d7   : > { %v1534_v2 = vmin.f32 %v1531_v1, 7.0  ;;  %v1532_v40 = vmax.f32 %v1526_v61, -8.0 }
 0x8d8   : > { %v2315_v13 = vround.rtne.f32 %v1536_v6  ;;  %v751_v6 = vmax.f32 %v745_v5, -8.0 }
 0x8d9   : > { %v1535_v58 = vmin.f32 %v1532_v40, 7.0  ;;  %v2313_v7 = vround.rtne.f32 %v1534_v2 }
 0x8db   : > { %v2314_v37 = vround.rtne.f32 %v1535_v58 }
 0x8dd   : > { %v2396_v38 = vpack.i.bf16 %v2314_v37, %v2313_v7 }
 0x8df   : > { %v2245_v12 = vpop.f32.mrb[12].mxu1 }
 0x8e0   : > { %v1776_v49 = vpop.f32.mrb[13].mxu1  ;;  %v1792_v17 = vmul.f32 0.0031633326, %v2245_v12 }
 0x8e1   : > { %v1790_v15 = vmul.f32 0.0031633326, %v1776_v49  ;;  %v2246_v34 = vpop.f32.mrb[14].mxu1 }
 0x8e2   : > { %v1779_v16 = vpop.f32.mrb[15].mxu1  ;;  %v1799_v53 = vsel %vm634_vm3, %v1792_v17, -inf }
 0x8e3   : > { %v1791_v19 = vmul.f32 0.0031633326, %v1779_v16  ;;  %v1793_v48 = vsel %vm627_vm2, %v1790_v15, -inf }
 0x8e4   : > { %1794 = vmax.xlane.f32.xlu0 %v1793_v48 }
 0x8e5   : > { %v1796_v22 = vsel %vm627_vm2, %v1791_v19, -inf }
 0x8e6   : > { %1797 = vmax.xlane.f32.xlu1 %v1796_v22 }
 0x8e8   : > { %1800 = vmax.xlane.f32.xlu0 %v1799_v53 }
 0x971   : > { %v1795_v23 = vpop.xlane.xlu0 %1794 }
 0x972   : > { %v1802_v24 = vsub.f32 %v1790_v15, %v1795_v23 }
 0x973   : > { %v1798_v62 = vpop.xlane.xlu1 %1797 }
 0x974   : > { %v1805_v25 = vmul.f32 1.442695, %v1802_v24  ;;  %v1803_v26 = vsub.f32 %v1791_v19, %v1798_v62 }
 0x975   : > { %v1801_v51 = vpop.xlane.xlu0 %1800 }
 0x976   : > { %2490 = vpow2.f32 %v1805_v25  ;;  %v1807_v27 = vmul.f32 1.442695, %v1803_v26  ;;  %v1804_v20 = vsub.f32 %v1792_v17, %v1801_v51 }
 0x978   : > { %2492 = vpow2.f32 %v1807_v27  ;;  %v1809_v54 = vmul.f32 1.442695, %v1804_v20 }
 0x97a   : > { %2494 = vpow2.f32 %v1809_v54 }
 0x980   : > { %v2491_v29 = vpop.eup %2490 }
 0x981   : > { %v1811_v31 = vsel %vm627_vm2, %v2491_v29, 0.0 }
 0x982   : > { %v2493_v39 = vpop.eup %2492  ;;  %1812 = vadd.xlane.f32.xlu0 %v1811_v31 }
 0x983   : > { %v1814_v36 = vsel %vm627_vm2, %v2493_v39, 0.0 }
 0x984   : > { %v2495_v35 = vpop.eup %2494 }
 0x985   : > { %v1817_v57 = vsel %vm634_vm3, %v2495_v35, 0.0 }
 0x986   : > { %1818 = vadd.xlane.f32.xlu1 %v1817_v57  ;;  %1815 = vadd.xlane.f32.xlu0 %v1814_v36  ;;  %v744_v57 = vmul.f32 0.011241163, %v2880_v8 }
 0x988   : > { %v747_v41 = vmul.f32 9.068083, %v744_v57 }
 0x98a   : > { %v753_v42 = vmax.f32 %v747_v41, -8.0 }
 0x997   : > { %1848 = vrot.lane.b32.xlu1 %v2807_v63, %s2534_s8 }
 0x99b   : > { %2392 = vrot.lane.b32.xlu1 %v2994_v45, %s2531_s21 }
 0x99c   : > { %1846 = vrot.lane.b32.xlu0 %v2802_v50, %s2534_s8 }
 0x99f   : > { %1933 = vrot.lane.b32.xlu1 %v2300_v32, %s2531_s21  ;;  %v756_v32 = vmin.f32 %v753_v42, 7.0 }
 0x9a0   : > { %2397 = vrot.lane.b32.xlu0 %v2396_v38, %s2533_s30 }
 0x9a3   : > { %1945 = vrot.lane.b32.xlu1 %v2315_v13, %s2533_s30  ;;  %v752_v13 = vmax.f32 %v746_v52, -8.0 }
 0xa0f   : > { %v1813_v43 = vpop.xlane.xlu0 %1812 }
 0xa10   : > { %2496 = vrcp.f32 %v1813_v43 }
 0xa13   : > { %v1816_v63 = vpop.xlane.xlu0 %1815  ;;  %v1819_v4 = vpop.xlane.xlu1 %1818 }
 0xa14   : > { %2498 = vrcp.f32 %v1816_v63  ;;  %v2285_v63 = vround.rtne.f32 %v756_v32 }
 0xa15   : > { %2500 = vrcp.f32 %v1819_v4  ;;  %v754_v4 = vmin.f32 %v751_v6, 7.0 }
 0xa17   : > { %v1847_v56 = vpop.permute.xlu0 %1846  ;;  %v1849_v45 = vpop.permute.xlu1 %1848 }
 0xa18   : > { %2247 = vmatprep.subr.bf16.mxu0 %v1847_v56  ;;  %v1858_v55 = vsel %vm690_vm4, %v1849_v45, 0 }
 0xa19   : > { %2248 = vmatpush3.bf16.msra.mxu0 %v1847_v56  ;;  %v755_v56 = vmin.f32 %v752_v13, 7.0 }
 0xa1a   : > { %v2497_v50 = vpop.eup %2496  ;;  %2266 = vmatprep.subr.msk.bf16.mxu0 %vm690_vm4, %v1849_v45 }
 0xa1b   : > { %v1823_v47 = vmul.f32 %v2497_v50, %v2491_v29  ;;  %v2393_v36 = vpop.permute.xlu1 %2392  ;;  %v2398_v45 = vpop.permute.xlu0 %2397 }
 0xa1c   : > { %v2395_v9 = vunpack.i.h.bf16 %v2393_v36  ;;  %v2394_v50 = vunpack.i.l.bf16 %v2393_v36 }
 0xa1d   : > { %2250 = vmatpush3.bf16.msra.mxu0 %v1858_v55  ;;  %v1826_v21 = vmul.f32 9.519897, %v1823_v47 }
 0xa1e   : > { %v2499_v18 = vpop.eup %2498 }
 0xa1f   : > { %v2501_v14 = vpop.eup %2500  ;;  %v1824_v59 = vmul.f32 %v2499_v18, %v2493_v39  ;;  %v1832_v28 = vmax.f32 %v1826_v21, -8.0  ;;  %v1934_v3 = vpop.permute.xlu1 %1933  ;;  %v2283_v21 = vround.rtne.f32 %v754_v4  ;;  %v2284_v18 = vround.rtne.f32 %v755_v56 }
 0xa20   : > { %v1825_v30 = vmul.f32 %v2501_v14, %v2495_v35  ;;  %v1964_v8 = vsel %vm395_vm0, %v2285_v63, %v1934_v3 }
 0xa21   : > { %v1827_v60 = vmul.f32 9.519897, %v1824_v59  ;;  %v1835_v11 = vmin.f32 %v1832_v28, 7.0  ;;  %v2400_v59 = vunpack.i.h.bf16 %v2398_v45  ;;  %v2399_v28 = vunpack.i.l.bf16 %v2398_v45 }
 0xa22   : > { %v1828_v44 = vmul.f32 9.519897, %v1825_v30  ;;  %v1963_v30 = vsel %vm395_vm0, %v2284_v18, %v2395_v9 }
 0xa23   : > { %v1833_v0 = vmax.f32 %v1827_v60, -8.0  ;;  %v2322_v2 = vround.rtne.f32 %v1835_v11  ;;  %v1946_v43 = vpop.permute.xlu1 %1945  ;;  %v1962_v60 = vsel %vm395_vm0, %v2283_v21, %v2394_v50 }
 0xa24   : > { %v1834_v1 = vmax.f32 %v1828_v44, -8.0  ;;  %v1968_v10 = vsel %vm1965_vm6, %v1964_v8, %v1946_v43 }
 0xa25   : > { %v1836_v61 = vmin.f32 %v1833_v0, 7.0  ;;  %v2325_v37 = vround.rtne.f32 %v2322_v2 }
 0xa26   : > { %v1837_v40 = vmin.f32 %v1834_v1, 7.0  ;;  %v1966_v1 = vsel %vm1965_vm6, %v1962_v60, %v2399_v28 }
 0xa27   : > { %v2323_v58 = vround.rtne.f32 %v1836_v61  ;;  %v1967_v61 = vsel %vm1965_vm6, %v1963_v30, %v2400_v59 }
 0xa28   : > { %v2324_v7 = vround.rtne.f32 %v1837_v40 }
 0xa29   : > { %v2326_v38 = vround.rtne.f32 %v2323_v58 }
 0xa2a   : > { %v2327_v12 = vround.rtne.f32 %v2324_v7 }
 0xa2b   : > { %v1844_v49 = vpack.c.bf16 %v2326_v38, %v2325_v37 }
 0xa2c   : > { %v1845_v15 = vpack.c.bf16 %v2327_v12, %v2327_v12 }
 0xa2d   : > { %2251 = vmatprep.mubr.msk.bf16.mxu0 %vm627_vm2, %v1844_v49 }
 0xa2e   : > { %2252 = vmatmul.mubr.msk.bf16.vlgmr.msra.gmra.mrb[12].mxu0 %vm627_vm2, %v1845_v15 }
 0xb01   : > { %v2253_v34 = vpop.f32.mrb[12].mxu0 }
 0xb02   : > { %v1910_v16 = vmul.f32 0.011241163, %v2253_v34  ;;  %v1894_v17 = vpop.f32.mrb[13].mxu0 }
 0xb03   : > { %v1908_v19 = vmul.f32 0.011241163, %v1894_v17  ;;  %v2254_v48 = vpop.f32.mrb[14].mxu0 }
 0xb04   : > { %v1913_v22 = vmul.f32 9.068083, %v1910_v16  ;;  %v1897_v53 = vpop.f32.mrb[15].mxu0 }
 0xb05   : > { %v1911_v23 = vmul.f32 9.068083, %v1908_v19  ;;  %v1909_v24 = vmul.f32 0.011241163, %v1897_v53 }
 0xb06   : > { %v1919_v62 = vmax.f32 %v1913_v22, -8.0 }
 0xb07   : > { %v1917_v25 = vmax.f32 %v1911_v23, -8.0  ;;  %v1912_v26 = vmul.f32 9.068083, %v1909_v24 }
 0xb08   : > { %v1922_v51 = vmin.f32 %v1919_v62, 7.0 }
 0xb09   : > { %v1920_v27 = vmin.f32 %v1917_v25, 7.0  ;;  %v1918_v20 = vmax.f32 %v1912_v26, -8.0 }
 0xb0a   : > { %v2330_v54 = vround.rtne.f32 %v1922_v51 }
 0xb0b   : > { %v1921_v29 = vmin.f32 %v1918_v20, 7.0  ;;  %v2328_v31 = vround.rtne.f32 %v1920_v27 }
 0xb0c   : > { %1957 = vrot.lane.b32.xlu1 %v2330_v54, %s2535_s11 }
 0xb0d   : > { %v2329_v39 = vround.rtne.f32 %v1921_v29 }
 0xb0f   : > { %v2401_v35 = vpack.i.bf16 %v2329_v39, %v2328_v31 }
 0xb11   : > { %2402 = vrot.lane.b32.xlu0 %v2401_v35, %s2535_s11 }
 0xb7e   : > { %v1958_v55 = vpop.permute.xlu1 %1957 }
 0xb7f   : > { %v1972_v47 = vsel %vm1969_vm5, %v1968_v10, %v1958_v55 }
 0xb80   : > { %v2146_v14 = vpack.c.bf16 %v1972_v47, %v1972_v47 }
 0xb82   : > { %1990 = vst.msk [vmem:[%s371_s20 + $0x8] sm:$0x1] %vm1989_vm7, %v2146_v14 }
 0xb83   : > { %v2403_v11 = vpop.permute.xlu0 %2402 }
 0xb84   : > { %v2405_v44 = vunpack.i.h.bf16 %v2403_v11  ;;  %v2404_v0 = vunpack.i.l.bf16 %v2403_v11 }
 0xb86   : > { %v1970_v2 = vsel %vm1969_vm5, %v1966_v1, %v2404_v0  ;;  %v1971_v40 = vsel %vm1969_vm5, %v1967_v61, %v2405_v44 }
 0xb87   : > { %v2144_v58 = vpack.c.bf16 %v1970_v2, %v1970_v2  ;;  %v2145_v7 = vpack.c.bf16 %v1971_v40, %v1971_v40 }
 0xb89   : > { %1987 = vst.msk [vmem:[%s371_s20] sm:$0xf] %vm1986_vm8, %v2144_v58  ;;  %1988 = vst.msk [vmem:[%s371_s20 + $0x4] sm:$0xf] %vm1986_vm8, %v2145_v7 }
 0xb8a PF: > { %s17_s26 = sadd.s32 1, %s2528_s26   ;;  %s3115_s24 = smov %s2524_s25 }
 0xb8b   : > { %p14_p5 = scmp.ge.s32.totalorder %s17_s26, 4   ;;  %s3116_s25 = smov %s3118_s27 }
 0xb8d   :  { %16 = sbr.rel (!%p14_p5) target bundleno = 2 (0x2), region = 84 }

</bundles_post_ra>
